<compile_context>
chip_gen: v5e
topology: v5e:2x2
jax: 0.10.0
libtpu: 0.0.40
codegen_flags: <defaults>
</compile_context>

<pallas_src>
import functools
import math

import jax
import jax.numpy as jnp
from jax.experimental import pallas as pl
from jax.experimental.pallas import tpu as pltpu


SEG_HEAD_NUM = 6                 # hardcoded in LongAxisSelfAttention.forward
_VMEM_LIMIT = 64 * 1024 * 1024   # explicit scoped-VMEM budget (raise over v5e/v6e defaults)
_NEG_INF = -1e30


# ---------------------------------------------------------------------------
# Helpers
# ---------------------------------------------------------------------------

def _pick_tile(dim, target, granule):
    """Largest tile <= target that divides dim (multiple of granule), else dim."""
    if dim <= target:
        return dim
    t = (target // granule) * granule
    while t >= granule:
        if dim % t == 0:
            return t
        t -= granule
    return dim


def _erf_approx(x):
    """Abramowitz & Stegun 7.1.26 erf approximation, |err| < 1.5e-7 (f32 ops only)."""
    ax = jnp.abs(x)
    t = 1.0 / (1.0 + 0.3275911 * ax)
    poly = t * (0.254829592 + t * (-0.284496736 + t * (1.421413741
                + t * (-1.453152027 + t * 1.061405429))))
    y = 1.0 - poly * jnp.exp(-(ax * ax))
    return jnp.where(x >= 0, y, -y)


def _gelu_exact(x):
    return 0.5 * x * (1.0 + _erf_approx(x * (1.0 / math.sqrt(2.0))))


# ---------------------------------------------------------------------------
# Tiled linear (+ optional exact GELU).  bf16 operands, f32 accumulation.
# ---------------------------------------------------------------------------

def _matmul_kernel(x_ref, w_ref, b_ref, o_ref, acc_ref, *, act):
    k = pl.program_id(2)

    @pl.when(k == 0)
    def _():
        acc_ref[...] = jnp.zeros_like(acc_ref)

    acc_ref[...] += jnp.dot(x_ref[...], w_ref[...],
                            preferred_element_type=jnp.float32)

    @pl.when(k == pl.num_programs(2) - 1)
    def _():
        y = acc_ref[...] + b_ref[...]
        if act == "gelu":
            y = _gelu_exact(y)
        o_ref[...] = y.astype(o_ref.dtype)


def linear_pallas(x, w, b, act=None, out_dtype=None, *, tm=512, tn=256, tk=512):
    """x: [M, K] (bf16), w: [K, N] (bf16), b: [N] (f32) -> [M, N]."""
    M, K = x.shape
    N = w.shape[1]
    out_dtype = out_dtype or x.dtype
    tm = _pick_tile(M, tm, 16)      # bf16 sublane granule
    tn = _pick_tile(N, tn, 128)
    tk = _pick_tile(K, tk, 128)
    grid = (M // tm, N // tn, K // tk)
    return pl.pallas_call(
        functools.partial(_matmul_kernel, act=act),
        grid=grid,
        in_specs=[
            pl.BlockSpec((tm, tk), lambda i, j, k: (i, k)),
            pl.BlockSpec((tk, tn), lambda i, j, k: (k, j)),
            pl.BlockSpec((1, tn), lambda i, j, k: (0, j)),
        ],
        out_specs=pl.BlockSpec((tm, tn), lambda i, j, k: (i, j)),
        out_shape=jax.ShapeDtypeStruct((M, N), out_dtype),
        scratch_shapes=[pltpu.VMEM((tm, tn), jnp.float32)],
        compiler_params=pltpu.CompilerParams(
            dimension_semantics=("parallel", "parallel", "arbitrary"),
            vmem_limit_bytes=_VMEM_LIMIT),
    )(x, w, b.reshape(1, N).astype(jnp.float32))


# ---------------------------------------------------------------------------
# Tiled linear fused with (bias + residual + LayerNorm) epilogue.
# Residual / LN params / output stay f32.
# ---------------------------------------------------------------------------

def _matmul_add_ln_kernel(x_ref, w_ref, b_ref, r_ref, g_ref, bb_ref,
                          o_ref, acc_ref, *, eps):
    k = pl.program_id(1)

    @pl.when(k == 0)
    def _():
        acc_ref[...] = jnp.zeros_like(acc_ref)

    acc_ref[...] += jnp.dot(x_ref[...], w_ref[...],
                            preferred_element_type=jnp.float32)

    @pl.when(k == pl.num_programs(1) - 1)
    def _():
        y = acc_ref[...] + b_ref[...] + r_ref[...]
        mean = jnp.mean(y, axis=-1, keepdims=True)
        var = jnp.mean(jnp.square(y - mean), axis=-1, keepdims=True)
        ynorm = (y - mean) * jax.lax.rsqrt(var + eps)
        o_ref[...] = (ynorm * g_ref[...] + bb_ref[...]).astype(o_ref.dtype)


def linear_add_ln_pallas(x, w, b, residual, gamma, beta, eps, *, tm=512, tk=512):
    """LayerNorm(x @ w + b + residual).  x/w bf16, residual f32, out f32."""
    M, K = x.shape
    N = w.shape[1]
    tm = _pick_tile(M, tm, 16)
    tk = _pick_tile(K, tk, 128)
    grid = (M // tm, K // tk)
    return pl.pallas_call(
        functools.partial(_matmul_add_ln_kernel, eps=eps),
        grid=grid,
        in_specs=[
            pl.BlockSpec((tm, tk), lambda i, k: (i, k)),
            pl.BlockSpec((tk, N), lambda i, k: (k, 0)),
            pl.BlockSpec((1, N), lambda i, k: (0, 0)),
            pl.BlockSpec((tm, N), lambda i, k: (i, 0)),
            pl.BlockSpec((1, N), lambda i, k: (0, 0)),
            pl.BlockSpec((1, N), lambda i, k: (0, 0)),
        ],
        out_specs=pl.BlockSpec((tm, N), lambda i, k: (i, 0)),
        out_shape=jax.ShapeDtypeStruct((M, N), jnp.float32),
        scratch_shapes=[pltpu.VMEM((tm, N), jnp.float32)],
        compiler_params=pltpu.CompilerParams(
            dimension_semantics=("parallel", "arbitrary"),
            vmem_limit_bytes=_VMEM_LIMIT),
    )(x, w, b.reshape(1, N).astype(jnp.float32), residual,
      gamma.reshape(1, N).astype(jnp.float32),
      beta.reshape(1, N).astype(jnp.float32))


# ---------------------------------------------------------------------------
# Fused FFN: LayerNorm(gelu(h @ Wi + bi) @ Wo + bo + h)
# The [tm, ti] intermediate lives only in VMEM (never written to HBM).
# ---------------------------------------------------------------------------

def _ffn_kernel(h_ref, wi_ref, bi_ref, wo_ref, bo_ref, r_ref, g_ref, bb_ref,
                o_ref, acc_ref, *, eps):
    i = pl.program_id(1)

    @pl.when(i == 0)
    def _():
        acc_ref[...] = jnp.zeros_like(acc_ref)

    inter = jnp.dot(h_ref[...], wi_ref[...], preferred_element_type=jnp.float32)
    inter = _gelu_exact(inter + bi_ref[...])
    acc_ref[...] += jnp.dot(inter.astype(h_ref.dtype), wo_ref[...],
                            preferred_element_type=jnp.float32)

    @pl.when(i == pl.num_programs(1) - 1)
    def _():
        y = acc_ref[...] + bo_ref[...] + r_ref[...]
        mean = jnp.mean(y, axis=-1, keepdims=True)
        var = jnp.mean(jnp.square(y - mean), axis=-1, keepdims=True)
        ynorm = (y - mean) * jax.lax.rsqrt(var + eps)
        o_ref[...] = (ynorm * g_ref[...] + bb_ref[...]).astype(o_ref.dtype)


def ffn_add_ln_pallas(h_bf16, wi, bi, wo, bo, residual, gamma, beta, eps,
                      *, tm=256, ti=512):
    """h: [M, Hd] bf16; wi: [Hd, I] bf16; wo: [I, Hd] bf16; residual f32; out f32."""
    M, Hd = h_bf16.shape
    I = wi.shape[1]
    tm = _pick_tile(M, tm, 16)
    ti = _pick_tile(I, ti, 128)
    grid = (M // tm, I // ti)
    return pl.pallas_call(
        functools.partial(_ffn_kernel, eps=eps),
        grid=grid,
        in_specs=[
            pl.BlockSpec((tm, Hd), lambda m, i: (m, 0)),    # h (bf16 operand)
            pl.BlockSpec((Hd, ti), lambda m, i: (0, i)),    # Wi
            pl.BlockSpec((1, ti), lambda m, i: (0, i)),     # bi
            pl.BlockSpec((ti, Hd), lambda m, i: (i, 0)),    # Wo
            pl.BlockSpec((1, Hd), lambda m, i: (0, 0)),     # bo
            pl.BlockSpec((tm, Hd), lambda m, i: (m, 0)),    # residual (f32)
            pl.BlockSpec((1, Hd), lambda m, i: (0, 0)),     # gamma
            pl.BlockSpec((1, Hd), lambda m, i: (0, 0)),     # beta
        ],
        out_specs=pl.BlockSpec((tm, Hd), lambda m, i: (m, 0)),
        out_shape=jax.ShapeDtypeStruct((M, Hd), jnp.float32),
        scratch_shapes=[pltpu.VMEM((tm, Hd), jnp.float32)],
        compiler_params=pltpu.CompilerParams(
            dimension_semantics=("parallel", "arbitrary"),
            vmem_limit_bytes=_VMEM_LIMIT),
    )(h_bf16, wi, bi.reshape(1, I).astype(jnp.float32), wo,
      bo.reshape(1, Hd).astype(jnp.float32), residual,
      gamma.reshape(1, Hd).astype(jnp.float32),
      beta.reshape(1, Hd).astype(jnp.float32))


# ---------------------------------------------------------------------------
# LongAxis self-attention.
# grid = (batch, head_group); each group is a lane-dense 128-wide column slab
# of heads.  q/k/v are three BlockSpec views of the fused qkv tensor.  The
# "four-axis" (stride-4) heads use an additive phase mask (i%4 == j%4) on the
# scores, which is exactly equivalent to the per-phase softmax of the PyTorch
# module and keeps all loads/stores lane-dense with no row relayouts.
# ---------------------------------------------------------------------------

def _longaxis_attn_kernel(q_ref, k_ref, v_ref, o_ref, *,
                          heads_per_group, head_dim, seg, scale):
    g = pl.program_id(1)
    S = q_ref.shape[1]

    # Phase mask: rows may attend columns of the same phase (i%4 == j%4).
    ri = jax.lax.broadcasted_iota(jnp.int32, (S, S), 0)
    ci = jax.lax.broadcasted_iota(jnp.int32, (S, S), 1)
    neg_bias = jnp.where((ri & 3) == (ci & 3),
                         jnp.float32(0.0), jnp.float32(_NEG_INF))

    ctxs = []
    for j in range(heads_per_group):
        c0 = j * head_dim
        q = q_ref[0, :, c0:c0 + head_dim]                 # bf16 [S, D]
        k = k_ref[0, :, c0:c0 + head_dim]
        v = v_ref[0, :, c0:c0 + head_dim]
        # QK^T with trans_b semantics; bf16 operands, f32 accumulation.
        s = jax.lax.dot_general(q, k, (((1,), (1,)), ((), ())),
                                preferred_element_type=jnp.float32) * scale
        # Heads >= seg use four-axis (stride-4) attention -> apply phase mask.
        is_axis = (g * heads_per_group + j >= seg).astype(jnp.float32)
        s = s + is_axis * neg_bias
        s = s - jnp.max(s, axis=-1, keepdims=True)
        p = jnp.exp(s)
        p = p / jnp.sum(p, axis=-1, keepdims=True)        # exact division
        ctxs.append(jnp.dot(p.astype(v.dtype), v,
                            preferred_element_type=jnp.float32))
    # Single lane-dense store of the whole head-group context slab.
    o_ref[0, :, :] = jnp.concatenate(ctxs, axis=-1).astype(o_ref.dtype)
    # TODO(synk): for long S, specialize axis heads to per-phase (S/4)^2 block
    # matmuls and tile the full heads flash-style (q-tile x kv-tile online
    # softmax) so score blocks stay small on v7x's 64 MiB VMEM.


def longaxis_attention_pallas(qkv, num_heads, head_dim):
    """qkv: [B, S, 3*H*D] (bf16, columns [q|k|v]) -> context [B, S, H*D]."""
    B, S, C = qkv.shape
    Hd = num_heads * head_dim
    assert C == 3 * Hd and S % 4 == 0
    if Hd % 128 == 0 and 128 % head_dim == 0:
        W = 128                       # lane-dense head group width
    else:
        W = Hd                        # fallback: all heads in one group
    ng = Hd // W
    G = W // head_dim
    scale = 1.0 / math.sqrt(head_dim)
    kern = functools.partial(_longaxis_attn_kernel, heads_per_group=G,
                             head_dim=head_dim, seg=SEG_HEAD_NUM, scale=scale)
    return pl.pallas_call(
        kern,
        grid=(B, ng),
        in_specs=[
            pl.BlockSpec((1, S, W), lambda b, g: (b, 0, g)),           # q group
            pl.BlockSpec((1, S, W), lambda b, g: (b, 0, ng + g)),      # k group
            pl.BlockSpec((1, S, W), lambda b, g: (b, 0, 2 * ng + g)),  # v group
        ],
        out_specs=pl.BlockSpec((1, S, W), lambda b, g: (b, 0, g)),
        out_shape=jax.ShapeDtypeStruct((B, S, Hd), qkv.dtype),
        compiler_params=pltpu.CompilerParams(
            dimension_semantics=("parallel", "parallel"),
            vmem_limit_bytes=_VMEM_LIMIT),
    )(qkv, qkv, qkv)


# ---------------------------------------------------------------------------
# Encoder layers
# ---------------------------------------------------------------------------

def bert_layer(x, p, num_heads, head_dim, eps):
    B, S, Hd = x.shape
    assert Hd == num_heads * head_dim and num_heads > SEG_HEAD_NUM and S % 4 == 0
    M = B * S
    x2 = x.reshape(M, Hd)                       # f32 residual path
    xb = x2.astype(jnp.bfloat16)                # bf16 matmul operand

    # Fused Q/K/V projection (one [Hd, 3*Hd] matmul), bf16 output.
    qkv = linear_pallas(xb, p["qkv_w"], p["qkv_b"], out_dtype=jnp.bfloat16)

    # LongAxis self-attention on lane-dense head groups.
    ctx = longaxis_attention_pallas(qkv.reshape(B, S, 3 * Hd), num_heads, head_dim)

    # BertSelfOutput: dense + residual + LayerNorm (fused epilogue).
    h = linear_add_ln_pallas(ctx.reshape(M, Hd), p["ao_w"], p["ao_b"],
                             x2, p["ln1_g"], p["ln1_b"], eps)

    # BertIntermediate + BertOutput fused (GELU intermediate never hits HBM).
    out = ffn_add_ln_pallas(h.astype(jnp.bfloat16), p["i_w"], p["i_b"],
                            p["o_w"], p["o_b"], h, p["ln2_g"], p["ln2_b"], eps)
    return out.reshape(B, S, Hd)


def bert_encoder(x, layer_params, num_heads, head_dim, eps=1e-12):
    for p in layer_params:
        pb = dict(p)
        for name in ("qkv_w", "ao_w", "i_w", "o_w"):
            pb[name] = p[name].astype(jnp.bfloat16)   # MXU-native operands
        x = bert_layer(x, pb, num_heads, head_dim, eps)
    return x


# ---------------------------------------------------------------------------
# Pure-JAX f32 reference (mirrors the PyTorch module) for verification
# ---------------------------------------------------------------------------

def _ref_attn(q, k, v, head_dim):
    s = jnp.einsum("bhqd,bhkd->bhqk", q, k) / math.sqrt(head_dim)
    p = jax.nn.softmax(s, axis=-1)
    return jnp.einsum("bhqk,bhkd->bhqd", p, v)


def _ref_ln(y, g, b, eps):
    m = jnp.mean(y, axis=-1, keepdims=True)
    v = jnp.mean(jnp.square(y - m), axis=-1, keepdims=True)
    return (y - m) * jax.lax.rsqrt(v + eps) * g + b


def bert_encoder_ref(x, layer_params, num_heads, head_dim, eps=1e-12):
    B, S, Hd = x.shape
    seg = SEG_HEAD_NUM
    for p in layer_params:
        qkv = x @ p["qkv_w"] + p["qkv_b"]

        def split(i):
            return (qkv[..., i * Hd:(i + 1) * Hd]
                    .reshape(B, S, num_heads, head_dim).transpose(0, 2, 1, 3))

        q, k, v = split(0), split(1), split(2)
        z_full = _ref_attn(q[:, :seg], k[:, :seg], v[:, :seg], head_dim)
        zs = [_ref_attn(q[:, seg:, i::4], k[:, seg:, i::4], v[:, seg:, i::4],
                        head_dim) for i in range(4)]
        z_stack = jnp.stack(zs, axis=3)
        z_axis = z_stack.reshape(z_stack.shape[0], z_stack.shape[1], -1,
                                 z_stack.shape[-1])
        ctx = (jnp.concatenate([z_full, z_axis], axis=1)
               .transpose(0, 2, 1, 3).reshape(B, S, Hd))
        h = _ref_ln(ctx @ p["ao_w"] + p["ao_b"] + x, p["ln1_g"], p["ln1_b"], eps)
        inter = jax.nn.gelu(h @ p["i_w"] + p["i_b"], approximate=False)
        x = _ref_ln(inter @ p["o_w"] + p["o_b"] + h, p["ln2_g"], p["ln2_b"], eps)
    return x


# ---------------------------------------------------------------------------
# Deterministic parameter init
# ---------------------------------------------------------------------------

def init_layer_params(key, hidden, intermediate):
    ks = jax.random.split(key, 6)
    sd = 0.02
    return {
        "qkv_w": sd * jax.random.normal(ks[0], (hidden, 3 * hidden), jnp.float32),
        "qkv_b": 0.01 * jax.random.normal(ks[1], (3 * hidden,), jnp.float32),
        "ao_w": sd * jax.random.normal(ks[2], (hidden, hidden), jnp.float32),
        "ao_b": jnp.zeros((hidden,), jnp.float32),
        "ln1_g": jnp.ones((hidden,), jnp.float32),
        "ln1_b": jnp.zeros((hidden,), jnp.float32),
        "i_w": sd * jax.random.normal(ks[3], (hidden, intermediate), jnp.float32),
        "i_b": 0.01 * jax.random.normal(ks[4], (intermediate,), jnp.float32),
        "o_w": sd * jax.random.normal(ks[5], (intermediate, hidden), jnp.float32),
        "o_b": jnp.zeros((hidden,), jnp.float32),
        "ln2_g": jnp.ones((hidden,), jnp.float32),
        "ln2_b": jnp.zeros((hidden,), jnp.float32),
    }


# ---------------------------------------------------------------------------

if __name__ == "__main__":
    # Small TPU-friendly config consistent with the module's constraints:
    #  - num_attention_heads > seg_head_num (6)
    #  - sequence length divisible by 4 (four-axis attention)
    B, S = 2, 32
    num_heads, head_dim = 8, 16
    hidden = num_heads * head_dim          # 128 (lane-dense)
    intermediate = 256
    num_layers = 2
    eps = 1e-12

    key = jax.random.PRNGKey(0)
    key, xkey = jax.random.split(key)
    x = jax.random.normal(xkey, (B, S, hidden), jnp.float32)

    layer_params = []
    for _ in range(num_layers):
        key, sub = jax.random.split(key)
        layer_params.append(init_layer_params(sub, hidden, intermediate))

    encoder = jax.jit(functools.partial(bert_encoder, num_heads=num_heads,
                                        head_dim=head_dim, eps=eps))
    out = jax.block_until_ready(encoder(x, layer_params))

    ref = jax.block_until_ready(
        bert_encoder_ref(x, layer_params, num_heads, head_dim, eps))

    assert out.shape == (B, S, hidden)
    # Tolerance covers bf16 MXU operands (f32 accumulation, f32 LN/softmax).
    assert jnp.allclose(out, ref, rtol=2e-2, atol=2e-2), (
        "mismatch vs reference, max abs err = "
        f"{float(jnp.max(jnp.abs(out - ref)))}")

    print("KERNEL_OK")
</pallas_src>

<mosaic_0001>
module attributes {stable_mosaic.version = 11 : i64} {
  func.func @_longaxis_attn_kernel(%arg0: i32, %arg1: i32, %arg2: memref<1x32x128xbf16, #tpu.memory_space<vmem>>, %arg3: memref<1x32x128xbf16, #tpu.memory_space<vmem>>, %arg4: memref<1x32x128xbf16, #tpu.memory_space<vmem>>, %arg5: memref<1x32x128xbf16, #tpu.memory_space<vmem>>) attributes {dimension_semantics = [#tpu.dimension_semantics<parallel>, #tpu.dimension_semantics<parallel>], iteration_bounds = array<i64: 2, 1>, scalar_prefetch = 0 : i64, scratch_operands = 0 : i64, tpu.core_type = #tpu.core_type<tc>, window_params = [{transform_indices = @transform_0, window_bounds = array<i64: 1, 32, 128>}, {transform_indices = @transform_1, window_bounds = array<i64: 1, 32, 128>}, {transform_indices = @transform_2, window_bounds = array<i64: 1, 32, 128>}, {transform_indices = @transform_3, window_bounds = array<i64: 1, 32, 128>}]} {
    %0 = tpu.iota {dimensions = array<i32: 0>} : vector<32x32xi32>
    %1 = tpu.iota {dimensions = array<i32: 1>} : vector<32x32xi32>
    %c3_i32 = arith.constant 3 : i32
    %2 = vector.broadcast %c3_i32 : i32 to vector<32x32xi32>
    %3 = arith.andi %0, %2 : vector<32x32xi32>
    %c3_i32_0 = arith.constant 3 : i32
    %4 = vector.broadcast %c3_i32_0 : i32 to vector<32x32xi32>
    %5 = arith.andi %1, %4 : vector<32x32xi32>
    %6 = arith.cmpi eq, %3, %5 : vector<32x32xi32>
    %cst = arith.constant 0.000000e+00 : f32
    %cst_1 = arith.constant -1.000000e+30 : f32
    %7 = vector.broadcast %cst : f32 to vector<32x32xf32>
    %8 = vector.broadcast %cst_1 : f32 to vector<32x32xf32>
    %9 = arith.select %6, %7, %8 : vector<32x32xi1>, vector<32x32xf32>
    %c0 = arith.constant 0 : index
    %c0_2 = arith.constant 0 : index
    %c0_3 = arith.constant 0 : index
    %10 = vector.load %arg2[%c0, %c0_2, %c0_3] : memref<1x32x128xbf16, #tpu.memory_space<vmem>>, vector<1x32x16xbf16>
    %11 = vector.shape_cast %10 : vector<1x32x16xbf16> to vector<32x16xbf16>
    %c0_4 = arith.constant 0 : index
    %c0_5 = arith.constant 0 : index
    %c0_6 = arith.constant 0 : index
    %12 = vector.load %arg3[%c0_4, %c0_5, %c0_6] : memref<1x32x128xbf16, #tpu.memory_space<vmem>>, vector<1x32x16xbf16>
    %13 = vector.shape_cast %12 : vector<1x32x16xbf16> to vector<32x16xbf16>
    %c0_7 = arith.constant 0 : index
    %c0_8 = arith.constant 0 : index
    %c0_9 = arith.constant 0 : index
    %14 = vector.load %arg4[%c0_7, %c0_8, %c0_9] : memref<1x32x128xbf16, #tpu.memory_space<vmem>>, vector<1x32x16xbf16>
    %15 = vector.shape_cast %14 : vector<1x32x16xbf16> to vector<32x16xbf16>
    %cst_10 = arith.constant dense<0.000000e+00> : vector<32x32xf32>
    %16 = tpu.matmul %11, %13, %cst_10 {dimension_numbers = #tpu.dot_dimension_numbers<[1], [1], [0], [0], [0, 0, 1, 0], [], []>} : vector<32x16xbf16>, vector<32x16xbf16>, vector<32x32xf32> -> vector<32x32xf32>
    %cst_11 = arith.constant 2.500000e-01 : f32
    %17 = vector.broadcast %cst_11 : f32 to vector<32x32xf32>
    %18 = arith.mulf %16, %17 : vector<32x32xf32>
    %c8_i32 = arith.constant 8 : i32
    %19 = arith.muli %arg1, %c8_i32 : i32
    %c0_i32 = arith.constant 0 : i32
    %20 = arith.addi %19, %c0_i32 : i32
    %c6_i32 = arith.constant 6 : i32
    %21 = arith.cmpi sge, %20, %c6_i32 : i32
    %22 = arith.extui %21 : i1 to i32
    %23 = arith.sitofp %22 : i32 to f32
    %24 = vector.broadcast %23 : f32 to vector<32x32xf32>
    %25 = arith.mulf %24, %9 : vector<32x32xf32>
    %26 = arith.addf %18, %25 : vector<32x32xf32>
    %cst_12 = arith.constant dense<0xFF800000> : vector<32xf32>
    %27 = vector.multi_reduction <maximumf>, %26, %cst_12 [1] : vector<32x32xf32> to vector<32xf32>
    %28 = vector.shape_cast %27 : vector<32xf32> to vector<32x1xf32>
    %29 = vector.broadcast %28 : vector<32x1xf32> to vector<32x32xf32>
    %30 = arith.subf %26, %29 : vector<32x32xf32>
    %31 = math.exp %30 : vector<32x32xf32>
    %cst_13 = arith.constant dense<0.000000e+00> : vector<32xf32>
    %32 = vector.multi_reduction <add>, %31, %cst_13 [1] : vector<32x32xf32> to vector<32xf32>
    %33 = vector.shape_cast %32 : vector<32xf32> to vector<32x1xf32>
    %34 = vector.broadcast %33 : vector<32x1xf32> to vector<32x32xf32>
    %35 = arith.divf %31, %34 : vector<32x32xf32>
    %36 = arith.truncf %35 : vector<32x32xf32> to vector<32x32xbf16>
    %cst_14 = arith.constant dense<0.000000e+00> : vector<32x16xf32>
    %37 = tpu.matmul %36, %15, %cst_14 {dimension_numbers = #tpu.dot_dimension_numbers<[1], [0], [0], [1], [0, 0, 1, 1], [], []>} : vector<32x32xbf16>, vector<32x16xbf16>, vector<32x16xf32> -> vector<32x16xf32>
    %c0_15 = arith.constant 0 : index
    %c0_16 = arith.constant 0 : index
    %c16 = arith.constant 16 : index
    %38 = vector.load %arg2[%c0_15, %c0_16, %c16] : memref<1x32x128xbf16, #tpu.memory_space<vmem>>, vector<1x32x16xbf16>
    %39 = vector.shape_cast %38 : vector<1x32x16xbf16> to vector<32x16xbf16>
    %c0_17 = arith.constant 0 : index
    %c0_18 = arith.constant 0 : index
    %c16_19 = arith.constant 16 : index
    %40 = vector.load %arg3[%c0_17, %c0_18, %c16_19] : memref<1x32x128xbf16, #tpu.memory_space<vmem>>, vector<1x32x16xbf16>
    %41 = vector.shape_cast %40 : vector<1x32x16xbf16> to vector<32x16xbf16>
    %c0_20 = arith.constant 0 : index
    %c0_21 = arith.constant 0 : index
    %c16_22 = arith.constant 16 : index
    %42 = vector.load %arg4[%c0_20, %c0_21, %c16_22] : memref<1x32x128xbf16, #tpu.memory_space<vmem>>, vector<1x32x16xbf16>
    %43 = vector.shape_cast %42 : vector<1x32x16xbf16> to vector<32x16xbf16>
    %cst_23 = arith.constant dense<0.000000e+00> : vector<32x32xf32>
    %44 = tpu.matmul %39, %41, %cst_23 {dimension_numbers = #tpu.dot_dimension_numbers<[1], [1], [0], [0], [0, 0, 1, 0], [], []>} : vector<32x16xbf16>, vector<32x16xbf16>, vector<32x32xf32> -> vector<32x32xf32>
    %cst_24 = arith.constant 2.500000e-01 : f32
    %45 = vector.broadcast %cst_24 : f32 to vector<32x32xf32>
    %46 = arith.mulf %44, %45 : vector<32x32xf32>
    %c8_i32_25 = arith.constant 8 : i32
    %47 = arith.muli %arg1, %c8_i32_25 : i32
    %c1_i32 = arith.constant 1 : i32
    %48 = arith.addi %47, %c1_i32 : i32
    %c6_i32_26 = arith.constant 6 : i32
    %49 = arith.cmpi sge, %48, %c6_i32_26 : i32
    %50 = arith.extui %49 : i1 to i32
    %51 = arith.sitofp %50 : i32 to f32
    %52 = vector.broadcast %51 : f32 to vector<32x32xf32>
    %53 = arith.mulf %52, %9 : vector<32x32xf32>
    %54 = arith.addf %46, %53 : vector<32x32xf32>
    %cst_27 = arith.constant dense<0xFF800000> : vector<32xf32>
    %55 = vector.multi_reduction <maximumf>, %54, %cst_27 [1] : vector<32x32xf32> to vector<32xf32>
    %56 = vector.shape_cast %55 : vector<32xf32> to vector<32x1xf32>
    %57 = vector.broadcast %56 : vector<32x1xf32> to vector<32x32xf32>
    %58 = arith.subf %54, %57 : vector<32x32xf32>
    %59 = math.exp %58 : vector<32x32xf32>
    %cst_28 = arith.constant dense<0.000000e+00> : vector<32xf32>
    %60 = vector.multi_reduction <add>, %59, %cst_28 [1] : vector<32x32xf32> to vector<32xf32>
    %61 = vector.shape_cast %60 : vector<32xf32> to vector<32x1xf32>
    %62 = vector.broadcast %61 : vector<32x1xf32> to vector<32x32xf32>
    %63 = arith.divf %59, %62 : vector<32x32xf32>
    %64 = arith.truncf %63 : vector<32x32xf32> to vector<32x32xbf16>
    %cst_29 = arith.constant dense<0.000000e+00> : vector<32x16xf32>
    %65 = tpu.matmul %64, %43, %cst_29 {dimension_numbers = #tpu.dot_dimension_numbers<[1], [0], [0], [1], [0, 0, 1, 1], [], []>} : vector<32x32xbf16>, vector<32x16xbf16>, vector<32x16xf32> -> vector<32x16xf32>
    %c0_30 = arith.constant 0 : index
    %c0_31 = arith.constant 0 : index
    %c32 = arith.constant 32 : index
    %66 = vector.load %arg2[%c0_30, %c0_31, %c32] : memref<1x32x128xbf16, #tpu.memory_space<vmem>>, vector<1x32x16xbf16>
    %67 = vector.shape_cast %66 : vector<1x32x16xbf16> to vector<32x16xbf16>
    %c0_32 = arith.constant 0 : index
    %c0_33 = arith.constant 0 : index
    %c32_34 = arith.constant 32 : index
    %68 = vector.load %arg3[%c0_32, %c0_33, %c32_34] : memref<1x32x128xbf16, #tpu.memory_space<vmem>>, vector<1x32x16xbf16>
    %69 = vector.shape_cast %68 : vector<1x32x16xbf16> to vector<32x16xbf16>
    %c0_35 = arith.constant 0 : index
    %c0_36 = arith.constant 0 : index
    %c32_37 = arith.constant 32 : index
    %70 = vector.load %arg4[%c0_35, %c0_36, %c32_37] : memref<1x32x128xbf16, #tpu.memory_space<vmem>>, vector<1x32x16xbf16>
    %71 = vector.shape_cast %70 : vector<1x32x16xbf16> to vector<32x16xbf16>
    %cst_38 = arith.constant dense<0.000000e+00> : vector<32x32xf32>
    %72 = tpu.matmul %67, %69, %cst_38 {dimension_numbers = #tpu.dot_dimension_numbers<[1], [1], [0], [0], [0, 0, 1, 0], [], []>} : vector<32x16xbf16>, vector<32x16xbf16>, vector<32x32xf32> -> vector<32x32xf32>
    %cst_39 = arith.constant 2.500000e-01 : f32
    %73 = vector.broadcast %cst_39 : f32 to vector<32x32xf32>
    %74 = arith.mulf %72, %73 : vector<32x32xf32>
    %c8_i32_40 = arith.constant 8 : i32
    %75 = arith.muli %arg1, %c8_i32_40 : i32
    %c2_i32 = arith.constant 2 : i32
    %76 = arith.addi %75, %c2_i32 : i32
    %c6_i32_41 = arith.constant 6 : i32
    %77 = arith.cmpi sge, %76, %c6_i32_41 : i32
    %78 = arith.extui %77 : i1 to i32
    %79 = arith.sitofp %78 : i32 to f32
    %80 = vector.broadcast %79 : f32 to vector<32x32xf32>
    %81 = arith.mulf %80, %9 : vector<32x32xf32>
    %82 = arith.addf %74, %81 : vector<32x32xf32>
    %cst_42 = arith.constant dense<0xFF800000> : vector<32xf32>
    %83 = vector.multi_reduction <maximumf>, %82, %cst_42 [1] : vector<32x32xf32> to vector<32xf32>
    %84 = vector.shape_cast %83 : vector<32xf32> to vector<32x1xf32>
    %85 = vector.broadcast %84 : vector<32x1xf32> to vector<32x32xf32>
    %86 = arith.subf %82, %85 : vector<32x32xf32>
    %87 = math.exp %86 : vector<32x32xf32>
    %cst_43 = arith.constant dense<0.000000e+00> : vector<32xf32>
    %88 = vector.multi_reduction <add>, %87, %cst_43 [1] : vector<32x32xf32> to vector<32xf32>
    %89 = vector.shape_cast %88 : vector<32xf32> to vector<32x1xf32>
    %90 = vector.broadcast %89 : vector<32x1xf32> to vector<32x32xf32>
    %91 = arith.divf %87, %90 : vector<32x32xf32>
    %92 = arith.truncf %91 : vector<32x32xf32> to vector<32x32xbf16>
    %cst_44 = arith.constant dense<0.000000e+00> : vector<32x16xf32>
    %93 = tpu.matmul %92, %71, %cst_44 {dimension_numbers = #tpu.dot_dimension_numbers<[1], [0], [0], [1], [0, 0, 1, 1], [], []>} : vector<32x32xbf16>, vector<32x16xbf16>, vector<32x16xf32> -> vector<32x16xf32>
    %c0_45 = arith.constant 0 : index
    %c0_46 = arith.constant 0 : index
    %c48 = arith.constant 48 : index
    %94 = vector.load %arg2[%c0_45, %c0_46, %c48] : memref<1x32x128xbf16, #tpu.memory_space<vmem>>, vector<1x32x16xbf16>
    %95 = vector.shape_cast %94 : vector<1x32x16xbf16> to vector<32x16xbf16>
    %c0_47 = arith.constant 0 : index
    %c0_48 = arith.constant 0 : index
    %c48_49 = arith.constant 48 : index
    %96 = vector.load %arg3[%c0_47, %c0_48, %c48_49] : memref<1x32x128xbf16, #tpu.memory_space<vmem>>, vector<1x32x16xbf16>
    %97 = vector.shape_cast %96 : vector<1x32x16xbf16> to vector<32x16xbf16>
    %c0_50 = arith.constant 0 : index
    %c0_51 = arith.constant 0 : index
    %c48_52 = arith.constant 48 : index
    %98 = vector.load %arg4[%c0_50, %c0_51, %c48_52] : memref<1x32x128xbf16, #tpu.memory_space<vmem>>, vector<1x32x16xbf16>
    %99 = vector.shape_cast %98 : vector<1x32x16xbf16> to vector<32x16xbf16>
    %cst_53 = arith.constant dense<0.000000e+00> : vector<32x32xf32>
    %100 = tpu.matmul %95, %97, %cst_53 {dimension_numbers = #tpu.dot_dimension_numbers<[1], [1], [0], [0], [0, 0, 1, 0], [], []>} : vector<32x16xbf16>, vector<32x16xbf16>, vector<32x32xf32> -> vector<32x32xf32>
    %cst_54 = arith.constant 2.500000e-01 : f32
    %101 = vector.broadcast %cst_54 : f32 to vector<32x32xf32>
    %102 = arith.mulf %100, %101 : vector<32x32xf32>
    %c8_i32_55 = arith.constant 8 : i32
    %103 = arith.muli %arg1, %c8_i32_55 : i32
    %c3_i32_56 = arith.constant 3 : i32
    %104 = arith.addi %103, %c3_i32_56 : i32
    %c6_i32_57 = arith.constant 6 : i32
    %105 = arith.cmpi sge, %104, %c6_i32_57 : i32
    %106 = arith.extui %105 : i1 to i32
    %107 = arith.sitofp %106 : i32 to f32
    %108 = vector.broadcast %107 : f32 to vector<32x32xf32>
    %109 = arith.mulf %108, %9 : vector<32x32xf32>
    %110 = arith.addf %102, %109 : vector<32x32xf32>
    %cst_58 = arith.constant dense<0xFF800000> : vector<32xf32>
    %111 = vector.multi_reduction <maximumf>, %110, %cst_58 [1] : vector<32x32xf32> to vector<32xf32>
    %112 = vector.shape_cast %111 : vector<32xf32> to vector<32x1xf32>
    %113 = vector.broadcast %112 : vector<32x1xf32> to vector<32x32xf32>
    %114 = arith.subf %110, %113 : vector<32x32xf32>
    %115 = math.exp %114 : vector<32x32xf32>
    %cst_59 = arith.constant dense<0.000000e+00> : vector<32xf32>
    %116 = vector.multi_reduction <add>, %115, %cst_59 [1] : vector<32x32xf32> to vector<32xf32>
    %117 = vector.shape_cast %116 : vector<32xf32> to vector<32x1xf32>
    %118 = vector.broadcast %117 : vector<32x1xf32> to vector<32x32xf32>
    %119 = arith.divf %115, %118 : vector<32x32xf32>
    %120 = arith.truncf %119 : vector<32x32xf32> to vector<32x32xbf16>
    %cst_60 = arith.constant dense<0.000000e+00> : vector<32x16xf32>
    %121 = tpu.matmul %120, %99, %cst_60 {dimension_numbers = #tpu.dot_dimension_numbers<[1], [0], [0], [1], [0, 0, 1, 1], [], []>} : vector<32x32xbf16>, vector<32x16xbf16>, vector<32x16xf32> -> vector<32x16xf32>
    %c0_61 = arith.constant 0 : index
    %c0_62 = arith.constant 0 : index
    %c64 = arith.constant 64 : index
    %122 = vector.load %arg2[%c0_61, %c0_62, %c64] : memref<1x32x128xbf16, #tpu.memory_space<vmem>>, vector<1x32x16xbf16>
    %123 = vector.shape_cast %122 : vector<1x32x16xbf16> to vector<32x16xbf16>
    %c0_63 = arith.constant 0 : index
    %c0_64 = arith.constant 0 : index
    %c64_65 = arith.constant 64 : index
    %124 = vector.load %arg3[%c0_63, %c0_64, %c64_65] : memref<1x32x128xbf16, #tpu.memory_space<vmem>>, vector<1x32x16xbf16>
    %125 = vector.shape_cast %124 : vector<1x32x16xbf16> to vector<32x16xbf16>
    %c0_66 = arith.constant 0 : index
    %c0_67 = arith.constant 0 : index
    %c64_68 = arith.constant 64 : index
    %126 = vector.load %arg4[%c0_66, %c0_67, %c64_68] : memref<1x32x128xbf16, #tpu.memory_space<vmem>>, vector<1x32x16xbf16>
    %127 = vector.shape_cast %126 : vector<1x32x16xbf16> to vector<32x16xbf16>
    %cst_69 = arith.constant dense<0.000000e+00> : vector<32x32xf32>
    %128 = tpu.matmul %123, %125, %cst_69 {dimension_numbers = #tpu.dot_dimension_numbers<[1], [1], [0], [0], [0, 0, 1, 0], [], []>} : vector<32x16xbf16>, vector<32x16xbf16>, vector<32x32xf32> -> vector<32x32xf32>
    %cst_70 = arith.constant 2.500000e-01 : f32
    %129 = vector.broadcast %cst_70 : f32 to vector<32x32xf32>
    %130 = arith.mulf %128, %129 : vector<32x32xf32>
    %c8_i32_71 = arith.constant 8 : i32
    %131 = arith.muli %arg1, %c8_i32_71 : i32
    %c4_i32 = arith.constant 4 : i32
    %132 = arith.addi %131, %c4_i32 : i32
    %c6_i32_72 = arith.constant 6 : i32
    %133 = arith.cmpi sge, %132, %c6_i32_72 : i32
    %134 = arith.extui %133 : i1 to i32
    %135 = arith.sitofp %134 : i32 to f32
    %136 = vector.broadcast %135 : f32 to vector<32x32xf32>
    %137 = arith.mulf %136, %9 : vector<32x32xf32>
    %138 = arith.addf %130, %137 : vector<32x32xf32>
    %cst_73 = arith.constant dense<0xFF800000> : vector<32xf32>
    %139 = vector.multi_reduction <maximumf>, %138, %cst_73 [1] : vector<32x32xf32> to vector<32xf32>
    %140 = vector.shape_cast %139 : vector<32xf32> to vector<32x1xf32>
    %141 = vector.broadcast %140 : vector<32x1xf32> to vector<32x32xf32>
    %142 = arith.subf %138, %141 : vector<32x32xf32>
    %143 = math.exp %142 : vector<32x32xf32>
    %cst_74 = arith.constant dense<0.000000e+00> : vector<32xf32>
    %144 = vector.multi_reduction <add>, %143, %cst_74 [1] : vector<32x32xf32> to vector<32xf32>
    %145 = vector.shape_cast %144 : vector<32xf32> to vector<32x1xf32>
    %146 = vector.broadcast %145 : vector<32x1xf32> to vector<32x32xf32>
    %147 = arith.divf %143, %146 : vector<32x32xf32>
    %148 = arith.truncf %147 : vector<32x32xf32> to vector<32x32xbf16>
    %cst_75 = arith.constant dense<0.000000e+00> : vector<32x16xf32>
    %149 = tpu.matmul %148, %127, %cst_75 {dimension_numbers = #tpu.dot_dimension_numbers<[1], [0], [0], [1], [0, 0, 1, 1], [], []>} : vector<32x32xbf16>, vector<32x16xbf16>, vector<32x16xf32> -> vector<32x16xf32>
    %c0_76 = arith.constant 0 : index
    %c0_77 = arith.constant 0 : index
    %c80 = arith.constant 80 : index
    %150 = vector.load %arg2[%c0_76, %c0_77, %c80] : memref<1x32x128xbf16, #tpu.memory_space<vmem>>, vector<1x32x16xbf16>
    %151 = vector.shape_cast %150 : vector<1x32x16xbf16> to vector<32x16xbf16>
    %c0_78 = arith.constant 0 : index
    %c0_79 = arith.constant 0 : index
    %c80_80 = arith.constant 80 : index
    %152 = vector.load %arg3[%c0_78, %c0_79, %c80_80] : memref<1x32x128xbf16, #tpu.memory_space<vmem>>, vector<1x32x16xbf16>
    %153 = vector.shape_cast %152 : vector<1x32x16xbf16> to vector<32x16xbf16>
    %c0_81 = arith.constant 0 : index
    %c0_82 = arith.constant 0 : index
    %c80_83 = arith.constant 80 : index
    %154 = vector.load %arg4[%c0_81, %c0_82, %c80_83] : memref<1x32x128xbf16, #tpu.memory_space<vmem>>, vector<1x32x16xbf16>
    %155 = vector.shape_cast %154 : vector<1x32x16xbf16> to vector<32x16xbf16>
    %cst_84 = arith.constant dense<0.000000e+00> : vector<32x32xf32>
    %156 = tpu.matmul %151, %153, %cst_84 {dimension_numbers = #tpu.dot_dimension_numbers<[1], [1], [0], [0], [0, 0, 1, 0], [], []>} : vector<32x16xbf16>, vector<32x16xbf16>, vector<32x32xf32> -> vector<32x32xf32>
    %cst_85 = arith.constant 2.500000e-01 : f32
    %157 = vector.broadcast %cst_85 : f32 to vector<32x32xf32>
    %158 = arith.mulf %156, %157 : vector<32x32xf32>
    %c8_i32_86 = arith.constant 8 : i32
    %159 = arith.muli %arg1, %c8_i32_86 : i32
    %c5_i32 = arith.constant 5 : i32
    %160 = arith.addi %159, %c5_i32 : i32
    %c6_i32_87 = arith.constant 6 : i32
    %161 = arith.cmpi sge, %160, %c6_i32_87 : i32
    %162 = arith.extui %161 : i1 to i32
    %163 = arith.sitofp %162 : i32 to f32
    %164 = vector.broadcast %163 : f32 to vector<32x32xf32>
    %165 = arith.mulf %164, %9 : vector<32x32xf32>
    %166 = arith.addf %158, %165 : vector<32x32xf32>
    %cst_88 = arith.constant dense<0xFF800000> : vector<32xf32>
    %167 = vector.multi_reduction <maximumf>, %166, %cst_88 [1] : vector<32x32xf32> to vector<32xf32>
    %168 = vector.shape_cast %167 : vector<32xf32> to vector<32x1xf32>
    %169 = vector.broadcast %168 : vector<32x1xf32> to vector<32x32xf32>
    %170 = arith.subf %166, %169 : vector<32x32xf32>
    %171 = math.exp %170 : vector<32x32xf32>
    %cst_89 = arith.constant dense<0.000000e+00> : vector<32xf32>
    %172 = vector.multi_reduction <add>, %171, %cst_89 [1] : vector<32x32xf32> to vector<32xf32>
    %173 = vector.shape_cast %172 : vector<32xf32> to vector<32x1xf32>
    %174 = vector.broadcast %173 : vector<32x1xf32> to vector<32x32xf32>
    %175 = arith.divf %171, %174 : vector<32x32xf32>
    %176 = arith.truncf %175 : vector<32x32xf32> to vector<32x32xbf16>
    %cst_90 = arith.constant dense<0.000000e+00> : vector<32x16xf32>
    %177 = tpu.matmul %176, %155, %cst_90 {dimension_numbers = #tpu.dot_dimension_numbers<[1], [0], [0], [1], [0, 0, 1, 1], [], []>} : vector<32x32xbf16>, vector<32x16xbf16>, vector<32x16xf32> -> vector<32x16xf32>
    %c0_91 = arith.constant 0 : index
    %c0_92 = arith.constant 0 : index
    %c96 = arith.constant 96 : index
    %178 = vector.load %arg2[%c0_91, %c0_92, %c96] : memref<1x32x128xbf16, #tpu.memory_space<vmem>>, vector<1x32x16xbf16>
    %179 = vector.shape_cast %178 : vector<1x32x16xbf16> to vector<32x16xbf16>
    %c0_93 = arith.constant 0 : index
    %c0_94 = arith.constant 0 : index
    %c96_95 = arith.constant 96 : index
    %180 = vector.load %arg3[%c0_93, %c0_94, %c96_95] : memref<1x32x128xbf16, #tpu.memory_space<vmem>>, vector<1x32x16xbf16>
    %181 = vector.shape_cast %180 : vector<1x32x16xbf16> to vector<32x16xbf16>
    %c0_96 = arith.constant 0 : index
    %c0_97 = arith.constant 0 : index
    %c96_98 = arith.constant 96 : index
    %182 = vector.load %arg4[%c0_96, %c0_97, %c96_98] : memref<1x32x128xbf16, #tpu.memory_space<vmem>>, vector<1x32x16xbf16>
    %183 = vector.shape_cast %182 : vector<1x32x16xbf16> to vector<32x16xbf16>
    %cst_99 = arith.constant dense<0.000000e+00> : vector<32x32xf32>
    %184 = tpu.matmul %179, %181, %cst_99 {dimension_numbers = #tpu.dot_dimension_numbers<[1], [1], [0], [0], [0, 0, 1, 0], [], []>} : vector<32x16xbf16>, vector<32x16xbf16>, vector<32x32xf32> -> vector<32x32xf32>
    %cst_100 = arith.constant 2.500000e-01 : f32
    %185 = vector.broadcast %cst_100 : f32 to vector<32x32xf32>
    %186 = arith.mulf %184, %185 : vector<32x32xf32>
    %c8_i32_101 = arith.constant 8 : i32
    %187 = arith.muli %arg1, %c8_i32_101 : i32
    %c6_i32_102 = arith.constant 6 : i32
    %188 = arith.addi %187, %c6_i32_102 : i32
    %c6_i32_103 = arith.constant 6 : i32
    %189 = arith.cmpi sge, %188, %c6_i32_103 : i32
    %190 = arith.extui %189 : i1 to i32
    %191 = arith.sitofp %190 : i32 to f32
    %192 = vector.broadcast %191 : f32 to vector<32x32xf32>
    %193 = arith.mulf %192, %9 : vector<32x32xf32>
    %194 = arith.addf %186, %193 : vector<32x32xf32>
    %cst_104 = arith.constant dense<0xFF800000> : vector<32xf32>
    %195 = vector.multi_reduction <maximumf>, %194, %cst_104 [1] : vector<32x32xf32> to vector<32xf32>
    %196 = vector.shape_cast %195 : vector<32xf32> to vector<32x1xf32>
    %197 = vector.broadcast %196 : vector<32x1xf32> to vector<32x32xf32>
    %198 = arith.subf %194, %197 : vector<32x32xf32>
    %199 = math.exp %198 : vector<32x32xf32>
    %cst_105 = arith.constant dense<0.000000e+00> : vector<32xf32>
    %200 = vector.multi_reduction <add>, %199, %cst_105 [1] : vector<32x32xf32> to vector<32xf32>
    %201 = vector.shape_cast %200 : vector<32xf32> to vector<32x1xf32>
    %202 = vector.broadcast %201 : vector<32x1xf32> to vector<32x32xf32>
    %203 = arith.divf %199, %202 : vector<32x32xf32>
    %204 = arith.truncf %203 : vector<32x32xf32> to vector<32x32xbf16>
    %cst_106 = arith.constant dense<0.000000e+00> : vector<32x16xf32>
    %205 = tpu.matmul %204, %183, %cst_106 {dimension_numbers = #tpu.dot_dimension_numbers<[1], [0], [0], [1], [0, 0, 1, 1], [], []>} : vector<32x32xbf16>, vector<32x16xbf16>, vector<32x16xf32> -> vector<32x16xf32>
    %c0_107 = arith.constant 0 : index
    %c0_108 = arith.constant 0 : index
    %c112 = arith.constant 112 : index
    %206 = vector.load %arg2[%c0_107, %c0_108, %c112] : memref<1x32x128xbf16, #tpu.memory_space<vmem>>, vector<1x32x16xbf16>
    %207 = vector.shape_cast %206 : vector<1x32x16xbf16> to vector<32x16xbf16>
    %c0_109 = arith.constant 0 : index
    %c0_110 = arith.constant 0 : index
    %c112_111 = arith.constant 112 : index
    %208 = vector.load %arg3[%c0_109, %c0_110, %c112_111] : memref<1x32x128xbf16, #tpu.memory_space<vmem>>, vector<1x32x16xbf16>
    %209 = vector.shape_cast %208 : vector<1x32x16xbf16> to vector<32x16xbf16>
    %c0_112 = arith.constant 0 : index
    %c0_113 = arith.constant 0 : index
    %c112_114 = arith.constant 112 : index
    %210 = vector.load %arg4[%c0_112, %c0_113, %c112_114] : memref<1x32x128xbf16, #tpu.memory_space<vmem>>, vector<1x32x16xbf16>
    %211 = vector.shape_cast %210 : vector<1x32x16xbf16> to vector<32x16xbf16>
    %cst_115 = arith.constant dense<0.000000e+00> : vector<32x32xf32>
    %212 = tpu.matmul %207, %209, %cst_115 {dimension_numbers = #tpu.dot_dimension_numbers<[1], [1], [0], [0], [0, 0, 1, 0], [], []>} : vector<32x16xbf16>, vector<32x16xbf16>, vector<32x32xf32> -> vector<32x32xf32>
    %cst_116 = arith.constant 2.500000e-01 : f32
    %213 = vector.broadcast %cst_116 : f32 to vector<32x32xf32>
    %214 = arith.mulf %212, %213 : vector<32x32xf32>
    %c8_i32_117 = arith.constant 8 : i32
    %215 = arith.muli %arg1, %c8_i32_117 : i32
    %c7_i32 = arith.constant 7 : i32
    %216 = arith.addi %215, %c7_i32 : i32
    %c6_i32_118 = arith.constant 6 : i32
    %217 = arith.cmpi sge, %216, %c6_i32_118 : i32
    %218 = arith.extui %217 : i1 to i32
    %219 = arith.sitofp %218 : i32 to f32
    %220 = vector.broadcast %219 : f32 to vector<32x32xf32>
    %221 = arith.mulf %220, %9 : vector<32x32xf32>
    %222 = arith.addf %214, %221 : vector<32x32xf32>
    %cst_119 = arith.constant dense<0xFF800000> : vector<32xf32>
    %223 = vector.multi_reduction <maximumf>, %222, %cst_119 [1] : vector<32x32xf32> to vector<32xf32>
    %224 = vector.shape_cast %223 : vector<32xf32> to vector<32x1xf32>
    %225 = vector.broadcast %224 : vector<32x1xf32> to vector<32x32xf32>
    %226 = arith.subf %222, %225 : vector<32x32xf32>
    %227 = math.exp %226 : vector<32x32xf32>
    %cst_120 = arith.constant dense<0.000000e+00> : vector<32xf32>
    %228 = vector.multi_reduction <add>, %227, %cst_120 [1] : vector<32x32xf32> to vector<32xf32>
    %229 = vector.shape_cast %228 : vector<32xf32> to vector<32x1xf32>
    %230 = vector.broadcast %229 : vector<32x1xf32> to vector<32x32xf32>
    %231 = arith.divf %227, %230 : vector<32x32xf32>
    %232 = arith.truncf %231 : vector<32x32xf32> to vector<32x32xbf16>
    %cst_121 = arith.constant dense<0.000000e+00> : vector<32x16xf32>
    %233 = tpu.matmul %232, %211, %cst_121 {dimension_numbers = #tpu.dot_dimension_numbers<[1], [0], [0], [1], [0, 0, 1, 1], [], []>} : vector<32x32xbf16>, vector<32x16xbf16>, vector<32x16xf32> -> vector<32x16xf32>
    %234 = tpu.concatenate %37, %65, %93, %121, %149, %177, %205, %233 in 1 : vector<32x16xf32>, vector<32x16xf32>, vector<32x16xf32>, vector<32x16xf32>, vector<32x16xf32>, vector<32x16xf32>, vector<32x16xf32>, vector<32x16xf32> -> vector<32x128xf32>
    %235 = arith.truncf %234 : vector<32x128xf32> to vector<32x128xbf16>
    %c0_122 = arith.constant 0 : index
    %c0_123 = arith.constant 0 : index
    %c0_124 = arith.constant 0 : index
    %236 = vector.load %arg5[%c0_122, %c0_123, %c0_124] : memref<1x32x128xbf16, #tpu.memory_space<vmem>>, vector<1x32x128xbf16>
    %237 = vector.shape_cast %236 : vector<1x32x128xbf16> to vector<32x128xbf16>
    %238 = vector.shape_cast %235 : vector<32x128xbf16> to vector<1x32x128xbf16>
    tpu.vector_store %arg5[%c0_122, %c0_123, %c0_124], %238 {strides = array<i32>} : memref<1x32x128xbf16, #tpu.memory_space<vmem>>, vector<1x32x128xbf16>,
    return
  }
  func.func @transform_0(%arg0: i32, %arg1: i32) -> (i32, i32, i32) {
    %c0_i32 = arith.constant 0 : i32
    %c0_i32_0 = arith.constant 0 : i32
    return %arg0, %c0_i32, %arg1 : i32, i32, i32
  }
  func.func @transform_1(%arg0: i32, %arg1: i32) -> (i32, i32, i32) {
    %c1_i32 = arith.constant 1 : i32
    %0 = arith.addi %c1_i32, %arg1 : i32
    %c0_i32 = arith.constant 0 : i32
    %c0_i32_0 = arith.constant 0 : i32
    return %arg0, %c0_i32, %0 : i32, i32, i32
  }
  func.func @transform_2(%arg0: i32, %arg1: i32) -> (i32, i32, i32) {
    %c2_i32 = arith.constant 2 : i32
    %0 = arith.addi %c2_i32, %arg1 : i32
    %c0_i32 = arith.constant 0 : i32
    %c0_i32_0 = arith.constant 0 : i32
    return %arg0, %c0_i32, %0 : i32, i32, i32
  }
  func.func @transform_3(%arg0: i32, %arg1: i32) -> (i32, i32, i32) {
    %c0_i32 = arith.constant 0 : i32
    %c0_i32_0 = arith.constant 0 : i32
    return %arg0, %c0_i32, %arg1 : i32, i32, i32
  }
}

module attributes {stable_mosaic.version = 11 : i64} {
  func.func @_matmul_kernel(%arg0: i32, %arg1: i32, %arg2: i32, %arg3: memref<64x128xbf16, #tpu.memory_space<vmem>>, %arg4: memref<128x128xbf16, #tpu.memory_space<vmem>>, %arg5: memref<1x128xf32, #tpu.memory_space<vmem>>, %arg6: memref<64x128xbf16, #tpu.memory_space<vmem>>, %arg7: memref<64x128xf32, #tpu.memory_space<vmem>>) attributes {dimension_semantics = [#tpu.dimension_semantics<parallel>, #tpu.dimension_semantics<parallel>, #tpu.dimension_semantics<arbitrary>], iteration_bounds = array<i64: 1, 3, 1>, scalar_prefetch = 0 : i64, scratch_operands = 1 : i64, tpu.core_type = #tpu.core_type<tc>, window_params = [{transform_indices = @transform_0, window_bounds = array<i64: 64, 128>}, {transform_indices = @transform_1, window_bounds = array<i64: 128, 128>}, {transform_indices = @transform_2, window_bounds = array<i64: 1, 128>}, {transform_indices = @transform_3, window_bounds = array<i64: 64, 128>}]} {
    %c0_i32 = arith.constant 0 : i32
    %0 = arith.cmpi eq, %arg2, %c0_i32 : i32
    %1 = arith.extui %0 : i1 to i32
    %c0_i32_0 = arith.constant 0 : i32
    %2 = arith.cmpi ne, %1, %c0_i32_0 : i32
    scf.if %2 {
      %cst_10 = arith.constant 0.000000e+00 : f32
      %12 = vector.broadcast %cst_10 : f32 to vector<64x128xf32>
      %c0_11 = arith.constant 0 : index
      %c0_12 = arith.constant 0 : index
      %13 = vector.load %arg7[%c0_11, %c0_12] : memref<64x128xf32, #tpu.memory_space<vmem>>, vector<64x128xf32>
      tpu.vector_store %arg7[%c0_11, %c0_12], %12 {strides = array<i32>} : memref<64x128xf32, #tpu.memory_space<vmem>>, vector<64x128xf32>,
    } else {
    }
    %c0 = arith.constant 0 : index
    %c0_1 = arith.constant 0 : index
    %3 = vector.load %arg7[%c0, %c0_1] : memref<64x128xf32, #tpu.memory_space<vmem>>, vector<64x128xf32>
    %c0_2 = arith.constant 0 : index
    %c0_3 = arith.constant 0 : index
    %4 = vector.load %arg3[%c0_2, %c0_3] : memref<64x128xbf16, #tpu.memory_space<vmem>>, vector<64x128xbf16>
    %c0_4 = arith.constant 0 : index
    %c0_5 = arith.constant 0 : index
    %5 = vector.load %arg4[%c0_4, %c0_5] : memref<128x128xbf16, #tpu.memory_space<vmem>>, vector<128x128xbf16>
    %cst = arith.constant dense<0.000000e+00> : vector<64x128xf32>
    %6 = tpu.matmul %4, %5, %cst {dimension_numbers = #tpu.dot_dimension_numbers<[1], [0], [0], [1], [0, 0, 1, 1], [], []>} : vector<64x128xbf16>, vector<128x128xbf16>, vector<64x128xf32> -> vector<64x128xf32>
    %7 = arith.addf %3, %6 : vector<64x128xf32>
    %c0_6 = arith.constant 0 : index
    %c0_7 = arith.constant 0 : index
    %8 = vector.load %arg7[%c0_6, %c0_7] : memref<64x128xf32, #tpu.memory_space<vmem>>, vector<64x128xf32>
    tpu.vector_store %arg7[%c0_6, %c0_7], %7 {strides = array<i32>} : memref<64x128xf32, #tpu.memory_space<vmem>>, vector<64x128xf32>,
    %c0_i32_8 = arith.constant 0 : i32
    %9 = arith.cmpi eq, %arg2, %c0_i32_8 : i32
    %10 = arith.extui %9 : i1 to i32
    %c0_i32_9 = arith.constant 0 : i32
    %11 = arith.cmpi ne, %10, %c0_i32_9 : i32
    scf.if %11 {
      %c0_10 = arith.constant 0 : index
      %c0_11 = arith.constant 0 : index
      %12 = vector.load %arg7[%c0_10, %c0_11] : memref<64x128xf32, #tpu.memory_space<vmem>>, vector<64x128xf32>
      %c0_12 = arith.constant 0 : index
      %c0_13 = arith.constant 0 : index
      %13 = vector.load %arg5[%c0_12, %c0_13] : memref<1x128xf32, #tpu.memory_space<vmem>>, vector<1x128xf32>
      %14 = vector.broadcast %13 : vector<1x128xf32> to vector<64x128xf32>
      %15 = arith.addf %12, %14 : vector<64x128xf32>
      %16 = arith.truncf %15 : vector<64x128xf32> to vector<64x128xbf16>
      %c0_14 = arith.constant 0 : index
      %c0_15 = arith.constant 0 : index
      %17 = vector.load %arg6[%c0_14, %c0_15] : memref<64x128xbf16, #tpu.memory_space<vmem>>, vector<64x128xbf16>
      tpu.vector_store %arg6[%c0_14, %c0_15], %16 {strides = array<i32>} : memref<64x128xbf16, #tpu.memory_space<vmem>>, vector<64x128xbf16>,
    } else {
    }
    return
  }
  func.func @transform_0(%arg0: i32, %arg1: i32, %arg2: i32) -> (i32, i32) {
    %c0_i32 = arith.constant 0 : i32
    return %arg0, %arg2 : i32, i32
  }
  func.func @transform_1(%arg0: i32, %arg1: i32, %arg2: i32) -> (i32, i32) {
    %c0_i32 = arith.constant 0 : i32
    return %arg2, %arg1 : i32, i32
  }
  func.func @transform_2(%arg0: i32, %arg1: i32, %arg2: i32) -> (i32, i32) {
    %c0_i32 = arith.constant 0 : i32
    %c0_i32_0 = arith.constant 0 : i32
    return %c0_i32, %arg1 : i32, i32
  }
  func.func @transform_3(%arg0: i32, %arg1: i32, %arg2: i32) -> (i32, i32) {
    %c0_i32 = arith.constant 0 : i32
    return %arg0, %arg1 : i32, i32
  }
}

module attributes {stable_mosaic.version = 11 : i64} {
  func.func @_matmul_add_ln_kernel(%arg0: i32, %arg1: i32, %arg2: memref<64x128xbf16, #tpu.memory_space<vmem>>, %arg3: memref<128x128xbf16, #tpu.memory_space<vmem>>, %arg4: memref<1x128xf32, #tpu.memory_space<vmem>>, %arg5: memref<64x128xf32, #tpu.memory_space<vmem>>, %arg6: memref<1x128xf32, #tpu.memory_space<vmem>>, %arg7: memref<1x128xf32, #tpu.memory_space<vmem>>, %arg8: memref<64x128xf32, #tpu.memory_space<vmem>>, %arg9: memref<64x128xf32, #tpu.memory_space<vmem>>) attributes {dimension_semantics = [#tpu.dimension_semantics<parallel>, #tpu.dimension_semantics<arbitrary>], iteration_bounds = array<i64: 1, 1>, scalar_prefetch = 0 : i64, scratch_operands = 1 : i64, tpu.core_type = #tpu.core_type<tc>, window_params = [{transform_indices = @transform_0, window_bounds = array<i64: 64, 128>}, {transform_indices = @transform_1, window_bounds = array<i64: 128, 128>}, {pipeline_mode = #tpu.pipeline_mode<synchronous>, transform_indices = @transform_2, window_bounds = array<i64: 1, 128>}, {transform_indices = @transform_3, window_bounds = array<i64: 64, 128>}, {pipeline_mode = #tpu.pipeline_mode<synchronous>, transform_indices = @transform_4, window_bounds = array<i64: 1, 128>}, {pipeline_mode = #tpu.pipeline_mode<synchronous>, transform_indices = @transform_5, window_bounds = array<i64: 1, 128>}, {transform_indices = @transform_6, window_bounds = array<i64: 64, 128>}]} {
    %c0_i32 = arith.constant 0 : i32
    %0 = arith.cmpi eq, %arg1, %c0_i32 : i32
    %1 = arith.extui %0 : i1 to i32
    %c0_i32_0 = arith.constant 0 : i32
    %2 = arith.cmpi ne, %1, %c0_i32_0 : i32
    scf.if %2 {
      %cst_10 = arith.constant 0.000000e+00 : f32
      %12 = vector.broadcast %cst_10 : f32 to vector<64x128xf32>
      %c0_11 = arith.constant 0 : index
      %c0_12 = arith.constant 0 : index
      %13 = vector.load %arg9[%c0_11, %c0_12] : memref<64x128xf32, #tpu.memory_space<vmem>>, vector<64x128xf32>
      tpu.vector_store %arg9[%c0_11, %c0_12], %12 {strides = array<i32>} : memref<64x128xf32, #tpu.memory_space<vmem>>, vector<64x128xf32>,
    } else {
    }
    %c0 = arith.constant 0 : index
    %c0_1 = arith.constant 0 : index
    %3 = vector.load %arg9[%c0, %c0_1] : memref<64x128xf32, #tpu.memory_space<vmem>>, vector<64x128xf32>
    %c0_2 = arith.constant 0 : index
    %c0_3 = arith.constant 0 : index
    %4 = vector.load %arg2[%c0_2, %c0_3] : memref<64x128xbf16, #tpu.memory_space<vmem>>, vector<64x128xbf16>
    %c0_4 = arith.constant 0 : index
    %c0_5 = arith.constant 0 : index
    %5 = vector.load %arg3[%c0_4, %c0_5] : memref<128x128xbf16, #tpu.memory_space<vmem>>, vector<128x128xbf16>
    %cst = arith.constant dense<0.000000e+00> : vector<64x128xf32>
    %6 = tpu.matmul %4, %5, %cst {dimension_numbers = #tpu.dot_dimension_numbers<[1], [0], [0], [1], [0, 0, 1, 1], [], []>} : vector<64x128xbf16>, vector<128x128xbf16>, vector<64x128xf32> -> vector<64x128xf32>
    %7 = arith.addf %3, %6 : vector<64x128xf32>
    %c0_6 = arith.constant 0 : index
    %c0_7 = arith.constant 0 : index
    %8 = vector.load %arg9[%c0_6, %c0_7] : memref<64x128xf32, #tpu.memory_space<vmem>>, vector<64x128xf32>
    tpu.vector_store %arg9[%c0_6, %c0_7], %7 {strides = array<i32>} : memref<64x128xf32, #tpu.memory_space<vmem>>, vector<64x128xf32>,
    %c0_i32_8 = arith.constant 0 : i32
    %9 = arith.cmpi eq, %arg1, %c0_i32_8 : i32
    %10 = arith.extui %9 : i1 to i32
    %c0_i32_9 = arith.constant 0 : i32
    %11 = arith.cmpi ne, %10, %c0_i32_9 : i32
    scf.if %11 {
      %c0_10 = arith.constant 0 : index
      %c0_11 = arith.constant 0 : index
      %12 = vector.load %arg9[%c0_10, %c0_11] : memref<64x128xf32, #tpu.memory_space<vmem>>, vector<64x128xf32>
      %c0_12 = arith.constant 0 : index
      %c0_13 = arith.constant 0 : index
      %13 = vector.load %arg4[%c0_12, %c0_13] : memref<1x128xf32, #tpu.memory_space<vmem>>, vector<1x128xf32>
      %14 = vector.broadcast %13 : vector<1x128xf32> to vector<64x128xf32>
      %15 = arith.addf %12, %14 : vector<64x128xf32>
      %c0_14 = arith.constant 0 : index
      %c0_15 = arith.constant 0 : index
      %16 = vector.load %arg5[%c0_14, %c0_15] : memref<64x128xf32, #tpu.memory_space<vmem>>, vector<64x128xf32>
      %17 = arith.addf %15, %16 : vector<64x128xf32>
      %cst_16 = arith.constant dense<0.000000e+00> : vector<64xf32>
      %18 = vector.multi_reduction <add>, %17, %cst_16 [1] : vector<64x128xf32> to vector<64xf32>
      %19 = vector.shape_cast %18 : vector<64xf32> to vector<64x1xf32>
      %cst_17 = arith.constant 1.280000e+02 : f32
      %20 = vector.broadcast %cst_17 : f32 to vector<64x1xf32>
      %21 = arith.divf %19, %20 : vector<64x1xf32>
      %22 = vector.broadcast %21 : vector<64x1xf32> to vector<64x128xf32>
      %23 = arith.subf %17, %22 : vector<64x128xf32>
      %24 = arith.mulf %23, %23 : vector<64x128xf32>
      %cst_18 = arith.constant dense<0.000000e+00> : vector<64xf32>
      %25 = vector.multi_reduction <add>, %24, %cst_18 [1] : vector<64x128xf32> to vector<64xf32>
      %26 = vector.shape_cast %25 : vector<64xf32> to vector<64x1xf32>
      %cst_19 = arith.constant 1.280000e+02 : f32
      %27 = vector.broadcast %cst_19 : f32 to vector<64x1xf32>
      %28 = arith.divf %26, %27 : vector<64x1xf32>
      %29 = vector.broadcast %21 : vector<64x1xf32> to vector<64x128xf32>
      %30 = arith.subf %17, %29 : vector<64x128xf32>
      %cst_20 = arith.constant 9.99999996E-13 : f32
      %31 = vector.broadcast %cst_20 : f32 to vector<64x1xf32>
      %32 = arith.addf %28, %31 : vector<64x1xf32>
      %33 = math.rsqrt %32 : vector<64x1xf32>
      %34 = vector.broadcast %33 : vector<64x1xf32> to vector<64x128xf32>
      %35 = arith.mulf %30, %34 : vector<64x128xf32>
      %c0_21 = arith.constant 0 : index
      %c0_22 = arith.constant 0 : index
      %36 = vector.load %arg6[%c0_21, %c0_22] : memref<1x128xf32, #tpu.memory_space<vmem>>, vector<1x128xf32>
      %37 = vector.broadcast %36 : vector<1x128xf32> to vector<64x128xf32>
      %38 = arith.mulf %35, %37 : vector<64x128xf32>
      %c0_23 = arith.constant 0 : index
      %c0_24 = arith.constant 0 : index
      %39 = vector.load %arg7[%c0_23, %c0_24] : memref<1x128xf32, #tpu.memory_space<vmem>>, vector<1x128xf32>
      %40 = vector.broadcast %39 : vector<1x128xf32> to vector<64x128xf32>
      %41 = arith.addf %38, %40 : vector<64x128xf32>
      %c0_25 = arith.constant 0 : index
      %c0_26 = arith.constant 0 : index
      %42 = vector.load %arg8[%c0_25, %c0_26] : memref<64x128xf32, #tpu.memory_space<vmem>>, vector<64x128xf32>
      tpu.vector_store %arg8[%c0_25, %c0_26], %41 {strides = array<i32>} : memref<64x128xf32, #tpu.memory_space<vmem>>, vector<64x128xf32>,
    } else {
    }
    return
  }
  func.func @transform_0(%arg0: i32, %arg1: i32) -> (i32, i32) {
    %c0_i32 = arith.constant 0 : i32
    return %arg0, %arg1 : i32, i32
  }
  func.func @transform_1(%arg0: i32, %arg1: i32) -> (i32, i32) {
    %c0_i32 = arith.constant 0 : i32
    %c0_i32_0 = arith.constant 0 : i32
    return %arg1, %c0_i32 : i32, i32
  }
  func.func @transform_2(%arg0: i32, %arg1: i32) -> (i32, i32) {
    %c0_i32 = arith.constant 0 : i32
    %c0_i32_0 = arith.constant 0 : i32
    %c0_i32_1 = arith.constant 0 : i32
    return %c0_i32, %c0_i32_0 : i32, i32
  }
  func.func @transform_3(%arg0: i32, %arg1: i32) -> (i32, i32) {
    %c0_i32 = arith.constant 0 : i32
    %c0_i32_0 = arith.constant 0 : i32
    return %arg0, %c0_i32 : i32, i32
  }
  func.func @transform_4(%arg0: i32, %arg1: i32) -> (i32, i32) {
    %c0_i32 = arith.constant 0 : i32
    %c0_i32_0 = arith.constant 0 : i32
    %c0_i32_1 = arith.constant 0 : i32
    return %c0_i32, %c0_i32_0 : i32, i32
  }
  func.func @transform_5(%arg0: i32, %arg1: i32) -> (i32, i32) {
    %c0_i32 = arith.constant 0 : i32
    %c0_i32_0 = arith.constant 0 : i32
    %c0_i32_1 = arith.constant 0 : i32
    return %c0_i32, %c0_i32_0 : i32, i32
  }
  func.func @transform_6(%arg0: i32, %arg1: i32) -> (i32, i32) {
    %c0_i32 = arith.constant 0 : i32
    %c0_i32_0 = arith.constant 0 : i32
    return %arg0, %c0_i32 : i32, i32
  }
}

module attributes {stable_mosaic.version = 11 : i64} {
  func.func @_ffn_kernel(%arg0: i32, %arg1: i32, %arg2: memref<64x128xbf16, #tpu.memory_space<vmem>>, %arg3: memref<128x256xbf16, #tpu.memory_space<vmem>>, %arg4: memref<1x256xf32, #tpu.memory_space<vmem>>, %arg5: memref<256x128xbf16, #tpu.memory_space<vmem>>, %arg6: memref<1x128xf32, #tpu.memory_space<vmem>>, %arg7: memref<64x128xf32, #tpu.memory_space<vmem>>, %arg8: memref<1x128xf32, #tpu.memory_space<vmem>>, %arg9: memref<1x128xf32, #tpu.memory_space<vmem>>, %arg10: memref<64x128xf32, #tpu.memory_space<vmem>>, %arg11: memref<64x128xf32, #tpu.memory_space<vmem>>) attributes {dimension_semantics = [#tpu.dimension_semantics<parallel>, #tpu.dimension_semantics<arbitrary>], iteration_bounds = array<i64: 1, 1>, scalar_prefetch = 0 : i64, scratch_operands = 1 : i64, tpu.core_type = #tpu.core_type<tc>, window_params = [{transform_indices = @transform_0, window_bounds = array<i64: 64, 128>}, {transform_indices = @transform_1, window_bounds = array<i64: 128, 256>}, {transform_indices = @transform_2, window_bounds = array<i64: 1, 256>}, {transform_indices = @transform_3, window_bounds = array<i64: 256, 128>}, {pipeline_mode = #tpu.pipeline_mode<synchronous>, transform_indices = @transform_4, window_bounds = array<i64: 1, 128>}, {transform_indices = @transform_5, window_bounds = array<i64: 64, 128>}, {pipeline_mode = #tpu.pipeline_mode<synchronous>, transform_indices = @transform_6, window_bounds = array<i64: 1, 128>}, {pipeline_mode = #tpu.pipeline_mode<synchronous>, transform_indices = @transform_7, window_bounds = array<i64: 1, 128>}, {transform_indices = @transform_8, window_bounds = array<i64: 64, 128>}]} {
    %c0_i32 = arith.constant 0 : i32
    %0 = arith.cmpi eq, %arg1, %c0_i32 : i32
    %1 = arith.extui %0 : i1 to i32
    %c0_i32_0 = arith.constant 0 : i32
    %2 = arith.cmpi ne, %1, %c0_i32_0 : i32
    scf.if %2 {
      %cst_30 = arith.constant 0.000000e+00 : f32
      %58 = vector.broadcast %cst_30 : f32 to vector<64x128xf32>
      %c0_31 = arith.constant 0 : index
      %c0_32 = arith.constant 0 : index
      %59 = vector.load %arg11[%c0_31, %c0_32] : memref<64x128xf32, #tpu.memory_space<vmem>>, vector<64x128xf32>
      tpu.vector_store %arg11[%c0_31, %c0_32], %58 {strides = array<i32>} : memref<64x128xf32, #tpu.memory_space<vmem>>, vector<64x128xf32>,
    } else {
    }
    %c0 = arith.constant 0 : index
    %c0_1 = arith.constant 0 : index
    %3 = vector.load %arg2[%c0, %c0_1] : memref<64x128xbf16, #tpu.memory_space<vmem>>, vector<64x128xbf16>
    %c0_2 = arith.constant 0 : index
    %c0_3 = arith.constant 0 : index
    %4 = vector.load %arg3[%c0_2, %c0_3] : memref<128x256xbf16, #tpu.memory_space<vmem>>, vector<128x256xbf16>
    %cst = arith.constant dense<0.000000e+00> : vector<64x256xf32>
    %5 = tpu.matmul %3, %4, %cst {dimension_numbers = #tpu.dot_dimension_numbers<[1], [0], [0], [1], [0, 0, 1, 1], [], []>} : vector<64x128xbf16>, vector<128x256xbf16>, vector<64x256xf32> -> vector<64x256xf32>
    %c0_4 = arith.constant 0 : index
    %c0_5 = arith.constant 0 : index
    %6 = vector.load %arg4[%c0_4, %c0_5] : memref<1x256xf32, #tpu.memory_space<vmem>>, vector<1x256xf32>
    %7 = vector.broadcast %6 : vector<1x256xf32> to vector<64x256xf32>
    %8 = arith.addf %5, %7 : vector<64x256xf32>
    %cst_6 = arith.constant 5.000000e-01 : f32
    %9 = vector.broadcast %cst_6 : f32 to vector<64x256xf32>
    %10 = arith.mulf %9, %8 : vector<64x256xf32>
    %cst_7 = arith.constant 0.707106769 : f32
    %11 = vector.broadcast %cst_7 : f32 to vector<64x256xf32>
    %12 = arith.mulf %8, %11 : vector<64x256xf32>
    %13 = math.absf %12 : vector<64x256xf32>
    %cst_8 = arith.constant 0.327591091 : f32
    %14 = vector.broadcast %cst_8 : f32 to vector<64x256xf32>
    %15 = arith.mulf %14, %13 : vector<64x256xf32>
    %cst_9 = arith.constant 1.000000e+00 : f32
    %16 = vector.broadcast %cst_9 : f32 to vector<64x256xf32>
    %17 = arith.addf %16, %15 : vector<64x256xf32>
    %cst_10 = arith.constant 1.000000e+00 : f32
    %18 = vector.broadcast %cst_10 : f32 to vector<64x256xf32>
    %19 = arith.divf %18, %17 : vector<64x256xf32>
    %cst_11 = arith.constant 1.06140542 : f32
    %20 = vector.broadcast %cst_11 : f32 to vector<64x256xf32>
    %21 = arith.mulf %19, %20 : vector<64x256xf32>
    %cst_12 = arith.constant -1.45315206 : f32
    %22 = vector.broadcast %cst_12 : f32 to vector<64x256xf32>
    %23 = arith.addf %22, %21 : vector<64x256xf32>
    %24 = arith.mulf %19, %23 : vector<64x256xf32>
    %cst_13 = arith.constant 1.42141378 : f32
    %25 = vector.broadcast %cst_13 : f32 to vector<64x256xf32>
    %26 = arith.addf %25, %24 : vector<64x256xf32>
    %27 = arith.mulf %19, %26 : vector<64x256xf32>
    %cst_14 = arith.constant -0.284496725 : f32
    %28 = vector.broadcast %cst_14 : f32 to vector<64x256xf32>
    %29 = arith.addf %28, %27 : vector<64x256xf32>
    %30 = arith.mulf %19, %29 : vector<64x256xf32>
    %cst_15 = arith.constant 0.254829586 : f32
    %31 = vector.broadcast %cst_15 : f32 to vector<64x256xf32>
    %32 = arith.addf %31, %30 : vector<64x256xf32>
    %33 = arith.mulf %19, %32 : vector<64x256xf32>
    %34 = arith.mulf %13, %13 : vector<64x256xf32>
    %cst_16 = arith.constant 0.000000e+00 : f32
    %35 = vector.broadcast %cst_16 : f32 to vector<64x256xf32>
    %36 = arith.subf %35, %34 : vector<64x256xf32>
    %37 = math.exp %36 : vector<64x256xf32>
    %38 = arith.mulf %33, %37 : vector<64x256xf32>
    %cst_17 = arith.constant 1.000000e+00 : f32
    %39 = vector.broadcast %cst_17 : f32 to vector<64x256xf32>
    %40 = arith.subf %39, %38 : vector<64x256xf32>
    %cst_18 = arith.constant 0.000000e+00 : f32
    %41 = vector.broadcast %cst_18 : f32 to vector<64x256xf32>
    %42 = arith.cmpf oge, %12, %41 : vector<64x256xf32>
    %cst_19 = arith.constant 0.000000e+00 : f32
    %43 = vector.broadcast %cst_19 : f32 to vector<64x256xf32>
    %44 = arith.subf %43, %40 : vector<64x256xf32>
    %45 = arith.select %42, %40, %44 : vector<64x256xi1>, vector<64x256xf32>
    %cst_20 = arith.constant 1.000000e+00 : f32
    %46 = vector.broadcast %cst_20 : f32 to vector<64x256xf32>
    %47 = arith.addf %46, %45 : vector<64x256xf32>
    %48 = arith.mulf %10, %47 : vector<64x256xf32>
    %c0_21 = arith.constant 0 : index
    %c0_22 = arith.constant 0 : index
    %49 = vector.load %arg11[%c0_21, %c0_22] : memref<64x128xf32, #tpu.memory_space<vmem>>, vector<64x128xf32>
    %50 = arith.truncf %48 : vector<64x256xf32> to vector<64x256xbf16>
    %c0_23 = arith.constant 0 : index
    %c0_24 = arith.constant 0 : index
    %51 = vector.load %arg5[%c0_23, %c0_24] : memref<256x128xbf16, #tpu.memory_space<vmem>>, vector<256x128xbf16>
    %cst_25 = arith.constant dense<0.000000e+00> : vector<64x128xf32>
    %52 = tpu.matmul %50, %51, %cst_25 {dimension_numbers = #tpu.dot_dimension_numbers<[1], [0], [0], [1], [0, 0, 1, 1], [], []>} : vector<64x256xbf16>, vector<256x128xbf16>, vector<64x128xf32> -> vector<64x128xf32>
    %53 = arith.addf %49, %52 : vector<64x128xf32>
    %c0_26 = arith.constant 0 : index
    %c0_27 = arith.constant 0 : index
    %54 = vector.load %arg11[%c0_26, %c0_27] : memref<64x128xf32, #tpu.memory_space<vmem>>, vector<64x128xf32>
    tpu.vector_store %arg11[%c0_26, %c0_27], %53 {strides = array<i32>} : memref<64x128xf32, #tpu.memory_space<vmem>>, vector<64x128xf32>,
    %c0_i32_28 = arith.constant 0 : i32
    %55 = arith.cmpi eq, %arg1, %c0_i32_28 : i32
    %56 = arith.extui %55 : i1 to i32
    %c0_i32_29 = arith.constant 0 : i32
    %57 = arith.cmpi ne, %56, %c0_i32_29 : i32
    scf.if %57 {
      %c0_30 = arith.constant 0 : index
      %c0_31 = arith.constant 0 : index
      %58 = vector.load %arg11[%c0_30, %c0_31] : memref<64x128xf32, #tpu.memory_space<vmem>>, vector<64x128xf32>
      %c0_32 = arith.constant 0 : index
      %c0_33 = arith.constant 0 : index
      %59 = vector.load %arg6[%c0_32, %c0_33] : memref<1x128xf32, #tpu.memory_space<vmem>>, vector<1x128xf32>
      %60 = vector.broadcast %59 : vector<1x128xf32> to vector<64x128xf32>
      %61 = arith.addf %58, %60 : vector<64x128xf32>
      %c0_34 = arith.constant 0 : index
      %c0_35 = arith.constant 0 : index
      %62 = vector.load %arg7[%c0_34, %c0_35] : memref<64x128xf32, #tpu.memory_space<vmem>>, vector<64x128xf32>
      %63 = arith.addf %61, %62 : vector<64x128xf32>
      %cst_36 = arith.constant dense<0.000000e+00> : vector<64xf32>
      %64 = vector.multi_reduction <add>, %63, %cst_36 [1] : vector<64x128xf32> to vector<64xf32>
      %65 = vector.shape_cast %64 : vector<64xf32> to vector<64x1xf32>
      %cst_37 = arith.constant 1.280000e+02 : f32
      %66 = vector.broadcast %cst_37 : f32 to vector<64x1xf32>
      %67 = arith.divf %65, %66 : vector<64x1xf32>
      %68 = vector.broadcast %67 : vector<64x1xf32> to vector<64x128xf32>
      %69 = arith.subf %63, %68 : vector<64x128xf32>
      %70 = arith.mulf %69, %69 : vector<64x128xf32>
      %cst_38 = arith.constant dense<0.000000e+00> : vector<64xf32>
      %71 = vector.multi_reduction <add>, %70, %cst_38 [1] : vector<64x128xf32> to vector<64xf32>
      %72 = vector.shape_cast %71 : vector<64xf32> to vector<64x1xf32>
      %cst_39 = arith.constant 1.280000e+02 : f32
      %73 = vector.broadcast %cst_39 : f32 to vector<64x1xf32>
      %74 = arith.divf %72, %73 : vector<64x1xf32>
      %75 = vector.broadcast %67 : vector<64x1xf32> to vector<64x128xf32>
      %76 = arith.subf %63, %75 : vector<64x128xf32>
      %cst_40 = arith.constant 9.99999996E-13 : f32
      %77 = vector.broadcast %cst_40 : f32 to vector<64x1xf32>
      %78 = arith.addf %74, %77 : vector<64x1xf32>
      %79 = math.rsqrt %78 : vector<64x1xf32>
      %80 = vector.broadcast %79 : vector<64x1xf32> to vector<64x128xf32>
      %81 = arith.mulf %76, %80 : vector<64x128xf32>
      %c0_41 = arith.constant 0 : index
      %c0_42 = arith.constant 0 : index
      %82 = vector.load %arg8[%c0_41, %c0_42] : memref<1x128xf32, #tpu.memory_space<vmem>>, vector<1x128xf32>
      %83 = vector.broadcast %82 : vector<1x128xf32> to vector<64x128xf32>
      %84 = arith.mulf %81, %83 : vector<64x128xf32>
      %c0_43 = arith.constant 0 : index
      %c0_44 = arith.constant 0 : index
      %85 = vector.load %arg9[%c0_43, %c0_44] : memref<1x128xf32, #tpu.memory_space<vmem>>, vector<1x128xf32>
      %86 = vector.broadcast %85 : vector<1x128xf32> to vector<64x128xf32>
      %87 = arith.addf %84, %86 : vector<64x128xf32>
      %c0_45 = arith.constant 0 : index
      %c0_46 = arith.constant 0 : index
      %88 = vector.load %arg10[%c0_45, %c0_46] : memref<64x128xf32, #tpu.memory_space<vmem>>, vector<64x128xf32>
      tpu.vector_store %arg10[%c0_45, %c0_46], %87 {strides = array<i32>} : memref<64x128xf32, #tpu.memory_space<vmem>>, vector<64x128xf32>,
    } else {
    }
    return
  }
  func.func @transform_0(%arg0: i32, %arg1: i32) -> (i32, i32) {
    %c0_i32 = arith.constant 0 : i32
    %c0_i32_0 = arith.constant 0 : i32
    return %arg0, %c0_i32 : i32, i32
  }
  func.func @transform_1(%arg0: i32, %arg1: i32) -> (i32, i32) {
    %c0_i32 = arith.constant 0 : i32
    %c0_i32_0 = arith.constant 0 : i32
    return %c0_i32, %arg1 : i32, i32
  }
  func.func @transform_2(%arg0: i32, %arg1: i32) -> (i32, i32) {
    %c0_i32 = arith.constant 0 : i32
    %c0_i32_0 = arith.constant 0 : i32
    return %c0_i32, %arg1 : i32, i32
  }
  func.func @transform_3(%arg0: i32, %arg1: i32) -> (i32, i32) {
    %c0_i32 = arith.constant 0 : i32
    %c0_i32_0 = arith.constant 0 : i32
    return %arg1, %c0_i32 : i32, i32
  }
  func.func @transform_4(%arg0: i32, %arg1: i32) -> (i32, i32) {
    %c0_i32 = arith.constant 0 : i32
    %c0_i32_0 = arith.constant 0 : i32
    %c0_i32_1 = arith.constant 0 : i32
    return %c0_i32, %c0_i32_0 : i32, i32
  }
  func.func @transform_5(%arg0: i32, %arg1: i32) -> (i32, i32) {
    %c0_i32 = arith.constant 0 : i32
    %c0_i32_0 = arith.constant 0 : i32
    return %arg0, %c0_i32 : i32, i32
  }
  func.func @transform_6(%arg0: i32, %arg1: i32) -> (i32, i32) {
    %c0_i32 = arith.constant 0 : i32
    %c0_i32_0 = arith.constant 0 : i32
    %c0_i32_1 = arith.constant 0 : i32
    return %c0_i32, %c0_i32_0 : i32, i32
  }
  func.func @transform_7(%arg0: i32, %arg1: i32) -> (i32, i32) {
    %c0_i32 = arith.constant 0 : i32
    %c0_i32_0 = arith.constant 0 : i32
    %c0_i32_1 = arith.constant 0 : i32
    return %c0_i32, %c0_i32_0 : i32, i32
  }
  func.func @transform_8(%arg0: i32, %arg1: i32) -> (i32, i32) {
    %c0_i32 = arith.constant 0 : i32
    %c0_i32_0 = arith.constant 0 : i32
    return %arg0, %c0_i32 : i32, i32
  }
}

module attributes {stable_mosaic.version = 11 : i64} {
  func.func @_ffn_kernel(%arg0: i32, %arg1: i32, %arg2: memref<64x128xbf16, #tpu.memory_space<vmem>>, %arg3: memref<128x256xbf16, #tpu.memory_space<vmem>>, %arg4: memref<1x256xf32, #tpu.memory_space<vmem>>, %arg5: memref<256x128xbf16, #tpu.memory_space<vmem>>, %arg6: memref<1x128xf32, #tpu.memory_space<vmem>>, %arg7: memref<64x128xf32, #tpu.memory_space<vmem>>, %arg8: memref<1x128xf32, #tpu.memory_space<vmem>>, %arg9: memref<1x128xf32, #tpu.memory_space<vmem>>, %arg10: memref<64x128xf32, #tpu.memory_space<vmem>>, %arg11: memref<64x128xf32, #tpu.memory_space<vmem>>) attributes {dimension_semantics = [#tpu.dimension_semantics<parallel>, #tpu.dimension_semantics<arbitrary>], iteration_bounds = array<i64: 1, 1>, scalar_prefetch = 0 : i64, scratch_operands = 1 : i64, tpu.core_type = #tpu.core_type<tc>, window_params = [{transform_indices = @transform_0, window_bounds = array<i64: 64, 128>}, {transform_indices = @transform_1, window_bounds = array<i64: 128, 256>}, {transform_indices = @transform_2, window_bounds = array<i64: 1, 256>}, {transform_indices = @transform_3, window_bounds = array<i64: 256, 128>}, {pipeline_mode = #tpu.pipeline_mode<synchronous>, transform_indices = @transform_4, window_bounds = array<i64: 1, 128>}, {transform_indices = @transform_5, window_bounds = array<i64: 64, 128>}, {pipeline_mode = #tpu.pipeline_mode<synchronous>, transform_indices = @transform_6, window_bounds = array<i64: 1, 128>}, {pipeline_mode = #tpu.pipeline_mode<synchronous>, transform_indices = @transform_7, window_bounds = array<i64: 1, 128>}, {transform_indices = @transform_8, window_bounds = array<i64: 64, 128>}]} {
    %c0_i32 = arith.constant 0 : i32
    %0 = arith.cmpi eq, %arg1, %c0_i32 : i32
    %1 = arith.extui %0 : i1 to i32
    %c0_i32_0 = arith.constant 0 : i32
    %2 = arith.cmpi ne, %1, %c0_i32_0 : i32
    scf.if %2 {
      %cst_30 = arith.constant 0.000000e+00 : f32
      %58 = vector.broadcast %cst_30 : f32 to vector<64x128xf32>
      %c0_31 = arith.constant 0 : index
      %c0_32 = arith.constant 0 : index
      %59 = vector.load %arg11[%c0_31, %c0_32] : memref<64x128xf32, #tpu.memory_space<vmem>>, vector<64x128xf32>
      tpu.vector_store %arg11[%c0_31, %c0_32], %58 {strides = array<i32>} : memref<64x128xf32, #tpu.memory_space<vmem>>, vector<64x128xf32>,
    } else {
    }
    %c0 = arith.constant 0 : index
    %c0_1 = arith.constant 0 : index
    %3 = vector.load %arg2[%c0, %c0_1] : memref<64x128xbf16, #tpu.memory_space<vmem>>, vector<64x128xbf16>
    %c0_2 = arith.constant 0 : index
    %c0_3 = arith.constant 0 : index
    %4 = vector.load %arg3[%c0_2, %c0_3] : memref<128x256xbf16, #tpu.memory_space<vmem>>, vector<128x256xbf16>
    %cst = arith.constant dense<0.000000e+00> : vector<64x256xf32>
    %5 = tpu.matmul %3, %4, %cst {dimension_numbers = #tpu.dot_dimension_numbers<[1], [0], [0], [1], [0, 0, 1, 1], [], []>} : vector<64x128xbf16>, vector<128x256xbf16>, vector<64x256xf32> -> vector<64x256xf32>
    %c0_4 = arith.constant 0 : index
    %c0_5 = arith.constant 0 : index
    %6 = vector.load %arg4[%c0_4, %c0_5] : memref<1x256xf32, #tpu.memory_space<vmem>>, vector<1x256xf32>
    %7 = vector.broadcast %6 : vector<1x256xf32> to vector<64x256xf32>
    %8 = arith.addf %5, %7 : vector<64x256xf32>
    %cst_6 = arith.constant 5.000000e-01 : f32
    %9 = vector.broadcast %cst_6 : f32 to vector<64x256xf32>
    %10 = arith.mulf %9, %8 : vector<64x256xf32>
    %cst_7 = arith.constant 0.707106769 : f32
    %11 = vector.broadcast %cst_7 : f32 to vector<64x256xf32>
    %12 = arith.mulf %8, %11 : vector<64x256xf32>
    %13 = math.absf %12 : vector<64x256xf32>
    %cst_8 = arith.constant 0.327591091 : f32
    %14 = vector.broadcast %cst_8 : f32 to vector<64x256xf32>
    %15 = arith.mulf %14, %13 : vector<64x256xf32>
    %cst_9 = arith.constant 1.000000e+00 : f32
    %16 = vector.broadcast %cst_9 : f32 to vector<64x256xf32>
    %17 = arith.addf %16, %15 : vector<64x256xf32>
    %cst_10 = arith.constant 1.000000e+00 : f32
    %18 = vector.broadcast %cst_10 : f32 to vector<64x256xf32>
    %19 = arith.divf %18, %17 : vector<64x256xf32>
    %cst_11 = arith.constant 1.06140542 : f32
    %20 = vector.broadcast %cst_11 : f32 to vector<64x256xf32>
    %21 = arith.mulf %19, %20 : vector<64x256xf32>
    %cst_12 = arith.constant -1.45315206 : f32
    %22 = vector.broadcast %cst_12 : f32 to vector<64x256xf32>
    %23 = arith.addf %22, %21 : vector<64x256xf32>
    %24 = arith.mulf %19, %23 : vector<64x256xf32>
    %cst_13 = arith.constant 1.42141378 : f32
    %25 = vector.broadcast %cst_13 : f32 to vector<64x256xf32>
    %26 = arith.addf %25, %24 : vector<64x256xf32>
    %27 = arith.mulf %19, %26 : vector<64x256xf32>
    %cst_14 = arith.constant -0.284496725 : f32
    %28 = vector.broadcast %cst_14 : f32 to vector<64x256xf32>
    %29 = arith.addf %28, %27 : vector<64x256xf32>
    %30 = arith.mulf %19, %29 : vector<64x256xf32>
    %cst_15 = arith.constant 0.254829586 : f32
    %31 = vector.broadcast %cst_15 : f32 to vector<64x256xf32>
    %32 = arith.addf %31, %30 : vector<64x256xf32>
    %33 = arith.mulf %19, %32 : vector<64x256xf32>
    %34 = arith.mulf %13, %13 : vector<64x256xf32>
    %cst_16 = arith.constant 0.000000e+00 : f32
    %35 = vector.broadcast %cst_16 : f32 to vector<64x256xf32>
    %36 = arith.subf %35, %34 : vector<64x256xf32>
    %37 = math.exp %36 : vector<64x256xf32>
    %38 = arith.mulf %33, %37 : vector<64x256xf32>
    %cst_17 = arith.constant 1.000000e+00 : f32
    %39 = vector.broadcast %cst_17 : f32 to vector<64x256xf32>
    %40 = arith.subf %39, %38 : vector<64x256xf32>
    %cst_18 = arith.constant 0.000000e+00 : f32
    %41 = vector.broadcast %cst_18 : f32 to vector<64x256xf32>
    %42 = arith.cmpf oge, %12, %41 : vector<64x256xf32>
    %cst_19 = arith.constant 0.000000e+00 : f32
    %43 = vector.broadcast %cst_19 : f32 to vector<64x256xf32>
    %44 = arith.subf %43, %40 : vector<64x256xf32>
    %45 = arith.select %42, %40, %44 : vector<64x256xi1>, vector<64x256xf32>
    %cst_20 = arith.constant 1.000000e+00 : f32
    %46 = vector.broadcast %cst_20 : f32 to vector<64x256xf32>
    %47 = arith.addf %46, %45 : vector<64x256xf32>
    %48 = arith.mulf %10, %47 : vector<64x256xf32>
    %c0_21 = arith.constant 0 : index
    %c0_22 = arith.constant 0 : index
    %49 = vector.load %arg11[%c0_21, %c0_22] : memref<64x128xf32, #tpu.memory_space<vmem>>, vector<64x128xf32>
    %50 = arith.truncf %48 : vector<64x256xf32> to vector<64x256xbf16>
    %c0_23 = arith.constant 0 : index
    %c0_24 = arith.constant 0 : index
    %51 = vector.load %arg5[%c0_23, %c0_24] : memref<256x128xbf16, #tpu.memory_space<vmem>>, vector<256x128xbf16>
    %cst_25 = arith.constant dense<0.000000e+00> : vector<64x128xf32>
    %52 = tpu.matmul %50, %51, %cst_25 {dimension_numbers = #tpu.dot_dimension_numbers<[1], [0], [0], [1], [0, 0, 1, 1], [], []>} : vector<64x256xbf16>, vector<256x128xbf16>, vector<64x128xf32> -> vector<64x128xf32>
    %53 = arith.addf %49, %52 : vector<64x128xf32>
    %c0_26 = arith.constant 0 : index
    %c0_27 = arith.constant 0 : index
    %54 = vector.load %arg11[%c0_26, %c0_27] : memref<64x128xf32, #tpu.memory_space<vmem>>, vector<64x128xf32>
    tpu.vector_store %arg11[%c0_26, %c0_27], %53 {strides = array<i32>} : memref<64x128xf32, #tpu.memory_space<vmem>>, vector<64x128xf32>,
    %c0_i32_28 = arith.constant 0 : i32
    %55 = arith.cmpi eq, %arg1, %c0_i32_28 : i32
    %56 = arith.extui %55 : i1 to i32
    %c0_i32_29 = arith.constant 0 : i32
    %57 = arith.cmpi ne, %56, %c0_i32_29 : i32
    scf.if %57 {
      %c0_30 = arith.constant 0 : index
      %c0_31 = arith.constant 0 : index
      %58 = vector.load %arg11[%c0_30, %c0_31] : memref<64x128xf32, #tpu.memory_space<vmem>>, vector<64x128xf32>
      %c0_32 = arith.constant 0 : index
      %c0_33 = arith.constant 0 : index
      %59 = vector.load %arg6[%c0_32, %c0_33] : memref<1x128xf32, #tpu.memory_space<vmem>>, vector<1x128xf32>
      %60 = vector.broadcast %59 : vector<1x128xf32> to vector<64x128xf32>
      %61 = arith.addf %58, %60 : vector<64x128xf32>
      %c0_34 = arith.constant 0 : index
      %c0_35 = arith.constant 0 : index
      %62 = vector.load %arg7[%c0_34, %c0_35] : memref<64x128xf32, #tpu.memory_space<vmem>>, vector<64x128xf32>
      %63 = arith.addf %61, %62 : vector<64x128xf32>
      %cst_36 = arith.constant dense<0.000000e+00> : vector<64xf32>
      %64 = vector.multi_reduction <add>, %63, %cst_36 [1] : vector<64x128xf32> to vector<64xf32>
      %65 = vector.shape_cast %64 : vector<64xf32> to vector<64x1xf32>
      %cst_37 = arith.constant 1.280000e+02 : f32
      %66 = vector.broadcast %cst_37 : f32 to vector<64x1xf32>
      %67 = arith.divf %65, %66 : vector<64x1xf32>
      %68 = vector.broadcast %67 : vector<64x1xf32> to vector<64x128xf32>
      %69 = arith.subf %63, %68 : vector<64x128xf32>
      %70 = arith.mulf %69, %69 : vector<64x128xf32>
      %cst_38 = arith.constant dense<0.000000e+00> : vector<64xf32>
      %71 = vector.multi_reduction <add>, %70, %cst_38 [1] : vector<64x128xf32> to vector<64xf32>
      %72 = vector.shape_cast %71 : vector<64xf32> to vector<64x1xf32>
      %cst_39 = arith.constant 1.280000e+02 : f32
      %73 = vector.broadcast %cst_39 : f32 to vector<64x1xf32>
      %74 = arith.divf %72, %73 : vector<64x1xf32>
      %75 = vector.broadcast %67 : vector<64x1xf32> to vector<64x128xf32>
      %76 = arith.subf %63, %75 : vector<64x128xf32>
      %cst_40 = arith.constant 9.99999996E-13 : f32
      %77 = vector.broadcast %cst_40 : f32 to vector<64x1xf32>
      %78 = arith.addf %74, %77 : vector<64x1xf32>
      %79 = math.rsqrt %78 : vector<64x1xf32>
      %80 = vector.broadcast %79 : vector<64x1xf32> to vector<64x128xf32>
      %81 = arith.mulf %76, %80 : vector<64x128xf32>
      %c0_41 = arith.constant 0 : index
      %c0_42 = arith.constant 0 : index
      %82 = vector.load %arg8[%c0_41, %c0_42] : memref<1x128xf32, #tpu.memory_space<vmem>>, vector<1x128xf32>
      %83 = vector.broadcast %82 : vector<1x128xf32> to vector<64x128xf32>
      %84 = arith.mulf %81, %83 : vector<64x128xf32>
      %c0_43 = arith.constant 0 : index
      %c0_44 = arith.constant 0 : index
      %85 = vector.load %arg9[%c0_43, %c0_44] : memref<1x128xf32, #tpu.memory_space<vmem>>, vector<1x128xf32>
      %86 = vector.broadcast %85 : vector<1x128xf32> to vector<64x128xf32>
      %87 = arith.addf %84, %86 : vector<64x128xf32>
      %c0_45 = arith.constant 0 : index
      %c0_46 = arith.constant 0 : index
      %88 = vector.load %arg10[%c0_45, %c0_46] : memref<64x128xf32, #tpu.memory_space<vmem>>, vector<64x128xf32>
      tpu.vector_store %arg10[%c0_45, %c0_46], %87 {strides = array<i32>} : memref<64x128xf32, #tpu.memory_space<vmem>>, vector<64x128xf32>,
    } else {
    }
    return
  }
  func.func @transform_0(%arg0: i32, %arg1: i32) -> (i32, i32) {
    %c0_i32 = arith.constant 0 : i32
    %c0_i32_0 = arith.constant 0 : i32
    return %arg0, %c0_i32 : i32, i32
  }
  func.func @transform_1(%arg0: i32, %arg1: i32) -> (i32, i32) {
    %c0_i32 = arith.constant 0 : i32
    %c0_i32_0 = arith.constant 0 : i32
    return %c0_i32, %arg1 : i32, i32
  }
  func.func @transform_2(%arg0: i32, %arg1: i32) -> (i32, i32) {
    %c0_i32 = arith.constant 0 : i32
    %c0_i32_0 = arith.constant 0 : i32
    return %c0_i32, %arg1 : i32, i32
  }
  func.func @transform_3(%arg0: i32, %arg1: i32) -> (i32, i32) {
    %c0_i32 = arith.constant 0 : i32
    %c0_i32_0 = arith.constant 0 : i32
    return %arg1, %c0_i32 : i32, i32
  }
  func.func @transform_4(%arg0: i32, %arg1: i32) -> (i32, i32) {
    %c0_i32 = arith.constant 0 : i32
    %c0_i32_0 = arith.constant 0 : i32
    %c0_i32_1 = arith.constant 0 : i32
    return %c0_i32, %c0_i32_0 : i32, i32
  }
  func.func @transform_5(%arg0: i32, %arg1: i32) -> (i32, i32) {
    %c0_i32 = arith.constant 0 : i32
    %c0_i32_0 = arith.constant 0 : i32
    return %arg0, %c0_i32 : i32, i32
  }
  func.func @transform_6(%arg0: i32, %arg1: i32) -> (i32, i32) {
    %c0_i32 = arith.constant 0 : i32
    %c0_i32_0 = arith.constant 0 : i32
    %c0_i32_1 = arith.constant 0 : i32
    return %c0_i32, %c0_i32_0 : i32, i32
  }
  func.func @transform_7(%arg0: i32, %arg1: i32) -> (i32, i32) {
    %c0_i32 = arith.constant 0 : i32
    %c0_i32_0 = arith.constant 0 : i32
    %c0_i32_1 = arith.constant 0 : i32
    return %c0_i32, %c0_i32_0 : i32, i32
  }
  func.func @transform_8(%arg0: i32, %arg1: i32) -> (i32, i32) {
    %c0_i32 = arith.constant 0 : i32
    %c0_i32_0 = arith.constant 0 : i32
    return %arg0, %c0_i32 : i32, i32
  }
}

</mosaic_0001>

<bundles_post_ra>
// kernel: bert_encoder.10
= control target key start
LH: loop header
LB: loop body
LE: loop exit
PB: predicated region body
PF: predicated region fallthrough
CT: control target
= control target key end

     0   :  { %v532_v45 = vmov 128.0   ;;  %s770_s1 = inlined_call_operand.vmem [shape: bf16[128,128], index: 1, kind: input, shape index: {}]   ;;  %s771_s2 = inlined_call_operand.vmem [shape: f32[1,128], index: 2, kind: input, shape index: {}]   ;;  %s772_s0 = inlined_call_operand.vmem [shape: bf16[64,128], index: 0, kind: input, shape index: {}]   ;;  %s773_s3 = inlined_call_operand.vmem [shape: f32[64,128], index: 3, kind: input, shape index: {}]   ;;  %s774_s4 = inlined_call_operand.vmem [shape: f32[1,128], index: 4, kind: input, shape index: {}]   ;;  %s775_s5 = inlined_call_operand.vmem [shape: f32[1,128], index: 5, kind: input, shape index: {}]   ;;  %s776_s6 = inlined_call_operand.vmem [shape: f32[64,128], index: 6, kind: output, shape index: {}]  }
   0x1   :  { %v485_v0 = vld [vmem:[%s770_s1 + $0x38] sm:$0xff]  ;;  %v484_v1 = vld [vmem:[%s770_s1 + $0x30] sm:$0xff]  ;;  %v483_v2 = vld [vmem:[%s770_s1 + $0x28] sm:$0xff]  ;;  %514 = vrcp.f32 %v532_v45 }
   0x2   :  { %139 = vmatpush.bf16.msra.mxu0 %v485_v0  ;;  %486 = vmatpush.bf16.msra.mxu1 %v485_v0  ;;  %v482_v3 = vld [vmem:[%s770_s1 + $0x20] sm:$0xff]  ;;  %v481_v4 = vld [vmem:[%s770_s1 + $0x18] sm:$0xff]  ;;  %v480_v5 = vld [vmem:[%s770_s1 + $0x10] sm:$0xff] }
   0x3   :  { %487 = vmatpush.bf16.msra.mxu2 %v485_v0  ;;  %488 = vmatpush.bf16.msra.mxu3 %v485_v0  ;;  %v479_v6 = vld [vmem:[%s770_s1 + $0x8] sm:$0xff]  ;;  %v478_v7 = vld [vmem:[%s770_s1] sm:$0xff]  ;;  %v476_v10 = vld [vmem:[%s772_s0 + $0x10] sm:$0xff] }
   0x4   :  { %v474_v8 = vld [vmem:[%s772_s0] sm:$0xff]  ;;  %v475_v9 = vld [vmem:[%s772_s0 + $0x8] sm:$0xff]  ;;  %v477_v11 = vld [vmem:[%s772_s0 + $0x18] sm:$0xff] }
   0x5   :  { %v511_v12 = vld [vmem:[%s771_s2] ss:$0 sm:$0xff]  ;;  %v209_v15 = vld [vmem:[%s773_s3 + $0x10] sm:$0xff]  ;;  %v210_v27 = vld [vmem:[%s773_s3 + $0x18] sm:$0xff] }
   0x6   :  { %140 = vmatpush.bf16.msra.mxu0 %v484_v1  ;;  %489 = vmatpush.bf16.msra.mxu1 %v484_v1  ;;  %v207_v16 = vld [vmem:[%s773_s3] sm:$0xff]  ;;  %v208_v28 = vld [vmem:[%s773_s3 + $0x8] sm:$0xff]  ;;  %v214_v40 = vld [vmem:[%s773_s3 + $0x38] sm:$0xff] }
   0x7   :  { %490 = vmatpush.bf16.msra.mxu2 %v484_v1  ;;  %491 = vmatpush.bf16.msra.mxu3 %v484_v1  ;;  %v211_v23 = vld [vmem:[%s773_s3 + $0x20] sm:$0xff]  ;;  %v212_v37 = vld [vmem:[%s773_s3 + $0x28] sm:$0xff]  ;;  %v213_v41 = vld [vmem:[%s773_s3 + $0x30] sm:$0xff]  ;;  %v515_v46 = vpop.eup %514 }
   0x8   :  { %v240_v47 = vmul.f32 128.0, %v515_v46  ;;  %vm244_vm0 = vweird.f32 %v515_v46 }
   0xa   :  { %141 = vmatpush.bf16.msra.mxu0 %v483_v2  ;;  %492 = vmatpush.bf16.msra.mxu1 %v483_v2  ;;  %v241_v48 = vsub.f32 1.0, %v240_v47 }
   0xb   :  { %493 = vmatpush.bf16.msra.mxu2 %v483_v2  ;;  %494 = vmatpush.bf16.msra.mxu3 %v483_v2 }
   0xc   :  { %v242_v49 = vmul.f32 %v515_v46, %v241_v48 }
   0xe   :  { %142 = vmatpush.bf16.msra.mxu0 %v482_v3  ;;  %495 = vmatpush.bf16.msra.mxu1 %v482_v3  ;;  %v243_v50 = vadd.f32 %v515_v46, %v242_v49 }
   0xf   :  { %496 = vmatpush.bf16.msra.mxu2 %v482_v3  ;;  %497 = vmatpush.bf16.msra.mxu3 %v482_v3 }
  0x10   :  { %v631_v51 = vsel %vm244_vm0, %v515_v46, %v243_v50 }
  0x12   :  { %143 = vmatpush.bf16.msra.mxu0 %v481_v4  ;;  %498 = vmatpush.bf16.msra.mxu1 %v481_v4 }
  0x13   :  { %499 = vmatpush.bf16.msra.mxu2 %v481_v4  ;;  %500 = vmatpush.bf16.msra.mxu3 %v481_v4 }
  0x16   :  { %144 = vmatpush.bf16.msra.mxu0 %v480_v5  ;;  %501 = vmatpush.bf16.msra.mxu1 %v480_v5 }
  0x17   :  { %502 = vmatpush.bf16.msra.mxu2 %v480_v5  ;;  %503 = vmatpush.bf16.msra.mxu3 %v480_v5 }
  0x1a   :  { %145 = vmatpush.bf16.msra.mxu0 %v479_v6  ;;  %504 = vmatpush.bf16.msra.mxu1 %v479_v6 }
  0x1b   :  { %505 = vmatpush.bf16.msra.mxu2 %v479_v6  ;;  %506 = vmatpush.bf16.msra.mxu3 %v479_v6 }
  0x1e   :  { %146 = vmatpush.bf16.msra.mxu0 %v478_v7  ;;  %507 = vmatpush.bf16.msra.mxu1 %v478_v7 }
  0x1f   :  { %508 = vmatpush.bf16.msra.mxu2 %v478_v7  ;;  %509 = vmatpush.bf16.msra.mxu3 %v478_v7 }
  0x21   :  { %147 = vmatmul.bf16.vlgmr.msra.gmra.mxu0 %v474_v8  ;;  %152 = vmatmul.bf16.vlgmr.msra.gmra.mxu1 %v475_v9 }
  0x22   :  { %157 = vmatmul.bf16.vlgmr.msra.gmra.mxu2 %v476_v10  ;;  %162 = vmatmul.bf16.vlgmr.msra.gmra.mxu3 %v477_v11 }
  0x9e   :  { %v148_v13 = vpop.f32.mrf.mxu0  ;;  %v153_v14 = vpop.f32.mrf.mxu1 }
  0x9f   :  { %v199_v17 = vadd.f32 %v511_v12, %v148_v13  ;;  %v201_v18 = vadd.f32 %v511_v12, %v153_v14 }
  0xa1   :  { %v217_v19 = vadd.f32 %v209_v15, %v201_v18  ;;  %v215_v20 = vadd.f32 %v207_v16, %v199_v17 }
  0xa3   :  { %227 = vadd.xlane.f32.xlu1 %v217_v19  ;;  %223 = vadd.xlane.f32.xlu0 %v215_v20 }
  0xa5   :  { %v158_v21 = vpop.f32.mrf.mxu2  ;;  %v163_v22 = vpop.f32.mrf.mxu3 }
  0xa6   :  { %v203_v24 = vadd.f32 %v511_v12, %v158_v21  ;;  %v150_v25 = vpop.f32.mrf.mxu0  ;;  %v155_v26 = vpop.f32.mrf.mxu1  ;;  %v205_v34 = vadd.f32 %v511_v12, %v163_v22 }
  0xa7   :  { %v200_v29 = vadd.f32 %v511_v12, %v150_v25  ;;  %v202_v30 = vadd.f32 %v511_v12, %v155_v26 }
  0xa8   :  { %v219_v31 = vadd.f32 %v211_v23, %v203_v24  ;;  %v221_v44 = vadd.f32 %v213_v41, %v205_v34 }
  0xa9   :  { %v218_v32 = vadd.f32 %v210_v27, %v202_v30  ;;  %v216_v33 = vadd.f32 %v208_v28, %v200_v29 }
  0xaa   :  { %231 = vadd.xlane.f32.xlu2 %v219_v31 }
  0xab   :  { %229 = vadd.xlane.f32.xlu1 %v218_v32  ;;  %225 = vadd.xlane.f32.xlu0 %v216_v33 }
  0xad   :  { %v160_v35 = vpop.f32.mrf.mxu2  ;;  %v165_v36 = vpop.f32.mrf.mxu3 }
  0xae   :  { %v204_v38 = vadd.f32 %v511_v12, %v160_v35  ;;  %v206_v39 = vadd.f32 %v511_v12, %v165_v36 }
  0xb0   :  { %v220_v42 = vadd.f32 %v212_v37, %v204_v38  ;;  %v222_v43 = vadd.f32 %v214_v40, %v206_v39 }
  0xb2   :  { %233 = vadd.xlane.f32.xlu2 %v220_v42 }
  0xb3   :  { %237 = vadd.xlane.f32.xlu1 %v222_v43  ;;  %235 = vadd.xlane.f32.xlu0 %v221_v44 }
 0x116   :  { %v228_v52 = vpop.xlane.xlu1 %227  ;;  %v224_v53 = vpop.xlane.xlu0 %223 }
 0x117   :  { %v248_v54 = vmul.f32 %v631_v51, %v228_v52  ;;  %v246_v55 = vmul.f32 %v631_v51, %v224_v53 }
 0x119   :  { %v635_v56 = vsub.f32 %v217_v19, %v248_v54  ;;  %v637_v57 = vsub.f32 %v215_v20, %v246_v55 }
 0x11b   :  { %v264_v58 = vmul.f32 %v635_v56, %v635_v56  ;;  %v262_v59 = vmul.f32 %v637_v57, %v637_v57 }
 0x11d   :  { %v232_v60 = vpop.xlane.xlu2 %231  ;;  %274 = vadd.xlane.f32.xlu1 %v264_v58  ;;  %270 = vadd.xlane.f32.xlu2 %v262_v59  ;;  %v698_v59 = vld [vmem:[%s774_s4] ss:$0 sm:$0xff] }
 0x11e   :  { %v250_v61 = vmul.f32 %v631_v51, %v232_v60  ;;  %v230_v62 = vpop.xlane.xlu1 %229  ;;  %v226_v63 = vpop.xlane.xlu0 %225 }
 0x11f   :  { %v249_v0 = vmul.f32 %v631_v51, %v230_v62  ;;  %v247_v3 = vmul.f32 %v631_v51, %v226_v63 }
 0x120   :  { %v645_v1 = vsub.f32 %v219_v31, %v250_v61 }
 0x121   :  { %v647_v2 = vsub.f32 %v218_v32, %v249_v0  ;;  %v654_v7 = vsub.f32 %v216_v33, %v247_v3  ;;  %v705_v0 = vld [vmem:[%s775_s5] ss:$0 sm:$0xff] }
 0x122   :  { %v266_v4 = vmul.f32 %v645_v1, %v645_v1 }
 0x123   :  { %v265_v5 = vmul.f32 %v647_v2, %v647_v2  ;;  %v263_v16 = vmul.f32 %v654_v7, %v654_v7 }
 0x124   :  { %278 = vadd.xlane.f32.xlu0 %v266_v4 }
 0x125   :  { %v234_v6 = vpop.xlane.xlu2 %233  ;;  %276 = vadd.xlane.f32.xlu2 %v265_v5 }
 0x126   :  { %v251_v8 = vmul.f32 %v631_v51, %v234_v6  ;;  %v236_v9 = vpop.xlane.xlu0 %235  ;;  %v238_v10 = vpop.xlane.xlu1 %237 }
 0x127   :  { %v252_v11 = vmul.f32 %v631_v51, %v236_v9  ;;  %v253_v14 = vmul.f32 %v631_v51, %v238_v10 }
 0x128   :  { %v658_v12 = vsub.f32 %v220_v42, %v251_v8 }
 0x129   :  { %v660_v13 = vsub.f32 %v221_v44, %v252_v11  ;;  %v669_v18 = vsub.f32 %v222_v43, %v253_v14 }
 0x12a   :  { %v267_v15 = vmul.f32 %v658_v12, %v658_v12 }
 0x12b   :  { %v268_v17 = vmul.f32 %v660_v13, %v660_v13  ;;  %v269_v19 = vmul.f32 %v669_v18, %v669_v18 }
 0x12c   :  { %280 = vadd.xlane.f32.xlu1 %v267_v15  ;;  %272 = vadd.xlane.f32.xlu0 %v263_v16 }
 0x12d   :  { %282 = vadd.xlane.f32.xlu2 %v268_v17 }
 0x134   :  { %284 = vadd.xlane.f32.xlu0 %v269_v19 }
 0x190   :  { %v275_v20 = vpop.xlane.xlu1 %274  ;;  %v271_v21 = vpop.xlane.xlu2 %270 }
 0x191   :  { %v288_v22 = vmul.f32 %v275_v20, %v631_v51  ;;  %v286_v23 = vmul.f32 %v271_v21, %v631_v51 }
 0x193   :  { %v296_v24 = vadd.f32 1e-12, %v288_v22  ;;  %v294_v25 = vadd.f32 1e-12, %v286_v23 }
 0x195   :  { %516 = vrsqrt.f32 %v296_v24  ;;  %vm328_vm3 = vweird.f32 %v296_v24  ;;  %vm308_vm5 = vweird.f32 %v294_v25 }
 0x196   :  { %518 = vrsqrt.f32 %v294_v25 }
 0x197   :  { %v279_v26 = vpop.xlane.xlu0 %278 }
 0x198   :  { %v290_v27 = vmul.f32 %v279_v26, %v631_v51  ;;  %v277_v28 = vpop.xlane.xlu2 %276 }
 0x199   :  { %v289_v29 = vmul.f32 %v277_v28, %v631_v51 }
 0x19a   :  { %v677_v30 = vadd.f32 1e-12, %v290_v27 }
 0x19b   :  { %v517_v31 = vpop.eup %516  ;;  %v679_v32 = vadd.f32 1e-12, %v289_v29 }
 0x19c   :  { %v519_v33 = vpop.eup %518  ;;  %v323_v34 = vmul.f32 %v517_v31, %v296_v24  ;;  %520 = vrsqrt.f32 %v677_v30  ;;  %vm329_vm1 = vweird.f32 %v517_v31  ;;  %vm348_vm9 = vweird.f32 %v677_v30 }
 0x19d   :  { %v303_v35 = vmul.f32 %v519_v33, %v294_v25  ;;  %522 = vrsqrt.f32 %v679_v32  ;;  %vm309_vm2 = vweird.f32 %v519_v33  ;;  %vm330_vm4 = vmor %vm328_vm3, %vm329_vm1  ;;  %vm338_vm11 = vweird.f32 %v679_v32 }
 0x19e   :  { %v324_v36 = vmul.f32 %v517_v31, %v323_v34  ;;  %vm310_vm6 = vmor %vm308_vm5, %vm309_vm2 }
 0x19f   :  { %v304_v37 = vmul.f32 %v519_v33, %v303_v35  ;;  %v281_v38 = vpop.xlane.xlu1 %280  ;;  %v273_v39 = vpop.xlane.xlu0 %272 }
 0x1a0   :  { %v325_v40 = vmul.f32 0.5, %v324_v36  ;;  %v291_v41 = vmul.f32 %v281_v38, %v631_v51  ;;  %v287_v42 = vmul.f32 %v273_v39, %v631_v51  ;;  %v283_v43 = vpop.xlane.xlu2 %282 }
 0x1a1   :  { %v305_v44 = vmul.f32 0.5, %v304_v37  ;;  %v292_v45 = vmul.f32 %v283_v43, %v631_v51 }
 0x1a2   :  { %v521_v46 = vpop.eup %520  ;;  %v326_v47 = vsub.f32 1.5, %v325_v40  ;;  %v686_v48 = vadd.f32 1e-12, %v291_v41  ;;  %v688_v49 = vadd.f32 1e-12, %v287_v42 }
 0x1a3   :  { %v523_v50 = vpop.eup %522  ;;  %v306_v52 = vsub.f32 1.5, %v305_v44  ;;  %v343_v53 = vmul.f32 %v521_v46, %v677_v30  ;;  %v691_v54 = vadd.f32 1e-12, %v292_v45  ;;  %vm349_vm7 = vweird.f32 %v521_v46 }
 0x1a4   :  { %v327_v55 = vmul.f32 %v517_v31, %v326_v47  ;;  %v333_v58 = vmul.f32 %v523_v50, %v679_v32  ;;  %524 = vrsqrt.f32 %v686_v48  ;;  %vm339_vm8 = vweird.f32 %v523_v50  ;;  %vm350_vm10 = vmor %vm348_vm9, %vm349_vm7 }
 0x1a5   :  { %v307_v60 = vmul.f32 %v519_v33, %v306_v52  ;;  %v344_v61 = vmul.f32 %v521_v46, %v343_v53  ;;  %526 = vrsqrt.f32 %v688_v49  ;;  %vm340_vm12 = vmor %vm338_vm11, %vm339_vm8  ;;  %vm358_vm14 = vweird.f32 %v686_v48 }
 0x1a6   :  { %v331_v62 = vsel %vm330_vm4, %v517_v31, %v327_v55  ;;  %v334_v63 = vmul.f32 %v523_v50, %v333_v58  ;;  %528 = vrsqrt.f32 %v691_v54  ;;  %vm318_vm2 = vweird.f32 %v688_v49 }
 0x1a7   :  { %v384_v3 = vmul.f32 %v331_v62, %v635_v56  ;;  %v311_v4 = vsel %vm310_vm6, %v519_v33, %v307_v60  ;;  %v345_v5 = vmul.f32 0.5, %v344_v61  ;;  %v285_v6 = vpop.xlane.xlu0 %284  ;;  %vm368_vm4 = vweird.f32 %v691_v54 }
 0x1a8   :  { %v382_v8 = vmul.f32 %v311_v4, %v637_v57  ;;  %v335_v9 = vmul.f32 0.5, %v334_v63  ;;  %v293_v10 = vmul.f32 %v285_v6, %v631_v51 }
 0x1a9   :  { %v396_v11 = vmul.f32 %v698_v59, %v384_v3  ;;  %v346_v14 = vsub.f32 1.5, %v345_v5 }
 0x1aa   :  { %v525_v15 = vpop.eup %524  ;;  %v394_v16 = vmul.f32 %v698_v59, %v382_v8  ;;  %v336_v17 = vsub.f32 1.5, %v335_v9  ;;  %v712_v19 = vadd.f32 1e-12, %v293_v10 }
 0x1ab   :  { %v527_v56 = vpop.eup %526  ;;  %v408_v20 = vadd.f32 %v705_v0, %v396_v11  ;;  %v347_v21 = vmul.f32 %v521_v46, %v346_v14  ;;  %v353_v57 = vmul.f32 %v525_v15, %v686_v48  ;;  %vm359_vm13 = vweird.f32 %v525_v15 }
 0x1ac   :  { %v529_v51 = vpop.eup %528  ;;  %v406_v22 = vadd.f32 %v705_v0, %v394_v16  ;;  %v337_v23 = vmul.f32 %v523_v50, %v336_v17  ;;  %v313_v24 = vmul.f32 %v527_v56, %v688_v49  ;;  %530 = vrsqrt.f32 %v712_v19  ;;  %vm360_vm1 = vmor %vm358_vm14, %vm359_vm13 }
 0x1ad   :  { %416 = vst [vmem:[%s776_s6 + $0x10] sm:$0xff] %v408_v20  ;;  %v351_v25 = vsel %vm350_vm10, %v521_v46, %v347_v21  ;;  %v354_v26 = vmul.f32 %v525_v15, %v353_v57  ;;  %v363_v27 = vmul.f32 %v529_v51, %v691_v54  ;;  %vm319_vm15 = vweird.f32 %v527_v56 }
 0x1ae   :  { %414 = vst [vmem:[%s776_s6] sm:$0xff] %v406_v22  ;;  %v386_v28 = vmul.f32 %v351_v25, %v645_v1  ;;  %v341_v29 = vsel %vm340_vm12, %v523_v50, %v337_v23  ;;  %v314_v30 = vmul.f32 %v527_v56, %v313_v24  ;;  %vm369_vm0 = vweird.f32 %v529_v51  ;;  %vm320_vm3 = vmor %vm318_vm2, %vm319_vm15 }
 0x1af   :  { %v385_v31 = vmul.f32 %v341_v29, %v647_v2  ;;  %v355_v32 = vmul.f32 0.5, %v354_v26  ;;  %v364_v33 = vmul.f32 %v529_v51, %v363_v27  ;;  %vm370_vm5 = vmor %vm368_vm4, %vm369_vm0  ;;  %vm378_vm7 = vweird.f32 %v712_v19 }
 0x1b0   :  { %v398_v34 = vmul.f32 %v698_v59, %v386_v28  ;;  %v315_v35 = vmul.f32 0.5, %v314_v30 }
 0x1b1   :  { %v397_v36 = vmul.f32 %v698_v59, %v385_v31  ;;  %v356_v37 = vsub.f32 1.5, %v355_v32  ;;  %v365_v38 = vmul.f32 0.5, %v364_v33 }
 0x1b2   :  { %v410_v39 = vadd.f32 %v705_v0, %v398_v34  ;;  %v316_v1 = vsub.f32 1.5, %v315_v35  ;;  %v531_v42 = vpop.eup %530 }
 0x1b3   :  { %v409_v40 = vadd.f32 %v705_v0, %v397_v36  ;;  %v357_v41 = vmul.f32 %v525_v15, %v356_v37  ;;  %v366_v2 = vsub.f32 1.5, %v365_v38  ;;  %v373_v46 = vmul.f32 %v531_v42, %v712_v19 }
 0x1b4   :  { %418 = vst [vmem:[%s776_s6 + $0x20] sm:$0xff] %v410_v39  ;;  %v317_v43 = vmul.f32 %v527_v56, %v316_v1  ;;  %vm379_vm6 = vweird.f32 %v531_v42 }
 0x1b5   :  { %417 = vst [vmem:[%s776_s6 + $0x18] sm:$0xff] %v409_v40  ;;  %v361_v44 = vsel %vm360_vm1, %v525_v15, %v357_v41  ;;  %v367_v45 = vmul.f32 %v529_v51, %v366_v2  ;;  %v374_v53 = vmul.f32 %v531_v42, %v373_v46  ;;  %vm380_vm8 = vmor %vm378_vm7, %vm379_vm6 }
 0x1b6   :  { %v387_v47 = vmul.f32 %v361_v44, %v658_v12  ;;  %v321_v48 = vsel %vm320_vm3, %v527_v56, %v317_v43 }
 0x1b7   :  { %v383_v50 = vmul.f32 %v321_v48, %v654_v7  ;;  %v371_v52 = vsel %vm370_vm5, %v529_v51, %v367_v45  ;;  %v375_v60 = vmul.f32 0.5, %v374_v53 }
 0x1b8   :  { %v399_v49 = vmul.f32 %v698_v59, %v387_v47  ;;  %v388_v55 = vmul.f32 %v371_v52, %v660_v13 }
 0x1b9   :  { %v395_v58 = vmul.f32 %v698_v59, %v383_v50  ;;  %v376_v12 = vsub.f32 1.5, %v375_v60 }
 0x1ba   :  { %v411_v61 = vadd.f32 %v705_v0, %v399_v49  ;;  %v400_v54 = vmul.f32 %v698_v59, %v388_v55 }
 0x1bb   :  { %v407_v62 = vadd.f32 %v705_v0, %v395_v58  ;;  %v377_v13 = vmul.f32 %v531_v42, %v376_v12 }
 0x1bc   :  { %419 = vst [vmem:[%s776_s6 + $0x28] sm:$0xff] %v411_v61  ;;  %v412_v7 = vadd.f32 %v705_v0, %v400_v54 }
 0x1bd   :  { %415 = vst [vmem:[%s776_s6 + $0x8] sm:$0xff] %v407_v62  ;;  %v381_v63 = vsel %vm380_vm8, %v531_v42, %v377_v13 }
 0x1be   :  { %420 = vst [vmem:[%s776_s6 + $0x30] sm:$0xff] %v412_v7  ;;  %v389_v3 = vmul.f32 %v381_v63, %v669_v18 }
 0x1c0   :  { %v401_v4 = vmul.f32 %v698_v59, %v389_v3 }
 0x1c2   :  { %v413_v5 = vadd.f32 %v705_v0, %v401_v4 }
 0x1c4   :  { %421 = vst [vmem:[%s776_s6 + $0x38] sm:$0xff] %v413_v5 }

// kernel: bert_encoder.8
= control target key start
LH: loop header
LB: loop body
LE: loop exit
PB: predicated region body
PF: predicated region fallthrough
CT: control target
= control target key end

     0   :  { %s945_s12 = smov 0   ;;  %s947_s13 = smov 0   ;;  %s1074_s0 = inlined_call_operand.vmem [shape: bf16[64,128], index: 0, kind: input, shape index: {}]   ;;  %s1075_s1 = inlined_call_operand.vmem [shape: bf16[128,384], index: 1, kind: input, shape index: {}]   ;;  %s1076_s2 = inlined_call_operand.vmem [shape: f32[1,384], index: 2, kind: input, shape index: {}]   ;;  %s1077_s3 = inlined_call_operand.vmem [shape: bf16[64,384], index: 3, kind: output, shape index: {}]  }
   0x1   :  { %s949_s14 = smov 0   ;;  %s951_s15 = smov 0  }
   0x2   :  { %s953_s16 = smov 0  }
   0x3 LB: > { %s28_s17 = sadd.s32 1, %s919_s15  ;;  %s723_s18 = sadd.s32 4294967295, %s923_s16   ;;  %s923_s16 = sphi %s953_s16, %s13_s16   ;;  %s919_s15 = sphi %s951_s15, %s1082_s15   ;;  %s915_s14 = sphi %s949_s14, %s1081_s14   ;;  %s911_s13 = sphi %s947_s13, %s1080_s13   ;;  %s907_s12 = sphi %s945_s12, %s1079_s12  }
   0x4   : > { %p30_p0 = scmp.ge.s32.totalorder %s28_s17, 3  ;;  %p76_p1 = scmp.ne.s32.totalorder %s911_s13, %s907_s12 }
   0x5   : > { %p77_p2 = scmp.eq.s32.totalorder %s923_s16, 0  ;;  %p134_p4 = scmp.eq.s32.totalorder %s723_s18, 2 }
   0x6   : > { %s1084_s17 = smov (%p30_p0, %s28_s17), 0  ;;  %s69_s20 = sadd.s32 1, %s911_s13 }
   0x7   : > { %p78_p3 = por %p77_p2, %p76_p1  ;;  %s65_s19 = ssub.s32 %s919_s15, %s1084_s17 }
   0x8   : > { %p67_p5 = scmp.eq.s32.totalorder %s65_s19, 0  ;;  %p980_p6 = por %p134_p4, %p76_p1 }
   0x9   : > { %p727_p7 = scmp.ge.s32.totalorder %s923_s16, 3 }
   0xa   : > { %s985_s22 = scalar_select %p67_p5, %s911_s13, %s69_s20  }
   0xb   : > { %168 = sbr.rel (%p727_p7) target bundleno = 36 (0x24), region = 20 }
  0x10   : > { %171 = sbr.rel (!%p78_p3) target bundleno = 36 (0x24), region = 24  ;;  %s173_s23 = sand.u32 (%p78_p3), 1, %s911_s13  }
  0x11   : > { %s729_s24 = sshll.u32 (%p78_p3), %s919_s15, 2  ;;  %s728_s25 = sshll.u32 (%p78_p3), %s173_s23, 6 }
  0x12   : > { %s993_s28 = scalar_lea.vmem (%p78_p3), %s1075_s1, %s729_s24  ;;  %s175_s29 = scalar_lea.vmem (%p78_p3), [#allocation3], %s728_s25 }
  0x13   : > { %v197_v0 = vld [vmem:[%s993_s28] sm:$0xf] (%p78_p3)  ;;  %v199_v1 = vld [vmem:[%s993_s28 + $0xc] sm:$0xf] (%p78_p3)  ;;  %v201_v2 = vld [vmem:[%s993_s28 + $0x18] sm:$0xf] (%p78_p3) }
  0x14   : > { %198 = vst [vmem:[%s175_s29] sm:$0xf] (%p78_p3), %v197_v0  ;;  %v203_v3 = vld [vmem:[%s993_s28 + $0x24] sm:$0xf] (%p78_p3)  ;;  %v205_v4 = vld [vmem:[%s993_s28 + $0x30] sm:$0xf] (%p78_p3) }
  0x15   : > { %200 = vst [vmem:[%s175_s29 + $0x4] sm:$0xf] %v199_v1  ;;  %v207_v5 = vld [vmem:[%s993_s28 + $0x3c] sm:$0xf]  ;;  %v209_v6 = vld [vmem:[%s993_s28 + $0x48] sm:$0xf] }
  0x16   : > { %202 = vst [vmem:[%s175_s29 + $0x8] sm:$0xf] %v201_v2  ;;  %v211_v7 = vld [vmem:[%s993_s28 + $0x54] sm:$0xf]  ;;  %v213_v8 = vld [vmem:[%s993_s28 + $0x60] sm:$0xf] }
  0x17   : > { %204 = vst [vmem:[%s175_s29 + $0xc] sm:$0xf] %v203_v3  ;;  %v215_v9 = vld [vmem:[%s993_s28 + $0x6c] sm:$0xf]  ;;  %v217_v10 = vld [vmem:[%s993_s28 + $0x78] sm:$0xf] }
  0x18   : > { %206 = vst [vmem:[%s175_s29 + $0x10] sm:$0xf] %v205_v4  ;;  %v219_v11 = vld [vmem:[%s993_s28 + $0x84] sm:$0xf]  ;;  %v221_v12 = vld [vmem:[%s993_s28 + $0x90] sm:$0xf] }
  0x19   : > { %208 = vst [vmem:[%s175_s29 + $0x14] sm:$0xf] %v207_v5  ;;  %v223_v13 = vld [vmem:[%s993_s28 + $0x9c] sm:$0xf]  ;;  %v225_v14 = vld [vmem:[%s993_s28 + $0xa8] sm:$0xf] }
  0x1a   : > { %210 = vst [vmem:[%s175_s29 + $0x18] sm:$0xf] %v209_v6  ;;  %v227_v15 = vld [vmem:[%s993_s28 + $0xb4] sm:$0xf] }
  0x1b   : > { %212 = vst [vmem:[%s175_s29 + $0x1c] sm:$0xf] %v211_v7 }
  0x1c   : > { %214 = vst [vmem:[%s175_s29 + $0x20] sm:$0xf] %v213_v8 }
  0x1d   : > { %216 = vst [vmem:[%s175_s29 + $0x24] sm:$0xf] %v215_v9 }
  0x1e   : > { %218 = vst [vmem:[%s175_s29 + $0x28] sm:$0xf] %v217_v10 }
  0x1f   : > { %220 = vst [vmem:[%s175_s29 + $0x2c] sm:$0xf] %v219_v11 }
  0x20   : > { %222 = vst [vmem:[%s175_s29 + $0x30] sm:$0xf] %v221_v12 }
  0x21   : > { %224 = vst [vmem:[%s175_s29 + $0x34] sm:$0xf] %v223_v13 }
  0x22   : > { %226 = vst [vmem:[%s175_s29 + $0x38] sm:$0xf] %v225_v14 }
  0x23   : > { %228 = vst [vmem:[%s175_s29 + $0x3c] sm:$0xf] %v227_v15 }
  0x24 PF: > { %p730_p8 = scmp.ge.s32.totalorder %s923_s16, 1  ;;  %p289_p9 = scmp.lt.s32.totalorder %s923_s16, 4 }
  0x26   : > { %p290_p10 = pnand %p730_p8, %p289_p9 }
  0x27   : > { %s296_s30 = sand.u32 (!%p290_p10), 1, %s907_s12   ;;  %p339_p11 = scmp.lt.s32.totalorder (!%p290_p10), %s915_s14, 2 }
  0x28   : > { %293 = sbr.rel (%p290_p10) target bundleno = 234 (0xea), region = 69  ;;  %s731_s4 = sshll.u32 (!%p290_p10), %s296_s30, 6 }
  0x29   : > { %s1017_s5 = scalar_lea.vmem (!%p290_p10), [#allocation3], %s731_s4  ;;  %s732_s28 = sshll.u32 (!%p290_p10), %s296_s30, 5 }
  0x2a   : > { %s328_s29 = scalar_lea.vmem (!%p290_p10), [#allocation4], %s732_s28 }
  0x2d   : > { %v796_v16 = vld [vmem:[%s1017_s5 + $0x38] sm:$0xff]  ;;  %s1021_s6 = scalar_select %p339_p11, %s915_s14, 2  ;;  %v795_v17 = vld [vmem:[%s1017_s5 + $0x30] sm:$0xff]  ;;  %v794_v18 = vld [vmem:[%s1017_s5 + $0x28] sm:$0xff] }
  0x2e   : > { %459 = vmatpush.bf16.msra.mxu0 %v796_v16  ;;  %820 = vmatpush.bf16.msra.mxu1 %v796_v16  ;;  %v793_v19 = vld [vmem:[%s1017_s5 + $0x20] sm:$0xff]  ;;  %v792_v20 = vld [vmem:[%s1017_s5 + $0x18] sm:$0xff]  ;;  %v791_v21 = vld [vmem:[%s1017_s5 + $0x10] sm:$0xff]  ;;  %s782_s12 = sshll.u32 (%p980_p6), %s915_s14, 2 }
  0x2f   : > { %s341_s9 = scalar_lea.vmem %s1076_s2, %s1021_s6  ;;  %821 = vmatpush.bf16.msra.mxu2 %v796_v16  ;;  %822 = vmatpush.bf16.msra.mxu3 %v796_v16  ;;  %v790_v22 = vld [vmem:[%s1017_s5 + $0x8] sm:$0xff]  ;;  %v789_v23 = vld [vmem:[%s1017_s5] sm:$0xff]  ;;  %v787_v26 = vld [vmem:[%s1074_s0 + $0x10] sm:$0xff]  ;;  %s554_s5 = scalar_lea.vmem (%p980_p6), %s1077_s3, %s782_s12 }
  0x30   : > { %v785_v24 = vld [vmem:[%s1074_s0] sm:$0xff]  ;;  %v786_v25 = vld [vmem:[%s1074_s0 + $0x8] sm:$0xff]  ;;  %v788_v27 = vld [vmem:[%s1074_s0 + $0x18] sm:$0xff] }
  0x31   : > { %v884_v30 = vld [vmem:[%s341_s9] ss:$0 sm:$0xff] }
  0x32   : > { %460 = vmatpush.bf16.msra.mxu0 %v795_v17  ;;  %823 = vmatpush.bf16.msra.mxu1 %v795_v17 }
  0x33   : > { %824 = vmatpush.bf16.msra.mxu2 %v795_v17  ;;  %825 = vmatpush.bf16.msra.mxu3 %v795_v17 }
  0x36   : > { %461 = vmatpush.bf16.msra.mxu0 %v794_v18  ;;  %826 = vmatpush.bf16.msra.mxu1 %v794_v18 }
  0x37   : > { %827 = vmatpush.bf16.msra.mxu2 %v794_v18  ;;  %828 = vmatpush.bf16.msra.mxu3 %v794_v18 }
  0x3a   : > { %462 = vmatpush.bf16.msra.mxu0 %v793_v19  ;;  %829 = vmatpush.bf16.msra.mxu1 %v793_v19 }
  0x3b   : > { %830 = vmatpush.bf16.msra.mxu2 %v793_v19  ;;  %831 = vmatpush.bf16.msra.mxu3 %v793_v19 }
  0x3e   : > { %463 = vmatpush.bf16.msra.mxu0 %v792_v20  ;;  %832 = vmatpush.bf16.msra.mxu1 %v792_v20 }
  0x3f   : > { %833 = vmatpush.bf16.msra.mxu2 %v792_v20  ;;  %834 = vmatpush.bf16.msra.mxu3 %v792_v20 }
  0x42   : > { %464 = vmatpush.bf16.msra.mxu0 %v791_v21  ;;  %835 = vmatpush.bf16.msra.mxu1 %v791_v21 }
  0x43   : > { %836 = vmatpush.bf16.msra.mxu2 %v791_v21  ;;  %837 = vmatpush.bf16.msra.mxu3 %v791_v21 }
  0x46   : > { %465 = vmatpush.bf16.msra.mxu0 %v790_v22  ;;  %838 = vmatpush.bf16.msra.mxu1 %v790_v22 }
  0x47   : > { %839 = vmatpush.bf16.msra.mxu2 %v790_v22  ;;  %840 = vmatpush.bf16.msra.mxu3 %v790_v22 }
  0x4a   : > { %466 = vmatpush.bf16.msra.mxu0 %v789_v23  ;;  %841 = vmatpush.bf16.msra.mxu1 %v789_v23 }
  0x4b   : > { %842 = vmatpush.bf16.msra.mxu2 %v789_v23  ;;  %843 = vmatpush.bf16.msra.mxu3 %v789_v23 }
  0x4d   : > { %467 = vmatmul.bf16.vlgmr.msra.gmra.mxu0 %v785_v24  ;;  %472 = vmatmul.bf16.vlgmr.msra.gmra.mxu1 %v786_v25 }
  0x4e   : > { %477 = vmatmul.bf16.vlgmr.msra.gmra.mxu2 %v787_v26  ;;  %482 = vmatmul.bf16.vlgmr.msra.gmra.mxu3 %v788_v27 }
  0xca   : > { %v468_v28 = vpop.f32.mrf.mxu0  ;;  %v473_v29 = vpop.f32.mrf.mxu1 }
  0xcb   : > { %v519_v35 = vadd.f32 %v884_v30, %v468_v28  ;;  %v521_v36 = vadd.f32 %v884_v30, %v473_v29 }
  0xd1   : > { %v478_v31 = vpop.f32.mrf.mxu2  ;;  %v483_v32 = vpop.f32.mrf.mxu3 }
  0xd2   : > { %v470_v33 = vpop.f32.mrf.mxu0  ;;  %v475_v34 = vpop.f32.mrf.mxu1  ;;  %v523_v43 = vadd.f32 %v884_v30, %v478_v31  ;;  %v525_v44 = vadd.f32 %v884_v30, %v483_v32 }
  0xd3   : > { %v520_v37 = vadd.f32 %v884_v30, %v470_v33  ;;  %v522_v38 = vadd.f32 %v884_v30, %v475_v34 }
  0xd5   : > { %v800_v39 = vpack.c.bf16 %v520_v37, %v519_v35  ;;  %v805_v40 = vpack.c.bf16 %v522_v38, %v521_v36 }
  0xd7   : > { %801 = vst [vmem:[%s328_s29] sm:$0xff] %v800_v39  }
  0xd8   : > { %817 = vst [vmem:[%s328_s29 + $0x8] sm:$0xff] %v805_v40  }
  0xd9   : > { %v480_v41 = vpop.f32.mrf.mxu2  ;;  %v485_v42 = vpop.f32.mrf.mxu3 }
  0xda   : > { %v524_v45 = vadd.f32 %v884_v30, %v480_v41  ;;  %v526_v46 = vadd.f32 %v884_v30, %v485_v42 }
  0xdb   : > { %549 = sbr.rel (!%p980_p6) target bundleno = 234 (0xea), region = 85 }
  0xdc   : > { %v810_v47 = vpack.c.bf16 %v524_v45, %v523_v43  ;;  %v815_v48 = vpack.c.bf16 %v526_v46, %v525_v44 }
  0xde   : > { %818 = vst [vmem:[%s328_s29 + $0x10] sm:$0xff] %v810_v47   ;;  %v571_v49 = vld [vmem:[%s328_s29] sm:$0xf] (%p980_p6)  ;;  %v573_v50 = vld [vmem:[%s328_s29 + $0x4] sm:$0xf] (%p980_p6) }
  0xdf   : > { %819 = vst [vmem:[%s328_s29 + $0x18] sm:$0xff] %v815_v48   ;;  %v575_v51 = vld [vmem:[%s328_s29 + $0x8] sm:$0xf] (%p980_p6)  ;;  %v577_v52 = vld [vmem:[%s328_s29 + $0xc] sm:$0xf] (%p980_p6) }
  0xe0   : > { %572 = vst [vmem:[%s554_s5] sm:$0xf] %v571_v49 }
  0xe1   : > { %574 = vst [vmem:[%s554_s5 + $0xc] sm:$0xf] %v573_v50 }
  0xe2   : > { %576 = vst [vmem:[%s554_s5 + $0x18] sm:$0xf] %v575_v51 }
  0xe3   : > { %578 = vst [vmem:[%s554_s5 + $0x24] sm:$0xf] %v577_v52 }
  0xe5   : > { %v579_v53 = vld [vmem:[%s328_s29 + $0x10] sm:$0xf]  ;;  %v581_v54 = vld [vmem:[%s328_s29 + $0x14] sm:$0xf] }
  0xe6   : > { %v583_v55 = vld [vmem:[%s328_s29 + $0x18] sm:$0xf]  ;;  %580 = vst [vmem:[%s554_s5 + $0x30] sm:$0xf] %v579_v53  ;;  %v585_v56 = vld [vmem:[%s328_s29 + $0x1c] sm:$0xf] }
  0xe7   : > { %582 = vst [vmem:[%s554_s5 + $0x3c] sm:$0xf] %v581_v54 }
  0xe8   : > { %584 = vst [vmem:[%s554_s5 + $0x48] sm:$0xf] %v583_v55 }
  0xe9   : > { %586 = vst [vmem:[%s554_s5 + $0x54] sm:$0xf] %v585_v56 }
  0xea PF: > { %s13_s16 = sadd.s32 1, %s923_s16   ;;  %s1079_s12 = smov %s911_s13 }
  0xeb   : > { %p10_p12 = scmp.ge.s32.totalorder %s13_s16, 5   ;;  %s1080_s13 = smov %s985_s22 }
  0xec   : > { %s1081_s14 = smov %s919_s15  ;;  %s1082_s15 = smov %s1084_s17 }
  0xed   :  { %12 = sbr.rel (!%p10_p12) target bundleno = 3 (0x3), region = 163 }

// kernel: bert_encoder.9
= control target key start
LH: loop header
LB: loop body
LE: loop exit
PB: predicated region body
PF: predicated region fallthrough
CT: control target
= control target key end

     0   :  { %s2646_s12 = smov 0   ;;  %s2648_s13 = smov 0   ;;  %s3648_s0 = inlined_call_operand.vmem [shape: bf16[2,32,384], index: 0, kind: input, shape index: {}, may-alias: {0,1,2}]   ;;  %s3649_s1 = inlined_call_operand.vmem [shape: bf16[2,32,384], index: 1, kind: input, shape index: {}, may-alias: {0,1,2}]   ;;  %s3650_s2 = inlined_call_operand.vmem [shape: bf16[2,32,384], index: 2, kind: input, shape index: {}, may-alias: {0,1,2}]   ;;  %s3651_s3 = inlined_call_operand.vmem [shape: bf16[2,32,128], index: 3, kind: output, shape index: {}]  }
   0x1   :  { %s2650_s14 = smov 0   ;;  %s2652_s15 = smov 0  }
   0x2   :  { %s2654_s16 = smov 0  }
   0x3 LB: > { %s25_s17 = sadd.s32 1, %s2612_s15  ;;  %p41_p1 = scmp.ne.s32.totalorder %s2604_s13, %s2600_s12  ;;  %s2616_s16 = sphi %s2654_s16, %s13_s16   ;;  %s2612_s15 = sphi %s2652_s15, %s3678_s15   ;;  %s2608_s14 = sphi %s2650_s14, %s3677_s14   ;;  %s2604_s13 = sphi %s2648_s13, %s3676_s13   ;;  %s2600_s12 = sphi %s2646_s12, %s3675_s12  }
   0x4   : > { %p27_p0 = scmp.ge.s32.totalorder %s25_s17, 2  ;;  %p42_p2 = scmp.eq.s32.totalorder %s2616_s16, 0 }
   0x5   : > { %s34_s20 = sadd.s32 1, %s2604_s13  ;;  %p2232_p5 = scmp.ge.s32.totalorder %s2616_s16, 2 }
   0x6   : > { %s3680_s17 = smov (%p27_p0, %s25_s17), 0  ;;  %p2677_p3 = por %p42_p2, %p41_p1 }
   0x7   : > { %s29_s19 = ssub.s32 %s2612_s15, %s3680_s17  ;;  %155 = sbr.rel (%p2232_p5) target bundleno = 39 (0x27), region = 16 }
   0x8   : > { %p32_p4 = scmp.eq.s32.totalorder %s29_s19, 0 }
   0xa   : > { %s2685_s21 = scalar_select %p32_p4, %s2604_s13, %s34_s20  }
   0xc   : > { %158 = sbr.rel (!%p2677_p3) target bundleno = 21 (0x15), region = 20  ;;  %s160_s22 = sand.u32 (%p2677_p3), 1, %s2604_s13  }
   0xd   : > { %s2329_s23 = smul.u32 (%p2677_p3), 48, %s2612_s15  ;;  %s2233_s24 = sshll.u32 (%p2677_p3), %s160_s22, 4 }
   0xe   : > { %s162_s28 = scalar_lea.vmem (%p2677_p3), [#allocation2], %s2233_s24 }
   0xf   : > { %s166_s27 = scalar_lea.vmem (%p2677_p3), %s3648_s0, %s2329_s23 }
  0x10   : > { %v183_v0 = vld [vmem:[%s166_s27] sm:$0xf] (%p2677_p3)  ;;  %v185_v1 = vld [vmem:[%s166_s27 + $0xc] sm:$0xf] (%p2677_p3)  ;;  %v187_v2 = vld [vmem:[%s166_s27 + $0x18] sm:$0xf] (%p2677_p3) }
  0x11   : > { %184 = vst [vmem:[%s162_s28] sm:$0xf] %v183_v0  ;;  %v189_v3 = vld [vmem:[%s166_s27 + $0x24] sm:$0xf] }
  0x12   : > { %186 = vst [vmem:[%s162_s28 + $0x4] sm:$0xf] %v185_v1 }
  0x13   : > { %188 = vst [vmem:[%s162_s28 + $0x8] sm:$0xf] %v187_v2 }
  0x14   : > { %190 = vst [vmem:[%s162_s28 + $0xc] sm:$0xf] %v189_v3 }
  0x15 PF: > { %222 = sbr.rel (!%p2677_p3) target bundleno = 30 (0x1e), region = 61  ;;  %s224_s29 = sand.u32 (%p2677_p3), 1, %s2604_s13  }
  0x16   : > { %s2236_s30 = smul.u32 (%p2677_p3), 48, %s2612_s15  ;;  %s2235_s4 = sshll.u32 (%p2677_p3), %s224_s29, 4 }
  0x17   : > { %s226_s8 = scalar_lea.vmem (%p2677_p3), [#allocation3], %s2235_s4 }
  0x18   : > { %s2140_s7 = scalar_lea.vmem (%p2677_p3), %s3649_s1, %s2236_s30 }
  0x19   : > { %v2237_v4 = vld [vmem:[%s2140_s7 + $0x4] sm:$0xf] (%p2677_p3)  ;;  %v2238_v5 = vld [vmem:[%s2140_s7 + $0x10] sm:$0xf] (%p2677_p3)  ;;  %v2239_v6 = vld [vmem:[%s2140_s7 + $0x1c] sm:$0xf] (%p2677_p3) }
  0x1a   : > { %249 = vst [vmem:[%s226_s8] sm:$0xf] %v2237_v4  ;;  %v2240_v7 = vld [vmem:[%s2140_s7 + $0x28] sm:$0xf] }
  0x1b   : > { %251 = vst [vmem:[%s226_s8 + $0x4] sm:$0xf] %v2238_v5 }
  0x1c   : > { %253 = vst [vmem:[%s226_s8 + $0x8] sm:$0xf] %v2239_v6 }
  0x1d   : > { %255 = vst [vmem:[%s226_s8 + $0xc] sm:$0xf] %v2240_v7 }
  0x1e PF: > { %287 = sbr.rel (!%p2677_p3) target bundleno = 39 (0x27), region = 102  ;;  %s289_s9 = sand.u32 (%p2677_p3), 1, %s2604_s13  }
  0x1f   : > { %s2242_s10 = smul.u32 (%p2677_p3), 48, %s2612_s15  ;;  %s2241_s11 = sshll.u32 (%p2677_p3), %s289_s9, 4 }
  0x20   : > { %s291_s23 = scalar_lea.vmem (%p2677_p3), [#allocation4], %s2241_s11 }
  0x21   : > { %s2147_s22 = scalar_lea.vmem (%p2677_p3), %s3650_s2, %s2242_s10 }
  0x22   : > { %v2243_v8 = vld [vmem:[%s2147_s22 + $0x8] sm:$0xf] (%p2677_p3)  ;;  %v2244_v9 = vld [vmem:[%s2147_s22 + $0x14] sm:$0xf] (%p2677_p3)  ;;  %v2245_v10 = vld [vmem:[%s2147_s22 + $0x20] sm:$0xf] (%p2677_p3) }
  0x23   : > { %314 = vst [vmem:[%s291_s23] sm:$0xf] %v2243_v8  ;;  %v2246_v11 = vld [vmem:[%s2147_s22 + $0x2c] sm:$0xf] }
  0x24   : > { %316 = vst [vmem:[%s291_s23 + $0x4] sm:$0xf] %v2244_v9 }
  0x25   : > { %318 = vst [vmem:[%s291_s23 + $0x8] sm:$0xf] %v2245_v10 }
  0x26   : > { %320 = vst [vmem:[%s291_s23 + $0xc] sm:$0xf] %v2246_v11 }
  0x27 PF: > { %p2247_p6 = scmp.ge.s32.totalorder %s2616_s16, 1  ;;  %p351_p7 = scmp.lt.s32.totalorder %s2616_s16, 3 }
  0x29   : > { %p352_p8 = pnand %p2247_p6, %p351_p7 }
  0x2a   : > { %s358_s18 = sand.u32 (!%p352_p8), 1, %s2600_s12   ;;  %s2618_s27 = smov (!%p352_p8), 112  }
  0x2b   : > { %355 = sbr.rel (%p352_p8) target bundleno = 1359 (0x54f), region = 143  ;;  %s2712_s24 = sshll.u32 (!%p352_p8), %s358_s18, 4 }
  0x2c   : > { %s367_s25 = scalar_lea.vmem (!%p352_p8), [#allocation3], %s2712_s24  ;;  %s360_s26 = scalar_lea.vmem (!%p352_p8), [#allocation2], %s2712_s24 }
  0x2d   : > { %s2619_s12 = smov (!%p352_p8), 96   ;;  %s2620_s28 = smov (!%p352_p8), 80  }
  0x2e   : > { %s2621_s29 = smov (!%p352_p8), 64   ;;  %s2622_s30 = smov (!%p352_p8), 48  }
  0x2f   : > { %s2623_s4 = smov (!%p352_p8), 16   ;;  %s2800_s5 = scalar_lea.vmem (!%p352_p8), [#allocation4], %s2712_s24 }
  0x30   : > { %vm469_vm0 = vcmask 130048   ;;  %v2715_v12 = vld [vmem:[%s367_s25 + $0x8] sm:$0xff]  ;;  %v2717_v13 = vld [vmem:[%s367_s25] sm:$0xff]  ;;  %v417_v22 = vlaneseq  ;;  %v2624_v29 = vmov -1e+30   ;;  %vm518_vm3 = vcmask 261120  }
  0x31   : > { %v2720_v14 = vld [vmem:[%s360_s26] sm:$0xff]  ;;  %660 = vrot.lane.b32.xlu0 %v2715_v12, %s2618_s27  ;;  %v480_v15 = vsel %vm469_vm0, %v2715_v12, 0  ;;  %658 = vrot.lane.b32.xlu1 %v2717_v13, %s2618_s27  ;;  %v2730_v16 = vld [vmem:[%s360_s26 + $0x8] sm:$0xff]  ;;  %v477_v17 = vsel %vm469_vm0, %v2717_v13, 0  ;;  %s2625_s6 = smov 32   ;;  %p408_p9 = scmp.lt.s32.totalorder %s2608_s14, 1 }
  0x32   : > { %488 = vmatpush.bf16.xpose.msra.mxu0 %v480_v15  ;;  %654 = vrot.lane.b32.xlu2 %v2720_v14, %s2618_s27  ;;  %v418_v23 = vshrl.u32 %v417_v22, 7  ;;  %v423_v24 = vand.u32 127, %v417_v22  ;;  %v2803_v60 = vld [vmem:[%s2800_s5 + $0x8] sm:$0xff]  ;;  %v2809_v62 = vld [vmem:[%s2800_s5] sm:$0xff] }
  0x33   : > { %641 = vmatpush.bf16.msra.mxu1 %v2803_v60  ;;  %s3682_s14 = smov (!%p408_p9, %s2608_s14), 1 }
  0x34   : > { %v424_v26 = vand.u32 3, %v418_v23  ;;  %v428_v27 = vand.u32 3, %v423_v24  ;;  %v419_v28 = vadd.s32 8, %v418_v23  ;;  %v420_v35 = vadd.s32 16, %v418_v23  ;;  %s2311_s7 = sshll.u32 %s3682_s14, 4 }
  0x35   : > { %v421_v44 = vadd.s32 24, %v418_v23  ;;  %s415_s9 = scalar_lea.vmem %s3651_s3, %s2311_s7 }
  0x36   : > { %vm429_vm1 = vcmp.eq.s32.totalorder %v424_v26, %v428_v27  ;;  %v425_v31 = vand.u32 3, %v419_v28  ;;  %v426_v40 = vand.u32 3, %v420_v35 }
  0x37   : > { %v2761_v30 = vsel %vm429_vm1, 0.0, %v2624_v29  ;;  %v427_v48 = vand.u32 3, %v421_v44  ;;  %642 = vmatpush.bf16.msra.mxu1 %v2809_v62 }
  0x38   : > { %v2764_v32 = vmul.f32 0.0, %v2761_v30  ;;  %vm430_vm2 = vcmp.eq.s32.totalorder %v425_v31, %v428_v27  ;;  %vm431_vm4 = vcmp.eq.s32.totalorder %v426_v40, %v428_v27 }
  0x39   : > { %656 = vrot.lane.b32.xlu0 %v2730_v16, %s2618_s27  ;;  %845 = vrot.lane.b32.xlu1 %v2715_v12, %s2619_s12  ;;  %v2767_v38 = vsel %vm430_vm2, 0.0, %v2624_v29  ;;  %v2775_v46 = vsel %vm431_vm4, 0.0, %v2624_v29  ;;  %vm432_vm5 = vcmp.eq.s32.totalorder %v427_v48, %v428_v27 }
  0x3a   : > { %489 = vmatpush.bf16.xpose.msra.mxu0 %v477_v17  ;;  %839 = vrot.lane.b32.xlu2 %v2720_v14, %s2619_s12  ;;  %v2772_v41 = vmul.f32 0.0, %v2767_v38  ;;  %v2779_v49 = vmul.f32 0.0, %v2775_v46  ;;  %v2782_v53 = vsel %vm432_vm5, 0.0, %v2624_v29 }
  0x3b   : > { %v2786_v55 = vmul.f32 0.0, %v2782_v53 }
  0x41   : > { %2269 = vmatmul.msk.bf16.vlgmr.msra.gmra.mxu0 %vm469_vm0, %v2720_v14  ;;  %843 = vrot.lane.b32.xlu1 %v2717_v13, %s2619_s12 }
  0x42   : > { %1215 = vrot.lane.b32.xlu2 %v2715_v12, %s2621_s29 }
  0x49   : > { %1024 = vrot.lane.b32.xlu1 %v2720_v14, %s2620_s28 }
  0x4a   : > { %1213 = vrot.lane.b32.xlu2 %v2717_v13, %s2621_s29 }
  0x51   : > { %2270 = vmatmul.msk.bf16.gmra.mxu0 %vm469_vm0, %v2730_v16 }
  0x52   : > { %1394 = vrot.lane.b32.xlu2 %v2720_v14, %s2622_s30 }
  0x5a   : > { %1396 = vrot.lane.b32.xlu2 %v2730_v16, %s2622_s30 }
  0x62   : > { %1768 = vrot.lane.b32.xlu2 %v2717_v13, %s2623_s4 }
  0x8c   : > { %v655_v25 = vpop.permute.xlu2 %654 }
  0xa3   : > { %v661_v18 = vpop.permute.xlu0 %660  ;;  %v659_v20 = vpop.permute.xlu1 %658 }
  0xa4   : > { %v672_v19 = vsel %vm469_vm0, %v661_v18, 0  ;;  %v669_v21 = vsel %vm469_vm0, %v659_v20, 0 }
  0xa5   : > { %680 = vmatpush.bf16.xpose.msra.mxu2 %v672_v19 }
  0xab   : > { %v657_v36 = vpop.permute.xlu0 %656  ;;  %v846_v61 = vpop.permute.xlu1 %845 }
  0xac   : > { %v857_v63 = vsel %vm469_vm0, %v846_v61, 0 }
  0xad   : > { %681 = vmatpush.bf16.xpose.msra.mxu2 %v669_v21  ;;  %865 = vmatpush.bf16.xpose.msrb.mxu1 %v857_v63 }
  0xb3   : > { %v844_v0 = vpop.permute.xlu1 %843 }
  0xb4   : > { %2281 = vmatmul.msk.bf16.vlgmr.msra.gmra.mxu2 %vm469_vm0, %v655_v25  ;;  %v854_v1 = vsel %vm469_vm0, %v844_v0, 0 }
  0xb5   : > { %866 = vmatpush.bf16.xpose.msrb.mxu1 %v854_v1 }
  0xbb   : > { %v1025_v8 = vpop.permute.xlu1 %1024 }
  0xbe   : > { %v491_v33 = vpop.f32.mrf.mxu0 }
  0xbf   : > { %v501_v34 = vmul.f32 0.25, %v491_v33 }
  0xc1   : > { %v514_v37 = vadd.f32 %v2764_v32, %v501_v34 }
  0xc3   : > { %v519_v39 = vsel %vm518_vm3, %v514_v37, -inf }
  0xc4   : > { %2282 = vmatmul.msk.bf16.gmra.mxu2 %vm469_vm0, %v657_v36  ;;  %520 = vmax.xlane.f32.xlu0 %v519_v39  ;;  %v2863_v39 = vpop.permute.xlu2 %839 }
  0xc6   : > { %v493_v42 = vpop.f32.mrf.mxu0 }
  0xc7   : > { %v502_v43 = vmul.f32 0.25, %v493_v42 }
  0xc9   : > { %v515_v45 = vadd.f32 %v2772_v41, %v502_v43 }
  0xcb   : > { %v522_v47 = vsel %vm518_vm3, %v515_v45, -inf }
  0xcc   : > { %523 = vmax.xlane.f32.xlu0 %v522_v47  ;;  %v2872_v47 = vpop.permute.xlu2 %1215 }
  0xce   : > { %v496_v50 = vpop.f32.mrf.mxu0 }
  0xcf   : > { %v503_v51 = vmul.f32 0.25, %v496_v50 }
  0xd1   : > { %v516_v52 = vadd.f32 %v2779_v49, %v503_v51 }
  0xd3   : > { %v525_v54 = vsel %vm518_vm3, %v516_v52, -inf }
  0xd4   : > { %526 = vmax.xlane.f32.xlu1 %v525_v54  ;;  %v2877_v51 = vpop.permute.xlu2 %1213 }
  0xd6   : > { %v498_v56 = vpop.f32.mrf.mxu0 }
  0xd7   : > { %v504_v57 = vmul.f32 0.25, %v498_v56 }
  0xd9   : > { %v2789_v58 = vadd.f32 %v2786_v55, %v504_v57 }
  0xdb   : > { %v528_v59 = vsel %vm518_vm3, %v2789_v58, -inf }
  0xdc   : > { %529 = vmax.xlane.f32.xlu1 %v528_v59 }
  0xe0   : > { %1030 = vrot.lane.b32.xlu0 %v2715_v12, %s2620_s28 }
  0xe8   : > { %1028 = vrot.lane.b32.xlu0 %v2717_v13, %s2620_s28 }
  0xf0   : > { %841 = vrot.lane.b32.xlu0 %v2730_v16, %s2619_s12 }
  0xf5   : > { %1026 = vrot.lane.b32.xlu1 %v2730_v16, %s2620_s28 }
  0xf8   : > { %1400 = vrot.lane.b32.xlu0 %v2715_v12, %s2622_s30 }
  0xfd   : > { %1398 = vrot.lane.b32.xlu1 %v2717_v13, %s2622_s30 }
 0x100   : > { %1209 = vrot.lane.b32.xlu0 %v2720_v14, %s2621_s29 }
 0x105   : > { %1211 = vrot.lane.b32.xlu1 %v2730_v16, %s2621_s29 }
 0x108   : > { %1585 = vrot.lane.b32.xlu0 %v2715_v12, %s2625_s6 }
 0x10d   : > { %1770 = vrot.lane.b32.xlu1 %v2715_v12, %s2623_s4 }
 0x110   : > { %1583 = vrot.lane.b32.xlu0 %v2717_v13, %s2625_s6 }
 0x115   : > { %1579 = vrot.lane.b32.xlu1 %v2720_v14, %s2625_s6 }
 0x118   : > { %1764 = vrot.lane.b32.xlu0 %v2720_v14, %s2623_s4 }
 0x11d   : > { %1766 = vrot.lane.b32.xlu1 %v2730_v16, %s2623_s4 }
 0x137   : > { %v683_v2 = vpop.f32.mrf.mxu2  ;;  %v521_v3 = vpop.xlane.xlu0 %520 }
 0x138   : > { %v693_v4 = vmul.f32 0.25, %v683_v2  ;;  %v531_v5 = vsub.f32 %v514_v37, %v521_v3 }
 0x13a   : > { %v535_v6 = vmul.f32 1.442695, %v531_v5  ;;  %v2835_v7 = vadd.f32 %v693_v4, %v2764_v32 }
 0x13c   : > { %2448 = vpow2.f32 %v535_v6  ;;  %v710_v11 = vsel %vm518_vm3, %v2835_v7, -inf }
 0x13f   : > { %v2837_v9 = vpop.f32.mrf.mxu2  ;;  %v524_v10 = vpop.xlane.xlu0 %523 }
 0x140   : > { %v532_v12 = vsub.f32 %v515_v45, %v524_v10 }
 0x142   : > { %v2841_v13 = vpop.eup %2448  ;;  %v537_v14 = vmul.f32 1.442695, %v532_v12  ;;  %711 = vmax.xlane.f32.xlu0 %v710_v11 }
 0x143   : > { %v543_v15 = vsel %vm518_vm3, %v2841_v13, 0.0 }
 0x144   : > { %2450 = vpow2.f32 %v537_v14  ;;  %544 = vadd.xlane.f32.xlu2 %v543_v15 }
 0x147   : > { %v688_v17 = vpop.f32.mrf.mxu2  ;;  %v527_v18 = vpop.xlane.xlu1 %526 }
 0x148   : > { %v695_v19 = vmul.f32 0.25, %v688_v17  ;;  %v533_v20 = vsub.f32 %v516_v52, %v527_v18 }
 0x14a   : > { %v2845_v21 = vpop.eup %2450  ;;  %v539_v22 = vmul.f32 1.442695, %v533_v20  ;;  %v2848_v23 = vadd.f32 %v695_v19, %v2779_v49 }
 0x14b   : > { %v546_v24 = vsel %vm518_vm3, %v2845_v21, 0.0 }
 0x14c   : > { %2452 = vpow2.f32 %v539_v22  ;;  %547 = vadd.xlane.f32.xlu2 %v546_v24  ;;  %v716_v25 = vsel %vm518_vm3, %v2848_v23, -inf }
 0x14d   : > { %717 = vmax.xlane.f32.xlu1 %v716_v25 }
 0x14f   : > { %v690_v26 = vpop.f32.mrf.mxu2  ;;  %v530_v27 = vpop.xlane.xlu1 %529 }
 0x150   : > { %v696_v28 = vmul.f32 0.25, %v690_v26  ;;  %v534_v29 = vsub.f32 %v2789_v58, %v530_v27  ;;  %v1395_v58 = vpop.permute.xlu2 %1394 }
 0x152   : > { %v2855_v31 = vpop.eup %2452  ;;  %v541_v33 = vmul.f32 1.442695, %v534_v29  ;;  %v1031_v34 = vpop.permute.xlu0 %1030  ;;  %v2858_v35 = vadd.f32 %v696_v28, %v2786_v55 }
 0x153   : > { %v1042_v36 = vsel %vm469_vm0, %v1031_v34, 0  ;;  %v549_v37 = vsel %vm518_vm3, %v2855_v31, 0.0 }
 0x154   : > { %2454 = vpow2.f32 %v541_v33  ;;  %1050 = vmatpush.bf16.xpose.msrb.mxu0 %v1042_v36  ;;  %550 = vadd.xlane.f32.xlu2 %v549_v37  ;;  %v719_v40 = vsel %vm518_vm3, %v2858_v35, -inf }
 0x155   : > { %720 = vmax.xlane.f32.xlu0 %v719_v40 }
 0x158   : > { %v1397_v61 = vpop.permute.xlu2 %1396 }
 0x15a   : > { %v2867_v42 = vpop.eup %2454  ;;  %v1029_v43 = vpop.permute.xlu0 %1028 }
 0x15b   : > { %v1039_v44 = vsel %vm469_vm0, %v1029_v43, 0  ;;  %v552_v45 = vsel %vm518_vm3, %v2867_v42, 0.0 }
 0x15c   : > { %1051 = vmatpush.bf16.xpose.msrb.mxu0 %v1039_v44  ;;  %553 = vadd.xlane.f32.xlu2 %v552_v45 }
 0x160   : > { %v1769_v2 = vpop.permute.xlu2 %1768 }
 0x161   : > { %v1779_v3 = vsel %vm469_vm0, %v1769_v2, 0 }
 0x162   : > { %v2874_v48 = vpop.permute.xlu0 %841 }
 0x163   : > { %2289 = vmatmul.msk.bf16.vlgmr.msrb.gmra.mxu0 %vm469_vm0, %v1025_v8 }
 0x167   : > { %v1027_v50 = vpop.permute.xlu1 %1026 }
 0x16a   : > { %v1401_v52 = vpop.permute.xlu0 %1400 }
 0x16b   : > { %v1412_v54 = vsel %vm469_vm0, %v1401_v52, 0 }
 0x16c   : > { %1420 = vmatpush.bf16.xpose.msra.mxu0 %v1412_v54 }
 0x16f   : > { %v1399_v56 = vpop.permute.xlu1 %1398 }
 0x170   : > { %v1409_v57 = vsel %vm469_vm0, %v1399_v56, 0 }
 0x172   : > { %v2887_v1 = vpop.permute.xlu0 %1209 }
 0x173   : > { %2290 = vmatmul.msk.bf16.gmra.mxu0 %vm469_vm0, %v1027_v50 }
 0x174   : > { %1581 = vrot.lane.b32.xlu2 %v2730_v16, %s2625_s6  ;;  %1421 = vmatpush.bf16.xpose.msra.mxu0 %v1409_v57  ;;  %v694_v16 = vmul.f32 0.25, %v2837_v9 }
 0x176   : > { %v2898_v6 = vadd.f32 %v694_v16, %v2772_v41  ;;  %v1227_v16 = vsel %vm469_vm0, %v2872_v47, 0  ;;  %v1224_v47 = vsel %vm469_vm0, %v2877_v51, 0 }
 0x177   : > { %v2884_v59 = vpop.permute.xlu1 %1211 }
 0x178   : > { %v713_v8 = vsel %vm518_vm3, %v2898_v6, -inf }
 0x17a   : > { %v2891_v4 = vpop.permute.xlu0 %1585 }
 0x17f   : > { %v1771_v63 = vpop.permute.xlu1 %1770 }
 0x180   : > { %v1782_v0 = vsel %vm469_vm0, %v1771_v63, 0 }
 0x181   : > { %1790 = vmatpush.bf16.xpose.msrb.mxu0 %v1782_v0 }
 0x182   : > { %v2895_v5 = vpop.permute.xlu0 %1583 }
 0x183   : > { %2297 = vmatmul.msk.bf16.vlgmr.msra.gmra.mxu0 %vm469_vm0, %v1395_v58 }
 0x187   : > { %v2903_v11 = vpop.permute.xlu1 %1579 }
 0x189   : > { %1791 = vmatpush.bf16.xpose.msrb.mxu0 %v1779_v3 }
 0x18a   : > { %v1765_v10 = vpop.permute.xlu0 %1764 }
 0x18f   : > { %v1767_v12 = vpop.permute.xlu1 %1766 }
 0x193   : > { %2298 = vmatmul.msk.bf16.gmra.mxu0 %vm469_vm0, %v1397_v61 }
 0x19d   : > { %714 = vmax.xlane.f32.xlu2 %v713_v8 }
 0x1a3   : > { %2305 = vmatmul.msk.bf16.vlgmr.msrb.gmra.mxu0 %vm469_vm0, %v1765_v10 }
 0x1b3   : > { %2306 = vmatmul.msk.bf16.gmra.mxu0 %vm469_vm0, %v1767_v12 }
 0x1b7   : > { %v545_v9 = vpop.xlane.xlu2 %544 }
 0x1b8   : > { %2456 = vrcp.f32 %v545_v9  ;;  %v566_v26 = vand.u32 2147483648, %v545_v9  ;;  %vm560_vm7 = vweird.f32 %v545_v9  ;;  %v564_v28 = vand.u32 2147483647, %v545_v9 }
 0x1ba   : > { %v567_v40 = vor.u32 1.1754944e-38, %v566_v26  ;;  %vm565_vm11 = vcmp.eq.f32.partialorder %v564_v28, 8.507059e+37 }
 0x1be   : > { %v2457_v14 = vpop.eup %2456 }
 0x1bf   : > { %v556_v15 = vmul.f32 %v2457_v14, %v545_v9  ;;  %v548_v17 = vpop.xlane.xlu2 %547  ;;  %vm561_vm6 = vweird.f32 %v2457_v14 }
 0x1c0   : > { %2458 = vrcp.f32 %v548_v17  ;;  %vm2906_vm8 = vmor %vm560_vm7, %vm561_vm6  ;;  %v581_v34 = vand.u32 2147483648, %v548_v17  ;;  %v579_v36 = vand.u32 2147483647, %v548_v17  ;;  %vm575_vm10 = vweird.f32 %v548_v17 }
 0x1c1   : > { %v557_v18 = vsub.f32 1.0, %v556_v15 }
 0x1c2   : > { %v582_v45 = vor.u32 1.1754944e-38, %v581_v34  ;;  %vm580_vm13 = vcmp.eq.f32.partialorder %v579_v36, 8.507059e+37 }
 0x1c3   : > { %v558_v19 = vmul.f32 %v2457_v14, %v557_v18 }
 0x1c5   : > { %v559_v25 = vadd.f32 %v2457_v14, %v558_v19 }
 0x1c6   : > { %v2459_v20 = vpop.eup %2458 }
 0x1c7   : > { %v571_v22 = vmul.f32 %v2459_v20, %v548_v17  ;;  %v551_v24 = vpop.xlane.xlu2 %550  ;;  %vm576_vm9 = vweird.f32 %v2459_v20  ;;  %v563_v37 = vsel %vm2906_vm8, %v2457_v14, %v559_v25 }
 0x1c8   : > { %2460 = vrcp.f32 %v551_v24  ;;  %vm577_vm12 = vmor %vm575_vm10, %vm576_vm9  ;;  %v568_v54 = vsel %vm565_vm11, %v567_v40, %v563_v37  ;;  %v596_v12 = vand.u32 2147483648, %v551_v24  ;;  %vm590_vm15 = vweird.f32 %v551_v24 }
 0x1c9   : > { %v572_v27 = vsub.f32 1.0, %v571_v22  ;;  %v569_v61 = vmul.f32 %v2841_v13, %v568_v54  ;;  %v594_v9 = vand.u32 2147483647, %v551_v24 }
 0x1ca   : > { %v597_v18 = vor.u32 1.1754944e-38, %v596_v12 }
 0x1cb   : > { %v573_v33 = vmul.f32 %v2459_v20, %v572_v27  ;;  %vm595_vm4 = vcmp.eq.f32.partialorder %v594_v9, 8.507059e+37 }
 0x1cd   : > { %v574_v43 = vadd.f32 %v2459_v20, %v573_v33 }
 0x1ce   : > { %v2461_v44 = vpop.eup %2460 }
 0x1cf   : > { %v586_v50 = vmul.f32 %v2461_v44, %v551_v24  ;;  %v554_v52 = vpop.xlane.xlu2 %553  ;;  %v578_v56 = vsel %vm577_vm12, %v2459_v20, %v574_v43  ;;  %vm591_vm14 = vweird.f32 %v2461_v44 }
 0x1d0   : > { %2462 = vrcp.f32 %v554_v52  ;;  %v583_v58 = vsel %vm580_vm13, %v582_v45, %v578_v56  ;;  %vm592_vm1 = vmor %vm590_vm15, %vm591_vm14  ;;  %v611_v13 = vand.u32 2147483648, %v554_v52  ;;  %vm605_vm5 = vweird.f32 %v554_v52 }
 0x1d1   : > { %v587_v57 = vsub.f32 1.0, %v586_v50  ;;  %v584_v63 = vmul.f32 %v2845_v21, %v583_v58  ;;  %v609_v21 = vand.u32 2147483647, %v554_v52  ;;  %v1597_v45 = vsel %vm469_vm0, %v2891_v4, 0 }
 0x1d2   : > { %v612_v20 = vor.u32 1.1754944e-38, %v611_v13 }
 0x1d3   : > { %v588_v0 = vmul.f32 %v2461_v44, %v587_v57  ;;  %v615_v2 = vpack.c.bf16 %v584_v63, %v569_v61  ;;  %vm610_vm7 = vcmp.eq.f32.partialorder %v609_v21, 8.507059e+37  ;;  %v1594_v57 = vsel %vm469_vm0, %v2895_v5, 0 }
 0x1d5   : > { %2279 = vmatmul.msk.bf16.vlgmr.msra.gmra.mxu1 %vm518_vm3, %v615_v2  ;;  %v589_v8 = vadd.f32 %v2461_v44, %v588_v0 }
 0x1d6   : > { %v2463_v3 = vpop.eup %2462  ;;  %1235 = vmatpush.bf16.xpose.msra.mxu1 %v1227_v16 }
 0x1d7   : > { %v601_v10 = vmul.f32 %v2463_v3, %v554_v52  ;;  %vm606_vm2 = vweird.f32 %v2463_v3  ;;  %v593_v17 = vsel %vm592_vm1, %v2461_v44, %v589_v8  ;;  %v712_v8 = vpop.xlane.xlu0 %711 }
 0x1d8   : > { %vm607_vm6 = vmor %vm605_vm5, %vm606_vm2  ;;  %v598_v22 = vsel %vm595_vm4, %v597_v18, %v593_v17 }
 0x1d9   : > { %v602_v14 = vsub.f32 1.0, %v601_v10  ;;  %v599_v28 = vmul.f32 %v2855_v31, %v598_v22  ;;  %v722_v10 = vsub.f32 %v2835_v7, %v712_v8 }
 0x1db   : > { %v603_v15 = vmul.f32 %v2463_v3, %v602_v14 }
 0x1dd   : > { %v604_v19 = vadd.f32 %v2463_v3, %v603_v15 }
 0x1de   : > { %1236 = vmatpush.bf16.xpose.msra.mxu1 %v1224_v47 }
 0x1df   : > { %v608_v24 = vsel %vm607_vm6, %v2463_v3, %v604_v19  ;;  %v1582_v19 = vpop.permute.xlu2 %1581 }
 0x1e0   : > { %v1053_v25 = vpop.f32.mrf.mxu0  ;;  %v613_v26 = vsel %vm610_vm7, %v612_v20, %v608_v24  ;;  %v721_v24 = vpop.xlane.xlu0 %720 }
 0x1e1   : > { %v1063_v27 = vmul.f32 0.25, %v1053_v25  ;;  %v614_v29 = vmul.f32 %v2867_v42, %v613_v26 }
 0x1e3   : > { %v616_v33 = vpack.c.bf16 %v614_v29, %v599_v28  ;;  %v2922_v34 = vadd.f32 %v1063_v27, %v2764_v32 }
 0x1e5   : > { %v1080_v51 = vsel %vm518_vm3, %v2922_v34, -inf  ;;  %2280 = vmatmul.msk.bf16.gmra.mxu1 %vm518_vm3, %v616_v33 }
 0x1e6   : > { %1081 = vmax.xlane.f32.xlu0 %v1080_v51 }
 0x1e8   : > { %v1055_v36 = vpop.f32.mrf.mxu0 }
 0x1e9   : > { %v1064_v37 = vmul.f32 0.25, %v1055_v36 }
 0x1eb   : > { %v2928_v40 = vadd.f32 %v1064_v37, %v2772_v41 }
 0x1ed   : > { %v1083_v31 = vsel %vm518_vm3, %v2928_v40, -inf }
 0x1ee   : > { %1084 = vmax.xlane.f32.xlu2 %v1083_v31 }
 0x1f0   : > { %v1058_v42 = vpop.f32.mrf.mxu0 }
 0x1f1   : > { %v1065_v43 = vmul.f32 0.25, %v1058_v42 }
 0x1f3   : > { %v2933_v44 = vadd.f32 %v1065_v43, %v2779_v49  ;;  %v718_v43 = vpop.xlane.xlu1 %717 }
 0x1f5   : > { %v1086_v50 = vsel %vm518_vm3, %v2933_v44, -inf  ;;  %2285 = vmatmul.msk.bf16.vlgmr.msrb.gmra.mxu1 %vm469_vm0, %v2863_v39 }
 0x1f6   : > { %1087 = vmax.xlane.f32.xlu2 %v1086_v50  ;;  %1605 = vmatpush.bf16.xpose.msrb.mxu1 %v1597_v45 }
 0x1f8   : > { %v1060_v52 = vpop.f32.mrf.mxu0 }
 0x1f9   : > { %v1066_v54 = vmul.f32 0.25, %v1060_v52 }
 0x1fa   : > { %810 = vrot.lane.b32.xlu0 %v2803_v60, %s2618_s27 }
 0x1fb   : > { %v2944_v56 = vadd.f32 %v1066_v54, %v2786_v55 }
 0x1fd   : > { %v1089_v4 = vsel %vm518_vm3, %v2944_v56, -inf }
 0x1fe   : > { %1090 = vmax.xlane.f32.xlu1 %v1089_v4  ;;  %1606 = vmatpush.bf16.xpose.msrb.mxu1 %v1594_v57  ;;  %v724_v57 = vsub.f32 %v2848_v23, %v718_v43 }
 0x200   : > { %v1423_v58 = vpop.f32.mrf.mxu0 }
 0x201   : > { %v1433_v39 = vmul.f32 0.25, %v1423_v58  ;;  %v730_v58 = vmul.f32 1.442695, %v724_v57 }
 0x202   : > { %1178 = vrot.lane.b32.xlu0 %v2809_v62, %s2620_s28 }
 0x203   : > { %v2953_v61 = vadd.f32 %v1433_v39, %v2764_v32 }
 0x205   : > { %v1450_v63 = vsel %vm518_vm3, %v2953_v61, -inf  ;;  %2286 = vmatmul.msk.bf16.gmra.mxu1 %vm469_vm0, %v2874_v48 }
 0x206   : > { %1451 = vmax.xlane.f32.xlu2 %v1450_v63 }
 0x208   : > { %v1425_v5 = vpop.f32.mrf.mxu0 }
 0x209   : > { %v1434_v17 = vmul.f32 0.25, %v1425_v5 }
 0x20b   : > { %v2993_v18 = vadd.f32 %v1434_v17, %v2772_v41 }
 0x210   : > { %v1428_v0 = vpop.f32.mrf.mxu0  ;;  %v715_v26 = vpop.xlane.xlu2 %714 }
 0x211   : > { %v1435_v47 = vmul.f32 0.25, %v1428_v0  ;;  %v723_v33 = vsub.f32 %v2898_v6, %v715_v26 }
 0x213   : > { %v728_v31 = vmul.f32 1.442695, %v723_v33 }
 0x215   : > { %2293 = vmatmul.msk.bf16.vlgmr.msra.gmra.mxu1 %vm469_vm0, %v2887_v1 }
 0x217   : > { %1180 = vrot.lane.b32.xlu1 %v2803_v60, %s2620_s28 }
 0x218   : > { %v1430_v2 = vpop.f32.mrf.mxu0 }
 0x219   : > { %v1436_v20 = vmul.f32 0.25, %v1430_v2 }
 0x21b   : > { %v3006_v28 = vadd.f32 %v1436_v20, %v2786_v55 }
 0x21d   : > { %v1459_v36 = vsel %vm518_vm3, %v3006_v28, -inf }
 0x21e   : > { %808 = vrot.lane.b32.xlu2 %v2809_v62, %s2618_s27 }
 0x21f   : > { %1550 = vrot.lane.b32.xlu1 %v2803_v60, %s2622_s30 }
 0x220   : > { %v1793_v3 = vpop.f32.mrf.mxu0 }
 0x221   : > { %v1803_v51 = vmul.f32 0.25, %v1793_v3  ;;  %v725_v3 = vsub.f32 %v2858_v35, %v721_v24 }
 0x223   : > { %v3016_v50 = vadd.f32 %v1803_v51, %v2761_v30 }
 0x225   : > { %2294 = vmatmul.msk.bf16.gmra.mxu1 %vm469_vm0, %v2884_v59  ;;  %v726_v59 = vmul.f32 1.442695, %v722_v10  ;;  %v1820_v4 = vsel %vm518_vm3, %v3016_v50, -inf  ;;  %v732_v10 = vmul.f32 1.442695, %v725_v3 }
 0x226   : > { %995 = vrot.lane.b32.xlu2 %v2803_v60, %s2619_s12 }
 0x227   : > { %2464 = vpow2.f32 %v726_v59 }
 0x228   : > { %v1795_v48 = vpop.f32.mrf.mxu0  ;;  %2466 = vpow2.f32 %v728_v31 }
 0x229   : > { %v1804_v16 = vmul.f32 0.25, %v1795_v48 }
 0x22b   : > { %v2972_v1 = vadd.f32 %v1804_v16, %v2767_v38 }
 0x22d   : > { %v1823_v12 = vsel %vm518_vm3, %v2972_v1, -inf  ;;  %v2988_v7 = vpop.eup %2464 }
 0x22e   : > { %993 = vrot.lane.b32.xlu2 %v2809_v62, %s2619_s12  ;;  %1824 = vmax.xlane.f32.xlu0 %v1823_v12  ;;  %v734_v21 = vsel %vm518_vm3, %v2988_v7, 0.0  ;;  %v3026_v63 = vpop.eup %2466 }
 0x22f   : > { %v737_v23 = vsel %vm518_vm3, %v3026_v63, 0.0 }
 0x230   : > { %v1798_v9 = vpop.f32.mrf.mxu0 }
 0x231   : > { %v1805_v14 = vmul.f32 0.25, %v1798_v9 }
 0x233   : > { %v2980_v13 = vadd.f32 %v1805_v14, %v2775_v46 }
 0x235   : > { %v1826_v15 = vsel %vm518_vm3, %v2980_v13, -inf  ;;  %2301 = vmatmul.msk.bf16.vlgmr.msrb.gmra.mxu1 %vm469_vm0, %v2903_v11  ;;  %v1453_v11 = vsel %vm518_vm3, %v2993_v18, -inf }
 0x236   : > { %1365 = vrot.lane.b32.xlu2 %v2803_v60, %s2621_s29  ;;  %1827 = vmax.xlane.f32.xlu0 %v1826_v15  ;;  %v2999_v60 = vadd.f32 %v1435_v47, %v2779_v49 }
 0x238   : > { %v1456_v22 = vsel %vm518_vm3, %v2999_v60, -inf  ;;  %v1800_v25 = vpop.f32.mrf.mxu0 }
 0x239   : > { %v1806_v29 = vmul.f32 0.25, %v1800_v25 }
 0x23b   : > { %v3012_v37 = vadd.f32 %v1806_v29, %v2782_v53 }
 0x23d   : > { %v1829_v6 = vsel %vm518_vm3, %v3012_v37, -inf }
 0x23e   : > { %735 = vadd.xlane.f32.xlu0 %v734_v21 }
 0x245   : > { %2302 = vmatmul.msk.bf16.gmra.mxu1 %vm469_vm0, %v1582_v19 }
 0x249   : > { %1454 = vmax.xlane.f32.xlu1 %v1453_v11 }
 0x251   : > { %1457 = vmax.xlane.f32.xlu1 %v1456_v22 }
 0x252   : > { %v3003_v27 = vpop.f32.mrf.mxu1 }
 0x259   : > { %v1082_v42 = vpop.xlane.xlu0 %1081  ;;  %1460 = vmax.xlane.f32.xlu1 %v1459_v36 }
 0x25a   : > { %v1092_v45 = vsub.f32 %v2922_v34, %v1082_v42  ;;  %v3018_v52 = vpop.f32.mrf.mxu1 }
 0x25c   : > { %v1096_v54 = vmul.f32 1.442695, %v1092_v45 }
 0x25e   : > { %2468 = vpow2.f32 %v1096_v54 }
 0x25f   : > { %1830 = vmax.xlane.f32.xlu2 %v1829_v6  ;;  %2470 = vpow2.f32 %v730_v58 }
 0x261   : > { %v1085_v39 = vpop.xlane.xlu2 %1084  ;;  %1821 = vmax.xlane.f32.xlu1 %v1820_v4 }
 0x262   : > { %v1093_v34 = vsub.f32 %v2928_v40, %v1085_v39  ;;  %v3028_v5 = vpop.f32.mrf.mxu1 }
 0x264   : > { %v1098_v0 = vmul.f32 1.442695, %v1093_v34  ;;  %v3030_v2 = vpop.eup %2468 }
 0x265   : > { %v1104_v48 = vsel %vm518_vm3, %v3030_v2, 0.0  ;;  %v3038_v8 = vpop.eup %2470 }
 0x266   : > { %2472 = vpow2.f32 %v1098_v0  ;;  %v740_v35 = vsel %vm518_vm3, %v3038_v8, 0.0 }
 0x267   : > { %738 = vadd.xlane.f32.xlu2 %v737_v23 }
 0x269   : > { %v1088_v16 = vpop.xlane.xlu2 %1087  ;;  %1105 = vadd.xlane.f32.xlu1 %v1104_v48 }
 0x26a   : > { %v1094_v40 = vsub.f32 %v2933_v44, %v1088_v16  ;;  %v3040_v12 = vpop.f32.mrf.mxu1 }
 0x26c   : > { %v1100_v9 = vmul.f32 1.442695, %v1094_v40  ;;  %v811_v59 = vpop.permute.xlu0 %810  ;;  %v3042_v14 = vpop.eup %2472 }
 0x26d   : > { %826 = vmatpush.bf16.msra.mxu3 %v811_v59  ;;  %v1107_v15 = vsel %vm518_vm3, %v3042_v14, 0.0 }
 0x26e   : > { %2474 = vpow2.f32 %v1100_v9 }
 0x26f   : > { %2476 = vpow2.f32 %v732_v10  ;;  %741 = vadd.xlane.f32.xlu2 %v740_v35 }
 0x271   : > { %1108 = vadd.xlane.f32.xlu1 %v1107_v15  ;;  %v1091_v44 = vpop.xlane.xlu1 %1090 }
 0x272   : > { %v1095_v21 = vsub.f32 %v2944_v56, %v1091_v44  ;;  %v868_v17 = vpop.f32.mrf.mxu1 }
 0x273   : > { %v878_v11 = vmul.f32 0.25, %v868_v17 }
 0x274   : > { %v3049_v19 = vpop.eup %2474  ;;  %v1102_v47 = vmul.f32 1.442695, %v1095_v21  ;;  %v1179_v4 = vpop.permute.xlu0 %1178 }
 0x275   : > { %v3051_v20 = vpop.eup %2476  ;;  %v1110_v22 = vsel %vm518_vm3, %v3049_v19, 0.0  ;;  %v3056_v24 = vadd.f32 %v878_v11, %v2764_v32 }
 0x276   : > { %2478 = vpow2.f32 %v1102_v47  ;;  %1111 = vadd.xlane.f32.xlu0 %v1110_v22  ;;  %v743_v56 = vsel %vm518_vm3, %v3051_v20, 0.0 }
 0x277   : > { %v895_v25 = vsel %vm518_vm3, %v3056_v24, -inf }
 0x278   : > { %896 = vmax.xlane.f32.xlu2 %v895_v25 }
 0x279   : > { %v1452_v26 = vpop.xlane.xlu2 %1451  ;;  %744 = vadd.xlane.f32.xlu1 %v743_v56 }
 0x27a   : > { %v1462_v29 = vsub.f32 %v2953_v61, %v1452_v26  ;;  %v870_v33 = vpop.f32.mrf.mxu1 }
 0x27b   : > { %v879_v45 = vmul.f32 0.25, %v870_v33 }
 0x27c   : > { %v3063_v51 = vpop.eup %2478  ;;  %v1466_v36 = vmul.f32 1.442695, %v1462_v29 }
 0x27d   : > { %v1113_v31 = vsel %vm518_vm3, %v3063_v51, 0.0  ;;  %v3072_v6 = vadd.f32 %v879_v45, %v2772_v41 }
 0x27e   : > { %2480 = vpow2.f32 %v1466_v36  ;;  %1114 = vadd.xlane.f32.xlu0 %v1113_v31 }
 0x27f   : > { %v898_v39 = vsel %vm518_vm3, %v3072_v6, -inf }
 0x281   : > { %v809_v3 = vpop.permute.xlu2 %808 }
 0x282   : > { %v873_v42 = vpop.f32.mrf.mxu1  ;;  %827 = vmatpush.bf16.msra.mxu3 %v809_v3 }
 0x283   : > { %v880_v58 = vmul.f32 0.25, %v873_v42 }
 0x284   : > { %v3067_v43 = vpop.eup %2480 }
 0x285   : > { %v1474_v54 = vsel %vm518_vm3, %v3067_v43, 0.0  ;;  %v3079_v34 = vadd.f32 %v880_v58, %v2779_v49 }
 0x286   : > { %1475 = vadd.xlane.f32.xlu1 %v1474_v54 }
 0x287   : > { %v901_v16 = vsel %vm518_vm3, %v3079_v34, -inf }
 0x289   : > { %v1181_v61 = vpop.permute.xlu1 %1180  ;;  %v996_v9 = vpop.permute.xlu2 %995 }
 0x28a   : > { %1196 = vmatpush.bf16.msrb.mxu2 %v1181_v61  ;;  %v3074_v57 = vpop.f32.mrf.mxu1  ;;  %1011 = vmatpush.bf16.msrb.mxu3 %v996_v9 }
 0x28e   : > { %899 = vmax.xlane.f32.xlu1 %v898_v39  ;;  %1197 = vmatpush.bf16.msrb.mxu2 %v1179_v4 }
 0x290   : > { %1363 = vrot.lane.b32.xlu2 %v2809_v62, %s2621_s29 }
 0x291   : > { %v1551_v0 = vpop.permute.xlu1 %1550  ;;  %v994_v15 = vpop.permute.xlu2 %993 }
 0x292   : > { %1566 = vmatpush.bf16.msra.mxu2 %v1551_v0  ;;  %v1238_v23 = vpop.f32.mrf.mxu1  ;;  %1012 = vmatpush.bf16.msrb.mxu3 %v994_v15 }
 0x293   : > { %v1248_v48 = vmul.f32 0.25, %v1238_v23 }
 0x295   : > { %v3086_v40 = vadd.f32 %v1248_v48, %v2764_v32 }
 0x296   : > { %902 = vmax.xlane.f32.xlu1 %v901_v16 }
 0x297   : > { %v1265_v59 = vsel %vm518_vm3, %v3086_v40, -inf }
 0x299   : > { %v3119_v58 = vpop.permute.xlu2 %1365 }
 0x29a   : > { %v3088_v10 = vpop.f32.mrf.mxu1 }
 0x29e   : > { %1266 = vmax.xlane.f32.xlu1 %v1265_v59 }
 0x2a1   : > { %v3097_v11 = vpop.xlane.xlu0 %1824 }
 0x2a2   : > { %v1243_v62 = vpop.f32.mrf.mxu1 }
 0x2a3   : > { %v1250_v35 = vmul.f32 0.25, %v1243_v62 }
 0x2a5   : > { %v3093_v44 = vadd.f32 %v1250_v35, %v2779_v49 }
 0x2a7   : > { %v1271_v21 = vsel %vm518_vm3, %v3093_v44, -inf }
 0x2a8   : > { %1272 = vmax.xlane.f32.xlu1 %v1271_v21  ;;  %v881_v21 = vmul.f32 0.25, %v3074_v57 }
 0x2a9   : > { %v3107_v29 = vpop.xlane.xlu0 %1827 }
 0x2aa   : > { %v1245_v32 = vpop.f32.mrf.mxu1 }
 0x2b1   : > { %v736_v39 = vpop.xlane.xlu0 %735 }
 0x2b2   : > { %v1608_v17 = vpop.f32.mrf.mxu1  ;;  %vm751_vm9 = vweird.f32 %v736_v39 }
 0x2b3   : > { %v1618_v47 = vmul.f32 0.25, %v1608_v17 }
 0x2b5   : > { %v3100_v22 = vadd.f32 %v1618_v47, %v2761_v30 }
 0x2b7   : > { %v1635_v25 = vsel %vm518_vm3, %v3100_v22, -inf }
 0x2b8   : > { %1636 = vmax.xlane.f32.xlu1 %v1635_v25 }
 0x2ba   : > { %v3104_v56 = vpop.f32.mrf.mxu1 }
 0x2bc   : > { %v1455_v49 = vpop.xlane.xlu1 %1454 }
 0x2bd   : > { %v1463_v26 = vsub.f32 %v2993_v18, %v1455_v49 }
 0x2bf   : > { %v1468_v33 = vmul.f32 1.442695, %v1463_v26  ;;  %v3146_v26 = vadd.f32 %v881_v21, %v2786_v55  ;;  %v1619_v21 = vmul.f32 0.25, %v3104_v56 }
 0x2c1   : > { %2482 = vpow2.f32 %v1468_v33  ;;  %v904_v57 = vsel %vm518_vm3, %v3146_v26, -inf }
 0x2c2   : > { %v1613_v36 = vpop.f32.mrf.mxu1 }
 0x2c3   : > { %v1620_v31 = vmul.f32 0.25, %v1613_v36  ;;  %v1249_v36 = vmul.f32 0.25, %v3088_v10  ;;  %v755_v10 = vand.u32 2147483647, %v736_v39 }
 0x2c4   : > { %v1458_v42 = vpop.xlane.xlu1 %1457 }
 0x2c5   : > { %v1464_v45 = vsub.f32 %v2999_v60, %v1458_v42  ;;  %v3111_v30 = vadd.f32 %v1620_v31, %v2775_v46  ;;  %v1833_v42 = vsub.f32 %v2972_v1, %v3097_v11  ;;  %vm756_vm11 = vcmp.eq.f32.partialorder %v755_v10, 8.507059e+37 }
 0x2c6   : > { %v3206_v1 = vadd.f32 %v1619_v21, %v2767_v38 }
 0x2c7   : > { %v3113_v54 = vpop.eup %2482  ;;  %v1470_v61 = vmul.f32 1.442695, %v1464_v45  ;;  %v1641_v4 = vsel %vm518_vm3, %v3111_v30, -inf  ;;  %v1251_v45 = vmul.f32 0.25, %v1245_v32 }
 0x2c8   : > { %v1477_v18 = vsel %vm518_vm3, %v3113_v54, 0.0  ;;  %1642 = vmax.xlane.f32.xlu2 %v1641_v4  ;;  %v757_v4 = vand.u32 2147483648, %v736_v39 }
 0x2c9   : > { %2484 = vpow2.f32 %v1470_v61  ;;  %1478 = vadd.xlane.f32.xlu0 %v1477_v18 }
 0x2ca   : > { %v1615_v0 = vpop.f32.mrf.mxu1  ;;  %2486 = vrcp.f32 %v736_v39 }
 0x2cb   : > { %v1621_v60 = vmul.f32 0.25, %v1615_v0 }
 0x2cc   : > { %v1461_v46 = vpop.xlane.xlu1 %1460 }
 0x2cd   : > { %v1465_v23 = vsub.f32 %v3006_v28, %v1461_v46  ;;  %v3123_v3 = vadd.f32 %v1621_v60, %v2782_v53  ;;  %v3164_v46 = vadd.f32 %v1249_v36, %v2772_v41  ;;  %v758_v41 = vor.u32 1.1754944e-38, %v757_v4 }
 0x2cf   : > { %v3125_v48 = vpop.eup %2484  ;;  %v1472_v16 = vmul.f32 1.442695, %v1465_v23  ;;  %v1644_v9 = vsel %vm518_vm3, %v3123_v3, -inf }
 0x2d0   : > { %v1480_v59 = vsel %vm518_vm3, %v3125_v48, 0.0  ;;  %1645 = vmax.xlane.f32.xlu1 %v1644_v9  ;;  %v2487_v62 = vpop.eup %2486  ;;  %v3178_v9 = vadd.f32 %v1251_v45, %v2786_v55 }
 0x2d1   : > { %2488 = vpow2.f32 %v1472_v16  ;;  %1481 = vadd.xlane.f32.xlu0 %v1480_v59  ;;  %v747_v28 = vmul.f32 %v2487_v62, %v736_v39  ;;  %vm752_vm8 = vweird.f32 %v2487_v62  ;;  %v1838_v16 = vmul.f32 1.442695, %v1833_v42 }
 0x2d2   : > { %v3131_v35 = vpop.xlane.xlu2 %1830  ;;  %vm3166_vm10 = vmor %vm751_vm9, %vm752_vm8  ;;  %v1274_v56 = vsel %vm518_vm3, %v3178_v9, -inf }
 0x2d3   : > { %v748_v47 = vsub.f32 1.0, %v747_v28 }
 0x2d4   : > { %v3133_v15 = vpop.xlane.xlu1 %1821 }
 0x2d5   : > { %v749_v33 = vmul.f32 %v2487_v62, %v748_v47  ;;  %v1268_v47 = vsel %vm518_vm3, %v3164_v46, -inf }
 0x2d7   : > { %v3135_v53 = vpop.eup %2488  ;;  %v750_v61 = vadd.f32 %v2487_v62, %v749_v33 }
 0x2d8   : > { %v1483_v17 = vsel %vm518_vm3, %v3135_v53, 0.0 }
 0x2d9   : > { %1484 = vadd.xlane.f32.xlu0 %v1483_v17  ;;  %v754_v39 = vsel %vm3166_vm10, %v2487_v62, %v750_v61 }
 0x2da   : > { %v3140_v25 = vpop.xlane.xlu2 %738  ;;  %v759_v55 = vsel %vm756_vm11, %v758_v41, %v754_v39 }
 0x2db   : > { %2490 = vrcp.f32 %v3140_v25  ;;  %v772_v17 = vand.u32 2147483648, %v3140_v25  ;;  %vm766_vm13 = vweird.f32 %v3140_v25  ;;  %v770_v42 = vand.u32 2147483647, %v3140_v25 }
 0x2dc   : > { %v3143_v49 = vpop.xlane.xlu1 %1105  ;;  %v760_v10 = vmul.f32 %v2988_v7, %v759_v55 }
 0x2dd   : > { %2492 = vrcp.f32 %v3143_v49  ;;  %vm771_vm1 = vcmp.eq.f32.partialorder %v770_v42, 8.507059e+37  ;;  %vm1121_vm2 = vweird.f32 %v3143_v49 }
 0x2e1   : > { %v3152_v31 = vpop.eup %2490  ;;  %905 = vmax.xlane.f32.xlu0 %v904_v57 }
 0x2e2   : > { %v762_v18 = vmul.f32 %v3152_v31, %v3140_v25  ;;  %v3158_v0 = vpop.xlane.xlu2 %741  ;;  %vm767_vm12 = vweird.f32 %v3152_v31 }
 0x2e3   : > { %v3160_v60 = vpop.eup %2492  ;;  %2494 = vrcp.f32 %v3158_v0  ;;  %vm3199_vm14 = vmor %vm766_vm13, %vm767_vm12  ;;  %vm781_vm11 = vweird.f32 %v3158_v0 }
 0x2e4   : > { %v763_v32 = vsub.f32 1.0, %v762_v18  ;;  %v1117_v11 = vmul.f32 %v3160_v60, %v3143_v49  ;;  %v3172_v23 = vpop.xlane.xlu1 %1108  ;;  %v773_v18 = vor.u32 1.1754944e-38, %v772_v17  ;;  %vm1122_vm15 = vweird.f32 %v3160_v60 }
 0x2e5   : > { %2496 = vrcp.f32 %v3172_v23  ;;  %v1140_v21 = vand.u32 2147483647, %v3172_v23  ;;  %vm3225_vm4 = vmor %vm1121_vm2, %vm1122_vm15  ;;  %vm1136_vm7 = vweird.f32 %v3172_v23 }
 0x2e6   : > { %v764_v59 = vmul.f32 %v3152_v31, %v763_v32  ;;  %v1118_v28 = vsub.f32 1.0, %v1117_v11  ;;  %2498 = vpow2.f32 %v1838_v16 }
 0x2e7   : > { %vm1141_vm10 = vcmp.eq.f32.partialorder %v1140_v21, 8.507059e+37 }
 0x2e8   : > { %v765_v33 = vadd.f32 %v3152_v31, %v764_v59  ;;  %v1119_v62 = vmul.f32 %v3160_v60, %v1118_v28  ;;  %v1125_v59 = vand.u32 2147483647, %v3143_v49  ;;  %v1127_v28 = vand.u32 2147483648, %v3143_v49 }
 0x2e9   : > { %v3188_v36 = vpop.eup %2494  ;;  %v3190_v57 = vpop.xlane.xlu0 %1111  ;;  %1269 = vmax.xlane.f32.xlu0 %v1268_v47 }
 0x2ea   : > { %v777_v45 = vmul.f32 %v3188_v36, %v3158_v0  ;;  %2500 = vrcp.f32 %v3190_v57  ;;  %v1120_v25 = vadd.f32 %v3160_v60, %v1119_v62  ;;  %v769_v41 = vsel %vm3199_vm14, %v3152_v31, %v765_v33 }
 0x2eb   : > { %v2497_v61 = vpop.eup %2496  ;;  %v897_v16 = vpop.xlane.xlu2 %896  ;;  %v774_v62 = vsel %vm771_vm1, %v773_v18, %v769_v41  ;;  %vm1126_vm6 = vcmp.eq.f32.partialorder %v1125_v59, 8.507059e+37  ;;  %v1128_v4 = vor.u32 1.1754944e-38, %v1127_v28  ;;  %vm782_vm8 = vweird.f32 %v3188_v36 }
 0x2ec   : > { %v778_v32 = vsub.f32 1.0, %v777_v45  ;;  %v1132_v11 = vmul.f32 %v2497_v61, %v3172_v23  ;;  %v3210_v39 = vpop.xlane.xlu1 %744  ;;  %v907_v7 = vsub.f32 %v3056_v24, %v897_v16  ;;  %v3221_v17 = vpop.eup %2498  ;;  %v1142_v24 = vand.u32 2147483648, %v3172_v23  ;;  %vm3253_vm12 = vmor %vm781_vm11, %vm782_vm8 }
 0x2ed   : > { %2502 = vrcp.f32 %v3210_v39  ;;  %v1124_v49 = vsel %vm3225_vm4, %v3160_v60, %v1120_v25  ;;  %vm1137_vm5 = vweird.f32 %v2497_v61  ;;  %v775_v45 = vmul.f32 %v3026_v63, %v774_v62 }
 0x2ee   : > { %v1133_v38 = vsub.f32 1.0, %v1132_v11  ;;  %v779_v47 = vmul.f32 %v3188_v36, %v778_v32  ;;  %v911_v33 = vmul.f32 1.442695, %v907_v7  ;;  %vm1138_vm9 = vmor %vm1136_vm7, %vm1137_vm5  ;;  %v1143_v63 = vor.u32 1.1754944e-38, %v1142_v24 }
 0x2ef   : > { %v806_v16 = vpack.c.bf16 %v775_v45, %v760_v10  ;;  %v1129_v41 = vsel %vm1126_vm6, %v1128_v4, %v1124_v49  ;;  %v787_v23 = vand.u32 2147483648, %v3158_v0  ;;  %v1638_v10 = vsel %vm518_vm3, %v3206_v1, -inf }
 0x2f0   : > { %v3231_v55 = vpop.eup %2500  ;;  %v1134_v42 = vmul.f32 %v2497_v61, %v1133_v38  ;;  %2504 = vpow2.f32 %v911_v33  ;;  %v780_v25 = vadd.f32 %v3188_v36, %v779_v47  ;;  %v1130_v31 = vmul.f32 %v3030_v2, %v1129_v41 }
 0x2f1   : > { %v1147_v11 = vmul.f32 %v3231_v55, %v3190_v57  ;;  %v3239_v32 = vpop.xlane.xlu0 %1114  ;;  %1275 = vmax.xlane.f32.xlu0 %v1274_v56  ;;  %2283 = vmatmul.msk.bf16.vlgmr.msra.gmra.mxu3 %vm518_vm3, %v806_v16  ;;  %v800_v33 = vand.u32 2147483647, %v3210_v39  ;;  %v802_v62 = vand.u32 2147483648, %v3210_v39  ;;  %vm796_vm15 = vweird.f32 %v3210_v39 }
 0x2f2   : > { %v1135_v18 = vadd.f32 %v2497_v61, %v1134_v42  ;;  %2506 = vrcp.f32 %v3239_v32  ;;  %1381 = vmatpush.bf16.msra.mxu3 %v3119_v58  ;;  %v784_v58 = vsel %vm3253_vm12, %v3188_v36, %v780_v25  ;;  %vm1152_vm4 = vweird.f32 %v3231_v55 }
 0x2f3   : > { %v2503_v60 = vpop.eup %2502  ;;  %v1148_v28 = vsub.f32 1.0, %v1147_v11  ;;  %vm801_vm2 = vcmp.eq.f32.partialorder %v800_v33, 8.507059e+37  ;;  %v803_v36 = vor.u32 1.1754944e-38, %v802_v62  ;;  %vm1151_vm6 = vweird.f32 %v3190_v57 }
 0x2f4   : > { %v1139_v59 = vsel %vm1138_vm9, %v2497_v61, %v1135_v18  ;;  %v792_v56 = vmul.f32 %v2503_v60, %v3210_v39  ;;  %v785_v61 = vand.u32 2147483647, %v3158_v0  ;;  %vm797_vm13 = vweird.f32 %v2503_v60  ;;  %vm3285_vm7 = vmor %vm1151_vm6, %vm1152_vm4 }
 0x2f5   : > { %v1144_v7 = vsel %vm1141_vm10, %v1143_v63, %v1139_v59  ;;  %v1149_v42 = vmul.f32 %v3231_v55, %v1148_v28  ;;  %v1157_v18 = vand.u32 2147483648, %v3190_v57  ;;  %vm798_vm1 = vmor %vm796_vm15, %vm797_vm13  ;;  %v1172_v59 = vand.u32 2147483648, %v3239_v32 }
 0x2f6   : > { %v793_v21 = vsub.f32 1.0, %v792_v56  ;;  %v1145_v47 = vmul.f32 %v3042_v14, %v1144_v7  ;;  %v3260_v24 = vpop.eup %2504  ;;  %v788_v14 = vor.u32 1.1754944e-38, %v787_v23  ;;  %vm786_vm14 = vcmp.eq.f32.partialorder %v785_v61, 8.507059e+37 }
 0x2f7   : > { %v919_v2 = vsel %vm518_vm3, %v3260_v24, 0.0  ;;  %v1150_v41 = vadd.f32 %v3231_v55, %v1149_v42  ;;  %v1170_v23 = vand.u32 2147483647, %v3239_v32  ;;  %vm1166_vm8 = vweird.f32 %v3239_v32 }
 0x2f8   : > { %v2507_v49 = vpop.eup %2506  ;;  %v794_v0 = vmul.f32 %v2503_v60, %v793_v21  ;;  %v1176_v45 = vpack.c.bf16 %v1145_v47, %v1130_v31  ;;  %920 = vadd.xlane.f32.xlu2 %v919_v2  ;;  %v789_v63 = vsel %vm786_vm14, %v788_v14, %v784_v58  ;;  %v1847_v31 = vsel %vm518_vm3, %v3221_v17, 0.0 }
 0x2f9   : > { %v1162_v4 = vmul.f32 %v2507_v49, %v3239_v32  ;;  %1639 = vmax.xlane.f32.xlu0 %v1638_v10  ;;  %v3271_v11 = vpop.xlane.xlu1 %1475  ;;  %vm1167_vm5 = vweird.f32 %v2507_v49  ;;  %v1155_v10 = vand.u32 2147483647, %v3190_v57  ;;  %v790_v7 = vmul.f32 %v3038_v8, %v789_v63 }
 0x2fa   : > { %v795_v16 = vadd.f32 %v2503_v60, %v794_v0  ;;  %2291 = vmatmul.msk.bf16.vlgmr.msrb.gmra.mxu2 %vm518_vm3, %v1176_v45  ;;  %vm1168_vm9 = vmor %vm1166_vm8, %vm1167_vm5  ;;  %v1154_v57 = vsel %vm3285_vm7, %v3231_v55, %v1150_v41  ;;  %v1158_v8 = vor.u32 1.1754944e-38, %v1157_v18  ;;  %vm1171_vm10 = vcmp.eq.f32.partialorder %v1170_v23, 8.507059e+37 }
 0x2fb   : > { %v1163_v25 = vsub.f32 1.0, %v1162_v4  ;;  %vm1156_vm11 = vcmp.eq.f32.partialorder %v1155_v10, 8.507059e+37  ;;  %vm1491_vm13 = vweird.f32 %v3271_v11 }
 0x2fc   : > { %v799_v28 = vsel %vm798_vm1, %v2503_v60, %v795_v16  ;;  %v1173_v60 = vor.u32 1.1754944e-38, %v1172_v59  ;;  %v1159_v32 = vsel %vm1156_vm11, %v1158_v8, %v1154_v57  ;;  %v1364_v16 = vpop.permute.xlu2 %1363 }
 0x2fd   : > { %v1164_v56 = vmul.f32 %v2507_v49, %v1163_v25  ;;  %v804_v39 = vsel %vm801_vm2, %v803_v36, %v799_v28  ;;  %v1160_v2 = vmul.f32 %v3049_v19, %v1159_v32  ;;  %1382 = vmatpush.bf16.msra.mxu3 %v1364_v16 }
 0x2fe   : > { %v805_v38 = vmul.f32 %v3051_v20, %v804_v39 }
 0x2ff   : > { %v1165_v21 = vadd.f32 %v2507_v49, %v1164_v56 }
 0x300   : > { %v807_v47 = vpack.c.bf16 %v805_v38, %v790_v7  ;;  %1848 = vadd.xlane.f32.xlu2 %v1847_v31  ;;  %v1497_v31 = vand.u32 2147483648, %v3271_v11 }
 0x301   : > { %v900_v20 = vpop.xlane.xlu1 %899  ;;  %v1169_v33 = vsel %vm1168_vm9, %v2507_v49, %v1165_v21 }
 0x302   : > { %v908_v62 = vsub.f32 %v3072_v6, %v900_v20  ;;  %v1174_v58 = vsel %vm1171_vm10, %v1173_v60, %v1169_v33  ;;  %2284 = vmatmul.msk.bf16.gmra.mxu3 %vm518_vm3, %v807_v47  ;;  %v1495_v47 = vand.u32 2147483647, %v3271_v11 }
 0x303   : > { %v1175_v0 = vmul.f32 %v3063_v51, %v1174_v58  ;;  %v1498_v58 = vor.u32 1.1754944e-38, %v1497_v31 }
 0x304   : > { %v913_v42 = vmul.f32 1.442695, %v908_v62  ;;  %vm1496_vm1 = vcmp.eq.f32.partialorder %v1495_v47, 8.507059e+37 }
 0x305   : > { %v1177_v45 = vpack.c.bf16 %v1175_v0, %v1160_v2 }
 0x306   : > { %2508 = vpow2.f32 %v913_v42 }
 0x309   : > { %v903_v55 = vpop.xlane.xlu1 %902 }
 0x30a   : > { %v909_v14 = vsub.f32 %v3079_v34, %v903_v55  ;;  %2292 = vmatmul.msk.bf16.gmra.mxu2 %vm518_vm3, %v1177_v45 }
 0x30c   : > { %v3301_v49 = vpop.eup %2508  ;;  %v915_v4 = vmul.f32 1.442695, %v909_v14 }
 0x30d   : > { %v922_v6 = vsel %vm518_vm3, %v3301_v49, 0.0 }
 0x30e   : > { %2510 = vpow2.f32 %v915_v4  ;;  %923 = vadd.xlane.f32.xlu1 %v922_v6 }
 0x311   : > { %v1267_v18 = vpop.xlane.xlu1 %1266 }
 0x312   : > { %v1277_v51 = vsub.f32 %v3086_v40, %v1267_v18 }
 0x314   : > { %v3306_v19 = vpop.eup %2510  ;;  %v1281_v36 = vmul.f32 1.442695, %v1277_v51 }
 0x315   : > { %v925_v34 = vsel %vm518_vm3, %v3306_v19, 0.0 }
 0x316   : > { %2512 = vpow2.f32 %v1281_v36  ;;  %926 = vadd.xlane.f32.xlu1 %v925_v34 }
 0x31b   : > { %v1273_v63 = vpop.xlane.xlu1 %1272 }
 0x31c   : > { %v3310_v25 = vpop.eup %2512  ;;  %v1279_v41 = vsub.f32 %v3093_v44, %v1273_v63 }
 0x31d   : > { %v1289_v59 = vsel %vm518_vm3, %v3310_v25, 0.0 }
 0x31e   : > { %1290 = vadd.xlane.f32.xlu1 %v1289_v59  ;;  %v1285_v28 = vmul.f32 1.442695, %v1279_v41 }
 0x320   : > { %2514 = vpow2.f32 %v1285_v28 }
 0x321   : > { %2516 = vrcp.f32 %v3271_v11 }
 0x326   : > { %v3315_v40 = vpop.eup %2514 }
 0x327   : > { %v1295_v56 = vsel %vm518_vm3, %v3315_v40, 0.0  ;;  %v2517_v23 = vpop.eup %2516 }
 0x328   : > { %1296 = vadd.xlane.f32.xlu1 %v1295_v56  ;;  %v1487_v39 = vmul.f32 %v2517_v23, %v3271_v11  ;;  %vm1492_vm12 = vweird.f32 %v2517_v23 }
 0x329   : > { %vm1493_vm14 = vmor %vm1491_vm13, %vm1492_vm12 }
 0x32a   : > { %v1488_v10 = vsub.f32 1.0, %v1487_v39 }
 0x32b   : > { %v1637_v31 = vpop.xlane.xlu1 %1636 }
 0x32c   : > { %v1489_v44 = vmul.f32 %v2517_v23, %v1488_v10 }
 0x32e   : > { %v1490_v61 = vadd.f32 %v2517_v23, %v1489_v44 }
 0x330   : > { %v1494_v20 = vsel %vm1493_vm14, %v2517_v23, %v1490_v61 }
 0x331   : > { %v1499_v0 = vsel %vm1496_vm1, %v1498_v58, %v1494_v20 }
 0x332   : > { %v3325_v4 = vmul.f32 %v3067_v43, %v1499_v0 }
 0x33c   : > { %v1479_v7 = vpop.xlane.xlu0 %1478 }
 0x33d   : > { %2518 = vrcp.f32 %v1479_v7  ;;  %v1512_v8 = vand.u32 2147483648, %v1479_v7  ;;  %v1510_v62 = vand.u32 2147483647, %v1479_v7  ;;  %vm1506_vm2 = vweird.f32 %v1479_v7 }
 0x33f   : > { %v1513_v2 = vor.u32 1.1754944e-38, %v1512_v8  ;;  %vm1511_vm5 = vcmp.eq.f32.partialorder %v1510_v62, 8.507059e+37  ;;  %v1647_v62 = vsub.f32 %v3100_v22, %v1637_v31 }
 0x343   : > { %v2519_v38 = vpop.eup %2518 }
 0x344   : > { %v1502_v21 = vmul.f32 %v2519_v38, %v1479_v7  ;;  %v1482_v60 = vpop.xlane.xlu0 %1481  ;;  %vm1507_vm15 = vweird.f32 %v2519_v38 }
 0x345   : > { %2520 = vrcp.f32 %v1482_v60  ;;  %vm1508_vm4 = vmor %vm1506_vm2, %vm1507_vm15  ;;  %v1527_v59 = vand.u32 2147483648, %v1482_v60  ;;  %vm1521_vm7 = vweird.f32 %v1482_v60  ;;  %v1525_v56 = vand.u32 2147483647, %v1482_v60 }
 0x346   : > { %v1503_v57 = vsub.f32 1.0, %v1502_v21 }
 0x347   : > { %v1528_v44 = vor.u32 1.1754944e-38, %v1527_v59  ;;  %vm1526_vm10 = vcmp.eq.f32.partialorder %v1525_v56, 8.507059e+37 }
 0x348   : > { %v1504_v33 = vmul.f32 %v2519_v38, %v1503_v57 }
 0x34a   : > { %v1505_v32 = vadd.f32 %v2519_v38, %v1504_v33 }
 0x34b   : > { %v2521_v42 = vpop.eup %2520 }
 0x34c   : > { %v1509_v45 = vsel %vm1508_vm4, %v2519_v38, %v1505_v32  ;;  %v1517_v55 = vmul.f32 %v2521_v42, %v1482_v60  ;;  %v1485_v14 = vpop.xlane.xlu0 %1484  ;;  %vm1522_vm6 = vweird.f32 %v2521_v42 }
 0x34d   : > { %v1514_v11 = vsel %vm1511_vm5, %v1513_v2, %v1509_v45  ;;  %2522 = vrcp.f32 %v1485_v14  ;;  %vm1523_vm8 = vmor %vm1521_vm7, %vm1522_vm6  ;;  %v1542_v23 = vand.u32 2147483648, %v1485_v14  ;;  %v1540_v10 = vand.u32 2147483647, %v1485_v14  ;;  %v1643_v2 = vpop.xlane.xlu2 %1642 }
 0x34e   : > { %v3328_v6 = vmul.f32 %v3113_v54, %v1514_v11  ;;  %v1518_v18 = vsub.f32 1.0, %v1517_v55  ;;  %vm1536_vm11 = vweird.f32 %v1485_v14 }
 0x34f   : > { %v1543_v61 = vor.u32 1.1754944e-38, %v1542_v23  ;;  %vm1541_vm13 = vcmp.eq.f32.partialorder %v1540_v10, 8.507059e+37 }
 0x350   : > { %v1519_v16 = vmul.f32 %v2521_v42, %v1518_v18  ;;  %v1546_v51 = vpack.c.bf16 %v3328_v6, %v3325_v4  ;;  %v1649_v18 = vsub.f32 %v3111_v30, %v1643_v2 }
 0x352   : > { %v1520_v34 = vadd.f32 %v2521_v42, %v1519_v16 }
 0x353   : > { %v2523_v36 = vpop.eup %2522 }
 0x354   : > { %v1532_v63 = vmul.f32 %v2523_v36, %v1485_v14  ;;  %v906_v41 = vpop.xlane.xlu0 %905  ;;  %vm1537_vm9 = vweird.f32 %v2523_v36  ;;  %v1524_v7 = vsel %vm1523_vm8, %v2521_v42, %v1520_v34  ;;  %v1646_v34 = vpop.xlane.xlu1 %1645 }
 0x355   : > { %v910_v28 = vsub.f32 %v3146_v26, %v906_v41  ;;  %vm1538_vm12 = vmor %vm1536_vm11, %vm1537_vm9  ;;  %v1529_v21 = vsel %vm1526_vm10, %v1528_v44, %v1524_v7  ;;  %v3364_v41 = vld [vmem:[%s2800_s5] sm:$0xff]  ;;  %v1650_v30 = vsub.f32 %v3123_v3, %v1646_v34 }
 0x356   : > { %v1533_v43 = vsub.f32 1.0, %v1532_v63  ;;  %v3335_v8 = vmul.f32 %v3125_v48, %v1529_v21 }
 0x357   : > { %v917_v54 = vmul.f32 1.442695, %v910_v28 }
 0x358   : > { %v1534_v39 = vmul.f32 %v2523_v36, %v1533_v43  ;;  %v1657_v43 = vmul.f32 1.442695, %v1650_v30 }
 0x359   : > { %2524 = vpow2.f32 %v917_v54 }
 0x35a   : > { %v1535_v38 = vadd.f32 %v2523_v36, %v1534_v39 }
 0x35c   : > { %v1270_v26 = vpop.xlane.xlu0 %1269  ;;  %v1539_v60 = vsel %vm1538_vm12, %v2523_v36, %v1535_v38  ;;  %v1655_v36 = vmul.f32 1.442695, %v1649_v18  ;;  %v2577_v18 = vld [vmem:[%s2800_s5 + $0x8] sm:$0xff] }
 0x35d   : > { %v1278_v47 = vsub.f32 %v3164_v46, %v1270_v26  ;;  %v1544_v57 = vsel %vm1541_vm13, %v1543_v61, %v1539_v60  ;;  %v1651_v46 = vmul.f32 1.442695, %v1647_v62 }
 0x35e   : > { %v3338_v20 = vmul.f32 %v3135_v53, %v1544_v57  ;;  %v1834_v53 = vsub.f32 %v2980_v13, %v3107_v29  ;;  %v1832_v57 = vsub.f32 %v3016_v50, %v3133_v15 }
 0x35f   : > { %v3340_v33 = vpop.eup %2524  ;;  %v1283_v58 = vmul.f32 1.442695, %v1278_v47 }
 0x360   : > { %v928_v32 = vsel %vm518_vm3, %v3340_v33, 0.0  ;;  %v1547_v42 = vpack.c.bf16 %v3338_v20, %v3335_v8  ;;  %v1840_v45 = vmul.f32 1.442695, %v1834_v53  ;;  %v1836_v2 = vmul.f32 1.442695, %v1832_v57 }
 0x361   : > { %2526 = vpow2.f32 %v1283_v58  ;;  %929 = vadd.xlane.f32.xlu0 %v928_v32 }
 0x362   : > { %2528 = vpow2.f32 %v1651_v46 }
 0x363   : > { %2530 = vpow2.f32 %v1840_v45 }
 0x364   : > { %v3347_v0 = vpop.xlane.xlu0 %1275 }
 0x367   : > { %v3349_v48 = vpop.eup %2526 }
 0x368   : > { %v1292_v22 = vsel %vm518_vm3, %v3349_v48, 0.0  ;;  %v3355_v14 = vpop.eup %2528 }
 0x369   : > { %1293 = vadd.xlane.f32.xlu2 %v1292_v22  ;;  %v1659_v13 = vsel %vm518_vm3, %v3355_v14, 0.0  ;;  %v3361_v63 = vpop.eup %2530 }
 0x36a   : > { %v1850_v59 = vsel %vm518_vm3, %v3361_v63, 0.0 }
 0x36b   : > { %v921_v29 = vpop.xlane.xlu2 %920 }
 0x36c   : > { %v1640_v55 = vpop.xlane.xlu0 %1639  ;;  %v942_v26 = vand.u32 2147483648, %v921_v29  ;;  %vm936_vm15 = vweird.f32 %v921_v29  ;;  %v940_v47 = vand.u32 2147483647, %v921_v29 }
 0x36d   : > { %v1648_v11 = vsub.f32 %v3206_v1, %v1640_v55 }
 0x36e   : > { %v943_v53 = vor.u32 1.1754944e-38, %v942_v26  ;;  %vm941_vm5 = vcmp.eq.f32.partialorder %v940_v47, 8.507059e+37 }
 0x36f   : > { %v1653_v16 = vmul.f32 1.442695, %v1648_v11 }
 0x371   : > { %1660 = vadd.xlane.f32.xlu2 %v1659_v13  ;;  %2532 = vpow2.f32 %v1653_v16  ;;  %v1280_v13 = vsub.f32 %v3178_v9, %v3347_v0 }
 0x372   : > { %2534 = vrcp.f32 %v921_v29 }
 0x373   : > { %2536 = vpow2.f32 %v1655_v36  ;;  %v1287_v36 = vmul.f32 1.442695, %v1280_v13  ;;  %v3414_v26 = vpop.xlane.xlu2 %1848 }
 0x374   : > { %2538 = vpow2.f32 %v1657_v43  ;;  %v829_v43 = vpop.f32.mrf.mxu3 }
 0x375   : > { %1548 = vrot.lane.b32.xlu0 %v3364_v41, %s2622_s30 }
 0x377   : > { %v3369_v1 = vpop.eup %2532 }
 0x378   : > { %v1662_v28 = vsel %vm518_vm3, %v3369_v1, 0.0  ;;  %v2535_v56 = vpop.eup %2534 }
 0x379   : > { %1851 = vadd.xlane.f32.xlu2 %v1850_v59  ;;  %1663 = vadd.xlane.f32.xlu1 %v1662_v28  ;;  %v3375_v23 = vpop.eup %2536  ;;  %v932_v54 = vmul.f32 %v2535_v56, %v921_v29  ;;  %vm937_vm14 = vweird.f32 %v2535_v56  ;;  %v1835_v28 = vsub.f32 %v3012_v37, %v3131_v35 }
 0x37a   : > { %v1665_v39 = vsel %vm518_vm3, %v3375_v23, 0.0  ;;  %v3379_v7 = vpop.eup %2538  ;;  %vm938_vm1 = vmor %vm936_vm15, %vm937_vm14 }
 0x37b   : > { %v933_v10 = vsub.f32 1.0, %v932_v54  ;;  %v1668_v61 = vsel %vm518_vm3, %v3379_v7, 0.0 }
 0x37d   : > { %v934_v44 = vmul.f32 %v2535_v56, %v933_v10  ;;  %v1199_v34 = vpop.f32.mrf.mxu2 }
 0x37f   : > { %v935_v31 = vadd.f32 %v2535_v56, %v934_v44 }
 0x381   : > { %1666 = vadd.xlane.f32.xlu2 %v1665_v39  ;;  %v924_v3 = vpop.xlane.xlu1 %923  ;;  %v939_v32 = vsel %vm938_vm1, %v2535_v56, %v935_v31  ;;  %v1842_v56 = vmul.f32 1.442695, %v1835_v28  ;;  %v831_v39 = vpop.f32.mrf.mxu3 }
 0x382   : > { %2540 = vrcp.f32 %v924_v3  ;;  %v957_v58 = vand.u32 2147483648, %v924_v3  ;;  %v955_v46 = vand.u32 2147483647, %v924_v3  ;;  %vm951_vm4 = vweird.f32 %v924_v3 }
 0x383   : > { %v944_v11 = vsel %vm941_vm5, %v943_v53, %v939_v32  ;;  %2542 = vpow2.f32 %v1836_v2 }
 0x384   : > { %v958_v55 = vor.u32 1.1754944e-38, %v957_v58  ;;  %vm956_vm7 = vcmp.eq.f32.partialorder %v955_v46, 8.507059e+37  ;;  %v945_v15 = vmul.f32 %v3260_v24, %v944_v11  ;;  %2544 = vpow2.f32 %v1287_v36 }
 0x385   : > { %2546 = vpow2.f32 %v1842_v56 }
 0x388   : > { %v2541_v38 = vpop.eup %2540 }
 0x389   : > { %v947_v21 = vmul.f32 %v2541_v38, %v924_v3  ;;  %1669 = vadd.xlane.f32.xlu2 %v1668_v61  ;;  %vm952_vm2 = vweird.f32 %v2541_v38  ;;  %v3392_v30 = vpop.eup %2542  ;;  %v834_v10 = vpop.f32.mrf.mxu3 }
 0x38a   : > { %vm953_vm6 = vmor %vm951_vm4, %vm952_vm2  ;;  %v1844_v59 = vsel %vm518_vm3, %v3392_v30, 0.0  ;;  %v3398_v24 = vpop.eup %2544  ;;  %v927_v44 = vpop.xlane.xlu1 %926 }
 0x38b   : > { %v948_v60 = vsub.f32 1.0, %v947_v21  ;;  %v1298_v9 = vsel %vm518_vm3, %v3398_v24, 0.0  ;;  %v3405_v54 = vpop.eup %2546  ;;  %2548 = vrcp.f32 %v927_v44  ;;  %vm966_vm9 = vweird.f32 %v927_v44 }
 0x38c   : > { %v1853_v3 = vsel %vm518_vm3, %v3405_v54, 0.0  ;;  %v970_v11 = vand.u32 2147483647, %v927_v44 }
 0x38d   : > { %v949_v62 = vmul.f32 %v2541_v38, %v948_v60 }
 0x38e   : > { %vm971_vm13 = vcmp.eq.f32.partialorder %v970_v11, 8.507059e+37 }
 0x38f   : > { %v950_v22 = vadd.f32 %v2541_v38, %v949_v62 }
 0x391   : > { %v954_v45 = vsel %vm953_vm6, %v2541_v38, %v950_v22  ;;  %v2378_v38 = vpack.i.bf16 %v831_v39, %v829_v43  ;;  %v2549_v35 = vpop.eup %2548  ;;  %v836_v61 = vpop.f32.mrf.mxu3 }
 0x392   : > { %1735 = vrot.lane.b32.xlu1 %v2577_v18, %s2625_s6  ;;  %v959_v50 = vsel %vm956_vm7, %v958_v55, %v954_v45  ;;  %v962_v21 = vmul.f32 %v2549_v35, %v927_v44  ;;  %v2383_v31 = vpack.i.bf16 %v836_v61, %v834_v10  ;;  %v3416_v57 = vpop.xlane.xlu1 %1290  ;;  %vm967_vm8 = vweird.f32 %v2549_v35 }
 0x393   : > { %v960_v16 = vmul.f32 %v3301_v49, %v959_v50  ;;  %v1201_v49 = vpop.f32.mrf.mxu2  ;;  %v972_v45 = vand.u32 2147483648, %v927_v44  ;;  %vm3420_vm10 = vmor %vm966_vm9, %vm967_vm8  ;;  %vm1306_vm6 = vweird.f32 %v3416_v57 }
 0x394   : > { %v2388_v0 = vpack.i.bf16 %v1201_v49, %v1199_v34  ;;  %v963_v47 = vsub.f32 1.0, %v962_v21 }
 0x395   : > { %v991_v29 = vpack.c.bf16 %v960_v16, %v945_v15  ;;  %v973_v36 = vor.u32 1.1754944e-38, %v972_v45 }
 0x396   : > { %v964_v62 = vmul.f32 %v2549_v35, %v963_v47 }
 0x397   : > { %2287 = vmatmul.msk.bf16.vlgmr.msrb.gmra.mxu3 %vm518_vm3, %v991_v29 }
 0x398   : > { %v965_v22 = vadd.f32 %v2549_v35, %v964_v62 }
 0x39a   : > { %v969_v29 = vsel %vm3420_vm10, %v2549_v35, %v965_v22 }
 0x39b   : > { %v1204_v37 = vpop.f32.mrf.mxu2  ;;  %v974_v28 = vsel %vm971_vm13, %v973_v36, %v969_v29  ;;  %v3441_v22 = vpop.xlane.xlu1 %1296 }
 0x39c   : > { %v975_v44 = vmul.f32 %v3306_v19, %v974_v28 }
 0x39f   : > { %1845 = vadd.xlane.f32.xlu0 %v1844_v59 }
 0x3a1   : > { %1733 = vrot.lane.b32.xlu2 %v3364_v41, %s2625_s6 }
 0x3a7   : > { %1299 = vadd.xlane.f32.xlu0 %v1298_v9 }
 0x3a9   : > { %2389 = vrot.lane.b32.xlu2 %v2388_v0, %s2622_s30 }
 0x3bb   : > { %1920 = vrot.lane.b32.xlu0 %v2577_v18, %s2623_s4 }
 0x3bc   : > { %1854 = vadd.xlane.f32.xlu1 %v1853_v3 }
 0x3c3   : > { %1918 = vrot.lane.b32.xlu0 %v3364_v41, %s2623_s4  ;;  %v1206_v41 = vpop.f32.mrf.mxu2 }
 0x3c4   : > { %v2393_v58 = vpack.i.bf16 %v1206_v41, %v1204_v37  ;;  %v1310_v41 = vand.u32 2147483647, %v3416_v57 }
 0x3c6   : > { %vm1311_vm9 = vcmp.eq.f32.partialorder %v1310_v41, 8.507059e+37 }
 0x3cb   : > { %2379 = vrot.lane.b32.xlu0 %v2378_v38, %s2623_s4 }
 0x3d3   : > { %2384 = vrot.lane.b32.xlu0 %v2383_v31, %s2623_s4 }
 0x3d4   : > { %v930_v60 = vpop.xlane.xlu0 %929 }
 0x3d5   : > { %2550 = vrcp.f32 %v930_v60  ;;  %v987_v15 = vand.u32 2147483648, %v930_v60  ;;  %v985_v13 = vand.u32 2147483647, %v930_v60  ;;  %vm981_vm12 = vweird.f32 %v930_v60 }
 0x3d6   : > { %2552 = vrcp.f32 %v3416_v57 }
 0x3d7   : > { %v988_v49 = vor.u32 1.1754944e-38, %v987_v15  ;;  %vm986_vm15 = vcmp.eq.f32.partialorder %v985_v13, 8.507059e+37 }
 0x3db   : > { %v2551_v32 = vpop.eup %2550  ;;  %2394 = vrot.lane.b32.xlu0 %v2393_v58, %s2622_s30 }
 0x3dc   : > { %v977_v46 = vmul.f32 %v2551_v32, %v930_v60  ;;  %v1294_v53 = vpop.xlane.xlu2 %1293  ;;  %v2553_v2 = vpop.eup %2552  ;;  %vm982_vm11 = vweird.f32 %v2551_v32 }
 0x3dd   : > { %2554 = vrcp.f32 %v1294_v53  ;;  %v1302_v16 = vmul.f32 %v2553_v2, %v3416_v57  ;;  %vm983_vm14 = vmor %vm981_vm12, %vm982_vm11  ;;  %v1327_v31 = vand.u32 2147483648, %v1294_v53  ;;  %vm1307_vm2 = vweird.f32 %v2553_v2 }
 0x3de   : > { %v978_v55 = vsub.f32 1.0, %v977_v46  ;;  %vm1321_vm4 = vweird.f32 %v1294_v53  ;;  %v1325_v19 = vand.u32 2147483647, %v1294_v53  ;;  %vm1308_vm7 = vmor %vm1306_vm6, %vm1307_vm2 }
 0x3df   : > { %v1303_v43 = vsub.f32 1.0, %v1302_v16  ;;  %v1328_v58 = vor.u32 1.1754944e-38, %v1327_v31 }
 0x3e0   : > { %v979_v50 = vmul.f32 %v2551_v32, %v978_v55  ;;  %vm1326_vm8 = vcmp.eq.f32.partialorder %v1325_v19, 8.507059e+37 }
 0x3e1   : > { %v1304_v35 = vmul.f32 %v2553_v2, %v1303_v43 }
 0x3e2   : > { %v980_v34 = vadd.f32 %v2551_v32, %v979_v50 }
 0x3e3   : > { %v2555_v59 = vpop.eup %2554  ;;  %v1305_v47 = vadd.f32 %v2553_v2, %v1304_v35 }
 0x3e4   : > { %v1317_v9 = vmul.f32 %v2555_v59, %v1294_v53  ;;  %v3427_v0 = vpop.xlane.xlu2 %1660  ;;  %v984_v56 = vsel %vm983_vm14, %v2551_v32, %v980_v34  ;;  %vm1322_vm1 = vweird.f32 %v2555_v59 }
 0x3e5   : > { %v989_v3 = vsel %vm986_vm15, %v988_v49, %v984_v56  ;;  %vm1323_vm5 = vmor %vm1321_vm4, %vm1322_vm1  ;;  %v1309_v4 = vsel %vm1308_vm7, %v2553_v2, %v1305_v47 }
 0x3e6   : > { %v1318_v39 = vsub.f32 1.0, %v1317_v9  ;;  %v990_v38 = vmul.f32 %v3340_v33, %v989_v3  ;;  %v1312_v33 = vand.u32 2147483648, %v3416_v57 }
 0x3e7   : > { %v1549_v10 = vpop.permute.xlu0 %1548 }
 0x3e8   : > { %v1319_v37 = vmul.f32 %v2555_v59, %v1318_v39  ;;  %1567 = vmatpush.bf16.msra.mxu2 %v1549_v10  ;;  %v992_v61 = vpack.c.bf16 %v990_v38, %v975_v44  ;;  %v1313_v6 = vor.u32 1.1754944e-38, %v1312_v33 }
 0x3ea   : > { %v1320_v21 = vadd.f32 %v2555_v59, %v1319_v37  ;;  %2288 = vmatmul.msk.bf16.gmra.mxu3 %vm518_vm3, %v992_v61  ;;  %v1314_v32 = vsel %vm1311_vm9, %v1313_v6, %v1309_v4 }
 0x3eb   : > { %2299 = vmatmul.msk.bf16.vlgmr.msra.gmra.mxu2 %vm518_vm3, %v1546_v51  ;;  %v1315_v45 = vmul.f32 %v3310_v25, %v1314_v32 }
 0x3ec   : > { %v3436_v60 = vpop.xlane.xlu2 %1851  ;;  %v1324_v62 = vsel %vm1323_vm5, %v2555_v59, %v1320_v21  ;;  %v3450_v18 = vpop.xlane.xlu1 %1663  ;;  %vm1336_vm5 = vweird.f32 %v3441_v22 }
 0x3ed   : > { %v1329_v51 = vsel %vm1326_vm8, %v1328_v58, %v1324_v62  ;;  %vm1876_vm8 = vweird.f32 %v3414_v26 }
 0x3ee   : > { %v1330_v53 = vmul.f32 %v3349_v48, %v1329_v51 }
 0x3f0   : > { %v1361_v55 = vpack.c.bf16 %v1330_v53, %v1315_v45  ;;  %v1342_v45 = vand.u32 2147483648, %v3441_v22 }
 0x3f4   : > { %v1667_v46 = vpop.xlane.xlu2 %1666 }
 0x3f5   : > { %2556 = vrcp.f32 %v1667_v46  ;;  %v1712_v13 = vand.u32 2147483648, %v1667_v46  ;;  %vm1706_vm11 = vweird.f32 %v1667_v46  ;;  %v1710_v36 = vand.u32 2147483647, %v1667_v46 }
 0x3f7   : > { %v1713_v49 = vor.u32 1.1754944e-38, %v1712_v13  ;;  %vm1711_vm14 = vcmp.eq.f32.partialorder %v1710_v36, 8.507059e+37 }
 0x3fa   : > { %2295 = vmatmul.msk.bf16.vlgmr.msra.gmra.mxu3 %vm518_vm3, %v1361_v55 }
 0x3fb   : > { %v2557_v11 = vpop.eup %2556  ;;  %2300 = vmatmul.msk.bf16.gmra.mxu2 %vm518_vm3, %v1547_v42 }
 0x3fc   : > { %v1702_v57 = vmul.f32 %v2557_v11, %v1667_v46  ;;  %v1670_v2 = vpop.xlane.xlu2 %1669  ;;  %vm1707_vm10 = vweird.f32 %v2557_v11 }
 0x3fd   : > { %2558 = vrcp.f32 %v1670_v2  ;;  %vm1708_vm12 = vmor %vm1706_vm11, %vm1707_vm10  ;;  %v1727_v8 = vand.u32 2147483648, %v1670_v2  ;;  %v1725_v42 = vand.u32 2147483647, %v1670_v2  ;;  %vm1721_vm15 = vweird.f32 %v1670_v2 }
 0x3fe   : > { %v1703_v50 = vsub.f32 1.0, %v1702_v57  ;;  %2560 = vrcp.f32 %v3441_v22  ;;  %v1340_v57 = vand.u32 2147483647, %v3441_v22 }
 0x3ff   : > { %v1728_v56 = vor.u32 1.1754944e-38, %v1727_v8  ;;  %vm1726_vm2 = vcmp.eq.f32.partialorder %v1725_v42, 8.507059e+37  ;;  %2562 = vrcp.f32 %v3414_v26 }
 0x400   : > { %v1704_v15 = vmul.f32 %v2557_v11, %v1703_v50  ;;  %vm1341_vm10 = vcmp.eq.f32.partialorder %v1340_v57, 8.507059e+37 }
 0x402   : > { %v1705_v16 = vadd.f32 %v2557_v11, %v1704_v15 }
 0x403   : > { %v2559_v48 = vpop.eup %2558 }
 0x404   : > { %v1717_v25 = vmul.f32 %v2559_v48, %v1670_v2  ;;  %v1736_v29 = vpop.permute.xlu1 %1735  ;;  %vm1722_vm13 = vweird.f32 %v2559_v48  ;;  %v1709_v59 = vsel %vm1708_vm12, %v2557_v11, %v1705_v16  ;;  %v1734_v9 = vpop.permute.xlu2 %1733  ;;  %v1682_v11 = vand.u32 2147483648, %v3427_v0 }
 0x405   : > { %1751 = vmatpush.bf16.msrb.mxu3 %v1736_v29  ;;  %vm1723_vm1 = vmor %vm1721_vm15, %vm1722_vm13  ;;  %v1714_v43 = vsel %vm1711_vm14, %v1713_v49, %v1709_v59  ;;  %v2561_v37 = vpop.eup %2560 }
 0x406   : > { %v1718_v34 = vsub.f32 1.0, %v1717_v25  ;;  %v3454_v10 = vmul.f32 %v3375_v23, %v1714_v43  ;;  %v1332_v61 = vmul.f32 %v2561_v37, %v3441_v22  ;;  %v3466_v21 = vpop.eup %2562  ;;  %vm1337_vm4 = vweird.f32 %v2561_v37 }
 0x407   : > { %v1872_v47 = vmul.f32 %v3466_v21, %v3414_v26  ;;  %vm3483_vm6 = vmor %vm1336_vm5, %vm1337_vm4  ;;  %vm1877_vm9 = vweird.f32 %v3466_v21  ;;  %v1882_v43 = vand.u32 2147483648, %v3414_v26 }
 0x408   : > { %v1719_v20 = vmul.f32 %v2559_v48, %v1718_v34  ;;  %v1333_v31 = vsub.f32 1.0, %v1332_v61  ;;  %v1343_v34 = vor.u32 1.1754944e-38, %v1342_v45  ;;  %v1880_v61 = vand.u32 2147483647, %v3414_v26 }
 0x409   : > { %1752 = vmatpush.bf16.msrb.mxu3 %v1734_v9  ;;  %v1873_v62 = vsub.f32 1.0, %v1872_v47 }
 0x40a   : > { %v1720_v28 = vadd.f32 %v2559_v48, %v1719_v20  ;;  %v1334_v33 = vmul.f32 %v2561_v37, %v1333_v31  ;;  %vm1881_vm5 = vcmp.eq.f32.partialorder %v1880_v61, 8.507059e+37 }
 0x40b   : > { %v1874_v53 = vmul.f32 %v3466_v21, %v1873_v62 }
 0x40c   : > { %v1724_v39 = vsel %vm1723_vm1, %v2559_v48, %v1720_v28  ;;  %v1335_v6 = vadd.f32 %v2561_v37, %v1334_v33 }
 0x40d   : > { %v1729_v3 = vsel %vm1726_vm2, %v1728_v56, %v1724_v39  ;;  %v1875_v22 = vadd.f32 %v3466_v21, %v1874_v53  ;;  %vm3522_vm2 = vmor %vm1876_vm8, %vm1877_vm9  ;;  %v1697_v53 = vand.u32 2147483648, %v3450_v18  ;;  %vm1691_vm8 = vweird.f32 %v3450_v18 }
 0x40e   : > { %v3457_v44 = vmul.f32 %v3379_v7, %v1729_v3  ;;  %v1339_v13 = vsel %vm3483_vm6, %v2561_v37, %v1335_v6  ;;  %v1883_v6 = vor.u32 1.1754944e-38, %v1882_v43 }
 0x40f   : > { %v1344_v49 = vsel %vm1341_vm10, %v1343_v34, %v1339_v13  ;;  %v1879_v62 = vsel %vm3522_vm2, %v3466_v21, %v1875_v22  ;;  %vm1676_vm10 = vweird.f32 %v3427_v0 }
 0x410   : > { %v1732_v38 = vpack.c.bf16 %v3457_v44, %v3454_v10  ;;  %v1345_v47 = vmul.f32 %v3315_v40, %v1344_v49  ;;  %v1884_v21 = vsel %vm1881_vm5, %v1883_v6, %v1879_v62 }
 0x412   : > { %v3462_v35 = vpop.xlane.xlu0 %1845 }
 0x413   : > { %2564 = vrcp.f32 %v3462_v35  ;;  %v1867_v28 = vand.u32 2147483648, %v3462_v35  ;;  %vm1861_vm15 = vweird.f32 %v3462_v35  ;;  %v1865_v39 = vand.u32 2147483647, %v3462_v35 }
 0x414   : > { %2566 = vrcp.f32 %v3450_v18 }
 0x415   : > { %vm1866_vm4 = vcmp.eq.f32.partialorder %v1865_v39, 8.507059e+37 }
 0x419   : > { %v3468_v23 = vpop.eup %2564 }
 0x41a   : > { %v1300_v7 = vpop.xlane.xlu0 %1299  ;;  %v1014_v19 = vpop.f32.mrf.mxu3  ;;  %v1857_v41 = vmul.f32 %v3468_v23, %v3462_v35  ;;  %vm1862_vm12 = vweird.f32 %v3468_v23 }
 0x41b   : > { %2568 = vrcp.f32 %v1300_v7  ;;  %v3476_v58 = vpop.eup %2566  ;;  %v1357_v25 = vand.u32 2147483648, %v1300_v7  ;;  %v1355_v36 = vand.u32 2147483647, %v1300_v7  ;;  %vm1351_vm11 = vweird.f32 %v1300_v7  ;;  %vm3512_vm1 = vmor %vm1861_vm15, %vm1862_vm12 }
 0x41c   : > { %2570 = vrcp.f32 %v3427_v0  ;;  %v1858_v51 = vsub.f32 1.0, %v1857_v41  ;;  %v1687_v2 = vmul.f32 %v3476_v58, %v3450_v18  ;;  %vm1692_vm6 = vweird.f32 %v3476_v58 }
 0x41d   : > { %2572 = vrcp.f32 %v3436_v60  ;;  %v1358_v59 = vor.u32 1.1754944e-38, %v1357_v25  ;;  %vm1356_vm14 = vcmp.eq.f32.partialorder %v1355_v36, 8.507059e+37  ;;  %vm3544_vm9 = vmor %vm1691_vm8, %vm1692_vm6  ;;  %v1683_v36 = vor.u32 1.1754944e-38, %v1682_v11 }
 0x41e   : > { %v1859_v16 = vmul.f32 %v3468_v23, %v1858_v51  ;;  %v1688_v8 = vsub.f32 1.0, %v1687_v2  ;;  %vm2069_vm8 = vcmask 392192  }
 0x420   : > { %v1860_v42 = vadd.f32 %v3468_v23, %v1859_v16  ;;  %v1689_v31 = vmul.f32 %v3476_v58, %v1688_v8  ;;  %v1885_v16 = vmul.f32 %v3221_v17, %v1884_v21 }
 0x421   : > { %v2569_v4 = vpop.eup %2568 }
 0x422   : > { %v3478_v32 = vpop.eup %2570  ;;  %v1347_v46 = vmul.f32 %v2569_v4, %v1300_v7  ;;  %v1016_v55 = vpop.f32.mrf.mxu3  ;;  %vm1352_vm7 = vweird.f32 %v2569_v4  ;;  %v1864_v33 = vsel %vm3512_vm1, %v3468_v23, %v1860_v42  ;;  %v1690_v51 = vadd.f32 %v3476_v58, %v1689_v31 }
 0x423   : > { %v2398_v15 = vpack.i.bf16 %v1016_v55, %v1014_v19  ;;  %v1672_v48 = vmul.f32 %v3478_v32, %v3427_v0  ;;  %vm1353_vm13 = vmor %vm1351_vm11, %vm1352_vm7  ;;  %v3506_v37 = vpop.eup %2572  ;;  %vm1677_vm7 = vweird.f32 %v3478_v32  ;;  %v1695_v55 = vand.u32 2147483647, %v3450_v18 }
 0x424   : > { %v1348_v50 = vsub.f32 1.0, %v1347_v46  ;;  %v1887_v26 = vmul.f32 %v3506_v37, %v3436_v60  ;;  %vm1678_vm11 = vmor %vm1676_vm10, %vm1677_vm7  ;;  %v1698_v18 = vor.u32 1.1754944e-38, %v1697_v53  ;;  %vm1891_vm1 = vweird.f32 %v3436_v60 }
 0x425   : > { %2399 = vrot.lane.b32.xlu2 %v2398_v15, %s2625_s6  ;;  %v1673_v9 = vsub.f32 1.0, %v1672_v48  ;;  %v1680_v15 = vand.u32 2147483647, %v3427_v0  ;;  %v1694_v48 = vsel %vm3544_vm9, %v3476_v58, %v1690_v51  ;;  %vm1696_vm12 = vcmp.eq.f32.partialorder %v1695_v55, 8.507059e+37 }
 0x426   : > { %v1349_v29 = vmul.f32 %v2569_v4, %v1348_v50  ;;  %v1888_v57 = vsub.f32 1.0, %v1887_v26  ;;  %v1699_v22 = vsel %vm1696_vm12, %v1698_v18, %v1694_v48  ;;  %v3583_v48 = vpop.permute.xlu2 %2389  ;;  %vm2074_vm9 = vcmask 523264  }
 0x427   : > { %v1674_v40 = vmul.f32 %v3478_v32, %v1673_v9  ;;  %v1700_v17 = vmul.f32 %v3369_v1, %v1699_v22  ;;  %vm2084_vm10 = vcmask 785408   ;;  %vm2089_vm12 = vcmask 916480  }
 0x428   : > { %v1350_v20 = vadd.f32 %v2569_v4, %v1349_v29 }
 0x429   : > { %v1675_v45 = vadd.f32 %v3478_v32, %v1674_v40 }
 0x42a   : > { %v1354_v56 = vsel %vm1353_vm13, %v2569_v4, %v1350_v20  ;;  %vm1681_vm13 = vcmp.eq.f32.partialorder %v1680_v15, 8.507059e+37 }
 0x42b   : > { %v1359_v3 = vsel %vm1356_vm14, %v1358_v59, %v1354_v56  ;;  %v1679_v13 = vsel %vm1678_vm11, %v3478_v32, %v1675_v45  ;;  %vm1892_vm14 = vweird.f32 %v3506_v37  ;;  %v1897_v32 = vand.u32 2147483648, %v3436_v60 }
 0x42c   : > { %v1360_v19 = vmul.f32 %v3398_v24, %v1359_v3  ;;  %v1868_v24 = vor.u32 1.1754944e-38, %v1867_v28  ;;  %v1684_v8 = vsel %vm1681_vm13, %v1683_v36, %v1679_v13  ;;  %v1895_v28 = vand.u32 2147483647, %v3436_v60  ;;  %vm1893_vm2 = vmor %vm1891_vm1, %vm1892_vm14 }
 0x42d   : > { %v1921_v41 = vpop.permute.xlu0 %1920  ;;  %v1685_v59 = vmul.f32 %v3355_v14, %v1684_v8  ;;  %v1898_v3 = vor.u32 1.1754944e-38, %v1897_v32  ;;  %vm2079_vm11 = vcmask 654336  }
 0x42e   : > { %v1362_v4 = vpack.c.bf16 %v1360_v19, %v1345_v47  ;;  %1936 = vmatpush.bf16.msrb.mxu2 %v1921_v41  ;;  %v1869_v23 = vsel %vm1866_vm4, %v1868_v24, %v1864_v33  ;;  %vm1896_vm7 = vcmp.eq.f32.partialorder %v1895_v28, 8.507059e+37 }
 0x42f   : > { %v1855_v46 = vpop.xlane.xlu1 %1854  ;;  %v1870_v50 = vmul.f32 %v3392_v30, %v1869_v23  ;;  %v1889_v30 = vmul.f32 %v3506_v37, %v1888_v57  ;;  %v1731_v1 = vpack.c.bf16 %v1700_v17, %v1685_v59 }
 0x430   : > { %2296 = vmatmul.msk.bf16.gmra.mxu3 %vm518_vm3, %v1362_v4  ;;  %2574 = vrcp.f32 %v1855_v46  ;;  %v1912_v42 = vand.u32 2147483648, %v1855_v46  ;;  %v1910_v9 = vand.u32 2147483647, %v1855_v46  ;;  %vm1906_vm4 = vweird.f32 %v1855_v46 }
 0x431   : > { %v1916_v34 = vpack.c.bf16 %v1885_v16, %v1870_v50  ;;  %v1890_v20 = vadd.f32 %v3506_v37, %v1889_v30 }
 0x432   : > { %v1913_v43 = vor.u32 1.1754944e-38, %v1912_v42  ;;  %vm1911_vm6 = vcmp.eq.f32.partialorder %v1910_v9, 8.507059e+37 }
 0x433   : > { %v1894_v39 = vsel %vm1893_vm2, %v3506_v37, %v1890_v20 }
 0x434   : > { %v1899_v31 = vsel %vm1896_vm7, %v1898_v3, %v1894_v39 }
 0x435   : > { %v1919_v25 = vpop.permute.xlu0 %1918  ;;  %v1900_v60 = vmul.f32 %v3361_v63, %v1899_v31 }
 0x436   : > { %1937 = vmatpush.bf16.msrb.mxu2 %v1919_v25  ;;  %v2575_v29 = vpop.eup %2574 }
 0x437   : > { %v1902_v0 = vmul.f32 %v2575_v29, %v1855_v46  ;;  %vm1907_vm15 = vweird.f32 %v2575_v29 }
 0x438   : > { %vm1908_vm5 = vmor %vm1906_vm4, %vm1907_vm15 }
 0x439   : > { %2307 = vmatmul.msk.bf16.vlgmr.msrb.gmra.mxu2 %vm518_vm3, %v1916_v34  ;;  %v1903_v58 = vsub.f32 1.0, %v1902_v0 }
 0x43b   : > { %v1904_v49 = vmul.f32 %v2575_v29, %v1903_v58 }
 0x43d   : > { %v1905_v56 = vadd.f32 %v2575_v29, %v1904_v49  ;;  %v2380_v15 = vpop.permute.xlu0 %2379 }
 0x43e   : > { %v2382_v58 = vunpack.i.h.bf16 %v2380_v15  ;;  %v2381_v28 = vunpack.i.l.bf16 %v2380_v15 }
 0x43f   : > { %v1909_v14 = vsel %vm1908_vm5, %v2575_v29, %v1905_v56 }
 0x440   : > { %2303 = vmatmul.msk.bf16.vlgmr.msrb.gmra.mxu3 %vm518_vm3, %v1731_v1  ;;  %v1914_v61 = vsel %vm1911_vm6, %v1913_v43, %v1909_v14 }
 0x441   : > { %v1915_v7 = vmul.f32 %v3405_v54, %v1914_v61 }
 0x443   : > { %v1917_v47 = vpack.c.bf16 %v1915_v7, %v1900_v60  ;;  %v2061_v60 = vsel %vm469_vm0, %v3003_v27, %v2381_v28 }
 0x445   : > { %v2385_v16 = vpop.permute.xlu0 %2384 }
 0x446   : > { %v2387_v30 = vunpack.i.h.bf16 %v2385_v16  ;;  %v2386_v22 = vunpack.i.l.bf16 %v2385_v16 }
 0x448   : > { %v2064_v20 = vsel %vm469_vm0, %v3040_v12, %v2387_v30  ;;  %v2063_v32 = vsel %vm469_vm0, %v3028_v5, %v2386_v22  ;;  %v2062_v12 = vsel %vm469_vm0, %v3018_v52, %v2382_v58 }
 0x449   : > { %2308 = vmatmul.msk.bf16.gmra.mxu2 %vm518_vm3, %v1917_v47 }
 0x44d   : > { %v2395_v25 = vpop.permute.xlu0 %2394 }
 0x44e   : > { %v2397_v56 = vunpack.i.h.bf16 %v2395_v25  ;;  %v2396_v1 = vunpack.i.l.bf16 %v2395_v25 }
 0x450   : > { %2304 = vmatmul.msk.bf16.gmra.mxu3 %vm518_vm3, %v1732_v38 }
 0x46d   : > { %v1019_v37 = vpop.f32.mrf.mxu3 }
 0x46e   : > { %v1569_v19 = vpop.f32.mrf.mxu2 }
 0x475   : > { %v1021_v35 = vpop.f32.mrf.mxu3 }
 0x476   : > { %v1571_v33 = vpop.f32.mrf.mxu2  ;;  %v2403_v41 = vpack.i.bf16 %v1021_v35, %v1019_v37 }
 0x477   : > { %v2413_v54 = vpack.i.bf16 %v1571_v33, %v1569_v19 }
 0x478   : > { %2404 = vrot.lane.b32.xlu0 %v2403_v41, %s2625_s6 }
 0x47d   : > { %v1384_v62 = vpop.f32.mrf.mxu3 }
 0x47e   : > { %v1574_v40 = vpop.f32.mrf.mxu2 }
 0x47f   : > { %v2400_v18 = vpop.permute.xlu2 %2399 }
 0x480   : > { %2414 = vrot.lane.b32.xlu0 %v2413_v54, %s2620_s28  ;;  %v2402_v43 = vunpack.i.h.bf16 %v2400_v18  ;;  %v2401_v39 = vunpack.i.l.bf16 %v2400_v18 }
 0x482   : > { %v2066_v52 = vsel %vm518_vm3, %v2062_v12, %v2402_v43  ;;  %v2065_v35 = vsel %vm518_vm3, %v2061_v60, %v2401_v39 }
 0x485   : > { %v1386_v63 = vpop.f32.mrf.mxu3 }
 0x486   : > { %v1576_v24 = vpop.f32.mrf.mxu2  ;;  %v2408_v4 = vpack.i.bf16 %v1386_v63, %v1384_v62 }
 0x487   : > { %v2418_v6 = vpack.i.bf16 %v1576_v24, %v1574_v40 }
 0x488   : > { %2409 = vrot.lane.b32.xlu1 %v2408_v4, %s2621_s29 }
 0x489   : > { %2419 = vrot.lane.b32.xlu2 %v2418_v6, %s2620_s28 }
 0x4b3   : > { %v1389_v10 = vpop.f32.mrf.mxu3 }
 0x4bb   : > { %v1391_v44 = vpop.f32.mrf.mxu3 }
 0x4bc   : > { %v2423_v38 = vpack.i.bf16 %v1391_v44, %v1389_v10  ;;  %v1939_v26 = vpop.f32.mrf.mxu2  ;;  %v2392_v10 = vunpack.i.h.bf16 %v3583_v48  ;;  %v2391_v44 = vunpack.i.l.bf16 %v3583_v48 }
 0x4be   : > { %2424 = vrot.lane.b32.xlu2 %v2423_v38, %s2621_s29 }
 0x4c3   : > { %v1754_v51 = vpop.f32.mrf.mxu3 }
 0x4c4   : > { %v1941_v21 = vpop.f32.mrf.mxu2 }
 0x4c5   : > { %v2438_v45 = vpack.i.bf16 %v1941_v21, %v1939_v26 }
 0x4cb   : > { %v1756_v23 = vpop.f32.mrf.mxu3 }
 0x4cc   : > { %v2428_v46 = vpack.i.bf16 %v1756_v23, %v1754_v51  ;;  %v1944_v55 = vpop.f32.mrf.mxu2  ;;  %v2070_v23 = vsel %vm2069_vm8, %v2065_v35, %v2391_v44 }
 0x4ce   : > { %2429 = vrot.lane.b32.xlu0 %v2428_v46, %s2619_s12  ;;  %v2071_v46 = vsel %vm2069_vm8, %v2066_v52, %v2392_v10 }
 0x4d3   : > { %v1759_v53 = vpop.f32.mrf.mxu3 }
 0x4d4   : > { %v1946_v2 = vpop.f32.mrf.mxu2 }
 0x4d5   : > { %v2443_v50 = vpack.i.bf16 %v1946_v2, %v1944_v55 }
 0x4d6   : > { %2439 = vrot.lane.b32.xlu0 %v2438_v45, %s2618_s27 }
 0x4db   : > { %v1761_v11 = vpop.f32.mrf.mxu3 }
 0x4dc   : > { %v2433_v57 = vpack.i.bf16 %v1761_v11, %v1759_v53 }
 0x4de   : > { %2434 = vrot.lane.b32.xlu2 %v2433_v57, %s2619_s12 }
 0x4e3   : > { %v2420_v13 = vpop.permute.xlu2 %2419 }
 0x4e4   : > { %v2422_v47 = vunpack.i.h.bf16 %v2420_v13  ;;  %v2421_v37 = vunpack.i.l.bf16 %v2420_v13 }
 0x4e6   : > { %2444 = vrot.lane.b32.xlu2 %v2443_v50, %s2618_s27 }
 0x4ea   : > { %v2405_v29 = vpop.permute.xlu0 %2404 }
 0x4eb   : > { %v2407_v34 = vunpack.i.h.bf16 %v2405_v29  ;;  %v2406_v0 = vunpack.i.l.bf16 %v2405_v29 }
 0x4ed   : > { %v2068_v42 = vsel %vm518_vm3, %v2064_v20, %v2407_v34  ;;  %v2067_v59 = vsel %vm518_vm3, %v2063_v32, %v2406_v0 }
 0x4ee   : > { %v2072_v5 = vsel %vm2069_vm8, %v2067_v59, %v2396_v1  ;;  %v2073_v3 = vsel %vm2069_vm8, %v2068_v42, %v2397_v56 }
 0x4f2   : > { %v3585_v8 = vpop.permute.xlu0 %2414 }
 0x4f3   : > { %v2417_v11 = vunpack.i.h.bf16 %v3585_v8  ;;  %v2416_v57 = vunpack.i.l.bf16 %v3585_v8 }
 0x4fa   : > { %v2410_v19 = vpop.permute.xlu1 %2409 }
 0x4fb   : > { %v2412_v27 = vunpack.i.h.bf16 %v2410_v19  ;;  %v2411_v24 = vunpack.i.l.bf16 %v2410_v19 }
 0x4fd   : > { %v2076_v21 = vsel %vm2074_vm9, %v2071_v46, %v2412_v27  ;;  %v2075_v53 = vsel %vm2074_vm9, %v2070_v23, %v2411_v24 }
 0x4fe   : > { %v2081_v50 = vsel %vm2079_vm11, %v2076_v21, %v2417_v11  ;;  %v2080_v15 = vsel %vm2079_vm11, %v2075_v53, %v2416_v57 }
 0x518   : > { %v2425_v36 = vpop.permute.xlu2 %2424 }
 0x519   : > { %v2427_v49 = vunpack.i.h.bf16 %v2425_v36  ;;  %v2426_v9 = vunpack.i.l.bf16 %v2425_v36 }
 0x51b   : > { %v2078_v14 = vsel %vm2074_vm9, %v2073_v3, %v2427_v49  ;;  %v2077_v61 = vsel %vm2074_vm9, %v2072_v5, %v2426_v9 }
 0x51c   : > { %v2082_v62 = vsel %vm2079_vm11, %v2077_v61, %v2421_v37  ;;  %v2083_v40 = vsel %vm2079_vm11, %v2078_v14, %v2422_v47 }
 0x538   : > { %v2435_v17 = vpop.permute.xlu2 %2434 }
 0x539   : > { %v2437_v31 = vunpack.i.h.bf16 %v2435_v17  ;;  %v2436_v7 = vunpack.i.l.bf16 %v2435_v17 }
 0x53b   : > { %v2088_v4 = vsel %vm2084_vm10, %v2083_v40, %v2437_v31  ;;  %v2087_v6 = vsel %vm2084_vm10, %v2082_v62, %v2436_v7 }
 0x540   : > { %v2430_v33 = vpop.permute.xlu0 %2429  ;;  %v2445_v41 = vpop.permute.xlu2 %2444 }
 0x541   : > { %v2447_v54 = vunpack.i.h.bf16 %v2445_v41  ;;  %v2446_v63 = vunpack.i.l.bf16 %v2445_v41  ;;  %v2432_v45 = vunpack.i.h.bf16 %v2430_v33  ;;  %v2431_v55 = vunpack.i.l.bf16 %v2430_v33 }
 0x543   : > { %v2093_v38 = vsel %vm2089_vm12, %v2088_v4, %v2447_v54  ;;  %v2092_v26 = vsel %vm2089_vm12, %v2087_v6, %v2446_v63  ;;  %v2085_v18 = vsel %vm2084_vm10, %v2080_v15, %v2431_v55  ;;  %v2086_v25 = vsel %vm2084_vm10, %v2081_v50, %v2432_v45 }
 0x544   : > { %v2326_v51 = vpack.c.bf16 %v2093_v38, %v2092_v26 }
 0x546   : > { %2328 = vst [vmem:[%s415_s9 + $0x8] sm:$0xff] %v2326_v51  }
 0x548   : > { %v2440_v2 = vpop.permute.xlu0 %2439 }
 0x549   : > { %v2442_v48 = vunpack.i.h.bf16 %v2440_v2  ;;  %v2441_v16 = vunpack.i.l.bf16 %v2440_v2 }
 0x54b   : > { %v2090_v13 = vsel %vm2089_vm12, %v2085_v18, %v2441_v16  ;;  %v2091_v29 = vsel %vm2089_vm12, %v2086_v25, %v2442_v48 }
 0x54c   : > { %v2321_v36 = vpack.c.bf16 %v2091_v29, %v2090_v13 }
 0x54e   : > { %2322 = vst [vmem:[%s415_s9] sm:$0xff] %v2321_v36  }
 0x54f PF: > { %s13_s16 = sadd.s32 1, %s2616_s16   ;;  %s3675_s12 = smov %s2604_s13 }
 0x550   : > { %p10_p10 = scmp.ge.s32.totalorder %s13_s16, 4   ;;  %s3676_s13 = smov %s2685_s21 }
 0x551   : > { %s3677_s14 = smov %s2612_s15  ;;  %s3678_s15 = smov %s3680_s17 }
 0x552   :  { %12 = sbr.rel (!%p10_p10) target bundleno = 3 (0x3), region = 206 }

// kernel: bert_encoder.11
= control target key start
LH: loop header
LB: loop body
LE: loop exit
PB: predicated region body
PF: predicated region fallthrough
CT: control target
= control target key end

     0   :  { %s2921_s1 = inlined_call_operand.vmem [shape: bf16[128,256], index: 1, kind: input, shape index: {}]   ;;  %s2922_s0 = inlined_call_operand.vmem [shape: bf16[64,128], index: 0, kind: input, shape index: {}]   ;;  %s2923_s2 = inlined_call_operand.vmem [shape: f32[1,256], index: 2, kind: input, shape index: {}]   ;;  %s2924_s3 = inlined_call_operand.vmem [shape: bf16[256,128], index: 3, kind: input, shape index: {}]   ;;  %s2925_s4 = inlined_call_operand.vmem [shape: f32[1,128], index: 4, kind: input, shape index: {}]   ;;  %s2926_s5 = inlined_call_operand.vmem [shape: f32[64,128], index: 5, kind: input, shape index: {}]   ;;  %s2927_s6 = inlined_call_operand.vmem [shape: f32[1,128], index: 6, kind: input, shape index: {}]   ;;  %s2928_s7 = inlined_call_operand.vmem [shape: f32[1,128], index: 7, kind: input, shape index: {}]   ;;  %s2929_s8 = inlined_call_operand.vmem [shape: f32[64,128], index: 8, kind: output, shape index: {}]  }
   0x1   :  { %v1407_v0 = vld [vmem:[%s2921_s1 + $0x70] sm:$0xf]  ;;  %v1496_v1 = vld [vmem:[%s2921_s1 + $0x74] sm:$0xf0]  ;;  %v1495_v2 = vld [vmem:[%s2921_s1 + $0x74] sm:$0xf] }
   0x2   :  { %v1408_v3 = vor.u32 %v1496_v1, %v1407_v0  ;;  %v1409_v4 = vld [vmem:[%s2921_s1 + $0x78] sm:$0xf0]  ;;  %v1399_v5 = vld [vmem:[%s2921_s1 + $0x60] sm:$0xf]  ;;  %v1494_v6 = vld [vmem:[%s2921_s1 + $0x64] sm:$0xf0] }
   0x3   :  { %v1412_v7 = vor.u32 %v1495_v2, %v1409_v4  ;;  %v1493_v8 = vld [vmem:[%s2921_s1 + $0x64] sm:$0xf]  ;;  %v1401_v9 = vld [vmem:[%s2921_s1 + $0x68] sm:$0xf0]  ;;  %v1400_v10 = vor.u32 %v1494_v6, %v1399_v5  ;;  %v1391_v12 = vld [vmem:[%s2921_s1 + $0x50] sm:$0xf] }
   0x4   :  { %175 = vmatpush.bf16.msra.mxu0 %v1408_v3  ;;  %v1404_v11 = vor.u32 %v1493_v8, %v1401_v9  ;;  %v1492_v13 = vld [vmem:[%s2921_s1 + $0x54] sm:$0xf0]  ;;  %v1491_v14 = vld [vmem:[%s2921_s1 + $0x54] sm:$0xf]  ;;  %v1393_v15 = vld [vmem:[%s2921_s1 + $0x58] sm:$0xf0] }
   0x5   :  { %204 = vmatpush.bf16.msra.mxu1 %v1412_v7  ;;  %v1392_v16 = vor.u32 %v1492_v13, %v1391_v12  ;;  %v1396_v17 = vor.u32 %v1491_v14, %v1393_v15  ;;  %v1383_v18 = vld [vmem:[%s2921_s1 + $0x40] sm:$0xf]  ;;  %v1490_v19 = vld [vmem:[%s2921_s1 + $0x44] sm:$0xf0]  ;;  %v1489_v20 = vld [vmem:[%s2921_s1 + $0x44] sm:$0xf] }
   0x6   :  { %v1385_v21 = vld [vmem:[%s2921_s1 + $0x48] sm:$0xf0]  ;;  %v1384_v22 = vor.u32 %v1490_v19, %v1383_v18  ;;  %v1375_v24 = vld [vmem:[%s2921_s1 + $0x30] sm:$0xf]  ;;  %v1488_v25 = vld [vmem:[%s2921_s1 + $0x34] sm:$0xf0] }
   0x7   :  { %v1388_v23 = vor.u32 %v1489_v20, %v1385_v21  ;;  %v1487_v26 = vld [vmem:[%s2921_s1 + $0x34] sm:$0xf]  ;;  %v1377_v27 = vld [vmem:[%s2921_s1 + $0x38] sm:$0xf0]  ;;  %v1376_v28 = vor.u32 %v1488_v25, %v1375_v24  ;;  %v1367_v30 = vld [vmem:[%s2921_s1 + $0x20] sm:$0xf] }
   0x8   :  { %176 = vmatpush.bf16.msra.mxu0 %v1400_v10  ;;  %v1380_v29 = vor.u32 %v1487_v26, %v1377_v27  ;;  %v1486_v31 = vld [vmem:[%s2921_s1 + $0x24] sm:$0xf0]  ;;  %v1485_v32 = vld [vmem:[%s2921_s1 + $0x24] sm:$0xf]  ;;  %v1369_v33 = vld [vmem:[%s2921_s1 + $0x28] sm:$0xf0] }
   0x9   :  { %205 = vmatpush.bf16.msra.mxu1 %v1404_v11  ;;  %v1368_v34 = vor.u32 %v1486_v31, %v1367_v30  ;;  %v1372_v35 = vor.u32 %v1485_v32, %v1369_v33  ;;  %v1359_v36 = vld [vmem:[%s2921_s1 + $0x10] sm:$0xf]  ;;  %v1484_v37 = vld [vmem:[%s2921_s1 + $0x14] sm:$0xf0]  ;;  %v1483_v38 = vld [vmem:[%s2921_s1 + $0x14] sm:$0xf] }
   0xa   :  { %v1361_v39 = vld [vmem:[%s2921_s1 + $0x18] sm:$0xf0]  ;;  %v1360_v40 = vor.u32 %v1484_v37, %v1359_v36  ;;  %v1351_v42 = vld [vmem:[%s2921_s1] sm:$0xf]  ;;  %v1482_v43 = vld [vmem:[%s2921_s1 + $0x4] sm:$0xf0] }
   0xb   :  { %v1364_v41 = vor.u32 %v1483_v38, %v1361_v39  ;;  %v1481_v44 = vld [vmem:[%s2921_s1 + $0x4] sm:$0xf]  ;;  %v1353_v45 = vld [vmem:[%s2921_s1 + $0x8] sm:$0xf0]  ;;  %v1352_v46 = vor.u32 %v1482_v43, %v1351_v42  ;;  %v1479_v50 = vld [vmem:[%s2922_s0 + $0x10] sm:$0xff] }
   0xc   :  { %177 = vmatpush.bf16.msra.mxu0 %v1392_v16  ;;  %v1356_v47 = vor.u32 %v1481_v44, %v1353_v45  ;;  %v1477_v48 = vld [vmem:[%s2922_s0] sm:$0xff]  ;;  %v1478_v49 = vld [vmem:[%s2922_s0 + $0x8] sm:$0xff]  ;;  %v1480_v51 = vld [vmem:[%s2922_s0 + $0x18] sm:$0xff] }
   0xd   :  { %206 = vmatpush.bf16.msra.mxu1 %v1396_v17  ;;  %v65_v52 = vld [vmem:[%s2923_s2] sm:$0x3]  ;;  %v1504_v8 = vld [vmem:[%s2924_s3 + $0x38] sm:$0xff]  ;;  %v1510_v38 = vld [vmem:[%s2924_s3 + $0x68] sm:$0xff] }
   0xe   :  { %v1756_v53 = vperm.slane %v65_v52, 0  ;;  %v1758_v55 = vperm.slane %v65_v52, 1  ;;  %v1512_v9 = vld [vmem:[%s2924_s3 + $0x78] sm:$0xff]  ;;  %1017 = vmatpush.bf16.msra.mxu2 %v1504_v8 }
   0xf   :  { %1046 = vmatpush.bf16.msra.mxu3 %v1512_v9 }
  0x10   :  { %178 = vmatpush.bf16.msra.mxu0 %v1384_v22  ;;  %v1503_v22 = vld [vmem:[%s2924_s3 + $0x30] sm:$0xff] }
  0x11   :  { %207 = vmatpush.bf16.msra.mxu1 %v1388_v23  ;;  %v1511_v23 = vld [vmem:[%s2924_s3 + $0x70] sm:$0xff] }
  0x12   :  { %1018 = vmatpush.bf16.msra.mxu2 %v1503_v22 }
  0x13   :  { %1047 = vmatpush.bf16.msra.mxu3 %v1511_v23 }
  0x14   :  { %179 = vmatpush.bf16.msra.mxu0 %v1376_v28 }
  0x15   :  { %208 = vmatpush.bf16.msra.mxu1 %v1380_v29 }
  0x17   :  { %1048 = vmatpush.bf16.msra.mxu3 %v1510_v38 }
  0x18   :  { %180 = vmatpush.bf16.msra.mxu0 %v1368_v34 }
  0x19   :  { %209 = vmatpush.bf16.msra.mxu1 %v1372_v35  ;;  %v1502_v35 = vld [vmem:[%s2924_s3 + $0x28] sm:$0xff] }
  0x1a   :  { %1019 = vmatpush.bf16.msra.mxu2 %v1502_v35 }
  0x1c   :  { %181 = vmatpush.bf16.msra.mxu0 %v1360_v40 }
  0x1d   :  { %210 = vmatpush.bf16.msra.mxu1 %v1364_v41 }
  0x20   :  { %182 = vmatpush.bf16.msra.mxu0 %v1352_v46 }
  0x21   :  { %211 = vmatpush.bf16.msra.mxu1 %v1356_v47 }
  0x23   :  { %183 = vmatmul.bf16.vlgmr.msra.gmra.mxu0 %v1477_v48 }
  0x24   :  { %212 = vmatmul.bf16.vlgmr.msra.gmra.mxu1 %v1477_v48 }
  0x33   :  { %188 = vmatmul.bf16.gmra.mxu0 %v1478_v49 }
  0x34   :  { %217 = vmatmul.bf16.gmra.mxu1 %v1478_v49 }
  0x43   :  { %193 = vmatmul.bf16.gmra.mxu0 %v1479_v50 }
  0x44   :  { %222 = vmatmul.bf16.gmra.mxu1 %v1479_v50 }
  0x53   :  { %198 = vmatmul.bf16.gmra.mxu0 %v1480_v51 }
  0x54   :  { %227 = vmatmul.bf16.gmra.mxu1 %v1480_v51 }
  0xa0   :  { %v184_v54 = vpop.f32.mrf.mxu0 }
  0xa1   :  { %v213_v56 = vpop.f32.mrf.mxu1  ;;  %v185_v57 = vadd.f32 %v184_v54, %v1756_v53 }
  0xa2   :  { %v214_v58 = vadd.f32 %v213_v56, %v1758_v55  ;;  %v1501_v56 = vld [vmem:[%s2924_s3 + $0x20] sm:$0xff] }
  0xa3   :  { %v1762_v59 = vmul.f32 0.70710677, %v185_v57  ;;  %v1837_v39 = vmul.f32 0.5, %v185_v57  ;;  %v1509_v57 = vld [vmem:[%s2924_s3 + $0x60] sm:$0xff]  ;;  %1020 = vmatpush.bf16.msra.mxu2 %v1501_v56 }
  0xa4   :  { %v1764_v61 = vmul.f32 0.70710677, %v214_v58  ;;  %v1848_v47 = vmul.f32 0.5, %v214_v58  ;;  %1049 = vmatpush.bf16.msra.mxu3 %v1509_v57 }
  0xa5   :  { %v265_v63 = vand.u32 2147483647, %v1762_v59  ;;  %2966 = vst [vmem:[#allocation8_spill] sm:$0xff] %v1837_v39 }
  0xa6   :  { %2961 = vst [vmem:[#allocation3_spill] sm:$0xff] %v1764_v61  ;;  %v266_v0 = vand.u32 2147483647, %v1764_v61 }
  0xa7   :  { %v281_v2 = vmul.f32 0.3275911, %v265_v63  ;;  %v697_v19 = vmul.f32 %v265_v63, %v265_v63  ;;  %2968 = vst [vmem:[#allocation10_spill] sm:$0xff] %v1848_v47 }
  0xa8   :  { %v186_v60 = vpop.f32.mrf.mxu0  ;;  %v282_v5 = vmul.f32 0.3275911, %v266_v0  ;;  %v698_v20 = vmul.f32 %v266_v0, %v266_v0 }
  0xa9   :  { %v215_v62 = vpop.f32.mrf.mxu1  ;;  %v1769_v1 = vadd.f32 %v186_v60, %v1756_v53  ;;  %v1777_v7 = vadd.f32 1.0, %v281_v2  ;;  %v713_v29 = vsub.f32 0.0, %v697_v19  ;;  %v1508_v19 = vld [vmem:[%s2924_s3 + $0x58] sm:$0xff] }
  0xaa   :  { %v1772_v3 = vadd.f32 %v215_v62, %v1758_v55  ;;  %v1788_v12 = vadd.f32 1.0, %v282_v5  ;;  %v714_v33 = vsub.f32 0.0, %v698_v20  ;;  %1050 = vmatpush.bf16.msra.mxu3 %v1508_v19 }
  0xab   :  { %v1775_v6 = vmul.f32 0.70710677, %v1769_v1  ;;  %1517 = vrcp.f32 %v1777_v7  ;;  %v324_v43 = vand.u32 2147483648, %v1777_v7  ;;  %v729_v44 = vmul.f32 1.442695, %v713_v29 }
  0xac   :  { %v1786_v10 = vmul.f32 0.70710677, %v1772_v3  ;;  %1519 = vrcp.f32 %v1788_v12  ;;  %v339_v48 = vand.u32 2147483648, %v1788_v12  ;;  %v731_v49 = vmul.f32 1.442695, %v714_v33 }
  0xad   :  { %2962 = vst [vmem:[#allocation4_spill] sm:$0xff] %v1775_v6  ;;  %v267_v13 = vand.u32 2147483647, %v1775_v6  ;;  %v1868_v0 = vor.u32 1.1754944e-38, %v324_v43  ;;  %vm318_vm0 = vweird.f32 %v1777_v7  ;;  %vm333_vm10 = vweird.f32 %v1788_v12 }
  0xae   :  { %2963 = vst [vmem:[#allocation5_spill] sm:$0xff] %v1786_v10  ;;  %v268_v15 = vand.u32 2147483647, %v1786_v10  ;;  %v1876_v8 = vor.u32 1.1754944e-38, %v339_v48 }
  0xaf   :  { %v283_v17 = vmul.f32 0.3275911, %v267_v13  ;;  %v699_v52 = vmul.f32 %v267_v13, %v267_v13 }
  0xb0   :  { %v189_v4 = vpop.f32.mrf.mxu0  ;;  %v284_v24 = vmul.f32 0.3275911, %v268_v15  ;;  %v700_v60 = vmul.f32 %v268_v15, %v268_v15 }
  0xb1   :  { %v218_v11 = vpop.f32.mrf.mxu1  ;;  %v1792_v14 = vadd.f32 %v189_v4, %v1756_v53  ;;  %v1809_v25 = vpop.eup %1517  ;;  %v1811_v26 = vadd.f32 1.0, %v283_v17  ;;  %v1871_v4 = vmul.f32 0.5, %v1769_v1  ;;  %v715_v15 = vsub.f32 0.0, %v699_v52  ;;  %v1500_v17 = vld [vmem:[%s2924_s3 + $0x18] sm:$0xff] }
  0xb2   :  { %v1801_v21 = vadd.f32 %v218_v11, %v1758_v55  ;;  %v1822_v32 = vpop.eup %1519  ;;  %v314_v36 = vmul.f32 %v1809_v25, %v1777_v7  ;;  %v1832_v37 = vadd.f32 1.0, %v284_v24  ;;  %vm319_vm1 = vweird.f32 %v1809_v25  ;;  %1021 = vmatpush.bf16.msra.mxu2 %v1500_v17 }
  0xb3   :  { %v1798_v18 = vmul.f32 0.70710677, %v1792_v14  ;;  %1521 = vrcp.f32 %v1811_v26  ;;  %v329_v45 = vmul.f32 %v1822_v32, %v1788_v12  ;;  %2969 = vst [vmem:[#allocation11_spill] sm:$0xff] %v1871_v4  ;;  %v1884_v1 = vmul.f32 0.5, %v1772_v3  ;;  %vm1950_vm2 = vmor %vm318_vm0, %vm319_vm1 }
  0xb4   :  { %v1817_v28 = vmul.f32 0.70710677, %v1801_v21  ;;  %v315_v51 = vsub.f32 1.0, %v314_v36  ;;  %1523 = vrcp.f32 %v1832_v37  ;;  %v716_v20 = vsub.f32 0.0, %v700_v60 }
  0xb5   :  { %2964 = vst [vmem:[#allocation6_spill] sm:$0xff] %v1798_v18  ;;  %v1814_v27 = vand.u32 2147483647, %v1798_v18  ;;  %1525 = vpow2.f32 %v729_v44  ;;  %v330_v2 = vsub.f32 1.0, %v329_v45  ;;  %v1893_v22 = vmul.f32 0.5, %v1792_v14 }
  0xb6   :  { %2965 = vst [vmem:[#allocation7_spill] sm:$0xff] %v1817_v28  ;;  %v1825_v34 = vand.u32 2147483647, %v1817_v28  ;;  %1527 = vpow2.f32 %v731_v49  ;;  %v316_v13 = vmul.f32 %v1809_v25, %v315_v51  ;;  %v733_v44 = vmul.f32 1.442695, %v715_v15 }
  0xb7   :  { %v285_v41 = vmul.f32 0.3275911, %v1814_v27  ;;  %2970 = vst [vmem:[#allocation12_spill] sm:$0xff] %v1884_v1  ;;  %v331_v24 = vmul.f32 %v1822_v32, %v330_v2  ;;  %v701_v14 = vmul.f32 %v1814_v27, %v1814_v27  ;;  %v369_v45 = vand.u32 2147483648, %v1832_v37 }
  0xb8   :  { %v191_v16 = vpop.f32.mrf.mxu0  ;;  %v286_v50 = vmul.f32 0.3275911, %v1825_v34  ;;  %2971 = vst [vmem:[#allocation13_spill] sm:$0xff] %v1893_v22  ;;  %v1919_v43 = vadd.f32 %v1809_v25, %v316_v13  ;;  %v702_v19 = vmul.f32 %v1825_v34, %v1825_v34  ;;  %v1985_v34 = vmul.f32 0.5, %v1801_v21  ;;  %v1498_v21 = vld [vmem:[%s2924_s3 + $0x8] sm:$0xff] }
  0xb9   :  { %v1820_v30 = vadd.f32 %v191_v16, %v1756_v53  ;;  %v220_v31 = vpop.f32.mrf.mxu1  ;;  %v1863_v62 = vadd.f32 1.0, %v285_v41  ;;  %v1873_v5 = vpop.eup %1521  ;;  %v1930_v52 = vadd.f32 %v1822_v32, %v331_v24  ;;  %v717_v13 = vsub.f32 0.0, %v701_v14  ;;  %v1499_v14 = vld [vmem:[%s2924_s3 + $0x10] sm:$0xff] }
  0xba   :  { %v1866_v63 = vadd.f32 %v220_v31, %v1758_v55  ;;  %v1878_v9 = vadd.f32 1.0, %v286_v50  ;;  %v1899_v3 = vpop.eup %1523  ;;  %v344_v29 = vmul.f32 %v1873_v5, %v1811_v26  ;;  %v354_v31 = vand.u32 2147483648, %v1811_v26  ;;  %1022 = vmatpush.bf16.msra.mxu2 %v1499_v14  ;;  %2980 = vst [vmem:[#allocation20_spill] sm:$0xff] %v1985_v34 }
  0xbb   :  { %v1846_v46 = vmul.f32 0.70710677, %v1820_v30  ;;  %1529 = vrcp.f32 %v1863_v62  ;;  %v1916_v41 = vpop.eup %1525  ;;  %v359_v27 = vmul.f32 %v1899_v3, %v1832_v37  ;;  %v735_v50 = vmul.f32 1.442695, %v716_v20 }
  0xbc   :  { %v1897_v23 = vmul.f32 0.70710677, %v1866_v63  ;;  %1531 = vrcp.f32 %v1878_v9  ;;  %2973 = vst [vmem:[#allocation15_spill] sm:$0xff] %v1916_v41  ;;  %v1923_v48 = vpop.eup %1527  ;;  %v345_v56 = vsub.f32 1.0, %v344_v29  ;;  %v1954_v17 = vor.u32 1.1754944e-38, %v369_v45 }
  0xbd   :  { %2967 = vst [vmem:[#allocation9_spill] sm:$0xff] %v1846_v46  ;;  %v1854_v54 = vand.u32 2147483647, %v1846_v46  ;;  %v360_v29 = vsub.f32 1.0, %v359_v27  ;;  %v384_v27 = vand.u32 2147483648, %v1863_v62  ;;  %v718_v22 = vsub.f32 0.0, %v702_v19 }
  0xbe   :  { %2972 = vst [vmem:[#allocation14_spill] sm:$0xff] %v1897_v23  ;;  %v272_v51 = vand.u32 2147483647, %v1897_v23  ;;  %v737_v49 = vmul.f32 1.442695, %v717_v13  ;;  %v1993_v28 = vmul.f32 0.5, %v1820_v30  ;;  %1023 = vmatpush.bf16.msra.mxu2 %v1498_v21  ;;  %vm349_vm3 = vweird.f32 %v1873_v5 }
  0xbf   :  { %v287_v11 = vmul.f32 0.3275911, %v1854_v54  ;;  %2974 = vst [vmem:[#allocation16_spill] sm:$0xff] %v1923_v48  ;;  %v703_v58 = vmul.f32 %v1854_v54, %v1854_v54  ;;  %v361_v54 = vmul.f32 %v1899_v3, %v360_v29  ;;  %v1506_v19 = vld [vmem:[%s2924_s3 + $0x48] sm:$0xff]  ;;  %v2009_v30 = vor.u32 1.1754944e-38, %v384_v27 }
  0xc0   :  { %v194_v42 = vpop.f32.mrf.mxu0  ;;  %2981 = vst [vmem:[#allocation21_spill] sm:$0xff] %v1993_v28  ;;  %v399_v28 = vand.u32 2147483648, %v1878_v9  ;;  %v739_v46 = vmul.f32 1.442695, %v718_v22  ;;  %vm348_vm4 = vweird.f32 %v1811_v26  ;;  %vm334_vm7 = vweird.f32 %v1822_v32 }
  0xc1   :  { %v223_v16 = vpop.f32.mrf.mxu1  ;;  %v1906_v33 = vadd.f32 %v194_v42, %v1756_v53  ;;  %v1911_v35 = vadd.f32 1.0, %v287_v11  ;;  %v1938_v2 = vpop.eup %1529  ;;  %v1940_v11 = vor.u32 1.1754944e-38, %v354_v31  ;;  %v288_v31 = vmul.f32 0.3275911, %v272_v51  ;;  %vm2189_vm8 = vmor %vm348_vm4, %vm349_vm3 }
  0xc2   :  { %v1914_v36 = vadd.f32 %v223_v16, %v1758_v55  ;;  %v1959_v24 = vpop.eup %1531  ;;  %v374_v45 = vmul.f32 %v1938_v2, %v1863_v62  ;;  %v719_v1 = vsub.f32 0.0, %v703_v58  ;;  %v1497_v58 = vld [vmem:[%s2924_s3] sm:$0xff]  ;;  %v2040_v21 = vor.u32 1.1754944e-38, %v399_v28  ;;  %vm2296_vm4 = vmor %vm333_vm10, %vm334_vm7 }
  0xc3   :  { %v1933_v57 = vmul.f32 0.70710677, %v1906_v33  ;;  %1533 = vrcp.f32 %v1911_v35  ;;  %1024 = vmatpush.bf16.msra.mxu2 %v1497_v58  ;;  %vm364_vm9 = vweird.f32 %v1899_v3  ;;  %vm363_vm11 = vweird.f32 %v1832_v37 }
  0xc4   :  { %v1944_v15 = vmul.f32 0.70710677, %v1914_v36  ;;  %1535 = vpow2.f32 %v733_v44  ;;  %v346_v44 = vmul.f32 %v1873_v5, %v345_v56  ;;  %v375_v29 = vsub.f32 1.0, %v374_v45  ;;  %2985 = vst [vmem:[#allocation25_spill] sm:$0xff] %v2040_v21 }
  0xc5   :  { %2975 = vst [vmem:[#allocation17_spill] sm:$0xff] %v1933_v57  ;;  %v273_v20 = vand.u32 2147483647, %v1933_v57  ;;  %1537 = vpow2.f32 %v735_v50  ;;  %v389_v57 = vmul.f32 %v1959_v24, %v1878_v9  ;;  %v704_v45 = vmul.f32 %v272_v51, %v272_v51 }
  0xc6   :  { %2976 = vst [vmem:[#allocation18_spill] sm:$0xff] %v1944_v15  ;;  %v1981_v40 = vand.u32 2147483647, %v1944_v15  ;;  %v1995_v15 = vadd.f32 1.0, %v288_v31  ;;  %v2007_v56 = vadd.f32 %v1873_v5, %v346_v44  ;;  %1539 = vpow2.f32 %v737_v49 }
  0xc7   :  { %v289_v42 = vmul.f32 0.3275911, %v273_v20  ;;  %v390_v4 = vsub.f32 1.0, %v389_v57  ;;  %v376_v22 = vmul.f32 %v1938_v2, %v375_v29  ;;  %v414_v57 = vand.u32 2147483648, %v1911_v35 }
  0xc8   :  { %v196_v38 = vpop.f32.mrf.mxu0  ;;  %v290_v14 = vmul.f32 0.3275911, %v1981_v40  ;;  %1541 = vrcp.f32 %v1995_v15  ;;  %v705_v18 = vmul.f32 %v273_v20, %v273_v20  ;;  %v3019_v16 = vand.u32 2147483647, %v1788_v12 }
  0xc9   :  { %v1936_v60 = vadd.f32 %v196_v38, %v1756_v53  ;;  %v1507_v38 = vld [vmem:[%s2924_s3 + $0x50] sm:$0xff]  ;;  %v225_v23 = vpop.f32.mrf.mxu1  ;;  %v1989_v13 = vpop.eup %1533  ;;  %v2017_v47 = vadd.f32 1.0, %v289_v42  ;;  %v2032_v42 = vadd.f32 %v1899_v3, %v361_v54  ;;  %v720_v54 = vsub.f32 0.0, %v704_v45 }
  0xca   :  { %1051 = vmatpush.bf16.msra.mxu3 %v1507_v38  ;;  %v2004_v38 = vpop.eup %1535  ;;  %v404_v44 = vmul.f32 %v1989_v13, %v1911_v35  ;;  %v2022_v27 = vadd.f32 1.0, %v290_v14  ;;  %v2026_v49 = vadd.f32 %v225_v23, %v1758_v55  ;;  %v1505_v14 = vld [vmem:[%s2924_s3 + $0x40] sm:$0xff]  ;;  %v741_v23 = vmul.f32 1.442695, %v719_v1 }
  0xcb   :  { %v1976_v50 = vmul.f32 0.70710677, %v1936_v60  ;;  %2982 = vst [vmem:[#allocation22_spill] sm:$0xff] %v2004_v38  ;;  %v2014_v34 = vpop.eup %1537  ;;  %1543 = vrcp.f32 %v2017_v47  ;;  %v2059_v20 = vor.u32 1.1754944e-38, %v414_v57  ;;  %v721_v45 = vsub.f32 0.0, %v705_v18 }
  0xcc   :  { %2983 = vst [vmem:[#allocation23_spill] sm:$0xff] %v2014_v34  ;;  %1545 = vrcp.f32 %v2022_v27  ;;  %v2049_v51 = vpop.eup %1539  ;;  %v391_v34 = vmul.f32 %v1959_v24, %v390_v4  ;;  %v405_v28 = vsub.f32 1.0, %v404_v44  ;;  %v2053_v1 = vmul.f32 0.70710677, %v2026_v49 }
  0xcd   :  { %2979 = vst [vmem:[#allocation19_spill] sm:$0xff] %v1976_v50  ;;  %v2012_v31 = vand.u32 2147483647, %v1976_v50  ;;  %1547 = vpow2.f32 %v739_v46  ;;  %v2065_v46 = vmul.f32 0.5, %v1906_v33  ;;  %v2068_v4 = vmul.f32 0.5, %v1914_v36 }
  0xce   :  { %1052 = vmatpush.bf16.msra.mxu3 %v1506_v19  ;;  %2984 = vst [vmem:[#allocation24_spill] sm:$0xff] %v2022_v27  ;;  %v2043_v19 = vmul.f32 0.5, %v1866_v63  ;;  %v2056_v63 = vadd.f32 %v1938_v2, %v376_v22  ;;  %1549 = vpow2.f32 %v741_v23  ;;  %v2071_v44 = vmul.f32 0.5, %v1936_v60 }
  0xcf   :  { %v291_v50 = vmul.f32 0.3275911, %v2012_v31  ;;  %2987 = vst [vmem:[#allocation27_spill] sm:$0xff] %v2049_v51  ;;  %v743_v22 = vmul.f32 1.442695, %v720_v54  ;;  %v2078_v48 = vadd.f32 %v1959_v24, %v391_v34  ;;  %v406_v33 = vmul.f32 %v1989_v13, %v405_v28 }
  0xd0   :  { %2986 = vst [vmem:[#allocation26_spill] sm:$0xff] %v2043_v19  ;;  %v199_v58 = vpop.f32.mrf.mxu0  ;;  %v2062_v19 = vpop.eup %1541  ;;  %v276_v57 = vand.u32 2147483647, %v2053_v1  ;;  %v706_v34 = vmul.f32 %v1981_v40, %v1981_v40  ;;  %v444_v28 = vand.u32 2147483648, %v2017_v47  ;;  %vm2236_vm12 = vcmp.eq.f32.partialorder %v3019_v16, 8.507059e+37 }
  0xd1   :  { %v2047_v29 = vadd.f32 1.0, %v291_v50  ;;  %2988 = vst [vmem:[#allocation28_spill] sm:$0xff] %v2053_v1  ;;  %v429_v50 = vand.u32 2147483648, %v1995_v15  ;;  %v2075_v51 = vpop.eup %1543  ;;  %v2082_v23 = vadd.f32 %v199_v58, %v1756_v53  ;;  %v419_v18 = vmul.f32 %v2062_v19, %v1995_v15 }
  0xd2   :  { %1053 = vmatpush.bf16.msra.mxu3 %v1505_v14  ;;  %v228_v14 = vpop.f32.mrf.mxu1  ;;  %2989 = vst [vmem:[#allocation29_spill] sm:$0xff] %v2065_v46  ;;  %v2087_v60 = vpop.eup %1545  ;;  %v707_v58 = vmul.f32 %v2012_v31, %v2012_v31  ;;  %v434_v54 = vmul.f32 %v2075_v51, %v2017_v47  ;;  %v722_v10 = vsub.f32 0.0, %v706_v34  ;;  %vm379_vm13 = vweird.f32 %v1938_v2 }
  0xd3   :  { %2990 = vst [vmem:[#allocation30_spill] sm:$0xff] %v2068_v4  ;;  %1551 = vrcp.f32 %v2047_v29  ;;  %v2085_v36 = vadd.f32 %v228_v14, %v1758_v55  ;;  %v2092_v4 = vor.u32 1.1754944e-38, %v429_v50  ;;  %v2096_v1 = vpop.eup %1547  ;;  %v292_v14 = vmul.f32 0.3275911, %v276_v57 }
  0xd4   :  { %2991 = vst [vmem:[#allocation31_spill] sm:$0xff] %v2071_v44  ;;  %v2102_v44 = vmul.f32 0.70710677, %v2082_v23  ;;  %1553 = vpow2.f32 %v743_v22  ;;  %v745_v50 = vmul.f32 1.442695, %v721_v45  ;;  %v2109_v40 = vpop.eup %1549  ;;  %v449_v31 = vmul.f32 %v2087_v60, %v2022_v27 }
  0xd5   :  { %2992 = vst [vmem:[#allocation32_spill] sm:$0xff] %v2078_v48  ;;  %v2107_v46 = vmul.f32 0.70710677, %v2085_v36  ;;  %v2116_v39 = vadd.f32 1.0, %v292_v14  ;;  %v420_v45 = vsub.f32 1.0, %v419_v18  ;;  %v435_v14 = vsub.f32 1.0, %v434_v54 }
  0xd6   :  { %2993 = vst [vmem:[#allocation33_spill] sm:$0xff] %v2082_v23  ;;  %v277_v23 = vand.u32 2147483647, %v2102_v44  ;;  %v450_v41 = vsub.f32 1.0, %v449_v31  ;;  %v474_v18 = vand.u32 2147483648, %v2047_v29  ;;  %vm409_vm14 = vweird.f32 %v1989_v13 }
  0xd7   :  { %2994 = vst [vmem:[#allocation34_spill] sm:$0xff] %v2085_v36  ;;  %v708_v36 = vmul.f32 %v276_v57, %v276_v57  ;;  %v278_v61 = vand.u32 2147483647, %v2107_v46  ;;  %1555 = vrcp.f32 %v2116_v39  ;;  %v421_v54 = vmul.f32 %v2062_v19, %v420_v45 }
  0xd8   :  { %2995 = vst [vmem:[#allocation35_spill] sm:$0xff] %v2092_v4  ;;  %v723_v4 = vsub.f32 0.0, %v707_v58  ;;  %1557 = vpow2.f32 %v745_v50  ;;  %v293_v38 = vmul.f32 0.3275911, %v277_v23  ;;  %v3002_v58 = vand.u32 2147483647, %v1777_v7 }
  0xd9   :  { %2996 = vst [vmem:[#allocation36_spill] sm:$0xff] %v2096_v1  ;;  %v2112_v1 = vadd.f32 %v1989_v13, %v406_v33  ;;  %v2119_v22 = vpop.eup %1551  ;;  %v2124_v33 = vor.u32 1.1754944e-38, %v444_v28  ;;  %v294_v34 = vmul.f32 0.3275911, %v278_v61  ;;  %v747_v50 = vmul.f32 1.442695, %v722_v10 }
  0xda   :  { %2997 = vst [vmem:[#allocation37_spill] sm:$0xff] %v2102_v44  ;;  %v459_v44 = vand.u32 2147483648, %v2022_v27  ;;  %v464_v57 = vmul.f32 %v2119_v22, %v2047_v29  ;;  %v2132_v28 = vpop.eup %1553  ;;  %vm2136_vm5 = vcmp.eq.f32.partialorder %v3002_v58, 8.507059e+37  ;;  %v2141_v31 = vadd.f32 1.0, %v293_v38 }
  0xdb   :  { %2998 = vst [vmem:[#allocation38_spill] sm:$0xff] %v2107_v46  ;;  %v749_v27 = vmul.f32 1.442695, %v723_v4  ;;  %v709_v21 = vmul.f32 %v277_v23, %v277_v23  ;;  %v2144_v6 = vadd.f32 1.0, %v294_v34  ;;  %v436_v58 = vmul.f32 %v2075_v51, %v435_v14 }
  0xdc   :  { %2999 = vst [vmem:[#allocation39_spill] sm:$0xff] %v2109_v40  ;;  %v201_v40 = vpop.f32.mrf.mxu0  ;;  %v2153_v48 = vor.u32 1.1754944e-38, %v459_v44  ;;  %1559 = vrcp.f32 %v2141_v31  ;;  %v451_v4 = vmul.f32 %v2087_v60, %v450_v41  ;;  %v465_v23 = vsub.f32 1.0, %v464_v57 }
  0xdd   :  { %3000 = vst [vmem:[#allocation40_spill] sm:$0xff] %v2124_v33  ;;  %v724_v33 = vsub.f32 0.0, %v708_v36  ;;  %v2157_v10 = vadd.f32 %v201_v40, %v1756_v53  ;;  %v2159_v38 = vpop.eup %1555  ;;  %v489_v36 = vand.u32 2147483648, %v2116_v39  ;;  %1561 = vrcp.f32 %v2144_v6  ;;  %v230_v40 = vpop.f32.mrf.mxu1 }
  0xde   :  { %3001 = vst [vmem:[#allocation41_spill] sm:$0xff] %v2132_v28  ;;  %v3005_v28 = vand.u32 2147483647, %v1811_v26  ;;  %v2164_v45 = vpop.eup %1557  ;;  %v2167_v14 = vadd.f32 %v2062_v19, %v421_v54  ;;  %1563 = vpow2.f32 %v747_v50  ;;  %v2170_v44 = vmul.f32 0.5, %v2026_v49 }
  0xdf   :  { %3008 = vst [vmem:[#allocation42_spill] sm:$0xff] %v2157_v10  ;;  %v751_v53 = vmul.f32 1.442695, %v724_v33  ;;  %1565 = vpow2.f32 %v749_v27  ;;  %v725_v41 = vsub.f32 0.0, %v709_v21  ;;  %v2177_v57 = vadd.f32 %v2075_v51, %v436_v58 }
  0xe0   :  { %vm2148_vm6 = vcmp.eq.f32.partialorder %v3005_v28, 8.507059e+37  ;;  %3009 = vst [vmem:[#allocation43_spill] sm:$0xff] %v2164_v45  ;;  %v2173_v28 = vor.u32 1.1754944e-38, %v474_v18  ;;  %v479_v54 = vmul.f32 %v2159_v38, %v2116_v39  ;;  %v2183_v49 = vmul.f32 0.70710677, %v2157_v10 }
  0xe1   :  { %3010 = vst [vmem:[#allocation44_spill] sm:$0xff] %v2170_v44  ;;  %v2195_v21 = vadd.f32 %v2087_v60, %v451_v4  ;;  %v466_v33 = vmul.f32 %v2119_v22, %v465_v23  ;;  %v2198_v18 = vor.u32 1.1754944e-38, %v489_v36  ;;  %v2201_v58 = vadd.f32 %v230_v40, %v1758_v55 }
  0xe2   :  { %3011 = vst [vmem:[#allocation45_spill] sm:$0xff] %v2183_v49  ;;  %v2203_v50 = vpop.eup %1559  ;;  %1567 = vpow2.f32 %v751_v53  ;;  %v710_v26 = vmul.f32 %v278_v61, %v278_v61  ;;  %v279_v34 = vand.u32 2147483647, %v2183_v49  ;;  %v351_v4 = vsel %vm2189_vm8, %v1873_v5, %v2007_v56 }
  0xe3   :  { %3014 = vst [vmem:[#allocation46_spill] sm:$0xff] %v2198_v18  ;;  %v2211_v10 = vpop.eup %1561  ;;  %v494_v55 = vmul.f32 %v2203_v50, %v2141_v31  ;;  %v504_v23 = vand.u32 2147483648, %v2141_v31  ;;  %v753_v36 = vmul.f32 1.442695, %v725_v41  ;;  %v3016_v61 = vsel %vm1950_vm2, %v1809_v25, %v1919_v43 }
  0xe4   :  { %3015 = vst [vmem:[#allocation47_spill] sm:$0xff] %v2201_v58  ;;  %v2225_v53 = vsel %vm2136_vm5, %v1868_v0, %v3016_v61  ;;  %v2227_v5 = vpop.eup %1563  ;;  %v480_v56 = vsub.f32 1.0, %v479_v54  ;;  %v509_v40 = vmul.f32 %v2211_v10, %v2144_v6  ;;  %v519_v27 = vand.u32 2147483648, %v2144_v6 }
  0xe5   :  { %3017 = vst [vmem:[#allocation48_spill] sm:$0xff] %v2227_v5  ;;  %v295_v49 = vmul.f32 0.3275911, %v279_v34  ;;  %v2232_v41 = vpop.eup %1565  ;;  %v495_v0 = vsub.f32 1.0, %v494_v55  ;;  %v711_v43 = vmul.f32 %v279_v34, %v279_v34  ;;  %v2242_v46 = vmul.f32 0.70710677, %v2201_v58 }
  0xe6   :  { %3018 = vst [vmem:[#allocation49_spill] sm:$0xff] %v2232_v41  ;;  %v2247_v54 = vsel %vm2148_vm6, %v1940_v11, %v351_v4  ;;  %v510_v61 = vsub.f32 1.0, %v509_v40  ;;  %v726_v44 = vsub.f32 0.0, %v710_v26  ;;  %v553_v5 = vmul.f32 1.0614054, %v2225_v53  ;;  %vm2308_vm6 = vmor %vm363_vm11, %vm364_vm9 }
  0xe7   :  { %3022 = vst [vmem:[#allocation50_spill] sm:$0xff] %v2242_v46  ;;  %v2250_v16 = vadd.f32 1.0, %v295_v49  ;;  %v3023_v41 = vand.u32 2147483647, %v1832_v37  ;;  %vm378_vm0 = vweird.f32 %v1863_v62  ;;  %v2261_v7 = vadd.f32 %v2119_v22, %v466_v33 }
  0xe8   :  { %v727_v11 = vsub.f32 0.0, %v711_v43  ;;  %v280_v4 = vand.u32 2147483647, %v2242_v46  ;;  %v555_v26 = vmul.f32 1.0614054, %v2247_v54  ;;  %v2265_v49 = vpop.eup %1567  ;;  %vm408_vm1 = vweird.f32 %v1911_v35  ;;  %vm380_vm9 = vmor %vm378_vm0, %vm379_vm13 }
  0xe9   :  { %vm2255_vm15 = vcmp.eq.f32.partialorder %v3023_v41, 8.507059e+37  ;;  %3026 = vst [vmem:[#allocation51_spill] sm:$0xff] %v2265_v49  ;;  %v481_v55 = vmul.f32 %v2159_v38, %v480_v56  ;;  %1569 = vrcp.f32 %v2250_v16  ;;  %v3027_v33 = vand.u32 2147483647, %v1863_v62  ;;  %vm2372_vm11 = vmor %vm408_vm1, %vm409_vm14 }
  0xea   :  { %v496_v58 = vmul.f32 %v2203_v50, %v495_v0  ;;  %v2279_v46 = vor.u32 1.1754944e-38, %v504_v23  ;;  %v511_v49 = vmul.f32 %v2211_v10, %v510_v61  ;;  %v296_v45 = vmul.f32 0.3275911, %v280_v4 }
  0xeb   :  { %vm2274_vm2 = vcmp.eq.f32.partialorder %v3027_v33, 8.507059e+37  ;;  %v3030_v56 = vand.u32 2147483647, %v1911_v35  ;;  %1571 = vpow2.f32 %v753_v36  ;;  %v2288_v41 = vor.u32 1.1754944e-38, %v519_v27 }
  0xec   :  { %v2290_v33 = vmul.f32 1.442695, %v726_v44  ;;  %v569_v18 = vadd.f32 -1.4531521, %v553_v5  ;;  %vm394_vm5 = vweird.f32 %v1959_v24  ;;  %v534_v0 = vand.u32 2147483648, %v2250_v16 }
  0xed   :  { %vm2284_vm3 = vcmp.eq.f32.partialorder %v3030_v56, 8.507059e+37  ;;  %v757_v61 = vmul.f32 1.442695, %v727_v11  ;;  %v2302_v56 = vadd.f32 1.0, %v296_v45  ;;  %v571_v36 = vadd.f32 -1.4531521, %v555_v26 }
  0xee   :  { %v2313_v12 = vadd.f32 %v2159_v38, %v481_v55  ;;  %v585_v27 = vmul.f32 %v569_v18, %v2225_v53  ;;  %v336_v45 = vsel %vm2296_vm4, %v1822_v32, %v1930_v52  ;;  %vm393_vm7 = vweird.f32 %v1878_v9 }
  0xef   :  { %v2323_v37 = vadd.f32 %v2203_v50, %v496_v58  ;;  %v2326_v11 = vadd.f32 %v2211_v10, %v511_v49  ;;  %1573 = vrcp.f32 %v2302_v56  ;;  %v366_v18 = vsel %vm2308_vm6, %v1899_v3, %v2032_v42  ;;  %v2333_v26 = vpop.eup %1569  ;;  %vm2424_vm0 = vmor %vm393_vm7, %vm394_vm5 }
  0xf0   :  { %v2335_v55 = vmul.f32 %v280_v4, %v280_v4  ;;  %v587_v32 = vmul.f32 %v571_v36, %v2247_v54  ;;  %v601_v52 = vadd.f32 1.4214138, %v585_v27  ;;  %v2341_v58 = vsel %vm2236_vm12, %v1876_v8, %v336_v45 }
  0xf1   :  { %vm424_vm8 = vweird.f32 %v2062_v19  ;;  %v524_v49 = vmul.f32 %v2333_v26, %v2250_v16  ;;  %v2346_v23 = vor.u32 1.1754944e-38, %v534_v0  ;;  %1575 = vpow2.f32 %v757_v61  ;;  %v2349_v42 = vpop.eup %1571 }
  0xf2   :  { %v3037_v8 = vand.u32 2147483647, %v1878_v9  ;;  %v549_v4 = vand.u32 2147483648, %v2302_v56  ;;  %v603_v0 = vadd.f32 1.4214138, %v587_v32  ;;  %v617_v61 = vmul.f32 %v601_v52, %v2225_v53 }
  0xf3   :  { %v2366_v36 = vsel %vm2255_vm15, %v1954_v17, %v366_v18  ;;  %vm423_vm12 = vweird.f32 %v1995_v15  ;;  %v525_v44 = vsub.f32 1.0, %v524_v49  ;;  %v554_v27 = vmul.f32 1.0614054, %v2341_v58 }
  0xf4   :  { %vm2357_vm10 = vcmp.eq.f32.partialorder %v3037_v8, 8.507059e+37  ;;  %v556_v45 = vmul.f32 1.0614054, %v2366_v36  ;;  %v381_v34 = vsel %vm380_vm9, %v1938_v2, %v2056_v63  ;;  %v619_v17 = vmul.f32 %v603_v0, %v2247_v54 }
  0xf5   :  { %v633_v18 = vadd.f32 -0.28449672, %v617_v61  ;;  %v2385_v35 = vsel %vm2274_vm2, %v2009_v30, %v381_v34  ;;  %v411_v32 = vsel %vm2372_vm11, %v1989_v13, %v2112_v1  ;;  %v2391_v52 = vpop.eup %1573  ;;  %v3042_v49 = vand.u32 2147483647, %v1995_v15 }
  0xf6   :  { %vm439_vm14 = vweird.f32 %v2075_v51  ;;  %v526_v2 = vmul.f32 %v2333_v26, %v525_v44  ;;  %v570_v63 = vadd.f32 -1.4531521, %v554_v27  ;;  %v572_v30 = vadd.f32 -1.4531521, %v556_v45 }
  0xf7   :  { %vm2395_vm13 = vcmp.eq.f32.partialorder %v3042_v49, 8.507059e+37  ;;  %v2404_v43 = vsel %vm2284_vm3, %v2059_v20, %v411_v32  ;;  %v539_v13 = vmul.f32 %v2391_v52, %v2302_v56  ;;  %v2408_v1 = vor.u32 1.1754944e-38, %v549_v4  ;;  %v2411_v62 = vpop.eup %1575  ;;  %vm425_vm3 = vmor %vm423_vm12, %vm424_vm8  ;;  %v3051_v4 = vld [vmem:[#allocation15_spill] sm:$0xff] }
  0xf8   :  { %v635_v0 = vadd.f32 -0.28449672, %v619_v17  ;;  %v649_v61 = vmul.f32 %v633_v18, %v2225_v53  ;;  %3045 = vst [vmem:[#allocation52_spill] sm:$0xff] %v2411_v62  ;;  %vm438_vm15 = vweird.f32 %v2017_v47  ;;  %v2415_v44 = vadd.f32 %v2333_v26, %v526_v2 }
  0xf9   :  { %v586_v27 = vmul.f32 %v570_v63, %v2341_v58  ;;  %v588_v20 = vmul.f32 %v572_v30, %v2366_v36  ;;  %v557_v40 = vmul.f32 1.0614054, %v2385_v35  ;;  %v540_v45 = vsub.f32 1.0, %v539_v13  ;;  %v3048_v63 = vld [vmem:[#allocation32_spill] sm:$0xff]  ;;  %vm2480_vm7 = vmor %vm438_vm15, %vm439_vm14 }
  0xfa   :  { %v651_v34 = vmul.f32 %v635_v0, %v2247_v54  ;;  %v665_v17 = vadd.f32 0.2548296, %v649_v61  ;;  %v559_v18 = vmul.f32 1.0614054, %v2404_v43  ;;  %vm793_vm1 = vcmp.ge.f32.partialorder %v1762_v59, 0.0  ;;  %v3049_v0 = vld [vmem:[#allocation4_spill] sm:$0xff] }
  0xfb   :  { %v602_v32 = vadd.f32 1.4214138, %v586_v27  ;;  %v604_v49 = vadd.f32 1.4214138, %v588_v20  ;;  %v573_v2 = vadd.f32 -1.4531521, %v557_v40  ;;  %v396_v9 = vsel %vm2424_vm0, %v1959_v24, %v3048_v63 }
  0xfc   :  { %v541_v30 = vmul.f32 %v2391_v52, %v540_v45  ;;  %v667_v3 = vadd.f32 0.2548296, %v651_v34  ;;  %v681_v13 = vmul.f32 %v665_v17, %v2225_v53  ;;  %v575_v5 = vadd.f32 -1.4531521, %v559_v18  ;;  %v3050_v20 = vld [vmem:[#allocation25_spill] sm:$0xff] }
  0xfd   :  { %vm795_vm2 = vcmp.ge.f32.partialorder %v3049_v0, 0.0  ;;  %v618_v61 = vmul.f32 %v602_v32, %v2341_v58  ;;  %v620_v62 = vmul.f32 %v604_v49, %v2366_v36  ;;  %v589_v27 = vmul.f32 %v573_v2, %v2385_v35  ;;  %v3055_v2 = vld [vmem:[#allocation22_spill] sm:$0xff] }
  0xfe   :  { %v2444_v40 = vsel %vm2357_vm10, %v3050_v20, %v396_v9  ;;  %v2451_v24 = vadd.f32 %v2391_v52, %v541_v30  ;;  %v683_v53 = vmul.f32 %v667_v3, %v2247_v54  ;;  %v761_v45 = vmul.f32 %v3051_v4, %v681_v13  ;;  %v3056_v9 = vld [vmem:[#allocation35_spill] sm:$0xff]  ;;  %v3064_v13 = vld [vmem:[#allocation8_spill] sm:$0xff] }
  0xff   :  { %v591_v34 = vmul.f32 %v575_v5, %v2404_v43  ;;  %vm469_vm4 = vweird.f32 %v2119_v22  ;;  %v634_v17 = vadd.f32 -0.28449672, %v618_v61  ;;  %v636_v25 = vadd.f32 -0.28449672, %v620_v62 }
 0x100   :  { %v605_v18 = vadd.f32 1.4214138, %v589_v27  ;;  %v426_v32 = vsel %vm425_vm3, %v2062_v19, %v2167_v14  ;;  %v3052_v15 = vand.u32 2147483647, %v2017_v47  ;;  %v763_v54 = vmul.f32 %v3055_v2, %v683_v53  ;;  %v3060_v47 = vld [vmem:[#allocation5_spill] sm:$0xff] }
 0x101   :  { %v777_v3 = vsub.f32 1.0, %v761_v45  ;;  %v607_v63 = vadd.f32 1.4214138, %v591_v34  ;;  %v2469_v5 = vsel %vm2395_vm13, %v3056_v9, %v426_v32  ;;  %vm468_vm6 = vweird.f32 %v2047_v29 }
 0x102   :  { %vm2461_vm5 = vcmp.eq.f32.partialorder %v3052_v15, 8.507059e+37  ;;  %v650_v62 = vmul.f32 %v634_v17, %v2341_v58  ;;  %v652_v19 = vmul.f32 %v636_v25, %v2366_v36  ;;  %v621_v14 = vmul.f32 %v605_v18, %v2385_v35  ;;  %v3059_v17 = vld [vmem:[#allocation3_spill] sm:$0xff]  ;;  %vm2526_vm0 = vmor %vm468_vm6, %vm469_vm4 }
 0x103   :  { %v558_v30 = vmul.f32 1.0614054, %v2444_v40  ;;  %v779_v8 = vsub.f32 1.0, %v763_v54  ;;  %v809_v61 = vsub.f32 0.0, %v777_v3  ;;  %v623_v27 = vmul.f32 %v607_v63, %v2404_v43 }
 0x104   :  { %v560_v20 = vmul.f32 1.0614054, %v2469_v5  ;;  %v666_v53 = vadd.f32 0.2548296, %v650_v62  ;;  %v668_v4 = vadd.f32 0.2548296, %v652_v19  ;;  %v441_v34 = vsel %vm2480_vm7, %v2075_v51, %v2177_v57 }
 0x105   :  { %v637_v45 = vadd.f32 -0.28449672, %v621_v14  ;;  %vm794_vm8 = vcmp.ge.f32.partialorder %v3059_v17, 0.0  ;;  %vm796_vm9 = vcmp.ge.f32.partialorder %v3060_v47, 0.0  ;;  %v3061_v25 = vand.u32 2147483647, %v2047_v29 }
 0x106   :  { %v811_v32 = vsub.f32 0.0, %v779_v8  ;;  %v825_v15 = vsel %vm793_vm1, %v777_v3, %v809_v61  ;;  %v639_v2 = vadd.f32 -0.28449672, %v623_v27  ;;  %v574_v54 = vadd.f32 -1.4531521, %v558_v30  ;;  %v3065_v61 = vld [vmem:[#allocation16_spill] sm:$0xff] }
 0x107   :  { %vm2494_vm10 = vcmp.eq.f32.partialorder %v3061_v25, 8.507059e+37  ;;  %v841_v63 = vadd.f32 1.0, %v825_v15  ;;  %v682_v9 = vmul.f32 %v666_v53, %v2341_v58  ;;  %v684_v51 = vmul.f32 %v668_v4, %v2366_v36  ;;  %v3066_v58 = vld [vmem:[#allocation23_spill] sm:$0xff]  ;;  %v3067_v36 = vld [vmem:[#allocation24_spill] sm:$0xff]  ;;  %v3068_v25 = vld [vmem:[#allocation6_spill] sm:$0xff] }
 0x108   :  { %v653_v57 = vmul.f32 %v637_v45, %v2385_v35  ;;  %vm454_vm11 = vweird.f32 %v2087_v60  ;;  %v827_v62 = vsel %vm795_vm2, %v779_v8, %v811_v32  ;;  %v655_v19 = vmul.f32 %v639_v2, %v2404_v43  ;;  %v3070_v32 = vld [vmem:[#allocation11_spill] sm:$0xff] }
 0x109   :  { %v576_v14 = vadd.f32 -1.4531521, %v560_v20  ;;  %v590_v59 = vmul.f32 %v574_v54, %v2444_v40  ;;  %v843_v3 = vadd.f32 1.0, %v827_v62  ;;  %v857_v30 = vmul.f32 %v841_v63, %v3064_v13  ;;  %v3069_v20 = vld [vmem:[#allocation9_spill] sm:$0xff]  ;;  %v3071_v63 = vld [vmem:[#allocation40_spill] sm:$0xff] }
 0x10a   :  { %v762_v27 = vmul.f32 %v3065_v61, %v682_v9  ;;  %v764_v53 = vmul.f32 %v3066_v58, %v684_v51  ;;  %vm453_vm12 = vweird.f32 %v3067_v36  ;;  %vm484_vm13 = vweird.f32 %v2159_v38  ;;  %v3078_v61 = vld [vmem:[#allocation39_spill] sm:$0xff]  ;;  %v3085_v51 = vld [vmem:[#allocation10_spill] sm:$0xff] }
 0x10b   :  { %v669_v4 = vadd.f32 0.2548296, %v653_v57  ;;  %v671_v45 = vadd.f32 0.2548296, %v655_v19  ;;  %v592_v0 = vmul.f32 %v576_v14, %v2469_v5  ;;  %v606_v8 = vadd.f32 1.4214138, %v590_v59 }
 0x10c   :  { %vm797_vm14 = vcmp.ge.f32.partialorder %v3068_v25, 0.0  ;;  %vm799_vm15 = vcmp.ge.f32.partialorder %v3069_v20, 0.0  ;;  %v859_v15 = vmul.f32 %v843_v3, %v3070_v32  ;;  %v778_v2 = vsub.f32 1.0, %v762_v27  ;;  %v3095_v20 = vld [vmem:[#allocation14_spill] sm:$0xff] }
 0x10d   :  { %v780_v54 = vsub.f32 1.0, %v764_v53  ;;  %v2520_v9 = vsel %vm2461_vm5, %v3071_v63, %v441_v34  ;;  %vm483_vm1 = vweird.f32 %v2116_v39  ;;  %v685_v57 = vmul.f32 %v669_v4, %v2385_v35  ;;  %v3077_v35 = vld [vmem:[#allocation27_spill] sm:$0xff] }
 0x10e   :  { %v687_v62 = vmul.f32 %v671_v45, %v2404_v43  ;;  %v608_v19 = vadd.f32 1.4214138, %v592_v0  ;;  %v622_v14 = vmul.f32 %v606_v8, %v2444_v40  ;;  %v3074_v49 = vand.u32 2147483647, %v3067_v36 }
 0x10f   :  { %v881_v29 = vpack.c.bf16 %v859_v15, %v857_v30  ;;  %v810_v59 = vsub.f32 0.0, %v778_v2  ;;  %v812_v3 = vsub.f32 0.0, %v780_v54  ;;  %v471_v13 = vsel %vm2526_vm0, %v2119_v22, %v2261_v7 }
 0x110   :  { %vm2536_vm2 = vcmp.eq.f32.partialorder %v3074_v49, 8.507059e+37  ;;  %vm499_vm3 = vweird.f32 %v2203_v50  ;;  %v765_v43 = vmul.f32 %v3077_v35, %v685_v57  ;;  %v767_v27 = vmul.f32 %v3078_v61, %v687_v62  ;;  %v3086_v62 = vld [vmem:[#allocation12_spill] sm:$0xff] }
 0x111   :  { %v624_v58 = vmul.f32 %v608_v19, %v2469_v5  ;;  %v638_v53 = vadd.f32 -0.28449672, %v622_v14  ;;  %v3079_v4 = vand.u32 2147483647, %v2116_v39  ;;  %1025 = vmatmul.bf16.vlgmr.msra.gmra.mxu2 %v881_v29  ;;  %v826_v45 = vsel %vm794_vm8, %v778_v2, %v810_v59 }
 0x112   :  { %v828_v22 = vsel %vm796_vm9, %v780_v54, %v812_v3  ;;  %v2561_v7 = vsel %vm2494_vm10, %v2173_v28, %v471_v13  ;;  %v561_v0 = vmul.f32 1.0614054, %v2520_v9  ;;  %vm498_vm5 = vweird.f32 %v2141_v31  ;;  %vm2581_vm9 = vmor %vm453_vm12, %vm454_vm11 }
 0x113   :  { %vm2550_vm4 = vcmp.eq.f32.partialorder %v3079_v4, 8.507059e+37  ;;  %vm529_vm6 = vweird.f32 %v2333_v26  ;;  %v842_v8 = vadd.f32 1.0, %v826_v45  ;;  %v844_v32 = vadd.f32 1.0, %v828_v22  ;;  %vm2606_vm11 = vmor %vm483_vm1, %vm484_vm13 }
 0x114   :  { %v781_v15 = vsub.f32 1.0, %v765_v43  ;;  %v783_v63 = vsub.f32 1.0, %v767_v27  ;;  %v640_v17 = vadd.f32 -0.28449672, %v624_v58  ;;  %v654_v2 = vmul.f32 %v638_v53, %v2444_v40  ;;  %v3089_v43 = vld [vmem:[#allocation7_spill] sm:$0xff] }
 0x115   :  { %v563_v47 = vmul.f32 1.0614054, %v2561_v7  ;;  %v577_v54 = vadd.f32 -1.4531521, %v561_v0  ;;  %v3082_v18 = vand.u32 2147483647, %v2141_v31  ;;  %vm528_vm8 = vweird.f32 %v2250_v16 }
 0x116   :  { %v858_v57 = vmul.f32 %v842_v8, %v3085_v51  ;;  %v860_v19 = vmul.f32 %v844_v32, %v3086_v62  ;;  %v813_v14 = vsub.f32 0.0, %v781_v15  ;;  %v815_v49 = vsub.f32 0.0, %v783_v63 }
 0x117   :  { %vm2570_vm7 = vcmp.eq.f32.partialorder %v3082_v18, 8.507059e+37  ;;  %v656_v59 = vmul.f32 %v640_v17, %v2469_v5  ;;  %v670_v3 = vadd.f32 0.2548296, %v654_v2  ;;  %v579_v13 = vadd.f32 -1.4531521, %v563_v47  ;;  %v3098_v47 = vld [vmem:[#allocation36_spill] sm:$0xff] }
 0x118   :  { %v593_v35 = vmul.f32 %v577_v54, %v2520_v9  ;;  %vm798_vm10 = vcmp.ge.f32.partialorder %v3089_v43, 0.0  ;;  %v3090_v61 = vand.u32 2147483647, %v2250_v16  ;;  %v882_v58 = vpack.c.bf16 %v860_v19, %v858_v57  ;;  %v3102_v57 = vld [vmem:[#allocation41_spill] sm:$0xff] }
 0x119   :  { %v829_v36 = vsel %vm797_vm14, %v781_v15, %v813_v14  ;;  %v831_v53 = vsel %vm799_vm15, %v783_v63, %v815_v49  ;;  %v456_v4 = vsel %vm2581_vm9, %v2087_v60, %v2195_v21  ;;  %v672_v25 = vadd.f32 0.2548296, %v656_v59  ;;  %v3096_v15 = vld [vmem:[#allocation13_spill] sm:$0xff]  ;;  %vm2639_vm15 = vmor %vm498_vm5, %vm499_vm3 }
 0x11a   :  { %vm2590_vm0 = vcmp.eq.f32.partialorder %v3090_v61, 8.507059e+37  ;;  %v845_v22 = vadd.f32 1.0, %v829_v36  ;;  %v847_v0 = vadd.f32 1.0, %v831_v53  ;;  %v686_v8 = vmul.f32 %v670_v3, %v2444_v40  ;;  %1054 = vmatmul.bf16.vlgmr.msra.gmra.mxu3 %v882_v58  ;;  %v3097_v63 = vld [vmem:[#allocation21_spill] sm:$0xff]  ;;  %vm530_vm3 = vmor %vm528_vm8, %vm529_vm6 }
 0x11b   :  { %vm800_vm12 = vcmp.ge.f32.partialorder %v3095_v20, 0.0  ;;  %vm514_vm14 = vweird.f32 %v2211_v10  ;;  %v595_v60 = vmul.f32 %v579_v13, %v2561_v7  ;;  %v609_v21 = vadd.f32 1.4214138, %v593_v35 }
 0x11c   :  { %v2617_v39 = vsel %vm2536_vm2, %v2153_v48, %v456_v4  ;;  %v486_v32 = vsel %vm2606_vm11, %v2159_v38, %v2313_v12  ;;  %v861_v40 = vmul.f32 %v845_v22, %v3096_v15  ;;  %v863_v17 = vmul.f32 %v847_v0, %v3097_v63  ;;  %v3099_v48 = vld [vmem:[#allocation46_spill] sm:$0xff] }
 0x11d   :  { %v688_v2 = vmul.f32 %v672_v25, %v2469_v5  ;;  %v766_v54 = vmul.f32 %v3098_v47, %v686_v8  ;;  %vm513_vm13 = vweird.f32 %v2144_v6  ;;  %v611_v18 = vadd.f32 1.4214138, %v595_v60  ;;  %v3106_v8 = vld [vmem:[#allocation17_spill] sm:$0xff] }
 0x11e   :  { %v625_v34 = vmul.f32 %v609_v21, %v2520_v9  ;;  %v2632_v51 = vsel %vm2550_vm4, %v3099_v48, %v486_v32  ;;  %v562_v38 = vmul.f32 1.0614054, %v2617_v39  ;;  %v883_v5 = vpack.c.bf16 %v863_v17, %v861_v40  ;;  %v3110_v32 = vld [vmem:[#allocation20_spill] sm:$0xff]  ;;  %v3111_v17 = vld [vmem:[#allocation19_spill] sm:$0xff]  ;;  %vm2698_vm8 = vmor %vm513_vm13, %vm514_vm14 }
 0x11f   :  { %v768_v62 = vmul.f32 %v3102_v57, %v688_v2  ;;  %v782_v19 = vsub.f32 1.0, %v766_v54  ;;  %v564_v14 = vmul.f32 1.0614054, %v2632_v51  ;;  %vm544_vm1 = vweird.f32 %v2391_v52 }
 0x120   :  { %v627_v30 = vmul.f32 %v611_v18, %v2561_v7  ;;  %v641_v49 = vadd.f32 -0.28449672, %v625_v34  ;;  %v578_v29 = vadd.f32 -1.4531521, %v562_v38  ;;  %v501_v31 = vsel %vm2639_vm15, %v2203_v50, %v2323_v37  ;;  %v3114_v34 = vld [vmem:[#allocation26_spill] sm:$0xff]  ;;  %v3115_v38 = vld [vmem:[#allocation43_spill] sm:$0xff] }
 0x121   :  { %v3103_v59 = vand.u32 2147483647, %v2144_v6  ;;  %v784_v13 = vsub.f32 1.0, %v768_v62  ;;  %v814_v35 = vsub.f32 0.0, %v782_v19  ;;  %v580_v61 = vadd.f32 -1.4531521, %v564_v14  ;;  %1030 = vmatmul.bf16.gmra.mxu2 %v883_v5 }
 0x122   :  { %v2664_v58 = vsel %vm2570_vm7, %v2279_v46, %v501_v31  ;;  %vm543_vm4 = vweird.f32 %v2302_v56  ;;  %v643_v50 = vadd.f32 -0.28449672, %v627_v30  ;;  %v657_v37 = vmul.f32 %v641_v49, %v2520_v9  ;;  %v3116_v30 = vld [vmem:[#allocation49_spill] sm:$0xff] }
 0x123   :  { %vm2653_vm2 = vcmp.eq.f32.partialorder %v3103_v59, 8.507059e+37  ;;  %v594_v36 = vmul.f32 %v578_v29, %v2617_v39  ;;  %v531_v53 = vsel %vm530_vm3, %v2333_v26, %v2415_v44  ;;  %v816_v16 = vsub.f32 0.0, %v784_v13  ;;  %vm2723_vm9 = vmor %vm543_vm4, %vm544_vm1 }
 0x124   :  { %v830_v4 = vsel %vm798_vm10, %v782_v19, %v814_v35  ;;  %v596_v45 = vmul.f32 %v580_v61, %v2632_v51  ;;  %v2677_v46 = vsel %vm2590_vm0, %v2346_v23, %v531_v53  ;;  %v659_v22 = vmul.f32 %v643_v50, %v2561_v7  ;;  %v3119_v53 = vld [vmem:[#allocation18_spill] sm:$0xff] }
 0x125   :  { %v846_v28 = vadd.f32 1.0, %v830_v4  ;;  %v673_v0 = vadd.f32 0.2548296, %v657_v37  ;;  %v610_v25 = vadd.f32 1.4214138, %v594_v36  ;;  %vm801_vm5 = vcmp.ge.f32.partialorder %v3106_v8, 0.0 }
 0x126   :  { %v3107_v26 = vand.u32 2147483647, %v2302_v56  ;;  %v832_v43 = vsel %vm800_vm12, %v784_v13, %v816_v16  ;;  %v612_v27 = vadd.f32 1.4214138, %v596_v45  ;;  %v565_v23 = vmul.f32 1.0614054, %v2664_v58 }
 0x127   :  { %v567_v60 = vmul.f32 1.0614054, %v2677_v46  ;;  %v848_v21 = vadd.f32 1.0, %v832_v43  ;;  %v862_v15 = vmul.f32 %v846_v28, %v3110_v32  ;;  %v675_v40 = vadd.f32 0.2548296, %v659_v22 }
 0x128   :  { %vm2683_vm6 = vcmp.eq.f32.partialorder %v3107_v26, 8.507059e+37  ;;  %v689_v63 = vmul.f32 %v673_v0, %v2520_v9  ;;  %vm803_vm7 = vcmp.ge.f32.partialorder %v3111_v17, 0.0  ;;  %v626_v2 = vmul.f32 %v610_v25, %v2617_v39  ;;  %v3123_v17 = vld [vmem:[#allocation31_spill] sm:$0xff] }
 0x129   :  { %v628_v47 = vmul.f32 %v612_v27, %v2632_v51  ;;  %v581_v54 = vadd.f32 -1.4531521, %v565_v23  ;;  %v583_v18 = vadd.f32 -1.4531521, %v567_v60  ;;  %v864_v48 = vmul.f32 %v848_v21, %v3114_v34  ;;  %v3121_v60 = vld [vmem:[#allocation51_spill] sm:$0xff] }
 0x12a   :  { %v691_v9 = vmul.f32 %v675_v40, %v2561_v7  ;;  %v769_v12 = vmul.f32 %v3115_v38, %v689_v63  ;;  %v516_v6 = vsel %vm2698_vm8, %v2211_v10, %v2326_v11  ;;  %v642_v5 = vadd.f32 -0.28449672, %v626_v2  ;;  %v3122_v40 = vld [vmem:[#allocation29_spill] sm:$0xff] }
 0x12b   :  { %v644_v57 = vadd.f32 -0.28449672, %v628_v47  ;;  %v597_v62 = vmul.f32 %v581_v54, %v2664_v58  ;;  %v599_v19 = vmul.f32 %v583_v18, %v2677_v46  ;;  %v884_v14 = vpack.c.bf16 %v864_v48, %v862_v15  ;;  %v3124_v48 = vld [vmem:[#allocation28_spill] sm:$0xff] }
 0x12c   :  { %v771_v49 = vmul.f32 %v3116_v30, %v691_v9  ;;  %v785_v29 = vsub.f32 1.0, %v769_v12  ;;  %v2717_v7 = vsel %vm2653_vm2, %v2288_v41, %v516_v6  ;;  %v658_v11 = vmul.f32 %v642_v5, %v2617_v39 }
 0x12d   :  { %v660_v31 = vmul.f32 %v644_v57, %v2632_v51  ;;  %v613_v59 = vadd.f32 1.4214138, %v597_v62  ;;  %v615_v13 = vadd.f32 1.4214138, %v599_v19  ;;  %1059 = vmatmul.bf16.gmra.mxu3 %v884_v14  ;;  %v546_v41 = vsel %vm2723_vm9, %v2391_v52, %v2451_v24 }
 0x12e   :  { %v787_v35 = vsub.f32 1.0, %v771_v49  ;;  %v817_v61 = vsub.f32 0.0, %v785_v29  ;;  %v566_v56 = vmul.f32 1.0614054, %v2717_v7  ;;  %v674_v3 = vadd.f32 0.2548296, %v658_v11 }
 0x12f   :  { %v676_v50 = vadd.f32 0.2548296, %v660_v31  ;;  %v629_v37 = vmul.f32 %v613_v59, %v2664_v58  ;;  %v631_v36 = vmul.f32 %v615_v13, %v2677_v46  ;;  %vm802_vm10 = vcmp.ge.f32.partialorder %v3119_v53, 0.0  ;;  %v3125_v11 = vld [vmem:[#allocation52_spill] sm:$0xff]  ;;  %v3126_v59 = vld [vmem:[#allocation30_spill] sm:$0xff] }
 0x130   :  { %v819_v16 = vsub.f32 0.0, %v787_v35  ;;  %v833_v4 = vsel %vm801_vm5, %v785_v29, %v817_v61  ;;  %v2742_v45 = vsel %vm2683_vm6, %v2408_v1, %v546_v41  ;;  %v582_v52 = vadd.f32 -1.4531521, %v566_v56  ;;  %v3120_v1 = vld [vmem:[#allocation48_spill] sm:$0xff] }
 0x131   :  { %v849_v24 = vadd.f32 1.0, %v833_v4  ;;  %v690_v28 = vmul.f32 %v674_v3, %v2617_v39  ;;  %v692_v22 = vmul.f32 %v676_v50, %v2632_v51  ;;  %v645_v0 = vadd.f32 -0.28449672, %v629_v37 }
 0x132   :  { %v835_v25 = vsel %vm803_vm7, %v787_v35, %v819_v16  ;;  %v647_v26 = vadd.f32 -0.28449672, %v631_v36  ;;  %v568_v43 = vmul.f32 1.0614054, %v2742_v45  ;;  %v598_v8 = vmul.f32 %v582_v52, %v2717_v7  ;;  %v3127_v35 = vld [vmem:[#allocation44_spill] sm:$0xff]  ;;  %v3129_v16 = vld [vmem:[#allocation45_spill] sm:$0xff] }
 0x133   :  { %v728_v27 = vsub.f32 0.0, %v2335_v55  ;;  %v851_v44 = vadd.f32 1.0, %v835_v25  ;;  %v770_v23 = vmul.f32 %v3120_v1, %v690_v28  ;;  %v772_v21 = vmul.f32 %v3121_v60, %v692_v22  ;;  %v3131_v22 = vld [vmem:[#allocation42_spill] sm:$0xff] }
 0x134   :  { %v661_v39 = vmul.f32 %v645_v0, %v2664_v58  ;;  %v663_v51 = vmul.f32 %v647_v26, %v2677_v46  ;;  %v584_v32 = vadd.f32 -1.4531521, %v568_v43  ;;  %v614_v15 = vadd.f32 1.4214138, %v598_v8 }
 0x135   :  { %v865_v63 = vmul.f32 %v849_v24, %v3122_v40  ;;  %v867_v20 = vmul.f32 %v851_v44, %v3123_v17  ;;  %v786_v2 = vsub.f32 1.0, %v770_v23  ;;  %v788_v47 = vsub.f32 1.0, %v772_v21  ;;  %v3130_v24 = vld [vmem:[#allocation33_spill] sm:$0xff] }
 0x136   :  { %v677_v54 = vadd.f32 0.2548296, %v661_v39  ;;  %v679_v18 = vadd.f32 0.2548296, %v663_v51  ;;  %v600_v55 = vmul.f32 %v584_v32, %v2742_v45  ;;  %v630_v34 = vmul.f32 %v614_v15, %v2717_v7  ;;  %v3132_v15 = vld [vmem:[#allocation38_spill] sm:$0xff] }
 0x137   :  { %vm804_vm0 = vcmp.ge.f32.partialorder %v3124_v48, 0.0  ;;  %v885_v9 = vpack.c.bf16 %v867_v20, %v865_v63  ;;  %v818_v38 = vsub.f32 0.0, %v786_v2  ;;  %v820_v12 = vsub.f32 0.0, %v788_v47  ;;  %v3133_v20 = vld [vmem:[#allocation50_spill] sm:$0xff] }
 0x138   :  { %v693_v6 = vmul.f32 %v677_v54, %v2664_v58  ;;  %v695_v5 = vmul.f32 %v679_v18, %v2677_v46  ;;  %v616_v57 = vadd.f32 1.4214138, %v600_v55  ;;  %v646_v62 = vadd.f32 -0.28449672, %v630_v34  ;;  %v3134_v54 = vld [vmem:[#allocation34_spill] sm:$0xff]  ;;  %v3135_v55 = vld [vmem:[#allocation47_spill] sm:$0xff] }
 0x139   :  { %1577 = vpow2.f32 %v2290_v33  ;;  %v759_v19 = vmul.f32 1.442695, %v728_v27  ;;  %1035 = vmatmul.bf16.gmra.mxu2 %v885_v9  ;;  %v834_v14 = vsel %vm802_vm10, %v786_v2, %v818_v38  ;;  %v836_v30 = vsel %vm804_vm0, %v788_v47, %v820_v12 }
 0x13a   :  { %v850_v49 = vadd.f32 1.0, %v834_v14  ;;  %v852_v29 = vadd.f32 1.0, %v836_v30  ;;  %v773_v10 = vmul.f32 %v2349_v42, %v693_v6  ;;  %v775_v31 = vmul.f32 %v3125_v11, %v695_v5  ;;  %v3128_v42 = vld [vmem:[#allocation37_spill] sm:$0xff]  ;;  %v1514_v6 = vld [vmem:[%s2925_s4] ss:$0 sm:$0xff]  ;;  %v1115_v11 = vld [vmem:[%s2926_s5 + $0x8] sm:$0xff] }
 0x13b   :  { %v632_v58 = vmul.f32 %v616_v57, %v2742_v45  ;;  %v662_v46 = vmul.f32 %v646_v62, %v2717_v7  ;;  %1579 = vpow2.f32 %v759_v19  ;;  %vm805_vm11 = vcmp.ge.f32.partialorder %v3128_v42, 0.0  ;;  %v1114_v19 = vld [vmem:[%s2926_s5] sm:$0xff] }
 0x13c   :  { %v866_v13 = vmul.f32 %v850_v49, %v3126_v59  ;;  %v868_v33 = vmul.f32 %v852_v29, %v3127_v35  ;;  %v789_v61 = vsub.f32 1.0, %v773_v10  ;;  %v791_v41 = vsub.f32 1.0, %v775_v31 }
 0x13d   :  { %v648_v56 = vadd.f32 -0.28449672, %v632_v58  ;;  %v678_v3 = vadd.f32 0.2548296, %v662_v46  ;;  %vm807_vm12 = vcmp.ge.f32.partialorder %v3129_v16, 0.0  ;;  %v245_v28 = vmul.f32 0.5, %v3130_v24 }
 0x13e   :  { %v886_v50 = vpack.c.bf16 %v868_v33, %v866_v13  ;;  %v821_v37 = vsub.f32 0.0, %v789_v61  ;;  %v823_v36 = vsub.f32 0.0, %v791_v41  ;;  %v247_v0 = vmul.f32 0.5, %v3131_v22  ;;  %v1116_v13 = vld [vmem:[%s2926_s5 + $0x10] sm:$0xff]  ;;  %v1118_v16 = vld [vmem:[%s2926_s5 + $0x20] sm:$0xff] }
 0x13f   :  { %v1578_v53 = vpop.eup %1577  ;;  %v664_v4 = vmul.f32 %v648_v56, %v2742_v45  ;;  %v694_v52 = vmul.f32 %v678_v3, %v2717_v7  ;;  %vm806_vm14 = vcmp.ge.f32.partialorder %v3132_v15, 0.0  ;;  %vm808_vm13 = vcmp.ge.f32.partialorder %v3133_v20, 0.0  ;;  %v1117_v3 = vld [vmem:[%s2926_s5 + $0x18] sm:$0xff] }
 0x140   :  { %1064 = vmatmul.bf16.gmra.mxu3 %v886_v50  ;;  %v837_v25 = vsel %vm805_vm11, %v789_v61, %v821_v37  ;;  %v839_v26 = vsel %vm807_vm12, %v791_v41, %v823_v36  ;;  %v246_v18 = vmul.f32 0.5, %v3134_v54  ;;  %v248_v34 = vmul.f32 0.5, %v3135_v55 }
 0x141   :  { %v853_v43 = vadd.f32 1.0, %v837_v25  ;;  %v855_v8 = vadd.f32 1.0, %v839_v26  ;;  %v680_v27 = vadd.f32 0.2548296, %v664_v4  ;;  %v774_v44 = vmul.f32 %v1578_v53, %v694_v52  ;;  %v1580_v39 = vpop.eup %1579 }
 0x142   :  { %v1599_v15 = vmov 128.0  }
 0x143   :  { %v869_v1 = vmul.f32 %v853_v43, %v245_v28  ;;  %v871_v23 = vmul.f32 %v855_v8, %v247_v0  ;;  %v696_v60 = vmul.f32 %v680_v27, %v2742_v45  ;;  %v790_v21 = vsub.f32 1.0, %v774_v44  ;;  %v1119_v0 = vld [vmem:[%s2926_s5 + $0x28] sm:$0xff]  ;;  %v1120_v44 = vld [vmem:[%s2926_s5 + $0x30] sm:$0xff] }
 0x144   :  { %1581 = vrcp.f32 %v1599_v15 }
 0x145   :  { %v887_v51 = vpack.c.bf16 %v871_v23, %v869_v1  ;;  %v776_v32 = vmul.f32 %v1580_v39, %v696_v60  ;;  %v822_v7 = vsub.f32 0.0, %v790_v21 }
 0x147   :  { %v792_v40 = vsub.f32 1.0, %v776_v32  ;;  %v838_v63 = vsel %vm806_vm14, %v790_v21, %v822_v7 }
 0x148   :  { %v854_v2 = vadd.f32 1.0, %v838_v63 }
 0x149   :  { %1040 = vmatmul.bf16.gmra.mxu2 %v887_v51  ;;  %v824_v17 = vsub.f32 0.0, %v792_v40  ;;  %v1121_v51 = vld [vmem:[%s2926_s5 + $0x38] sm:$0xff] }
 0x14a   :  { %v870_v48 = vmul.f32 %v854_v2, %v246_v18 }
 0x14b   :  { %v840_v47 = vsel %vm808_vm13, %v792_v40, %v824_v17  ;;  %v1582_v40 = vpop.eup %1581 }
 0x14c   :  { %v856_v45 = vadd.f32 1.0, %v840_v47  ;;  %v1147_v63 = vmul.f32 128.0, %v1582_v40  ;;  %vm1151_vm15 = vweird.f32 %v1582_v40 }
 0x14e   :  { %v872_v9 = vmul.f32 %v856_v45, %v248_v34  ;;  %v1148_v17 = vsub.f32 1.0, %v1147_v63 }
 0x150   :  { %v888_v38 = vpack.c.bf16 %v872_v9, %v870_v48  ;;  %v1149_v20 = vmul.f32 %v1582_v40, %v1148_v17 }
 0x152   :  { %1069 = vmatmul.bf16.gmra.mxu3 %v888_v38  ;;  %v1150_v2 = vadd.f32 %v1582_v40, %v1149_v20 }
 0x154   :  { %v2812_v47 = vsel %vm1151_vm15, %v1582_v40, %v1150_v2 }
 0x194   :  { %v1026_v12 = vpop.f32.mrf.mxu2 }
 0x19c   :  { %v1028_v62 = vpop.f32.mrf.mxu2 }
 0x19d   :  { %v1055_v5 = vpop.f32.mrf.mxu3 }
 0x19e   :  { %v1056_v57 = vadd.f32 %v1055_v5, %v1026_v12 }
 0x1a0   :  { %v1106_v14 = vadd.f32 %v1514_v6, %v1056_v57 }
 0x1a2   :  { %v2788_v30 = vadd.f32 %v1114_v19, %v1106_v14 }
 0x1a4   :  { %1130 = vadd.xlane.f32.xlu0 %v2788_v30  ;;  %v1031_v10 = vpop.f32.mrf.mxu2 }
 0x1a5   :  { %v1057_v49 = vpop.f32.mrf.mxu3 }
 0x1a6   :  { %v1058_v29 = vadd.f32 %v1057_v49, %v1028_v62 }
 0x1a8   :  { %v1107_v31 = vadd.f32 %v1514_v6, %v1058_v29 }
 0x1aa   :  { %v1123_v58 = vadd.f32 %v1115_v11, %v1107_v31 }
 0x1ac   :  { %1132 = vadd.xlane.f32.xlu0 %v1123_v58  ;;  %v1033_v35 = vpop.f32.mrf.mxu2 }
 0x1b0   :  { %v1060_v46 = vpop.f32.mrf.mxu3 }
 0x1b1   :  { %v1061_v59 = vadd.f32 %v1060_v46, %v1031_v10 }
 0x1b3   :  { %v1108_v33 = vadd.f32 %v1514_v6, %v1061_v59 }
 0x1b5   :  { %v1124_v61 = vadd.f32 %v1116_v13, %v1108_v33 }
 0x1b7   :  { %1134 = vadd.xlane.f32.xlu1 %v1124_v61 }
 0x1b8   :  { %v1062_v41 = vpop.f32.mrf.mxu3 }
 0x1b9   :  { %v1063_v56 = vadd.f32 %v1062_v41, %v1033_v35 }
 0x1bb   :  { %v1109_v50 = vadd.f32 %v1514_v6, %v1063_v56 }
 0x1bc   :  { %v1036_v37 = vpop.f32.mrf.mxu2 }
 0x1bd   :  { %v1125_v36 = vadd.f32 %v1117_v3, %v1109_v50 }
 0x1bf   :  { %1136 = vadd.xlane.f32.xlu1 %v1125_v36 }
 0x1c3   :  { %v1065_v53 = vpop.f32.mrf.mxu3 }
 0x1c4   :  { %v1066_v42 = vadd.f32 %v1065_v53, %v1036_v37  ;;  %v1038_v52 = vpop.f32.mrf.mxu2 }
 0x1c6   :  { %v1110_v4 = vadd.f32 %v1514_v6, %v1066_v42 }
 0x1c8   :  { %v1126_v24 = vadd.f32 %v1118_v16, %v1110_v4 }
 0x1ca   :  { %1138 = vadd.xlane.f32.xlu2 %v1126_v24 }
 0x1cb   :  { %v1067_v28 = vpop.f32.mrf.mxu3 }
 0x1cc   :  { %v1068_v22 = vadd.f32 %v1067_v28, %v1038_v52  ;;  %v1041_v43 = vpop.f32.mrf.mxu2 }
 0x1ce   :  { %v1111_v25 = vadd.f32 %v1514_v6, %v1068_v22 }
 0x1d0   :  { %v1127_v26 = vadd.f32 %v1119_v0, %v1111_v25 }
 0x1d2   :  { %1140 = vadd.xlane.f32.xlu2 %v1127_v26 }
 0x1d4   :  { %v1043_v60 = vpop.f32.mrf.mxu2 }
 0x1d5   :  { %v1070_v8 = vpop.f32.mrf.mxu3 }
 0x1d6   :  { %v1071_v27 = vadd.f32 %v1070_v8, %v1041_v43 }
 0x1d8   :  { %v1112_v1 = vadd.f32 %v1514_v6, %v1071_v27 }
 0x1da   :  { %v1128_v23 = vadd.f32 %v1120_v44, %v1112_v1  ;;  %v2861_v1 = vld [vmem:[%s2927_s6] ss:$0 sm:$0xff] }
 0x1dc   :  { %1142 = vadd.xlane.f32.xlu0 %v1128_v23 }
 0x1dd   :  { %v1072_v21 = vpop.f32.mrf.mxu3 }
 0x1de   :  { %v1073_v39 = vadd.f32 %v1072_v21, %v1043_v60  ;;  %v2866_v21 = vld [vmem:[%s2928_s7] ss:$0 sm:$0xff] }
 0x1e0   :  { %v1113_v32 = vadd.f32 %v1514_v6, %v1073_v39 }
 0x1e2   :  { %v1129_v7 = vadd.f32 %v1121_v51, %v1113_v32 }
 0x1e4   :  { %1144 = vadd.xlane.f32.xlu1 %v1129_v7 }
 0x217   :  { %v1131_v54 = vpop.xlane.xlu0 %1130 }
 0x218   :  { %v1153_v18 = vmul.f32 %v2812_v47, %v1131_v54 }
 0x21a   :  { %v2816_v55 = vsub.f32 %v2788_v30, %v1153_v18 }
 0x21c   :  { %v1169_v34 = vmul.f32 %v2816_v55, %v2816_v55 }
 0x21e   :  { %1177 = vadd.xlane.f32.xlu2 %v1169_v34 }
 0x21f   :  { %v1133_v45 = vpop.xlane.xlu0 %1132 }
 0x220   :  { %v1154_v48 = vmul.f32 %v2812_v47, %v1133_v45 }
 0x222   :  { %v2821_v9 = vsub.f32 %v1123_v58, %v1154_v48 }
 0x224   :  { %v1170_v38 = vmul.f32 %v2821_v9, %v2821_v9 }
 0x226   :  { %1179 = vadd.xlane.f32.xlu0 %v1170_v38 }
 0x22a   :  { %v1135_v12 = vpop.xlane.xlu1 %1134 }
 0x22b   :  { %v1155_v6 = vmul.f32 %v2812_v47, %v1135_v12 }
 0x22d   :  { %v2826_v5 = vsub.f32 %v1124_v61, %v1155_v6 }
 0x22f   :  { %v1171_v57 = vmul.f32 %v2826_v5, %v2826_v5 }
 0x231   :  { %1181 = vadd.xlane.f32.xlu1 %v1171_v57 }
 0x232   :  { %v1137_v62 = vpop.xlane.xlu1 %1136 }
 0x233   :  { %v1156_v19 = vmul.f32 %v2812_v47, %v1137_v62 }
 0x235   :  { %v2831_v14 = vsub.f32 %v1125_v36, %v1156_v19 }
 0x237   :  { %v1172_v30 = vmul.f32 %v2831_v14, %v2831_v14 }
 0x239   :  { %1183 = vadd.xlane.f32.xlu2 %v1172_v30 }
 0x23d   :  { %v1139_v49 = vpop.xlane.xlu2 %1138 }
 0x23e   :  { %v1157_v29 = vmul.f32 %v2812_v47, %v1139_v49 }
 0x240   :  { %v2836_v10 = vsub.f32 %v1126_v24, %v1157_v29 }
 0x242   :  { %v1173_v11 = vmul.f32 %v2836_v10, %v2836_v10 }
 0x244   :  { %1185 = vadd.xlane.f32.xlu0 %v1173_v11 }
 0x245   :  { %v1141_v31 = vpop.xlane.xlu2 %1140 }
 0x246   :  { %v1158_v58 = vmul.f32 %v2812_v47, %v1141_v31 }
 0x248   :  { %v2841_v46 = vsub.f32 %v1127_v26, %v1158_v58 }
 0x24a   :  { %v1174_v59 = vmul.f32 %v2841_v46, %v2841_v46 }
 0x24c   :  { %1187 = vadd.xlane.f32.xlu1 %v1174_v59 }
 0x24f   :  { %v1143_v13 = vpop.xlane.xlu0 %1142 }
 0x250   :  { %v1159_v35 = vmul.f32 %v2812_v47, %v1143_v13 }
 0x252   :  { %v2846_v33 = vsub.f32 %v1128_v23, %v1159_v35 }
 0x254   :  { %v1175_v61 = vmul.f32 %v2846_v33, %v2846_v33 }
 0x256   :  { %1189 = vadd.xlane.f32.xlu2 %v1175_v61 }
 0x257   :  { %v1145_v41 = vpop.xlane.xlu1 %1144 }
 0x258   :  { %v1160_v56 = vmul.f32 %v2812_v47, %v1145_v41 }
 0x25a   :  { %v2851_v3 = vsub.f32 %v1129_v7, %v1160_v56 }
 0x25c   :  { %v1176_v50 = vmul.f32 %v2851_v3, %v2851_v3 }
 0x25e   :  { %1191 = vadd.xlane.f32.xlu0 %v1176_v50 }
 0x291   :  { %v1178_v37 = vpop.xlane.xlu2 %1177 }
 0x292   :  { %v1193_v36 = vmul.f32 %v1178_v37, %v2812_v47 }
 0x294   :  { %v1201_v53 = vadd.f32 1e-12, %v1193_v36 }
 0x296   :  { %1583 = vrsqrt.f32 %v1201_v53  ;;  %vm1215_vm2 = vweird.f32 %v1201_v53 }
 0x299   :  { %v1180_v42 = vpop.xlane.xlu0 %1179 }
 0x29a   :  { %v1194_v16 = vmul.f32 %v1180_v42, %v2812_v47 }
 0x29c   :  { %v1584_v4 = vpop.eup %1583  ;;  %v1202_v52 = vadd.f32 1e-12, %v1194_v16 }
 0x29d   :  { %v1210_v24 = vmul.f32 %v1584_v4, %v1201_v53  ;;  %vm1216_vm1 = vweird.f32 %v1584_v4 }
 0x29e   :  { %1585 = vrsqrt.f32 %v1202_v52  ;;  %vm1217_vm3 = vmor %vm1215_vm2, %vm1216_vm1  ;;  %vm1225_vm5 = vweird.f32 %v1202_v52 }
 0x29f   :  { %v1211_v28 = vmul.f32 %v1584_v4, %v1210_v24 }
 0x2a1   :  { %v1212_v22 = vmul.f32 0.5, %v1211_v28 }
 0x2a3   :  { %v1213_v26 = vsub.f32 1.5, %v1212_v22 }
 0x2a4   :  { %v1182_v0 = vpop.xlane.xlu1 %1181  ;;  %v1586_v43 = vpop.eup %1585 }
 0x2a5   :  { %v1195_v25 = vmul.f32 %v1182_v0, %v2812_v47  ;;  %v1214_v27 = vmul.f32 %v1584_v4, %v1213_v26  ;;  %v1220_v44 = vmul.f32 %v1586_v43, %v1202_v52  ;;  %vm1226_vm4 = vweird.f32 %v1586_v43 }
 0x2a6   :  { %vm1227_vm6 = vmor %vm1225_vm5, %vm1226_vm4 }
 0x2a7   :  { %v1203_v8 = vadd.f32 1e-12, %v1195_v25  ;;  %v1218_v23 = vsel %vm1217_vm3, %v1584_v4, %v1214_v27  ;;  %v1221_v60 = vmul.f32 %v1586_v43, %v1220_v44 }
 0x2a8   :  { %v1289_v39 = vmul.f32 %v1218_v23, %v2816_v55 }
 0x2a9   :  { %1587 = vrsqrt.f32 %v1203_v8  ;;  %v1222_v51 = vmul.f32 0.5, %v1221_v60  ;;  %vm1235_vm8 = vweird.f32 %v1203_v8 }
 0x2aa   :  { %v1301_v7 = vmul.f32 %v2861_v1, %v1289_v39 }
 0x2ab   :  { %v1223_v40 = vsub.f32 1.5, %v1222_v51 }
 0x2ac   :  { %v1184_v32 = vpop.xlane.xlu2 %1183  ;;  %v1313_v17 = vadd.f32 %v2866_v21, %v1301_v7 }
 0x2ad   :  { %v1196_v15 = vmul.f32 %v1184_v32, %v2812_v47  ;;  %v1224_v2 = vmul.f32 %v1586_v43, %v1223_v40 }
 0x2ae   :  { %1321 = vst [vmem:[%s2929_s8] sm:$0xff] %v1313_v17 }
 0x2af   :  { %v1588_v63 = vpop.eup %1587  ;;  %v1204_v20 = vadd.f32 1e-12, %v1196_v15  ;;  %v1228_v18 = vsel %vm1227_vm6, %v1586_v43, %v1224_v2 }
 0x2b0   :  { %v1230_v54 = vmul.f32 %v1588_v63, %v1203_v8  ;;  %v1290_v34 = vmul.f32 %v1228_v18, %v2821_v9  ;;  %vm1236_vm7 = vweird.f32 %v1588_v63 }
 0x2b1   :  { %1589 = vrsqrt.f32 %v1204_v20  ;;  %vm1237_vm9 = vmor %vm1235_vm8, %vm1236_vm7  ;;  %vm1245_vm0 = vweird.f32 %v1204_v20 }
 0x2b2   :  { %v1231_v55 = vmul.f32 %v1588_v63, %v1230_v54  ;;  %v1302_v48 = vmul.f32 %v2861_v1, %v1290_v34 }
 0x2b4   :  { %v1232_v45 = vmul.f32 0.5, %v1231_v55  ;;  %v1314_v57 = vadd.f32 %v2866_v21, %v1302_v48 }
 0x2b6   :  { %v1233_v38 = vsub.f32 1.5, %v1232_v45  ;;  %1322 = vst [vmem:[%s2929_s8 + $0x8] sm:$0xff] %v1314_v57 }
 0x2b7   :  { %v1186_v12 = vpop.xlane.xlu0 %1185  ;;  %v1590_v6 = vpop.eup %1589 }
 0x2b8   :  { %v1197_v62 = vmul.f32 %v1186_v12, %v2812_v47  ;;  %v1234_v19 = vmul.f32 %v1588_v63, %v1233_v38  ;;  %v1240_v30 = vmul.f32 %v1590_v6, %v1204_v20  ;;  %vm1246_vm10 = vweird.f32 %v1590_v6 }
 0x2b9   :  { %vm1247_vm11 = vmor %vm1245_vm0, %vm1246_vm10 }
 0x2ba   :  { %v1205_v9 = vadd.f32 1e-12, %v1197_v62  ;;  %v1238_v49 = vsel %vm1237_vm9, %v1588_v63, %v1234_v19  ;;  %v1241_v29 = vmul.f32 %v1590_v6, %v1240_v30 }
 0x2bb   :  { %v1291_v11 = vmul.f32 %v1238_v49, %v2826_v5 }
 0x2bc   :  { %1591 = vrsqrt.f32 %v1205_v9  ;;  %v1242_v31 = vmul.f32 0.5, %v1241_v29  ;;  %vm1255_vm14 = vweird.f32 %v1205_v9 }
 0x2bd   :  { %v1303_v58 = vmul.f32 %v2861_v1, %v1291_v11 }
 0x2be   :  { %v1243_v59 = vsub.f32 1.5, %v1242_v31 }
 0x2bf   :  { %v1188_v13 = vpop.xlane.xlu1 %1187  ;;  %v1315_v35 = vadd.f32 %v2866_v21, %v1303_v58 }
 0x2c0   :  { %v1198_v61 = vmul.f32 %v1188_v13, %v2812_v47  ;;  %v1244_v41 = vmul.f32 %v1590_v6, %v1243_v59 }
 0x2c1   :  { %1323 = vst [vmem:[%s2929_s8 + $0x10] sm:$0xff] %v1315_v35 }
 0x2c2   :  { %v1592_v56 = vpop.eup %1591  ;;  %v1206_v5 = vadd.f32 1e-12, %v1198_v61  ;;  %v1248_v50 = vsel %vm1247_vm11, %v1590_v6, %v1244_v41 }
 0x2c3   :  { %v1250_v37 = vmul.f32 %v1592_v56, %v1205_v9  ;;  %v1292_v36 = vmul.f32 %v1248_v50, %v2831_v14  ;;  %vm1256_vm12 = vweird.f32 %v1592_v56 }
 0x2c4   :  { %1593 = vrsqrt.f32 %v1206_v5  ;;  %vm1257_vm13 = vmor %vm1255_vm14, %vm1256_vm12  ;;  %vm1265_vm1 = vweird.f32 %v1206_v5 }
 0x2c5   :  { %v1251_v53 = vmul.f32 %v1592_v56, %v1250_v37  ;;  %v1304_v42 = vmul.f32 %v2861_v1, %v1292_v36 }
 0x2c7   :  { %v1252_v16 = vmul.f32 0.5, %v1251_v53  ;;  %v1316_v4 = vadd.f32 %v2866_v21, %v1304_v42 }
 0x2c9   :  { %v1253_v52 = vsub.f32 1.5, %v1252_v16  ;;  %v1190_v24 = vpop.xlane.xlu2 %1189  ;;  %1324 = vst [vmem:[%s2929_s8 + $0x18] sm:$0xff] %v1316_v4 }
 0x2ca   :  { %v1594_v28 = vpop.eup %1593  ;;  %v1199_v22 = vmul.f32 %v1190_v24, %v2812_v47 }
 0x2cb   :  { %v1254_v0 = vmul.f32 %v1592_v56, %v1253_v52  ;;  %v1260_v14 = vmul.f32 %v1594_v28, %v1206_v5  ;;  %vm1266_vm15 = vweird.f32 %v1594_v28 }
 0x2cc   :  { %v1207_v25 = vadd.f32 1e-12, %v1199_v22  ;;  %vm1267_vm2 = vmor %vm1265_vm1, %vm1266_vm15 }
 0x2cd   :  { %v1258_v26 = vsel %vm1257_vm13, %v1592_v56, %v1254_v0  ;;  %v1261_v43 = vmul.f32 %v1594_v28, %v1260_v14 }
 0x2ce   :  { %v1293_v8 = vmul.f32 %v1258_v26, %v2836_v10  ;;  %1595 = vrsqrt.f32 %v1207_v25  ;;  %vm1275_vm4 = vweird.f32 %v1207_v25 }
 0x2cf   :  { %v1262_v27 = vmul.f32 0.5, %v1261_v43 }
 0x2d0   :  { %v1305_v44 = vmul.f32 %v2861_v1, %v1293_v8 }
 0x2d1   :  { %v1263_v23 = vsub.f32 1.5, %v1262_v27  ;;  %v1192_v60 = vpop.xlane.xlu0 %1191 }
 0x2d2   :  { %v1317_v39 = vadd.f32 %v2866_v21, %v1305_v44  ;;  %v1200_v51 = vmul.f32 %v1192_v60, %v2812_v47 }
 0x2d3   :  { %v1264_v32 = vmul.f32 %v1594_v28, %v1263_v23 }
 0x2d4   :  { %v1596_v7 = vpop.eup %1595  ;;  %1325 = vst [vmem:[%s2929_s8 + $0x20] sm:$0xff] %v1317_v39  ;;  %v1208_v10 = vadd.f32 1e-12, %v1200_v51 }
 0x2d5   :  { %v1268_v15 = vsel %vm1267_vm2, %v1594_v28, %v1264_v32  ;;  %v1270_v40 = vmul.f32 %v1596_v7, %v1207_v25  ;;  %vm1276_vm3 = vweird.f32 %v1596_v7 }
 0x2d6   :  { %v1294_v63 = vmul.f32 %v1268_v15, %v2841_v46  ;;  %1597 = vrsqrt.f32 %v1208_v10  ;;  %vm1277_vm5 = vmor %vm1275_vm4, %vm1276_vm3  ;;  %vm1285_vm7 = vweird.f32 %v1208_v10 }
 0x2d7   :  { %v1271_v17 = vmul.f32 %v1596_v7, %v1270_v40 }
 0x2d8   :  { %v1306_v20 = vmul.f32 %v2861_v1, %v1294_v63 }
 0x2d9   :  { %v1272_v2 = vmul.f32 0.5, %v1271_v17 }
 0x2da   :  { %v1318_v47 = vadd.f32 %v2866_v21, %v1306_v20 }
 0x2db   :  { %v1273_v54 = vsub.f32 1.5, %v1272_v2 }
 0x2dc   :  { %v1598_v18 = vpop.eup %1597  ;;  %1326 = vst [vmem:[%s2929_s8 + $0x28] sm:$0xff] %v1318_v47 }
 0x2dd   :  { %v1274_v55 = vmul.f32 %v1596_v7, %v1273_v54  ;;  %v1280_v34 = vmul.f32 %v1598_v18, %v1208_v10  ;;  %vm1286_vm6 = vweird.f32 %v1598_v18 }
 0x2de   :  { %vm1287_vm8 = vmor %vm1285_vm7, %vm1286_vm6 }
 0x2df   :  { %v1278_v45 = vsel %vm1277_vm5, %v1596_v7, %v1274_v55  ;;  %v1281_v46 = vmul.f32 %v1598_v18, %v1280_v34 }
 0x2e0   :  { %v1295_v48 = vmul.f32 %v1278_v45, %v2846_v33 }
 0x2e1   :  { %v1282_v38 = vmul.f32 0.5, %v1281_v46 }
 0x2e2   :  { %v1307_v12 = vmul.f32 %v2861_v1, %v1295_v48 }
 0x2e3   :  { %v1283_v6 = vsub.f32 1.5, %v1282_v38 }
 0x2e4   :  { %v1319_v57 = vadd.f32 %v2866_v21, %v1307_v12 }
 0x2e5   :  { %v1284_v62 = vmul.f32 %v1598_v18, %v1283_v6 }
 0x2e6   :  { %1327 = vst [vmem:[%s2929_s8 + $0x30] sm:$0xff] %v1319_v57 }
 0x2e7   :  { %v1288_v19 = vsel %vm1287_vm8, %v1598_v18, %v1284_v62 }
 0x2e8   :  { %v1296_v30 = vmul.f32 %v1288_v19, %v2851_v3 }
 0x2ea   :  { %v1308_v9 = vmul.f32 %v2861_v1, %v1296_v30 }
 0x2ec   :  { %v1320_v33 = vadd.f32 %v2866_v21, %v1308_v9 }
 0x2ee   :  { %1328 = vst [vmem:[%s2929_s8 + $0x38] sm:$0xff] %v1320_v33 }

// kernel: bert_encoder.15
= control target key start
LH: loop header
LB: loop body
LE: loop exit
PB: predicated region body
PF: predicated region fallthrough
CT: control target
= control target key end

     0   :  { %s2943_s0 = inlined_call_operand.vmem [shape: bf16[64,128], index: 0, kind: input, shape index: {}]   ;;  %s2944_s1 = inlined_call_operand.vmem [shape: bf16[128,256], index: 1, kind: input, shape index: {}]   ;;  %s2945_s2 = inlined_call_operand.vmem [shape: f32[1,256], index: 2, kind: input, shape index: {}]   ;;  %s2946_s3 = inlined_call_operand.vmem [shape: bf16[256,128], index: 3, kind: input, shape index: {}]   ;;  %s2947_s4 = inlined_call_operand.vmem [shape: f32[1,128], index: 4, kind: input, shape index: {}]   ;;  %s2948_s5 = inlined_call_operand.vmem [shape: f32[64,128], index: 5, kind: input, shape index: {}]   ;;  %s2949_s6 = inlined_call_operand.vmem [shape: f32[1,128], index: 6, kind: input, shape index: {}]   ;;  %s2950_s7 = inlined_call_operand.vmem [shape: f32[1,128], index: 7, kind: input, shape index: {}]   ;;  %s2951_s8 = inlined_call_operand.hbm [shape: f32[64,128], index: 8, kind: output, shape index: {}]  }
   0x1   :  { %v1422_v0 = vld [vmem:[%s2944_s1 + $0x70] sm:$0xf]  ;;  %v1511_v1 = vld [vmem:[%s2944_s1 + $0x74] sm:$0xf0]  ;;  %v1510_v2 = vld [vmem:[%s2944_s1 + $0x74] sm:$0xf] }
   0x2   :  { %v1423_v3 = vor.u32 %v1511_v1, %v1422_v0  ;;  %v1424_v4 = vld [vmem:[%s2944_s1 + $0x78] sm:$0xf0]  ;;  %v1414_v5 = vld [vmem:[%s2944_s1 + $0x60] sm:$0xf]  ;;  %v1509_v6 = vld [vmem:[%s2944_s1 + $0x64] sm:$0xf0] }
   0x3   :  { %v1427_v7 = vor.u32 %v1510_v2, %v1424_v4  ;;  %v1508_v8 = vld [vmem:[%s2944_s1 + $0x64] sm:$0xf]  ;;  %v1416_v9 = vld [vmem:[%s2944_s1 + $0x68] sm:$0xf0]  ;;  %v1415_v10 = vor.u32 %v1509_v6, %v1414_v5  ;;  %v1406_v12 = vld [vmem:[%s2944_s1 + $0x50] sm:$0xf] }
   0x4   :  { %176 = vmatpush.bf16.msra.mxu0 %v1423_v3  ;;  %v1419_v11 = vor.u32 %v1508_v8, %v1416_v9  ;;  %v1507_v13 = vld [vmem:[%s2944_s1 + $0x54] sm:$0xf0]  ;;  %v1506_v14 = vld [vmem:[%s2944_s1 + $0x54] sm:$0xf]  ;;  %v1408_v15 = vld [vmem:[%s2944_s1 + $0x58] sm:$0xf0] }
   0x5   :  { %205 = vmatpush.bf16.msra.mxu1 %v1427_v7  ;;  %v1407_v16 = vor.u32 %v1507_v13, %v1406_v12  ;;  %v1411_v17 = vor.u32 %v1506_v14, %v1408_v15  ;;  %v1398_v18 = vld [vmem:[%s2944_s1 + $0x40] sm:$0xf]  ;;  %v1505_v19 = vld [vmem:[%s2944_s1 + $0x44] sm:$0xf0]  ;;  %v1504_v20 = vld [vmem:[%s2944_s1 + $0x44] sm:$0xf] }
   0x6   :  { %v1400_v21 = vld [vmem:[%s2944_s1 + $0x48] sm:$0xf0]  ;;  %v1399_v22 = vor.u32 %v1505_v19, %v1398_v18  ;;  %v1390_v23 = vld [vmem:[%s2944_s1 + $0x30] sm:$0xf]  ;;  %v1503_v25 = vld [vmem:[%s2944_s1 + $0x34] sm:$0xf0] }
   0x7   :  { %v1403_v24 = vor.u32 %v1504_v20, %v1400_v21 }
   0x8   :  { %177 = vmatpush.bf16.msra.mxu0 %v1415_v10 }
   0x9   :  { %206 = vmatpush.bf16.msra.mxu1 %v1419_v11 }
   0xc   :  { %178 = vmatpush.bf16.msra.mxu0 %v1407_v16 }
   0xd   :  { %207 = vmatpush.bf16.msra.mxu1 %v1411_v17 }
   0xe   :  { %13 = vsyncpa [#allocation4], 0  ;;  %v1502_v26 = vld [vmem:[%s2944_s1 + $0x34] sm:$0xf]  ;;  %v1392_v27 = vld [vmem:[%s2944_s1 + $0x38] sm:$0xf0]  ;;  %v1391_v28 = vor.u32 %v1503_v25, %v1390_v23 }
   0xf   :  { %v1395_v29 = vor.u32 %v1502_v26, %v1392_v27  ;;  %v1382_v30 = vld [vmem:[%s2944_s1 + $0x20] sm:$0xf]  ;;  %v1501_v31 = vld [vmem:[%s2944_s1 + $0x24] sm:$0xf0]  ;;  %v1500_v32 = vld [vmem:[%s2944_s1 + $0x24] sm:$0xf] }
  0x10   :  { %179 = vmatpush.bf16.msra.mxu0 %v1399_v22  ;;  %v1384_v33 = vld [vmem:[%s2944_s1 + $0x28] sm:$0xf0]  ;;  %v1383_v34 = vor.u32 %v1501_v31, %v1382_v30  ;;  %v1374_v36 = vld [vmem:[%s2944_s1 + $0x10] sm:$0xf]  ;;  %v1499_v37 = vld [vmem:[%s2944_s1 + $0x14] sm:$0xf0] }
  0x11   :  { %208 = vmatpush.bf16.msra.mxu1 %v1403_v24  ;;  %v1387_v35 = vor.u32 %v1500_v32, %v1384_v33  ;;  %v1498_v38 = vld [vmem:[%s2944_s1 + $0x14] sm:$0xf]  ;;  %v1376_v39 = vld [vmem:[%s2944_s1 + $0x18] sm:$0xf0]  ;;  %v1375_v40 = vor.u32 %v1499_v37, %v1374_v36  ;;  %v1366_v42 = vld [vmem:[%s2944_s1] sm:$0xf] }
  0x12   :  { %v1379_v41 = vor.u32 %v1498_v38, %v1376_v39  ;;  %v1497_v43 = vld [vmem:[%s2944_s1 + $0x4] sm:$0xf0]  ;;  %v1496_v44 = vld [vmem:[%s2944_s1 + $0x4] sm:$0xf]  ;;  %v1368_v45 = vld [vmem:[%s2944_s1 + $0x8] sm:$0xf0] }
  0x13   :  { %v1367_v46 = vor.u32 %v1497_v43, %v1366_v42  ;;  %v1371_v47 = vor.u32 %v1496_v44, %v1368_v45  ;;  %v1492_v48 = vld [vmem:[%s2943_s0] sm:$0xff]  ;;  %v1493_v49 = vld [vmem:[%s2943_s0 + $0x8] sm:$0xff]  ;;  %v1494_v50 = vld [vmem:[%s2943_s0 + $0x10] sm:$0xff]  ;;  %s1336_s13 = sshll.u32 %s2951_s8, 4  ;;  %s1645_s14 = smov 128   ;;  %s1337_s13 = int_to_ptr.hbm [resolvable:$true] %s1336_s13 }
  0x14   :  { %180 = vmatpush.bf16.msra.mxu0 %v1391_v28  ;;  %v1495_v51 = vld [vmem:[%s2943_s0 + $0x18] sm:$0xff]  ;;  %v66_v52 = vld [vmem:[%s2945_s2] sm:$0x3]  ;;  %v1518_v22 = vld [vmem:[%s2946_s3 + $0x30] sm:$0xff]  ;;  %s1646_s15 = smov 8  }
  0x15   :  { %209 = vmatpush.bf16.msra.mxu1 %v1395_v29  ;;  %v1803_v53 = vperm.slane %v66_v52, 0  ;;  %v1805_v55 = vperm.slane %v66_v52, 1  ;;  %v1519_v8 = vld [vmem:[%s2946_s3 + $0x38] sm:$0xff]  ;;  %v1526_v23 = vld [vmem:[%s2946_s3 + $0x70] sm:$0xff]  ;;  %v1525_v38 = vld [vmem:[%s2946_s3 + $0x68] sm:$0xff] }
  0x16   :  { %v1527_v9 = vld [vmem:[%s2946_s3 + $0x78] sm:$0xff]  ;;  %1018 = vmatpush.bf16.msra.mxu2 %v1519_v8 }
  0x17   :  { %1047 = vmatpush.bf16.msra.mxu3 %v1527_v9 }
  0x18   :  { %181 = vmatpush.bf16.msra.mxu0 %v1383_v34 }
  0x19   :  { %210 = vmatpush.bf16.msra.mxu1 %v1387_v35  ;;  %v1517_v35 = vld [vmem:[%s2946_s3 + $0x28] sm:$0xff] }
  0x1a   :  { %1019 = vmatpush.bf16.msra.mxu2 %v1518_v22 }
  0x1b   :  { %1048 = vmatpush.bf16.msra.mxu3 %v1526_v23 }
  0x1c   :  { %182 = vmatpush.bf16.msra.mxu0 %v1375_v40 }
  0x1d   :  { %211 = vmatpush.bf16.msra.mxu1 %v1379_v41 }
  0x1e   :  { %1020 = vmatpush.bf16.msra.mxu2 %v1517_v35 }
  0x1f   :  { %1049 = vmatpush.bf16.msra.mxu3 %v1525_v38 }
  0x20   :  { %183 = vmatpush.bf16.msra.mxu0 %v1367_v46 }
  0x21   :  { %212 = vmatpush.bf16.msra.mxu1 %v1371_v47 }
  0x23   :  { %184 = vmatmul.bf16.vlgmr.msra.gmra.mxu0 %v1492_v48 }
  0x24   :  { %213 = vmatmul.bf16.vlgmr.msra.gmra.mxu1 %v1492_v48 }
  0x33   :  { %189 = vmatmul.bf16.gmra.mxu0 %v1493_v49 }
  0x34   :  { %218 = vmatmul.bf16.gmra.mxu1 %v1493_v49 }
  0x43   :  { %194 = vmatmul.bf16.gmra.mxu0 %v1494_v50 }
  0x44   :  { %223 = vmatmul.bf16.gmra.mxu1 %v1494_v50 }
  0x53   :  { %199 = vmatmul.bf16.gmra.mxu0 %v1495_v51 }
  0x54   :  { %228 = vmatmul.bf16.gmra.mxu1 %v1495_v51 }
  0xa0   :  { %v185_v54 = vpop.f32.mrf.mxu0 }
  0xa1   :  { %v214_v56 = vpop.f32.mrf.mxu1  ;;  %v186_v57 = vadd.f32 %v185_v54, %v1803_v53 }
  0xa2   :  { %v215_v58 = vadd.f32 %v214_v56, %v1805_v55  ;;  %v1516_v56 = vld [vmem:[%s2946_s3 + $0x20] sm:$0xff] }
  0xa3   :  { %v1809_v59 = vmul.f32 0.70710677, %v186_v57  ;;  %v1884_v39 = vmul.f32 0.5, %v186_v57  ;;  %v1524_v57 = vld [vmem:[%s2946_s3 + $0x60] sm:$0xff]  ;;  %1021 = vmatpush.bf16.msra.mxu2 %v1516_v56 }
  0xa4   :  { %v1811_v61 = vmul.f32 0.70710677, %v215_v58  ;;  %v1895_v47 = vmul.f32 0.5, %v215_v58  ;;  %1050 = vmatpush.bf16.msra.mxu3 %v1524_v57 }
  0xa5   :  { %v266_v63 = vand.u32 2147483647, %v1809_v59  ;;  %2988 = vst [vmem:[#allocation11_spill] sm:$0xff] %v1884_v39 }
  0xa6   :  { %2983 = vst [vmem:[#allocation6_spill] sm:$0xff] %v1811_v61  ;;  %v267_v0 = vand.u32 2147483647, %v1811_v61 }
  0xa7   :  { %v282_v2 = vmul.f32 0.3275911, %v266_v63  ;;  %v698_v19 = vmul.f32 %v266_v63, %v266_v63  ;;  %2990 = vst [vmem:[#allocation13_spill] sm:$0xff] %v1895_v47 }
  0xa8   :  { %v187_v60 = vpop.f32.mrf.mxu0  ;;  %v283_v5 = vmul.f32 0.3275911, %v267_v0  ;;  %v699_v20 = vmul.f32 %v267_v0, %v267_v0 }
  0xa9   :  { %v216_v62 = vpop.f32.mrf.mxu1  ;;  %v1816_v1 = vadd.f32 %v187_v60, %v1803_v53  ;;  %v1824_v7 = vadd.f32 1.0, %v282_v2  ;;  %v714_v29 = vsub.f32 0.0, %v698_v19  ;;  %v1523_v19 = vld [vmem:[%s2946_s3 + $0x58] sm:$0xff] }
  0xaa   :  { %v1819_v3 = vadd.f32 %v216_v62, %v1805_v55  ;;  %v1835_v12 = vadd.f32 1.0, %v283_v5  ;;  %v715_v33 = vsub.f32 0.0, %v699_v20  ;;  %1051 = vmatpush.bf16.msra.mxu3 %v1523_v19 }
  0xab   :  { %v1822_v6 = vmul.f32 0.70710677, %v1816_v1  ;;  %1535 = vrcp.f32 %v1824_v7  ;;  %v325_v43 = vand.u32 2147483648, %v1824_v7  ;;  %v730_v44 = vmul.f32 1.442695, %v714_v29 }
  0xac   :  { %v1833_v10 = vmul.f32 0.70710677, %v1819_v3  ;;  %1537 = vrcp.f32 %v1835_v12  ;;  %v340_v48 = vand.u32 2147483648, %v1835_v12  ;;  %v732_v49 = vmul.f32 1.442695, %v715_v33 }
  0xad   :  { %2984 = vst [vmem:[#allocation7_spill] sm:$0xff] %v1822_v6  ;;  %v268_v13 = vand.u32 2147483647, %v1822_v6  ;;  %v1915_v0 = vor.u32 1.1754944e-38, %v325_v43  ;;  %vm319_vm0 = vweird.f32 %v1824_v7  ;;  %vm334_vm10 = vweird.f32 %v1835_v12 }
  0xae   :  { %2985 = vst [vmem:[#allocation8_spill] sm:$0xff] %v1833_v10  ;;  %v269_v15 = vand.u32 2147483647, %v1833_v10  ;;  %v1923_v8 = vor.u32 1.1754944e-38, %v340_v48 }
  0xaf   :  { %v284_v17 = vmul.f32 0.3275911, %v268_v13  ;;  %v700_v52 = vmul.f32 %v268_v13, %v268_v13 }
  0xb0   :  { %v190_v4 = vpop.f32.mrf.mxu0  ;;  %v285_v24 = vmul.f32 0.3275911, %v269_v15  ;;  %v701_v60 = vmul.f32 %v269_v15, %v269_v15 }
  0xb1   :  { %v219_v11 = vpop.f32.mrf.mxu1  ;;  %v1839_v14 = vadd.f32 %v190_v4, %v1803_v53  ;;  %v1856_v25 = vpop.eup %1535  ;;  %v1858_v26 = vadd.f32 1.0, %v284_v17  ;;  %v1918_v4 = vmul.f32 0.5, %v1816_v1  ;;  %v716_v15 = vsub.f32 0.0, %v700_v52  ;;  %v1515_v17 = vld [vmem:[%s2946_s3 + $0x18] sm:$0xff] }
  0xb2   :  { %v1848_v21 = vadd.f32 %v219_v11, %v1805_v55  ;;  %v1869_v32 = vpop.eup %1537  ;;  %v315_v36 = vmul.f32 %v1856_v25, %v1824_v7  ;;  %v1879_v37 = vadd.f32 1.0, %v285_v24  ;;  %vm320_vm1 = vweird.f32 %v1856_v25  ;;  %1022 = vmatpush.bf16.msra.mxu2 %v1515_v17 }
  0xb3   :  { %v1845_v18 = vmul.f32 0.70710677, %v1839_v14  ;;  %1539 = vrcp.f32 %v1858_v26  ;;  %v330_v45 = vmul.f32 %v1869_v32, %v1835_v12  ;;  %2991 = vst [vmem:[#allocation14_spill] sm:$0xff] %v1918_v4  ;;  %v1931_v1 = vmul.f32 0.5, %v1819_v3  ;;  %vm1997_vm2 = vmor %vm319_vm0, %vm320_vm1 }
  0xb4   :  { %v1864_v28 = vmul.f32 0.70710677, %v1848_v21  ;;  %v316_v51 = vsub.f32 1.0, %v315_v36  ;;  %1541 = vrcp.f32 %v1879_v37  ;;  %v717_v20 = vsub.f32 0.0, %v701_v60 }
  0xb5   :  { %2986 = vst [vmem:[#allocation9_spill] sm:$0xff] %v1845_v18  ;;  %v1861_v27 = vand.u32 2147483647, %v1845_v18  ;;  %1543 = vpow2.f32 %v730_v44  ;;  %v331_v2 = vsub.f32 1.0, %v330_v45  ;;  %v1940_v22 = vmul.f32 0.5, %v1839_v14 }
  0xb6   :  { %2987 = vst [vmem:[#allocation10_spill] sm:$0xff] %v1864_v28  ;;  %v1872_v34 = vand.u32 2147483647, %v1864_v28  ;;  %1545 = vpow2.f32 %v732_v49  ;;  %v317_v13 = vmul.f32 %v1856_v25, %v316_v51  ;;  %v734_v44 = vmul.f32 1.442695, %v716_v15 }
  0xb7   :  { %v286_v41 = vmul.f32 0.3275911, %v1861_v27  ;;  %2992 = vst [vmem:[#allocation15_spill] sm:$0xff] %v1931_v1  ;;  %v332_v24 = vmul.f32 %v1869_v32, %v331_v2  ;;  %v702_v14 = vmul.f32 %v1861_v27, %v1861_v27  ;;  %v370_v45 = vand.u32 2147483648, %v1879_v37 }
  0xb8   :  { %v192_v16 = vpop.f32.mrf.mxu0  ;;  %v287_v50 = vmul.f32 0.3275911, %v1872_v34  ;;  %2993 = vst [vmem:[#allocation16_spill] sm:$0xff] %v1940_v22  ;;  %v1966_v43 = vadd.f32 %v1856_v25, %v317_v13  ;;  %v703_v19 = vmul.f32 %v1872_v34, %v1872_v34  ;;  %v2032_v34 = vmul.f32 0.5, %v1848_v21  ;;  %v1513_v21 = vld [vmem:[%s2946_s3 + $0x8] sm:$0xff] }
  0xb9   :  { %v1867_v30 = vadd.f32 %v192_v16, %v1803_v53  ;;  %v221_v31 = vpop.f32.mrf.mxu1  ;;  %v1910_v62 = vadd.f32 1.0, %v286_v41  ;;  %v1920_v5 = vpop.eup %1539  ;;  %v1977_v52 = vadd.f32 %v1869_v32, %v332_v24  ;;  %v718_v13 = vsub.f32 0.0, %v702_v14  ;;  %v1514_v14 = vld [vmem:[%s2946_s3 + $0x10] sm:$0xff] }
  0xba   :  { %v1913_v63 = vadd.f32 %v221_v31, %v1805_v55  ;;  %v1925_v9 = vadd.f32 1.0, %v287_v50  ;;  %v1946_v3 = vpop.eup %1541  ;;  %v345_v29 = vmul.f32 %v1920_v5, %v1858_v26  ;;  %v355_v31 = vand.u32 2147483648, %v1858_v26  ;;  %1023 = vmatpush.bf16.msra.mxu2 %v1514_v14  ;;  %3002 = vst [vmem:[#allocation23_spill] sm:$0xff] %v2032_v34 }
  0xbb   :  { %v1893_v46 = vmul.f32 0.70710677, %v1867_v30  ;;  %1547 = vrcp.f32 %v1910_v62  ;;  %v1963_v41 = vpop.eup %1543  ;;  %v360_v27 = vmul.f32 %v1946_v3, %v1879_v37  ;;  %v736_v50 = vmul.f32 1.442695, %v717_v20 }
  0xbc   :  { %v1944_v23 = vmul.f32 0.70710677, %v1913_v63  ;;  %1549 = vrcp.f32 %v1925_v9  ;;  %2995 = vst [vmem:[#allocation18_spill] sm:$0xff] %v1963_v41  ;;  %v1970_v48 = vpop.eup %1545  ;;  %v346_v56 = vsub.f32 1.0, %v345_v29  ;;  %v2001_v17 = vor.u32 1.1754944e-38, %v370_v45 }
  0xbd   :  { %2989 = vst [vmem:[#allocation12_spill] sm:$0xff] %v1893_v46  ;;  %v1901_v54 = vand.u32 2147483647, %v1893_v46  ;;  %v361_v29 = vsub.f32 1.0, %v360_v27  ;;  %v385_v27 = vand.u32 2147483648, %v1910_v62  ;;  %v719_v22 = vsub.f32 0.0, %v703_v19 }
  0xbe   :  { %2994 = vst [vmem:[#allocation17_spill] sm:$0xff] %v1944_v23  ;;  %v273_v51 = vand.u32 2147483647, %v1944_v23  ;;  %v738_v49 = vmul.f32 1.442695, %v718_v13  ;;  %v2040_v28 = vmul.f32 0.5, %v1867_v30  ;;  %1024 = vmatpush.bf16.msra.mxu2 %v1513_v21  ;;  %vm350_vm3 = vweird.f32 %v1920_v5 }
  0xbf   :  { %v288_v11 = vmul.f32 0.3275911, %v1901_v54  ;;  %2996 = vst [vmem:[#allocation19_spill] sm:$0xff] %v1970_v48  ;;  %v704_v58 = vmul.f32 %v1901_v54, %v1901_v54  ;;  %v362_v54 = vmul.f32 %v1946_v3, %v361_v29  ;;  %v1521_v19 = vld [vmem:[%s2946_s3 + $0x48] sm:$0xff]  ;;  %v2056_v30 = vor.u32 1.1754944e-38, %v385_v27 }
  0xc0   :  { %v195_v42 = vpop.f32.mrf.mxu0  ;;  %3003 = vst [vmem:[#allocation24_spill] sm:$0xff] %v2040_v28  ;;  %v400_v28 = vand.u32 2147483648, %v1925_v9  ;;  %v740_v46 = vmul.f32 1.442695, %v719_v22  ;;  %vm349_vm4 = vweird.f32 %v1858_v26  ;;  %vm335_vm7 = vweird.f32 %v1869_v32 }
  0xc1   :  { %v224_v16 = vpop.f32.mrf.mxu1  ;;  %v1953_v33 = vadd.f32 %v195_v42, %v1803_v53  ;;  %v1958_v35 = vadd.f32 1.0, %v288_v11  ;;  %v1985_v2 = vpop.eup %1547  ;;  %v1987_v11 = vor.u32 1.1754944e-38, %v355_v31  ;;  %v289_v31 = vmul.f32 0.3275911, %v273_v51  ;;  %vm2236_vm8 = vmor %vm349_vm4, %vm350_vm3 }
  0xc2   :  { %v1961_v36 = vadd.f32 %v224_v16, %v1805_v55  ;;  %v2006_v24 = vpop.eup %1549  ;;  %v375_v45 = vmul.f32 %v1985_v2, %v1910_v62  ;;  %v720_v1 = vsub.f32 0.0, %v704_v58  ;;  %v1512_v58 = vld [vmem:[%s2946_s3] sm:$0xff]  ;;  %v2087_v21 = vor.u32 1.1754944e-38, %v400_v28  ;;  %vm2343_vm4 = vmor %vm334_vm10, %vm335_vm7 }
  0xc3   :  { %v1980_v57 = vmul.f32 0.70710677, %v1953_v33  ;;  %1551 = vrcp.f32 %v1958_v35  ;;  %1025 = vmatpush.bf16.msra.mxu2 %v1512_v58  ;;  %vm365_vm9 = vweird.f32 %v1946_v3  ;;  %vm364_vm11 = vweird.f32 %v1879_v37 }
  0xc4   :  { %v1991_v15 = vmul.f32 0.70710677, %v1961_v36  ;;  %1553 = vpow2.f32 %v734_v44  ;;  %v347_v44 = vmul.f32 %v1920_v5, %v346_v56  ;;  %v376_v29 = vsub.f32 1.0, %v375_v45  ;;  %3007 = vst [vmem:[#allocation28_spill] sm:$0xff] %v2087_v21 }
  0xc5   :  { %2997 = vst [vmem:[#allocation20_spill] sm:$0xff] %v1980_v57  ;;  %v274_v20 = vand.u32 2147483647, %v1980_v57  ;;  %1555 = vpow2.f32 %v736_v50  ;;  %v390_v57 = vmul.f32 %v2006_v24, %v1925_v9  ;;  %v705_v45 = vmul.f32 %v273_v51, %v273_v51 }
  0xc6   :  { %2998 = vst [vmem:[#allocation21_spill] sm:$0xff] %v1991_v15  ;;  %v2028_v40 = vand.u32 2147483647, %v1991_v15  ;;  %v2042_v15 = vadd.f32 1.0, %v289_v31  ;;  %v2054_v56 = vadd.f32 %v1920_v5, %v347_v44  ;;  %1557 = vpow2.f32 %v738_v49 }
  0xc7   :  { %v290_v42 = vmul.f32 0.3275911, %v274_v20  ;;  %v391_v4 = vsub.f32 1.0, %v390_v57  ;;  %v377_v22 = vmul.f32 %v1985_v2, %v376_v29  ;;  %v415_v57 = vand.u32 2147483648, %v1958_v35 }
  0xc8   :  { %v197_v38 = vpop.f32.mrf.mxu0  ;;  %v291_v14 = vmul.f32 0.3275911, %v2028_v40  ;;  %1559 = vrcp.f32 %v2042_v15  ;;  %v706_v18 = vmul.f32 %v274_v20, %v274_v20  ;;  %v3041_v16 = vand.u32 2147483647, %v1835_v12 }
  0xc9   :  { %v1983_v60 = vadd.f32 %v197_v38, %v1803_v53  ;;  %v1522_v38 = vld [vmem:[%s2946_s3 + $0x50] sm:$0xff]  ;;  %v226_v23 = vpop.f32.mrf.mxu1  ;;  %v2036_v13 = vpop.eup %1551  ;;  %v2064_v47 = vadd.f32 1.0, %v290_v42  ;;  %v2079_v42 = vadd.f32 %v1946_v3, %v362_v54  ;;  %v721_v54 = vsub.f32 0.0, %v705_v45 }
  0xca   :  { %1052 = vmatpush.bf16.msra.mxu3 %v1522_v38  ;;  %v2051_v38 = vpop.eup %1553  ;;  %v405_v44 = vmul.f32 %v2036_v13, %v1958_v35  ;;  %v2069_v27 = vadd.f32 1.0, %v291_v14  ;;  %v2073_v49 = vadd.f32 %v226_v23, %v1805_v55  ;;  %v1520_v14 = vld [vmem:[%s2946_s3 + $0x40] sm:$0xff]  ;;  %v742_v23 = vmul.f32 1.442695, %v720_v1 }
  0xcb   :  { %v2023_v50 = vmul.f32 0.70710677, %v1983_v60  ;;  %3004 = vst [vmem:[#allocation25_spill] sm:$0xff] %v2051_v38  ;;  %v2061_v34 = vpop.eup %1555  ;;  %1561 = vrcp.f32 %v2064_v47  ;;  %v2106_v20 = vor.u32 1.1754944e-38, %v415_v57  ;;  %v722_v45 = vsub.f32 0.0, %v706_v18 }
  0xcc   :  { %3005 = vst [vmem:[#allocation26_spill] sm:$0xff] %v2061_v34  ;;  %1563 = vrcp.f32 %v2069_v27  ;;  %v2096_v51 = vpop.eup %1557  ;;  %v392_v34 = vmul.f32 %v2006_v24, %v391_v4  ;;  %v406_v28 = vsub.f32 1.0, %v405_v44  ;;  %v2100_v1 = vmul.f32 0.70710677, %v2073_v49 }
  0xcd   :  { %3001 = vst [vmem:[#allocation22_spill] sm:$0xff] %v2023_v50  ;;  %v2059_v31 = vand.u32 2147483647, %v2023_v50  ;;  %1565 = vpow2.f32 %v740_v46  ;;  %v2112_v46 = vmul.f32 0.5, %v1953_v33  ;;  %v2115_v4 = vmul.f32 0.5, %v1961_v36 }
  0xce   :  { %1053 = vmatpush.bf16.msra.mxu3 %v1521_v19  ;;  %3006 = vst [vmem:[#allocation27_spill] sm:$0xff] %v2069_v27  ;;  %v2090_v19 = vmul.f32 0.5, %v1913_v63  ;;  %v2103_v63 = vadd.f32 %v1985_v2, %v377_v22  ;;  %1567 = vpow2.f32 %v742_v23  ;;  %v2118_v44 = vmul.f32 0.5, %v1983_v60 }
  0xcf   :  { %v292_v50 = vmul.f32 0.3275911, %v2059_v31  ;;  %3009 = vst [vmem:[#allocation30_spill] sm:$0xff] %v2096_v51  ;;  %v744_v22 = vmul.f32 1.442695, %v721_v54  ;;  %v2125_v48 = vadd.f32 %v2006_v24, %v392_v34  ;;  %v407_v33 = vmul.f32 %v2036_v13, %v406_v28 }
  0xd0   :  { %3008 = vst [vmem:[#allocation29_spill] sm:$0xff] %v2090_v19  ;;  %v200_v58 = vpop.f32.mrf.mxu0  ;;  %v2109_v19 = vpop.eup %1559  ;;  %v277_v57 = vand.u32 2147483647, %v2100_v1  ;;  %v707_v34 = vmul.f32 %v2028_v40, %v2028_v40  ;;  %v445_v28 = vand.u32 2147483648, %v2064_v47  ;;  %vm2283_vm12 = vcmp.eq.f32.partialorder %v3041_v16, 8.507059e+37 }
  0xd1   :  { %v2094_v29 = vadd.f32 1.0, %v292_v50  ;;  %3010 = vst [vmem:[#allocation31_spill] sm:$0xff] %v2100_v1  ;;  %v430_v50 = vand.u32 2147483648, %v2042_v15  ;;  %v2122_v51 = vpop.eup %1561  ;;  %v2129_v23 = vadd.f32 %v200_v58, %v1803_v53  ;;  %v420_v18 = vmul.f32 %v2109_v19, %v2042_v15 }
  0xd2   :  { %1054 = vmatpush.bf16.msra.mxu3 %v1520_v14  ;;  %v229_v14 = vpop.f32.mrf.mxu1  ;;  %3011 = vst [vmem:[#allocation32_spill] sm:$0xff] %v2112_v46  ;;  %v2134_v60 = vpop.eup %1563  ;;  %v708_v58 = vmul.f32 %v2059_v31, %v2059_v31  ;;  %v435_v54 = vmul.f32 %v2122_v51, %v2064_v47  ;;  %v723_v10 = vsub.f32 0.0, %v707_v34  ;;  %vm380_vm13 = vweird.f32 %v1985_v2 }
  0xd3   :  { %3012 = vst [vmem:[#allocation33_spill] sm:$0xff] %v2115_v4  ;;  %1569 = vrcp.f32 %v2094_v29  ;;  %v2132_v36 = vadd.f32 %v229_v14, %v1805_v55  ;;  %v2139_v4 = vor.u32 1.1754944e-38, %v430_v50  ;;  %v2143_v1 = vpop.eup %1565  ;;  %v293_v14 = vmul.f32 0.3275911, %v277_v57 }
  0xd4   :  { %3013 = vst [vmem:[#allocation34_spill] sm:$0xff] %v2118_v44  ;;  %v2149_v44 = vmul.f32 0.70710677, %v2129_v23  ;;  %1571 = vpow2.f32 %v744_v22  ;;  %v746_v50 = vmul.f32 1.442695, %v722_v45  ;;  %v2156_v40 = vpop.eup %1567  ;;  %v450_v31 = vmul.f32 %v2134_v60, %v2069_v27 }
  0xd5   :  { %3014 = vst [vmem:[#allocation35_spill] sm:$0xff] %v2125_v48  ;;  %v2154_v46 = vmul.f32 0.70710677, %v2132_v36  ;;  %v2163_v39 = vadd.f32 1.0, %v293_v14  ;;  %v421_v45 = vsub.f32 1.0, %v420_v18  ;;  %v436_v14 = vsub.f32 1.0, %v435_v54 }
  0xd6   :  { %3015 = vst [vmem:[#allocation36_spill] sm:$0xff] %v2129_v23  ;;  %v278_v23 = vand.u32 2147483647, %v2149_v44  ;;  %v451_v41 = vsub.f32 1.0, %v450_v31  ;;  %v475_v18 = vand.u32 2147483648, %v2094_v29  ;;  %vm410_vm14 = vweird.f32 %v2036_v13 }
  0xd7   :  { %3016 = vst [vmem:[#allocation37_spill] sm:$0xff] %v2132_v36  ;;  %v709_v36 = vmul.f32 %v277_v57, %v277_v57  ;;  %v279_v61 = vand.u32 2147483647, %v2154_v46  ;;  %1573 = vrcp.f32 %v2163_v39  ;;  %v422_v54 = vmul.f32 %v2109_v19, %v421_v45 }
  0xd8   :  { %3017 = vst [vmem:[#allocation38_spill] sm:$0xff] %v2139_v4  ;;  %v724_v4 = vsub.f32 0.0, %v708_v58  ;;  %1575 = vpow2.f32 %v746_v50  ;;  %v294_v38 = vmul.f32 0.3275911, %v278_v23  ;;  %v3024_v58 = vand.u32 2147483647, %v1824_v7 }
  0xd9   :  { %3018 = vst [vmem:[#allocation39_spill] sm:$0xff] %v2143_v1  ;;  %v2159_v1 = vadd.f32 %v2036_v13, %v407_v33  ;;  %v2166_v22 = vpop.eup %1569  ;;  %v2171_v33 = vor.u32 1.1754944e-38, %v445_v28  ;;  %v295_v34 = vmul.f32 0.3275911, %v279_v61  ;;  %v748_v50 = vmul.f32 1.442695, %v723_v10 }
  0xda   :  { %3019 = vst [vmem:[#allocation40_spill] sm:$0xff] %v2149_v44  ;;  %v460_v44 = vand.u32 2147483648, %v2069_v27  ;;  %v465_v57 = vmul.f32 %v2166_v22, %v2094_v29  ;;  %v2179_v28 = vpop.eup %1571  ;;  %vm2183_vm5 = vcmp.eq.f32.partialorder %v3024_v58, 8.507059e+37  ;;  %v2188_v31 = vadd.f32 1.0, %v294_v38 }
  0xdb   :  { %3020 = vst [vmem:[#allocation41_spill] sm:$0xff] %v2154_v46  ;;  %v750_v27 = vmul.f32 1.442695, %v724_v4  ;;  %v710_v21 = vmul.f32 %v278_v23, %v278_v23  ;;  %v2191_v6 = vadd.f32 1.0, %v295_v34  ;;  %v437_v58 = vmul.f32 %v2122_v51, %v436_v14 }
  0xdc   :  { %3021 = vst [vmem:[#allocation42_spill] sm:$0xff] %v2156_v40  ;;  %v202_v40 = vpop.f32.mrf.mxu0  ;;  %v2200_v48 = vor.u32 1.1754944e-38, %v460_v44  ;;  %1577 = vrcp.f32 %v2188_v31  ;;  %v452_v4 = vmul.f32 %v2134_v60, %v451_v41  ;;  %v466_v23 = vsub.f32 1.0, %v465_v57 }
  0xdd   :  { %3022 = vst [vmem:[#allocation43_spill] sm:$0xff] %v2171_v33  ;;  %v725_v33 = vsub.f32 0.0, %v709_v36  ;;  %v2204_v10 = vadd.f32 %v202_v40, %v1803_v53  ;;  %v2206_v38 = vpop.eup %1573  ;;  %v490_v36 = vand.u32 2147483648, %v2163_v39  ;;  %1579 = vrcp.f32 %v2191_v6  ;;  %v231_v40 = vpop.f32.mrf.mxu1 }
  0xde   :  { %3023 = vst [vmem:[#allocation44_spill] sm:$0xff] %v2179_v28  ;;  %v3027_v28 = vand.u32 2147483647, %v1858_v26  ;;  %v2211_v45 = vpop.eup %1575  ;;  %v2214_v14 = vadd.f32 %v2109_v19, %v422_v54  ;;  %1581 = vpow2.f32 %v748_v50  ;;  %v2217_v44 = vmul.f32 0.5, %v2073_v49 }
  0xdf   :  { %3030 = vst [vmem:[#allocation45_spill] sm:$0xff] %v2204_v10  ;;  %v752_v53 = vmul.f32 1.442695, %v725_v33  ;;  %1583 = vpow2.f32 %v750_v27  ;;  %v726_v41 = vsub.f32 0.0, %v710_v21  ;;  %v2224_v57 = vadd.f32 %v2122_v51, %v437_v58 }
  0xe0   :  { %vm2195_vm6 = vcmp.eq.f32.partialorder %v3027_v28, 8.507059e+37  ;;  %3031 = vst [vmem:[#allocation46_spill] sm:$0xff] %v2211_v45  ;;  %v2220_v28 = vor.u32 1.1754944e-38, %v475_v18  ;;  %v480_v54 = vmul.f32 %v2206_v38, %v2163_v39  ;;  %v2230_v49 = vmul.f32 0.70710677, %v2204_v10 }
  0xe1   :  { %3032 = vst [vmem:[#allocation47_spill] sm:$0xff] %v2217_v44  ;;  %v2242_v21 = vadd.f32 %v2134_v60, %v452_v4  ;;  %v467_v33 = vmul.f32 %v2166_v22, %v466_v23  ;;  %v2245_v18 = vor.u32 1.1754944e-38, %v490_v36  ;;  %v2248_v58 = vadd.f32 %v231_v40, %v1805_v55 }
  0xe2   :  { %3033 = vst [vmem:[#allocation48_spill] sm:$0xff] %v2230_v49  ;;  %v2250_v50 = vpop.eup %1577  ;;  %1585 = vpow2.f32 %v752_v53  ;;  %v711_v26 = vmul.f32 %v279_v61, %v279_v61  ;;  %v280_v34 = vand.u32 2147483647, %v2230_v49  ;;  %v352_v4 = vsel %vm2236_vm8, %v1920_v5, %v2054_v56 }
  0xe3   :  { %3036 = vst [vmem:[#allocation49_spill] sm:$0xff] %v2245_v18  ;;  %v2258_v10 = vpop.eup %1579  ;;  %v495_v55 = vmul.f32 %v2250_v50, %v2188_v31  ;;  %v505_v23 = vand.u32 2147483648, %v2188_v31  ;;  %v754_v36 = vmul.f32 1.442695, %v726_v41  ;;  %v3038_v61 = vsel %vm1997_vm2, %v1856_v25, %v1966_v43 }
  0xe4   :  { %3037 = vst [vmem:[#allocation50_spill] sm:$0xff] %v2248_v58  ;;  %v2272_v53 = vsel %vm2183_vm5, %v1915_v0, %v3038_v61  ;;  %v2274_v5 = vpop.eup %1581  ;;  %v481_v56 = vsub.f32 1.0, %v480_v54  ;;  %v510_v40 = vmul.f32 %v2258_v10, %v2191_v6  ;;  %v520_v27 = vand.u32 2147483648, %v2191_v6 }
  0xe5   :  { %3039 = vst [vmem:[#allocation51_spill] sm:$0xff] %v2274_v5  ;;  %v296_v49 = vmul.f32 0.3275911, %v280_v34  ;;  %v2279_v41 = vpop.eup %1583  ;;  %v496_v0 = vsub.f32 1.0, %v495_v55  ;;  %v712_v43 = vmul.f32 %v280_v34, %v280_v34  ;;  %v2289_v46 = vmul.f32 0.70710677, %v2248_v58 }
  0xe6   :  { %3040 = vst [vmem:[#allocation52_spill] sm:$0xff] %v2279_v41  ;;  %v2294_v54 = vsel %vm2195_vm6, %v1987_v11, %v352_v4  ;;  %v511_v61 = vsub.f32 1.0, %v510_v40  ;;  %v727_v44 = vsub.f32 0.0, %v711_v26  ;;  %v554_v5 = vmul.f32 1.0614054, %v2272_v53  ;;  %vm2355_vm6 = vmor %vm364_vm11, %vm365_vm9 }
  0xe7   :  { %3044 = vst [vmem:[#allocation53_spill] sm:$0xff] %v2289_v46  ;;  %v2297_v16 = vadd.f32 1.0, %v296_v49  ;;  %v3045_v41 = vand.u32 2147483647, %v1879_v37  ;;  %vm379_vm0 = vweird.f32 %v1910_v62  ;;  %v2308_v7 = vadd.f32 %v2166_v22, %v467_v33 }
  0xe8   :  { %v728_v11 = vsub.f32 0.0, %v712_v43  ;;  %v281_v4 = vand.u32 2147483647, %v2289_v46  ;;  %v556_v26 = vmul.f32 1.0614054, %v2294_v54  ;;  %v2312_v49 = vpop.eup %1585  ;;  %vm409_vm1 = vweird.f32 %v1958_v35  ;;  %vm381_vm9 = vmor %vm379_vm0, %vm380_vm13 }
  0xe9   :  { %vm2302_vm15 = vcmp.eq.f32.partialorder %v3045_v41, 8.507059e+37  ;;  %3048 = vst [vmem:[#allocation54_spill] sm:$0xff] %v2312_v49  ;;  %v482_v55 = vmul.f32 %v2206_v38, %v481_v56  ;;  %1587 = vrcp.f32 %v2297_v16  ;;  %v3049_v33 = vand.u32 2147483647, %v1910_v62  ;;  %vm2419_vm11 = vmor %vm409_vm1, %vm410_vm14 }
  0xea   :  { %v497_v58 = vmul.f32 %v2250_v50, %v496_v0  ;;  %v2326_v46 = vor.u32 1.1754944e-38, %v505_v23  ;;  %v512_v49 = vmul.f32 %v2258_v10, %v511_v61  ;;  %v297_v45 = vmul.f32 0.3275911, %v281_v4 }
  0xeb   :  { %vm2321_vm2 = vcmp.eq.f32.partialorder %v3049_v33, 8.507059e+37  ;;  %v3052_v56 = vand.u32 2147483647, %v1958_v35  ;;  %1589 = vpow2.f32 %v754_v36  ;;  %v2335_v41 = vor.u32 1.1754944e-38, %v520_v27 }
  0xec   :  { %v2337_v33 = vmul.f32 1.442695, %v727_v44  ;;  %v570_v18 = vadd.f32 -1.4531521, %v554_v5  ;;  %vm395_vm5 = vweird.f32 %v2006_v24  ;;  %v535_v0 = vand.u32 2147483648, %v2297_v16 }
  0xed   :  { %vm2331_vm3 = vcmp.eq.f32.partialorder %v3052_v56, 8.507059e+37  ;;  %v758_v61 = vmul.f32 1.442695, %v728_v11  ;;  %v2349_v56 = vadd.f32 1.0, %v297_v45  ;;  %v572_v36 = vadd.f32 -1.4531521, %v556_v26 }
  0xee   :  { %v2360_v12 = vadd.f32 %v2206_v38, %v482_v55  ;;  %v586_v27 = vmul.f32 %v570_v18, %v2272_v53  ;;  %v337_v45 = vsel %vm2343_vm4, %v1869_v32, %v1977_v52  ;;  %vm394_vm7 = vweird.f32 %v1925_v9 }
  0xef   :  { %v2370_v37 = vadd.f32 %v2250_v50, %v497_v58  ;;  %v2373_v11 = vadd.f32 %v2258_v10, %v512_v49  ;;  %1591 = vrcp.f32 %v2349_v56  ;;  %v367_v18 = vsel %vm2355_vm6, %v1946_v3, %v2079_v42  ;;  %v2380_v26 = vpop.eup %1587  ;;  %vm2471_vm0 = vmor %vm394_vm7, %vm395_vm5 }
  0xf0   :  { %v2382_v55 = vmul.f32 %v281_v4, %v281_v4  ;;  %v588_v32 = vmul.f32 %v572_v36, %v2294_v54  ;;  %v602_v52 = vadd.f32 1.4214138, %v586_v27  ;;  %v2388_v58 = vsel %vm2283_vm12, %v1923_v8, %v337_v45 }
  0xf1   :  { %vm425_vm8 = vweird.f32 %v2109_v19  ;;  %v525_v49 = vmul.f32 %v2380_v26, %v2297_v16  ;;  %v2393_v23 = vor.u32 1.1754944e-38, %v535_v0  ;;  %1593 = vpow2.f32 %v758_v61  ;;  %v2396_v42 = vpop.eup %1589 }
  0xf2   :  { %v3059_v8 = vand.u32 2147483647, %v1925_v9  ;;  %v550_v4 = vand.u32 2147483648, %v2349_v56  ;;  %v604_v0 = vadd.f32 1.4214138, %v588_v32  ;;  %v618_v61 = vmul.f32 %v602_v52, %v2272_v53 }
  0xf3   :  { %v2413_v36 = vsel %vm2302_vm15, %v2001_v17, %v367_v18  ;;  %vm424_vm12 = vweird.f32 %v2042_v15  ;;  %v526_v44 = vsub.f32 1.0, %v525_v49  ;;  %v555_v27 = vmul.f32 1.0614054, %v2388_v58 }
  0xf4   :  { %vm2404_vm10 = vcmp.eq.f32.partialorder %v3059_v8, 8.507059e+37  ;;  %v557_v45 = vmul.f32 1.0614054, %v2413_v36  ;;  %v382_v34 = vsel %vm381_vm9, %v1985_v2, %v2103_v63  ;;  %v620_v17 = vmul.f32 %v604_v0, %v2294_v54 }
  0xf5   :  { %v634_v18 = vadd.f32 -0.28449672, %v618_v61  ;;  %v2432_v35 = vsel %vm2321_vm2, %v2056_v30, %v382_v34  ;;  %v412_v32 = vsel %vm2419_vm11, %v2036_v13, %v2159_v1  ;;  %v2438_v52 = vpop.eup %1591  ;;  %v3064_v49 = vand.u32 2147483647, %v2042_v15 }
  0xf6   :  { %vm440_vm14 = vweird.f32 %v2122_v51  ;;  %v527_v2 = vmul.f32 %v2380_v26, %v526_v44  ;;  %v571_v63 = vadd.f32 -1.4531521, %v555_v27  ;;  %v573_v30 = vadd.f32 -1.4531521, %v557_v45 }
  0xf7   :  { %vm2442_vm13 = vcmp.eq.f32.partialorder %v3064_v49, 8.507059e+37  ;;  %v2451_v43 = vsel %vm2331_vm3, %v2106_v20, %v412_v32  ;;  %v540_v13 = vmul.f32 %v2438_v52, %v2349_v56  ;;  %v2455_v1 = vor.u32 1.1754944e-38, %v550_v4  ;;  %v2458_v62 = vpop.eup %1593  ;;  %vm426_vm3 = vmor %vm424_vm12, %vm425_vm8  ;;  %v3073_v4 = vld [vmem:[#allocation18_spill] sm:$0xff] }
  0xf8   :  { %v636_v0 = vadd.f32 -0.28449672, %v620_v17  ;;  %v650_v61 = vmul.f32 %v634_v18, %v2272_v53  ;;  %3067 = vst [vmem:[#allocation55_spill] sm:$0xff] %v2458_v62  ;;  %vm439_vm15 = vweird.f32 %v2064_v47  ;;  %v2462_v44 = vadd.f32 %v2380_v26, %v527_v2 }
  0xf9   :  { %v587_v27 = vmul.f32 %v571_v63, %v2388_v58  ;;  %v589_v20 = vmul.f32 %v573_v30, %v2413_v36  ;;  %v558_v40 = vmul.f32 1.0614054, %v2432_v35  ;;  %v541_v45 = vsub.f32 1.0, %v540_v13  ;;  %v3070_v63 = vld [vmem:[#allocation35_spill] sm:$0xff]  ;;  %vm2527_vm7 = vmor %vm439_vm15, %vm440_vm14 }
  0xfa   :  { %v652_v34 = vmul.f32 %v636_v0, %v2294_v54  ;;  %v666_v17 = vadd.f32 0.2548296, %v650_v61  ;;  %v560_v18 = vmul.f32 1.0614054, %v2451_v43  ;;  %vm794_vm1 = vcmp.ge.f32.partialorder %v1809_v59, 0.0  ;;  %v3071_v0 = vld [vmem:[#allocation7_spill] sm:$0xff] }
  0xfb   :  { %v603_v32 = vadd.f32 1.4214138, %v587_v27  ;;  %v605_v49 = vadd.f32 1.4214138, %v589_v20  ;;  %v574_v2 = vadd.f32 -1.4531521, %v558_v40  ;;  %v397_v9 = vsel %vm2471_vm0, %v2006_v24, %v3070_v63 }
  0xfc   :  { %v542_v30 = vmul.f32 %v2438_v52, %v541_v45  ;;  %v668_v3 = vadd.f32 0.2548296, %v652_v34  ;;  %v682_v13 = vmul.f32 %v666_v17, %v2272_v53  ;;  %v576_v5 = vadd.f32 -1.4531521, %v560_v18  ;;  %v3072_v20 = vld [vmem:[#allocation28_spill] sm:$0xff] }
  0xfd   :  { %vm796_vm2 = vcmp.ge.f32.partialorder %v3071_v0, 0.0  ;;  %v619_v61 = vmul.f32 %v603_v32, %v2388_v58  ;;  %v621_v62 = vmul.f32 %v605_v49, %v2413_v36  ;;  %v590_v27 = vmul.f32 %v574_v2, %v2432_v35  ;;  %v3077_v2 = vld [vmem:[#allocation25_spill] sm:$0xff] }
  0xfe   :  { %v2491_v40 = vsel %vm2404_vm10, %v3072_v20, %v397_v9  ;;  %v2498_v24 = vadd.f32 %v2438_v52, %v542_v30  ;;  %v684_v53 = vmul.f32 %v668_v3, %v2294_v54  ;;  %v762_v45 = vmul.f32 %v3073_v4, %v682_v13  ;;  %v3078_v9 = vld [vmem:[#allocation38_spill] sm:$0xff]  ;;  %v3086_v13 = vld [vmem:[#allocation11_spill] sm:$0xff] }
  0xff   :  { %v592_v34 = vmul.f32 %v576_v5, %v2451_v43  ;;  %vm470_vm4 = vweird.f32 %v2166_v22  ;;  %v635_v17 = vadd.f32 -0.28449672, %v619_v61  ;;  %v637_v25 = vadd.f32 -0.28449672, %v621_v62 }
 0x100   :  { %v606_v18 = vadd.f32 1.4214138, %v590_v27  ;;  %v427_v32 = vsel %vm426_vm3, %v2109_v19, %v2214_v14  ;;  %v3074_v15 = vand.u32 2147483647, %v2064_v47  ;;  %v764_v54 = vmul.f32 %v3077_v2, %v684_v53  ;;  %v3082_v47 = vld [vmem:[#allocation8_spill] sm:$0xff] }
 0x101   :  { %v778_v3 = vsub.f32 1.0, %v762_v45  ;;  %v608_v63 = vadd.f32 1.4214138, %v592_v34  ;;  %v2516_v5 = vsel %vm2442_vm13, %v3078_v9, %v427_v32  ;;  %vm469_vm6 = vweird.f32 %v2094_v29 }
 0x102   :  { %vm2508_vm5 = vcmp.eq.f32.partialorder %v3074_v15, 8.507059e+37  ;;  %v651_v62 = vmul.f32 %v635_v17, %v2388_v58  ;;  %v653_v19 = vmul.f32 %v637_v25, %v2413_v36  ;;  %v622_v14 = vmul.f32 %v606_v18, %v2432_v35  ;;  %v3081_v17 = vld [vmem:[#allocation6_spill] sm:$0xff]  ;;  %vm2573_vm0 = vmor %vm469_vm6, %vm470_vm4 }
 0x103   :  { %v559_v30 = vmul.f32 1.0614054, %v2491_v40  ;;  %v780_v8 = vsub.f32 1.0, %v764_v54  ;;  %v810_v61 = vsub.f32 0.0, %v778_v3  ;;  %v624_v27 = vmul.f32 %v608_v63, %v2451_v43 }
 0x104   :  { %v561_v20 = vmul.f32 1.0614054, %v2516_v5  ;;  %v667_v53 = vadd.f32 0.2548296, %v651_v62  ;;  %v669_v4 = vadd.f32 0.2548296, %v653_v19  ;;  %v442_v34 = vsel %vm2527_vm7, %v2122_v51, %v2224_v57 }
 0x105   :  { %v638_v45 = vadd.f32 -0.28449672, %v622_v14  ;;  %vm795_vm8 = vcmp.ge.f32.partialorder %v3081_v17, 0.0  ;;  %vm797_vm9 = vcmp.ge.f32.partialorder %v3082_v47, 0.0  ;;  %v3083_v25 = vand.u32 2147483647, %v2094_v29 }
 0x106   :  { %v812_v32 = vsub.f32 0.0, %v780_v8  ;;  %v826_v15 = vsel %vm794_vm1, %v778_v3, %v810_v61  ;;  %v640_v2 = vadd.f32 -0.28449672, %v624_v27  ;;  %v575_v54 = vadd.f32 -1.4531521, %v559_v30  ;;  %v3087_v61 = vld [vmem:[#allocation19_spill] sm:$0xff] }
 0x107   :  { %vm2541_vm10 = vcmp.eq.f32.partialorder %v3083_v25, 8.507059e+37  ;;  %v842_v63 = vadd.f32 1.0, %v826_v15  ;;  %v683_v9 = vmul.f32 %v667_v53, %v2388_v58  ;;  %v685_v51 = vmul.f32 %v669_v4, %v2413_v36  ;;  %v3088_v58 = vld [vmem:[#allocation26_spill] sm:$0xff]  ;;  %v3089_v36 = vld [vmem:[#allocation27_spill] sm:$0xff]  ;;  %v3090_v25 = vld [vmem:[#allocation9_spill] sm:$0xff] }
 0x108   :  { %v654_v57 = vmul.f32 %v638_v45, %v2432_v35  ;;  %vm455_vm11 = vweird.f32 %v2134_v60  ;;  %v828_v62 = vsel %vm796_vm2, %v780_v8, %v812_v32  ;;  %v656_v19 = vmul.f32 %v640_v2, %v2451_v43  ;;  %v3092_v32 = vld [vmem:[#allocation14_spill] sm:$0xff] }
 0x109   :  { %v577_v14 = vadd.f32 -1.4531521, %v561_v20  ;;  %v591_v59 = vmul.f32 %v575_v54, %v2491_v40  ;;  %v844_v3 = vadd.f32 1.0, %v828_v62  ;;  %v858_v30 = vmul.f32 %v842_v63, %v3086_v13  ;;  %v3091_v20 = vld [vmem:[#allocation12_spill] sm:$0xff]  ;;  %v3093_v63 = vld [vmem:[#allocation43_spill] sm:$0xff] }
 0x10a   :  { %v763_v27 = vmul.f32 %v3087_v61, %v683_v9  ;;  %v765_v53 = vmul.f32 %v3088_v58, %v685_v51  ;;  %vm454_vm12 = vweird.f32 %v3089_v36  ;;  %vm485_vm13 = vweird.f32 %v2206_v38  ;;  %v3100_v61 = vld [vmem:[#allocation42_spill] sm:$0xff]  ;;  %v3107_v51 = vld [vmem:[#allocation13_spill] sm:$0xff] }
 0x10b   :  { %v670_v4 = vadd.f32 0.2548296, %v654_v57  ;;  %v672_v45 = vadd.f32 0.2548296, %v656_v19  ;;  %v593_v0 = vmul.f32 %v577_v14, %v2516_v5  ;;  %v607_v8 = vadd.f32 1.4214138, %v591_v59 }
 0x10c   :  { %vm798_vm14 = vcmp.ge.f32.partialorder %v3090_v25, 0.0  ;;  %vm800_vm15 = vcmp.ge.f32.partialorder %v3091_v20, 0.0  ;;  %v860_v15 = vmul.f32 %v844_v3, %v3092_v32  ;;  %v779_v2 = vsub.f32 1.0, %v763_v27  ;;  %v3117_v20 = vld [vmem:[#allocation17_spill] sm:$0xff] }
 0x10d   :  { %v781_v54 = vsub.f32 1.0, %v765_v53  ;;  %v2567_v9 = vsel %vm2508_vm5, %v3093_v63, %v442_v34  ;;  %vm484_vm1 = vweird.f32 %v2163_v39  ;;  %v686_v57 = vmul.f32 %v670_v4, %v2432_v35  ;;  %v3099_v35 = vld [vmem:[#allocation30_spill] sm:$0xff] }
 0x10e   :  { %v688_v62 = vmul.f32 %v672_v45, %v2451_v43  ;;  %v609_v19 = vadd.f32 1.4214138, %v593_v0  ;;  %v623_v14 = vmul.f32 %v607_v8, %v2491_v40  ;;  %v3096_v49 = vand.u32 2147483647, %v3089_v36 }
 0x10f   :  { %v882_v29 = vpack.c.bf16 %v860_v15, %v858_v30  ;;  %v811_v59 = vsub.f32 0.0, %v779_v2  ;;  %v813_v3 = vsub.f32 0.0, %v781_v54  ;;  %v472_v13 = vsel %vm2573_vm0, %v2166_v22, %v2308_v7 }
 0x110   :  { %vm2583_vm2 = vcmp.eq.f32.partialorder %v3096_v49, 8.507059e+37  ;;  %vm500_vm3 = vweird.f32 %v2250_v50  ;;  %v766_v43 = vmul.f32 %v3099_v35, %v686_v57  ;;  %v768_v27 = vmul.f32 %v3100_v61, %v688_v62  ;;  %v3108_v62 = vld [vmem:[#allocation15_spill] sm:$0xff] }
 0x111   :  { %v625_v58 = vmul.f32 %v609_v19, %v2516_v5  ;;  %v639_v53 = vadd.f32 -0.28449672, %v623_v14  ;;  %v3101_v4 = vand.u32 2147483647, %v2163_v39  ;;  %1026 = vmatmul.bf16.vlgmr.msra.gmra.mxu2 %v882_v29  ;;  %v827_v45 = vsel %vm795_vm8, %v779_v2, %v811_v59 }
 0x112   :  { %v829_v22 = vsel %vm797_vm9, %v781_v54, %v813_v3  ;;  %v2608_v7 = vsel %vm2541_vm10, %v2220_v28, %v472_v13  ;;  %v562_v0 = vmul.f32 1.0614054, %v2567_v9  ;;  %vm499_vm5 = vweird.f32 %v2188_v31  ;;  %vm2628_vm9 = vmor %vm454_vm12, %vm455_vm11 }
 0x113   :  { %vm2597_vm4 = vcmp.eq.f32.partialorder %v3101_v4, 8.507059e+37  ;;  %vm530_vm6 = vweird.f32 %v2380_v26  ;;  %v843_v8 = vadd.f32 1.0, %v827_v45  ;;  %v845_v32 = vadd.f32 1.0, %v829_v22  ;;  %vm2653_vm11 = vmor %vm484_vm1, %vm485_vm13 }
 0x114   :  { %v782_v15 = vsub.f32 1.0, %v766_v43  ;;  %v784_v63 = vsub.f32 1.0, %v768_v27  ;;  %v641_v17 = vadd.f32 -0.28449672, %v625_v58  ;;  %v655_v2 = vmul.f32 %v639_v53, %v2491_v40  ;;  %v3111_v43 = vld [vmem:[#allocation10_spill] sm:$0xff] }
 0x115   :  { %v564_v47 = vmul.f32 1.0614054, %v2608_v7  ;;  %v578_v54 = vadd.f32 -1.4531521, %v562_v0  ;;  %v3104_v18 = vand.u32 2147483647, %v2188_v31  ;;  %vm529_vm8 = vweird.f32 %v2297_v16 }
 0x116   :  { %v859_v57 = vmul.f32 %v843_v8, %v3107_v51  ;;  %v861_v19 = vmul.f32 %v845_v32, %v3108_v62  ;;  %v814_v14 = vsub.f32 0.0, %v782_v15  ;;  %v816_v49 = vsub.f32 0.0, %v784_v63 }
 0x117   :  { %vm2617_vm7 = vcmp.eq.f32.partialorder %v3104_v18, 8.507059e+37  ;;  %v657_v59 = vmul.f32 %v641_v17, %v2516_v5  ;;  %v671_v3 = vadd.f32 0.2548296, %v655_v2  ;;  %v580_v13 = vadd.f32 -1.4531521, %v564_v47  ;;  %v3120_v47 = vld [vmem:[#allocation39_spill] sm:$0xff] }
 0x118   :  { %v594_v35 = vmul.f32 %v578_v54, %v2567_v9  ;;  %vm799_vm10 = vcmp.ge.f32.partialorder %v3111_v43, 0.0  ;;  %v3112_v61 = vand.u32 2147483647, %v2297_v16  ;;  %v883_v58 = vpack.c.bf16 %v861_v19, %v859_v57  ;;  %v3124_v57 = vld [vmem:[#allocation44_spill] sm:$0xff] }
 0x119   :  { %v830_v36 = vsel %vm798_vm14, %v782_v15, %v814_v14  ;;  %v832_v53 = vsel %vm800_vm15, %v784_v63, %v816_v49  ;;  %v457_v4 = vsel %vm2628_vm9, %v2134_v60, %v2242_v21  ;;  %v673_v25 = vadd.f32 0.2548296, %v657_v59  ;;  %v3118_v15 = vld [vmem:[#allocation16_spill] sm:$0xff]  ;;  %vm2686_vm15 = vmor %vm499_vm5, %vm500_vm3 }
 0x11a   :  { %vm2637_vm0 = vcmp.eq.f32.partialorder %v3112_v61, 8.507059e+37  ;;  %v846_v22 = vadd.f32 1.0, %v830_v36  ;;  %v848_v0 = vadd.f32 1.0, %v832_v53  ;;  %v687_v8 = vmul.f32 %v671_v3, %v2491_v40  ;;  %1055 = vmatmul.bf16.vlgmr.msra.gmra.mxu3 %v883_v58  ;;  %v3119_v63 = vld [vmem:[#allocation24_spill] sm:$0xff]  ;;  %vm531_vm3 = vmor %vm529_vm8, %vm530_vm6 }
 0x11b   :  { %vm801_vm12 = vcmp.ge.f32.partialorder %v3117_v20, 0.0  ;;  %vm515_vm14 = vweird.f32 %v2258_v10  ;;  %v596_v60 = vmul.f32 %v580_v13, %v2608_v7  ;;  %v610_v21 = vadd.f32 1.4214138, %v594_v35 }
 0x11c   :  { %v2664_v39 = vsel %vm2583_vm2, %v2200_v48, %v457_v4  ;;  %v487_v32 = vsel %vm2653_vm11, %v2206_v38, %v2360_v12  ;;  %v862_v40 = vmul.f32 %v846_v22, %v3118_v15  ;;  %v864_v17 = vmul.f32 %v848_v0, %v3119_v63  ;;  %v3121_v48 = vld [vmem:[#allocation49_spill] sm:$0xff] }
 0x11d   :  { %v689_v2 = vmul.f32 %v673_v25, %v2516_v5  ;;  %v767_v54 = vmul.f32 %v3120_v47, %v687_v8  ;;  %vm514_vm13 = vweird.f32 %v2191_v6  ;;  %v612_v18 = vadd.f32 1.4214138, %v596_v60  ;;  %v3128_v8 = vld [vmem:[#allocation20_spill] sm:$0xff] }
 0x11e   :  { %v626_v34 = vmul.f32 %v610_v21, %v2567_v9  ;;  %v2679_v51 = vsel %vm2597_vm4, %v3121_v48, %v487_v32  ;;  %v563_v38 = vmul.f32 1.0614054, %v2664_v39  ;;  %v884_v5 = vpack.c.bf16 %v864_v17, %v862_v40  ;;  %v3132_v32 = vld [vmem:[#allocation23_spill] sm:$0xff]  ;;  %v3133_v17 = vld [vmem:[#allocation22_spill] sm:$0xff]  ;;  %vm2745_vm8 = vmor %vm514_vm13, %vm515_vm14 }
 0x11f   :  { %v769_v62 = vmul.f32 %v3124_v57, %v689_v2  ;;  %v783_v19 = vsub.f32 1.0, %v767_v54  ;;  %v565_v14 = vmul.f32 1.0614054, %v2679_v51  ;;  %vm545_vm1 = vweird.f32 %v2438_v52 }
 0x120   :  { %v628_v30 = vmul.f32 %v612_v18, %v2608_v7  ;;  %v642_v49 = vadd.f32 -0.28449672, %v626_v34  ;;  %v579_v29 = vadd.f32 -1.4531521, %v563_v38  ;;  %v502_v31 = vsel %vm2686_vm15, %v2250_v50, %v2370_v37  ;;  %v3136_v34 = vld [vmem:[#allocation29_spill] sm:$0xff]  ;;  %v3137_v38 = vld [vmem:[#allocation46_spill] sm:$0xff] }
 0x121   :  { %v3125_v59 = vand.u32 2147483647, %v2191_v6  ;;  %v785_v13 = vsub.f32 1.0, %v769_v62  ;;  %v815_v35 = vsub.f32 0.0, %v783_v19  ;;  %v581_v61 = vadd.f32 -1.4531521, %v565_v14  ;;  %1031 = vmatmul.bf16.gmra.mxu2 %v884_v5 }
 0x122   :  { %v2711_v58 = vsel %vm2617_vm7, %v2326_v46, %v502_v31  ;;  %vm544_vm4 = vweird.f32 %v2349_v56  ;;  %v644_v50 = vadd.f32 -0.28449672, %v628_v30  ;;  %v658_v37 = vmul.f32 %v642_v49, %v2567_v9  ;;  %v3138_v30 = vld [vmem:[#allocation52_spill] sm:$0xff] }
 0x123   :  { %vm2700_vm2 = vcmp.eq.f32.partialorder %v3125_v59, 8.507059e+37  ;;  %v595_v36 = vmul.f32 %v579_v29, %v2664_v39  ;;  %v532_v53 = vsel %vm531_vm3, %v2380_v26, %v2462_v44  ;;  %v817_v16 = vsub.f32 0.0, %v785_v13  ;;  %vm2770_vm9 = vmor %vm544_vm4, %vm545_vm1 }
 0x124   :  { %v831_v4 = vsel %vm799_vm10, %v783_v19, %v815_v35  ;;  %v597_v45 = vmul.f32 %v581_v61, %v2679_v51  ;;  %v2724_v46 = vsel %vm2637_vm0, %v2393_v23, %v532_v53  ;;  %v660_v22 = vmul.f32 %v644_v50, %v2608_v7  ;;  %v3141_v53 = vld [vmem:[#allocation21_spill] sm:$0xff] }
 0x125   :  { %v847_v28 = vadd.f32 1.0, %v831_v4  ;;  %v674_v0 = vadd.f32 0.2548296, %v658_v37  ;;  %v611_v25 = vadd.f32 1.4214138, %v595_v36  ;;  %vm802_vm5 = vcmp.ge.f32.partialorder %v3128_v8, 0.0 }
 0x126   :  { %v3129_v26 = vand.u32 2147483647, %v2349_v56  ;;  %v833_v43 = vsel %vm801_vm12, %v785_v13, %v817_v16  ;;  %v613_v27 = vadd.f32 1.4214138, %v597_v45  ;;  %v566_v23 = vmul.f32 1.0614054, %v2711_v58 }
 0x127   :  { %v568_v60 = vmul.f32 1.0614054, %v2724_v46  ;;  %v849_v21 = vadd.f32 1.0, %v833_v43  ;;  %v863_v15 = vmul.f32 %v847_v28, %v3132_v32  ;;  %v676_v40 = vadd.f32 0.2548296, %v660_v22 }
 0x128   :  { %vm2730_vm6 = vcmp.eq.f32.partialorder %v3129_v26, 8.507059e+37  ;;  %v690_v63 = vmul.f32 %v674_v0, %v2567_v9  ;;  %vm804_vm7 = vcmp.ge.f32.partialorder %v3133_v17, 0.0  ;;  %v627_v2 = vmul.f32 %v611_v25, %v2664_v39  ;;  %v3145_v17 = vld [vmem:[#allocation34_spill] sm:$0xff] }
 0x129   :  { %v629_v47 = vmul.f32 %v613_v27, %v2679_v51  ;;  %v582_v54 = vadd.f32 -1.4531521, %v566_v23  ;;  %v584_v18 = vadd.f32 -1.4531521, %v568_v60  ;;  %v865_v48 = vmul.f32 %v849_v21, %v3136_v34  ;;  %v3143_v60 = vld [vmem:[#allocation54_spill] sm:$0xff] }
 0x12a   :  { %v692_v9 = vmul.f32 %v676_v40, %v2608_v7  ;;  %v770_v12 = vmul.f32 %v3137_v38, %v690_v63  ;;  %v517_v6 = vsel %vm2745_vm8, %v2258_v10, %v2373_v11  ;;  %v643_v5 = vadd.f32 -0.28449672, %v627_v2  ;;  %v3144_v40 = vld [vmem:[#allocation32_spill] sm:$0xff] }
 0x12b   :  { %v645_v57 = vadd.f32 -0.28449672, %v629_v47  ;;  %v598_v62 = vmul.f32 %v582_v54, %v2711_v58  ;;  %v600_v19 = vmul.f32 %v584_v18, %v2724_v46  ;;  %v885_v14 = vpack.c.bf16 %v865_v48, %v863_v15  ;;  %v3146_v48 = vld [vmem:[#allocation31_spill] sm:$0xff] }
 0x12c   :  { %v772_v49 = vmul.f32 %v3138_v30, %v692_v9  ;;  %v786_v29 = vsub.f32 1.0, %v770_v12  ;;  %v2764_v7 = vsel %vm2700_vm2, %v2335_v41, %v517_v6  ;;  %v659_v11 = vmul.f32 %v643_v5, %v2664_v39 }
 0x12d   :  { %v661_v31 = vmul.f32 %v645_v57, %v2679_v51  ;;  %v614_v59 = vadd.f32 1.4214138, %v598_v62  ;;  %v616_v13 = vadd.f32 1.4214138, %v600_v19  ;;  %1060 = vmatmul.bf16.gmra.mxu3 %v885_v14  ;;  %v547_v41 = vsel %vm2770_vm9, %v2438_v52, %v2498_v24 }
 0x12e   :  { %v788_v35 = vsub.f32 1.0, %v772_v49  ;;  %v818_v61 = vsub.f32 0.0, %v786_v29  ;;  %v567_v56 = vmul.f32 1.0614054, %v2764_v7  ;;  %v675_v3 = vadd.f32 0.2548296, %v659_v11 }
 0x12f   :  { %v677_v50 = vadd.f32 0.2548296, %v661_v31  ;;  %v630_v37 = vmul.f32 %v614_v59, %v2711_v58  ;;  %v632_v36 = vmul.f32 %v616_v13, %v2724_v46  ;;  %vm803_vm10 = vcmp.ge.f32.partialorder %v3141_v53, 0.0  ;;  %v3147_v11 = vld [vmem:[#allocation55_spill] sm:$0xff]  ;;  %v3148_v59 = vld [vmem:[#allocation33_spill] sm:$0xff] }
 0x130   :  { %v820_v16 = vsub.f32 0.0, %v788_v35  ;;  %v834_v4 = vsel %vm802_vm5, %v786_v29, %v818_v61  ;;  %v2789_v45 = vsel %vm2730_vm6, %v2455_v1, %v547_v41  ;;  %v583_v52 = vadd.f32 -1.4531521, %v567_v56  ;;  %v3142_v1 = vld [vmem:[#allocation51_spill] sm:$0xff] }
 0x131   :  { %v850_v24 = vadd.f32 1.0, %v834_v4  ;;  %v691_v28 = vmul.f32 %v675_v3, %v2664_v39  ;;  %v693_v22 = vmul.f32 %v677_v50, %v2679_v51  ;;  %v646_v0 = vadd.f32 -0.28449672, %v630_v37 }
 0x132   :  { %v836_v25 = vsel %vm804_vm7, %v788_v35, %v820_v16  ;;  %v648_v26 = vadd.f32 -0.28449672, %v632_v36  ;;  %v569_v43 = vmul.f32 1.0614054, %v2789_v45  ;;  %v599_v8 = vmul.f32 %v583_v52, %v2764_v7  ;;  %v3149_v35 = vld [vmem:[#allocation47_spill] sm:$0xff]  ;;  %v3151_v16 = vld [vmem:[#allocation48_spill] sm:$0xff] }
 0x133   :  { %v729_v27 = vsub.f32 0.0, %v2382_v55  ;;  %v852_v44 = vadd.f32 1.0, %v836_v25  ;;  %v771_v23 = vmul.f32 %v3142_v1, %v691_v28  ;;  %v773_v21 = vmul.f32 %v3143_v60, %v693_v22  ;;  %v3153_v22 = vld [vmem:[#allocation45_spill] sm:$0xff] }
 0x134   :  { %v662_v39 = vmul.f32 %v646_v0, %v2711_v58  ;;  %v664_v51 = vmul.f32 %v648_v26, %v2724_v46  ;;  %v585_v32 = vadd.f32 -1.4531521, %v569_v43  ;;  %v615_v15 = vadd.f32 1.4214138, %v599_v8 }
 0x135   :  { %v866_v63 = vmul.f32 %v850_v24, %v3144_v40  ;;  %v868_v20 = vmul.f32 %v852_v44, %v3145_v17  ;;  %v787_v2 = vsub.f32 1.0, %v771_v23  ;;  %v789_v47 = vsub.f32 1.0, %v773_v21  ;;  %v3152_v24 = vld [vmem:[#allocation36_spill] sm:$0xff] }
 0x136   :  { %v678_v54 = vadd.f32 0.2548296, %v662_v39  ;;  %v680_v18 = vadd.f32 0.2548296, %v664_v51  ;;  %v601_v55 = vmul.f32 %v585_v32, %v2789_v45  ;;  %v631_v34 = vmul.f32 %v615_v15, %v2764_v7  ;;  %v3154_v15 = vld [vmem:[#allocation41_spill] sm:$0xff] }
 0x137   :  { %vm805_vm0 = vcmp.ge.f32.partialorder %v3146_v48, 0.0  ;;  %v886_v9 = vpack.c.bf16 %v868_v20, %v866_v63  ;;  %v819_v38 = vsub.f32 0.0, %v787_v2  ;;  %v821_v12 = vsub.f32 0.0, %v789_v47  ;;  %v3155_v20 = vld [vmem:[#allocation53_spill] sm:$0xff] }
 0x138   :  { %v694_v6 = vmul.f32 %v678_v54, %v2711_v58  ;;  %v696_v5 = vmul.f32 %v680_v18, %v2724_v46  ;;  %v617_v57 = vadd.f32 1.4214138, %v601_v55  ;;  %v647_v62 = vadd.f32 -0.28449672, %v631_v34  ;;  %v3156_v54 = vld [vmem:[#allocation37_spill] sm:$0xff]  ;;  %v3157_v55 = vld [vmem:[#allocation50_spill] sm:$0xff] }
 0x139   :  { %1595 = vpow2.f32 %v2337_v33  ;;  %v760_v19 = vmul.f32 1.442695, %v729_v27  ;;  %1036 = vmatmul.bf16.gmra.mxu2 %v886_v9  ;;  %v835_v14 = vsel %vm803_vm10, %v787_v2, %v819_v38  ;;  %v837_v30 = vsel %vm805_vm0, %v789_v47, %v821_v12 }
 0x13a   :  { %v851_v49 = vadd.f32 1.0, %v835_v14  ;;  %v853_v29 = vadd.f32 1.0, %v837_v30  ;;  %v774_v10 = vmul.f32 %v2396_v42, %v694_v6  ;;  %v776_v31 = vmul.f32 %v3147_v11, %v696_v5  ;;  %v3150_v42 = vld [vmem:[#allocation40_spill] sm:$0xff]  ;;  %v1532_v6 = vld [vmem:[%s2947_s4] ss:$0 sm:$0xff]  ;;  %v1116_v11 = vld [vmem:[%s2948_s5 + $0x8] sm:$0xff] }
 0x13b   :  { %v633_v58 = vmul.f32 %v617_v57, %v2789_v45  ;;  %v663_v46 = vmul.f32 %v647_v62, %v2764_v7  ;;  %1597 = vpow2.f32 %v760_v19  ;;  %vm806_vm11 = vcmp.ge.f32.partialorder %v3150_v42, 0.0  ;;  %v1115_v19 = vld [vmem:[%s2948_s5] sm:$0xff] }
 0x13c   :  { %v867_v13 = vmul.f32 %v851_v49, %v3148_v59  ;;  %v869_v33 = vmul.f32 %v853_v29, %v3149_v35  ;;  %v790_v61 = vsub.f32 1.0, %v774_v10  ;;  %v792_v41 = vsub.f32 1.0, %v776_v31 }
 0x13d   :  { %v649_v56 = vadd.f32 -0.28449672, %v633_v58  ;;  %v679_v3 = vadd.f32 0.2548296, %v663_v46  ;;  %vm808_vm12 = vcmp.ge.f32.partialorder %v3151_v16, 0.0  ;;  %v246_v28 = vmul.f32 0.5, %v3152_v24 }
 0x13e   :  { %v887_v50 = vpack.c.bf16 %v869_v33, %v867_v13  ;;  %v822_v37 = vsub.f32 0.0, %v790_v61  ;;  %v824_v36 = vsub.f32 0.0, %v792_v41  ;;  %v248_v0 = vmul.f32 0.5, %v3153_v22  ;;  %v1117_v13 = vld [vmem:[%s2948_s5 + $0x10] sm:$0xff]  ;;  %v1119_v16 = vld [vmem:[%s2948_s5 + $0x20] sm:$0xff] }
 0x13f   :  { %v1596_v53 = vpop.eup %1595  ;;  %v665_v4 = vmul.f32 %v649_v56, %v2789_v45  ;;  %v695_v52 = vmul.f32 %v679_v3, %v2764_v7  ;;  %vm807_vm14 = vcmp.ge.f32.partialorder %v3154_v15, 0.0  ;;  %vm809_vm13 = vcmp.ge.f32.partialorder %v3155_v20, 0.0  ;;  %v1118_v3 = vld [vmem:[%s2948_s5 + $0x18] sm:$0xff] }
 0x140   :  { %1065 = vmatmul.bf16.gmra.mxu3 %v887_v50  ;;  %v838_v25 = vsel %vm806_vm11, %v790_v61, %v822_v37  ;;  %v840_v26 = vsel %vm808_vm12, %v792_v41, %v824_v36  ;;  %v247_v18 = vmul.f32 0.5, %v3156_v54  ;;  %v249_v34 = vmul.f32 0.5, %v3157_v55 }
 0x141   :  { %v854_v43 = vadd.f32 1.0, %v838_v25  ;;  %v856_v8 = vadd.f32 1.0, %v840_v26  ;;  %v681_v27 = vadd.f32 0.2548296, %v665_v4  ;;  %v775_v44 = vmul.f32 %v1596_v53, %v695_v52  ;;  %v1598_v39 = vpop.eup %1597 }
 0x142   :  { %v1643_v15 = vmov 128.0  }
 0x143   :  { %v870_v1 = vmul.f32 %v854_v43, %v246_v28  ;;  %v872_v23 = vmul.f32 %v856_v8, %v248_v0  ;;  %v697_v60 = vmul.f32 %v681_v27, %v2789_v45  ;;  %v791_v21 = vsub.f32 1.0, %v775_v44  ;;  %v1120_v0 = vld [vmem:[%s2948_s5 + $0x28] sm:$0xff]  ;;  %v1121_v44 = vld [vmem:[%s2948_s5 + $0x30] sm:$0xff] }
 0x144   :  { %1599 = vrcp.f32 %v1643_v15 }
 0x145   :  { %v888_v51 = vpack.c.bf16 %v872_v23, %v870_v1  ;;  %v777_v32 = vmul.f32 %v1598_v39, %v697_v60  ;;  %v823_v7 = vsub.f32 0.0, %v791_v21 }
 0x147   :  { %v793_v40 = vsub.f32 1.0, %v777_v32  ;;  %v839_v63 = vsel %vm807_vm14, %v791_v21, %v823_v7 }
 0x148   :  { %v855_v2 = vadd.f32 1.0, %v839_v63 }
 0x149   :  { %1041 = vmatmul.bf16.gmra.mxu2 %v888_v51  ;;  %v825_v17 = vsub.f32 0.0, %v793_v40  ;;  %v1122_v51 = vld [vmem:[%s2948_s5 + $0x38] sm:$0xff] }
 0x14a   :  { %v871_v48 = vmul.f32 %v855_v2, %v247_v18 }
 0x14b   :  { %v841_v47 = vsel %vm809_vm13, %v793_v40, %v825_v17  ;;  %v1600_v40 = vpop.eup %1599 }
 0x14c   :  { %v857_v45 = vadd.f32 1.0, %v841_v47  ;;  %v1148_v63 = vmul.f32 128.0, %v1600_v40  ;;  %vm1152_vm15 = vweird.f32 %v1600_v40 }
 0x14e   :  { %v873_v9 = vmul.f32 %v857_v45, %v249_v34  ;;  %v1149_v17 = vsub.f32 1.0, %v1148_v63 }
 0x150   :  { %v889_v38 = vpack.c.bf16 %v873_v9, %v871_v48  ;;  %v1150_v20 = vmul.f32 %v1600_v40, %v1149_v17 }
 0x152   :  { %1070 = vmatmul.bf16.gmra.mxu3 %v889_v38  ;;  %v1151_v2 = vadd.f32 %v1600_v40, %v1150_v20 }
 0x154   :  { %v2856_v47 = vsel %vm1152_vm15, %v1600_v40, %v1151_v2 }
 0x194   :  { %v1027_v12 = vpop.f32.mrf.mxu2 }
 0x19c   :  { %v1029_v62 = vpop.f32.mrf.mxu2 }
 0x19d   :  { %v1056_v5 = vpop.f32.mrf.mxu3 }
 0x19e   :  { %v1057_v57 = vadd.f32 %v1056_v5, %v1027_v12 }
 0x1a0   :  { %v1107_v14 = vadd.f32 %v1532_v6, %v1057_v57 }
 0x1a2   :  { %v1123_v30 = vadd.f32 %v1115_v19, %v1107_v14 }
 0x1a4   :  { %1131 = vadd.xlane.f32.xlu0 %v1123_v30  ;;  %v1032_v10 = vpop.f32.mrf.mxu2 }
 0x1a5   :  { %v1058_v49 = vpop.f32.mrf.mxu3 }
 0x1a6   :  { %v1059_v29 = vadd.f32 %v1058_v49, %v1029_v62 }
 0x1a8   :  { %v1108_v31 = vadd.f32 %v1532_v6, %v1059_v29 }
 0x1aa   :  { %v1124_v58 = vadd.f32 %v1116_v11, %v1108_v31 }
 0x1ac   :  { %1133 = vadd.xlane.f32.xlu0 %v1124_v58  ;;  %v1034_v35 = vpop.f32.mrf.mxu2 }
 0x1b0   :  { %v1061_v46 = vpop.f32.mrf.mxu3 }
 0x1b1   :  { %v1062_v59 = vadd.f32 %v1061_v46, %v1032_v10 }
 0x1b3   :  { %v1109_v33 = vadd.f32 %v1532_v6, %v1062_v59 }
 0x1b5   :  { %v1125_v61 = vadd.f32 %v1117_v13, %v1109_v33 }
 0x1b7   :  { %1135 = vadd.xlane.f32.xlu1 %v1125_v61 }
 0x1b8   :  { %v1063_v41 = vpop.f32.mrf.mxu3 }
 0x1b9   :  { %v1064_v56 = vadd.f32 %v1063_v41, %v1034_v35 }
 0x1bb   :  { %v1110_v50 = vadd.f32 %v1532_v6, %v1064_v56 }
 0x1bc   :  { %v1037_v37 = vpop.f32.mrf.mxu2 }
 0x1bd   :  { %v1126_v36 = vadd.f32 %v1118_v3, %v1110_v50 }
 0x1bf   :  { %1137 = vadd.xlane.f32.xlu1 %v1126_v36 }
 0x1c3   :  { %v1066_v53 = vpop.f32.mrf.mxu3 }
 0x1c4   :  { %v1067_v42 = vadd.f32 %v1066_v53, %v1037_v37  ;;  %v1039_v52 = vpop.f32.mrf.mxu2 }
 0x1c6   :  { %v1111_v4 = vadd.f32 %v1532_v6, %v1067_v42 }
 0x1c8   :  { %v1127_v24 = vadd.f32 %v1119_v16, %v1111_v4 }
 0x1ca   :  { %1139 = vadd.xlane.f32.xlu2 %v1127_v24 }
 0x1cb   :  { %v1068_v28 = vpop.f32.mrf.mxu3 }
 0x1cc   :  { %v1069_v22 = vadd.f32 %v1068_v28, %v1039_v52  ;;  %v1042_v43 = vpop.f32.mrf.mxu2 }
 0x1ce   :  { %v1112_v25 = vadd.f32 %v1532_v6, %v1069_v22 }
 0x1d0   :  { %v1128_v26 = vadd.f32 %v1120_v0, %v1112_v25 }
 0x1d2   :  { %1141 = vadd.xlane.f32.xlu2 %v1128_v26 }
 0x1d4   :  { %v1044_v60 = vpop.f32.mrf.mxu2 }
 0x1d5   :  { %v1071_v8 = vpop.f32.mrf.mxu3 }
 0x1d6   :  { %v1072_v27 = vadd.f32 %v1071_v8, %v1042_v43 }
 0x1d8   :  { %v1113_v1 = vadd.f32 %v1532_v6, %v1072_v27 }
 0x1da   :  { %v1129_v23 = vadd.f32 %v1121_v44, %v1113_v1  ;;  %v2904_v1 = vld [vmem:[%s2949_s6] ss:$0 sm:$0xff]  ;;  %s1644_s6 = smov [#allocation3]  }
 0x1dc   :  { %1143 = vadd.xlane.f32.xlu0 %v1129_v23 }
 0x1dd   :  { %v1073_v21 = vpop.f32.mrf.mxu3 }
 0x1de   :  { %v1074_v39 = vadd.f32 %v1073_v21, %v1044_v60  ;;  %v2909_v21 = vld [vmem:[%s2950_s7] ss:$0 sm:$0xff]  ;;  %s1334_s7 = sshll.u32 %s1644_s6, 4  ;;  %s1335_s7 = int_to_ptr.vmem [resolvable:$true] %s1334_s7 }
 0x1e0   :  { %v1114_v32 = vadd.f32 %v1532_v6, %v1074_v39 }
 0x1e2   :  { %v1130_v7 = vadd.f32 %v1122_v51, %v1114_v32 }
 0x1e4   :  { %1145 = vadd.xlane.f32.xlu1 %v1130_v7 }
 0x217   :  { %v1132_v54 = vpop.xlane.xlu0 %1131 }
 0x218   :  { %v1154_v18 = vmul.f32 %v2856_v47, %v1132_v54 }
 0x21a   :  { %v2859_v55 = vsub.f32 %v1123_v30, %v1154_v18 }
 0x21c   :  { %v1170_v34 = vmul.f32 %v2859_v55, %v2859_v55 }
 0x21e   :  { %1178 = vadd.xlane.f32.xlu2 %v1170_v34 }
 0x21f   :  { %v1134_v45 = vpop.xlane.xlu0 %1133 }
 0x220   :  { %v1155_v48 = vmul.f32 %v2856_v47, %v1134_v45 }
 0x222   :  { %v2864_v9 = vsub.f32 %v1124_v58, %v1155_v48 }
 0x224   :  { %v1171_v38 = vmul.f32 %v2864_v9, %v2864_v9 }
 0x226   :  { %1180 = vadd.xlane.f32.xlu0 %v1171_v38 }
 0x22a   :  { %v1136_v12 = vpop.xlane.xlu1 %1135 }
 0x22b   :  { %v1156_v6 = vmul.f32 %v2856_v47, %v1136_v12 }
 0x22d   :  { %v2869_v5 = vsub.f32 %v1125_v61, %v1156_v6 }
 0x22f   :  { %v1172_v57 = vmul.f32 %v2869_v5, %v2869_v5 }
 0x231   :  { %1182 = vadd.xlane.f32.xlu1 %v1172_v57 }
 0x232   :  { %v1138_v62 = vpop.xlane.xlu1 %1137 }
 0x233   :  { %v1157_v19 = vmul.f32 %v2856_v47, %v1138_v62 }
 0x235   :  { %v2874_v14 = vsub.f32 %v1126_v36, %v1157_v19 }
 0x237   :  { %v1173_v30 = vmul.f32 %v2874_v14, %v2874_v14 }
 0x239   :  { %1184 = vadd.xlane.f32.xlu2 %v1173_v30 }
 0x23d   :  { %v1140_v49 = vpop.xlane.xlu2 %1139 }
 0x23e   :  { %v1158_v29 = vmul.f32 %v2856_v47, %v1140_v49 }
 0x240   :  { %v2879_v10 = vsub.f32 %v1127_v24, %v1158_v29 }
 0x242   :  { %v1174_v11 = vmul.f32 %v2879_v10, %v2879_v10 }
 0x244   :  { %1186 = vadd.xlane.f32.xlu0 %v1174_v11 }
 0x245   :  { %v1142_v31 = vpop.xlane.xlu2 %1141 }
 0x246   :  { %v1159_v58 = vmul.f32 %v2856_v47, %v1142_v31 }
 0x248   :  { %v2884_v46 = vsub.f32 %v1128_v26, %v1159_v58 }
 0x24a   :  { %v1175_v59 = vmul.f32 %v2884_v46, %v2884_v46 }
 0x24c   :  { %1188 = vadd.xlane.f32.xlu1 %v1175_v59 }
 0x24f   :  { %v1144_v13 = vpop.xlane.xlu0 %1143 }
 0x250   :  { %v1160_v35 = vmul.f32 %v2856_v47, %v1144_v13 }
 0x252   :  { %v2889_v33 = vsub.f32 %v1129_v23, %v1160_v35 }
 0x254   :  { %v1176_v61 = vmul.f32 %v2889_v33, %v2889_v33 }
 0x256   :  { %1190 = vadd.xlane.f32.xlu2 %v1176_v61 }
 0x257   :  { %v1146_v41 = vpop.xlane.xlu1 %1145 }
 0x258   :  { %v1161_v56 = vmul.f32 %v2856_v47, %v1146_v41 }
 0x25a   :  { %v2894_v3 = vsub.f32 %v1130_v7, %v1161_v56 }
 0x25c   :  { %v1177_v50 = vmul.f32 %v2894_v3, %v2894_v3 }
 0x25e   :  { %1192 = vadd.xlane.f32.xlu0 %v1177_v50 }
 0x291   :  { %v1179_v37 = vpop.xlane.xlu2 %1178 }
 0x292   :  { %v1194_v36 = vmul.f32 %v1179_v37, %v2856_v47 }
 0x294   :  { %v1202_v53 = vadd.f32 1e-12, %v1194_v36 }
 0x296   :  { %1601 = vrsqrt.f32 %v1202_v53  ;;  %vm1216_vm2 = vweird.f32 %v1202_v53 }
 0x299   :  { %v1181_v42 = vpop.xlane.xlu0 %1180 }
 0x29a   :  { %v1195_v16 = vmul.f32 %v1181_v42, %v2856_v47 }
 0x29c   :  { %v1602_v4 = vpop.eup %1601  ;;  %v1203_v52 = vadd.f32 1e-12, %v1195_v16 }
 0x29d   :  { %v1211_v24 = vmul.f32 %v1602_v4, %v1202_v53  ;;  %vm1217_vm1 = vweird.f32 %v1602_v4 }
 0x29e   :  { %1603 = vrsqrt.f32 %v1203_v52  ;;  %vm1218_vm3 = vmor %vm1216_vm2, %vm1217_vm1  ;;  %vm1226_vm5 = vweird.f32 %v1203_v52 }
 0x29f   :  { %v1212_v28 = vmul.f32 %v1602_v4, %v1211_v24 }
 0x2a1   :  { %v1213_v22 = vmul.f32 0.5, %v1212_v28 }
 0x2a3   :  { %v1214_v26 = vsub.f32 1.5, %v1213_v22 }
 0x2a4   :  { %v1183_v0 = vpop.xlane.xlu1 %1182  ;;  %v1604_v43 = vpop.eup %1603 }
 0x2a5   :  { %v1196_v25 = vmul.f32 %v1183_v0, %v2856_v47  ;;  %v1215_v27 = vmul.f32 %v1602_v4, %v1214_v26  ;;  %v1221_v44 = vmul.f32 %v1604_v43, %v1203_v52  ;;  %vm1227_vm4 = vweird.f32 %v1604_v43 }
 0x2a6   :  { %vm1228_vm6 = vmor %vm1226_vm5, %vm1227_vm4 }
 0x2a7   :  { %v1204_v8 = vadd.f32 1e-12, %v1196_v25  ;;  %v1219_v23 = vsel %vm1218_vm3, %v1602_v4, %v1215_v27  ;;  %v1222_v60 = vmul.f32 %v1604_v43, %v1221_v44 }
 0x2a8   :  { %v1290_v39 = vmul.f32 %v1219_v23, %v2859_v55 }
 0x2a9   :  { %1605 = vrsqrt.f32 %v1204_v8  ;;  %v1223_v51 = vmul.f32 0.5, %v1222_v60  ;;  %vm1236_vm8 = vweird.f32 %v1204_v8 }
 0x2aa   :  { %v1302_v7 = vmul.f32 %v2904_v1, %v1290_v39 }
 0x2ab   :  { %v1224_v40 = vsub.f32 1.5, %v1223_v51 }
 0x2ac   :  { %v1185_v32 = vpop.xlane.xlu2 %1184  ;;  %v1314_v17 = vadd.f32 %v2909_v21, %v1302_v7 }
 0x2ad   :  { %v1197_v15 = vmul.f32 %v1185_v32, %v2856_v47  ;;  %v1225_v2 = vmul.f32 %v1604_v43, %v1224_v40 }
 0x2ae   :  { %1322 = vst [vmem:[#allocation3] sm:$0xff] %v1314_v17 }
 0x2af   :  { %v1606_v63 = vpop.eup %1605  ;;  %v1205_v20 = vadd.f32 1e-12, %v1197_v15  ;;  %v1229_v18 = vsel %vm1228_vm6, %v1604_v43, %v1225_v2 }
 0x2b0   :  { %v1231_v54 = vmul.f32 %v1606_v63, %v1204_v8  ;;  %v1291_v34 = vmul.f32 %v1229_v18, %v2864_v9  ;;  %vm1237_vm7 = vweird.f32 %v1606_v63 }
 0x2b1   :  { %1607 = vrsqrt.f32 %v1205_v20  ;;  %vm1238_vm9 = vmor %vm1236_vm8, %vm1237_vm7  ;;  %vm1246_vm0 = vweird.f32 %v1205_v20 }
 0x2b2   :  { %v1232_v55 = vmul.f32 %v1606_v63, %v1231_v54  ;;  %v1303_v48 = vmul.f32 %v2904_v1, %v1291_v34 }
 0x2b4   :  { %v1233_v45 = vmul.f32 0.5, %v1232_v55  ;;  %v1315_v57 = vadd.f32 %v2909_v21, %v1303_v48 }
 0x2b6   :  { %v1234_v38 = vsub.f32 1.5, %v1233_v45  ;;  %1323 = vst [vmem:[#allocation3 + $0x8] sm:$0xff] %v1315_v57 }
 0x2b7   :  { %v1187_v12 = vpop.xlane.xlu0 %1186  ;;  %v1608_v6 = vpop.eup %1607 }
 0x2b8   :  { %v1198_v62 = vmul.f32 %v1187_v12, %v2856_v47  ;;  %v1235_v19 = vmul.f32 %v1606_v63, %v1234_v38  ;;  %v1241_v30 = vmul.f32 %v1608_v6, %v1205_v20  ;;  %vm1247_vm10 = vweird.f32 %v1608_v6 }
 0x2b9   :  { %vm1248_vm11 = vmor %vm1246_vm0, %vm1247_vm10 }
 0x2ba   :  { %v1206_v49 = vadd.f32 1e-12, %v1198_v62  ;;  %v1239_v29 = vsel %vm1238_vm9, %v1606_v63, %v1235_v19  ;;  %v1242_v11 = vmul.f32 %v1608_v6, %v1241_v30 }
 0x2bb   :  { %v1292_v9 = vmul.f32 %v1239_v29, %v2869_v5 }
 0x2bc   :  { %1609 = vrsqrt.f32 %v1206_v49  ;;  %v1243_v31 = vmul.f32 0.5, %v1242_v11  ;;  %vm1256_vm14 = vweird.f32 %v1206_v49 }
 0x2bd   :  { %v1304_v58 = vmul.f32 %v2904_v1, %v1292_v9 }
 0x2be   :  { %v1244_v59 = vsub.f32 1.5, %v1243_v31 }
 0x2bf   :  { %v1189_v13 = vpop.xlane.xlu1 %1188  ;;  %v1316_v35 = vadd.f32 %v2909_v21, %v1304_v58 }
 0x2c0   :  { %v1199_v61 = vmul.f32 %v1189_v13, %v2856_v47  ;;  %v1245_v41 = vmul.f32 %v1608_v6, %v1244_v59 }
 0x2c1   :  { %1324 = vst [vmem:[#allocation3 + $0x10] sm:$0xff] %v1316_v35 }
 0x2c2   :  { %v1610_v56 = vpop.eup %1609  ;;  %v1207_v50 = vadd.f32 1e-12, %v1199_v61  ;;  %v1249_v37 = vsel %vm1248_vm11, %v1608_v6, %v1245_v41 }
 0x2c3   :  { %v1251_v36 = vmul.f32 %v1610_v56, %v1206_v49  ;;  %v1293_v5 = vmul.f32 %v1249_v37, %v2874_v14  ;;  %vm1257_vm12 = vweird.f32 %v1610_v56 }
 0x2c4   :  { %1611 = vrsqrt.f32 %v1207_v50  ;;  %vm1258_vm13 = vmor %vm1256_vm14, %vm1257_vm12  ;;  %vm1266_vm1 = vweird.f32 %v1207_v50 }
 0x2c5   :  { %v1252_v53 = vmul.f32 %v1610_v56, %v1251_v36  ;;  %v1305_v42 = vmul.f32 %v2904_v1, %v1293_v5 }
 0x2c7   :  { %v1253_v16 = vmul.f32 0.5, %v1252_v53  ;;  %v1317_v4 = vadd.f32 %v2909_v21, %v1305_v42 }
 0x2c9   :  { %v1254_v52 = vsub.f32 1.5, %v1253_v16  ;;  %v1191_v24 = vpop.xlane.xlu2 %1190  ;;  %1325 = vst [vmem:[#allocation3 + $0x18] sm:$0xff] %v1317_v4 }
 0x2ca   :  { %v1612_v28 = vpop.eup %1611  ;;  %v1200_v22 = vmul.f32 %v1191_v24, %v2856_v47 }
 0x2cb   :  { %v1255_v0 = vmul.f32 %v1610_v56, %v1254_v52  ;;  %v1261_v25 = vmul.f32 %v1612_v28, %v1207_v50  ;;  %vm1267_vm15 = vweird.f32 %v1612_v28 }
 0x2cc   :  { %v1208_v26 = vadd.f32 1e-12, %v1200_v22  ;;  %vm1268_vm2 = vmor %vm1266_vm1, %vm1267_vm15 }
 0x2cd   :  { %v1259_v14 = vsel %vm1258_vm13, %v1610_v56, %v1255_v0  ;;  %v1262_v43 = vmul.f32 %v1612_v28, %v1261_v25 }
 0x2ce   :  { %v1294_v8 = vmul.f32 %v1259_v14, %v2879_v10  ;;  %1613 = vrsqrt.f32 %v1208_v26  ;;  %vm1276_vm4 = vweird.f32 %v1208_v26 }
 0x2cf   :  { %v1263_v27 = vmul.f32 0.5, %v1262_v43 }
 0x2d0   :  { %v1306_v44 = vmul.f32 %v2904_v1, %v1294_v8 }
 0x2d1   :  { %v1264_v23 = vsub.f32 1.5, %v1263_v27  ;;  %v1193_v60 = vpop.xlane.xlu0 %1192 }
 0x2d2   :  { %v1318_v39 = vadd.f32 %v2909_v21, %v1306_v44  ;;  %v1201_v51 = vmul.f32 %v1193_v60, %v2856_v47 }
 0x2d3   :  { %v1265_v32 = vmul.f32 %v1612_v28, %v1264_v23 }
 0x2d4   :  { %v1614_v7 = vpop.eup %1613  ;;  %1326 = vst [vmem:[#allocation3 + $0x20] sm:$0xff] %v1318_v39  ;;  %v1209_v15 = vadd.f32 1e-12, %v1201_v51 }
 0x2d5   :  { %v1269_v40 = vsel %vm1268_vm2, %v1612_v28, %v1265_v32  ;;  %v1271_v63 = vmul.f32 %v1614_v7, %v1208_v26  ;;  %vm1277_vm3 = vweird.f32 %v1614_v7 }
 0x2d6   :  { %v1295_v10 = vmul.f32 %v1269_v40, %v2884_v46  ;;  %1615 = vrsqrt.f32 %v1209_v15  ;;  %vm1278_vm5 = vmor %vm1276_vm4, %vm1277_vm3  ;;  %vm1286_vm7 = vweird.f32 %v1209_v15 }
 0x2d7   :  { %v1272_v17 = vmul.f32 %v1614_v7, %v1271_v63 }
 0x2d8   :  { %v1307_v20 = vmul.f32 %v2904_v1, %v1295_v10 }
 0x2d9   :  { %v1273_v2 = vmul.f32 0.5, %v1272_v17 }
 0x2da   :  { %v1319_v54 = vadd.f32 %v2909_v21, %v1307_v20 }
 0x2db   :  { %v1274_v18 = vsub.f32 1.5, %v1273_v2 }
 0x2dc   :  { %v1616_v47 = vpop.eup %1615  ;;  %1327 = vst [vmem:[#allocation3 + $0x28] sm:$0xff] %v1319_v54 }
 0x2dd   :  { %v1275_v55 = vmul.f32 %v1614_v7, %v1274_v18  ;;  %v1281_v34 = vmul.f32 %v1616_v47, %v1209_v15  ;;  %vm1287_vm6 = vweird.f32 %v1616_v47 }
 0x2de   :  { %vm1288_vm8 = vmor %vm1286_vm7, %vm1287_vm6 }
 0x2df   :  { %v1279_v45 = vsel %vm1278_vm5, %v1614_v7, %v1275_v55  ;;  %v1282_v48 = vmul.f32 %v1616_v47, %v1281_v34 }
 0x2e0   :  { %v1296_v38 = vmul.f32 %v1279_v45, %v2889_v33 }
 0x2e1   :  { %v1283_v46 = vmul.f32 0.5, %v1282_v48 }
 0x2e2   :  { %v1308_v12 = vmul.f32 %v2904_v1, %v1296_v38 }
 0x2e3   :  { %v1284_v6 = vsub.f32 1.5, %v1283_v46 }
 0x2e4   :  { %v1320_v57 = vadd.f32 %v2909_v21, %v1308_v12 }
 0x2e5   :  { %v1285_v62 = vmul.f32 %v1616_v47, %v1284_v6 }
 0x2e6   :  { %1328 = vst [vmem:[#allocation3 + $0x30] sm:$0xff] %v1320_v57 }
 0x2e7   :  { %v1289_v19 = vsel %vm1288_vm8, %v1616_v47, %v1285_v62 }
 0x2e8   :  { %v1297_v30 = vmul.f32 %v1289_v19, %v2894_v3 }
 0x2ea   :  { %v1309_v33 = vmul.f32 %v2904_v1, %v1297_v30 }
 0x2ec   :  { %v1321_v49 = vadd.f32 %v2909_v21, %v1309_v33 }
 0x2ee   :  { %1329 = vst [vmem:[#allocation3 + $0x38] sm:$0xff] %v1321_v49 }
 0x2ef   :  { %1342 = dma.vmem_to_hbm [thread:$0]  %s1335_s7, 1024, %s1337_s13, [#allocation4], %s1645_s14, %s1645_s14, %s1646_s15  }
 0x2f0   :  { %1641 = dma.done.wait [#allocation4], 1024  }
 0x2f1   :  { %1642 = vsyncadd [#allocation4], 4294966272 }
 0x2f2   :  { %1347 = vsyncpa [#allocation4], 1 }

</bundles_post_ra>
